<compile_context>
chip_gen: v7x
topology: tpu7x:2x2x1
jax: 0.10.0
libtpu: 0.0.40
codegen_flags: <defaults>
</compile_context>

<pallas_src>
import functools
import math

import numpy as np

import jax
import jax.numpy as jnp
from jax import lax
from jax.experimental import pallas as pl
from jax.experimental.pallas import tpu as pltpu


_VMEM_LIMIT = 32 * 1024 * 1024  # safe on v5e/v6e (128 MiB phys) and v7x (64 MiB)


def _cparams():
    # Single 1-D "parallel" grid axis (batch) so the v7x megacore can shard it.
    return pltpu.CompilerParams(
        dimension_semantics=("parallel",),
        vmem_limit_bytes=_VMEM_LIMIT,
    )


# ----------------------------------------------------------------------------
# BlockSpec helpers
# ----------------------------------------------------------------------------

def _rep(arr):
    """Whole-array block, identical for every grid step (weights stay resident)."""
    nd = arr.ndim
    return pl.BlockSpec(arr.shape, lambda b, _n=nd: (0,) * _n)


def _per_batch(shape):
    """Per-batch block with the (squeezed) leading batch dim selected by the grid."""
    n = len(shape)
    return pl.BlockSpec((None,) + tuple(shape), lambda b, _n=n: (b,) + (0,) * _n)


# ----------------------------------------------------------------------------
# In-kernel math helpers (bf16 MXU operands, f32 accumulation / statistics)
# ----------------------------------------------------------------------------

def _mm(a, w_bf16):
    return jnp.dot(a.astype(jnp.bfloat16), w_bf16, preferred_element_type=jnp.float32)


def _layer_norm(y, g, b, eps):
    mean = jnp.mean(y, axis=-1, keepdims=True)
    c = y - mean
    var = jnp.mean(c * c, axis=-1, keepdims=True)
    return c * lax.rsqrt(var + eps) * g + b


def _attention(x_q, kv_src, w_in, b_in, w_o, b_o, ln_g, ln_b, neg_mask,
               *, num_heads, eps):
    """Post-LN MHA sub-layer: LayerNorm(x_q + MHA(x_q, kv_src, kv_src)).

    w_in: packed [E, 3E] in-projection (q|k|v, == in_proj_weight.T), b_in [1, 3E].
    neg_mask: additive [Lq, Lk] causal mask (0 / -1e30) or None.
    """
    l_q, e = x_q.shape
    dh = e // num_heads
    scale = 1.0 / math.sqrt(dh)

    if kv_src is x_q:
        # self-attention: one packed [L,E]@[E,3E] matmul, then split q|k|v
        qkv = _mm(x_q, w_in) + b_in
        q, k, v = qkv[:, :e], qkv[:, e:2 * e], qkv[:, 2 * e:]
    else:
        # cross-attention: q from the target, packed k|v from memory
        q = _mm(x_q, w_in[:, :e]) + b_in[:, :e]
        kv = _mm(kv_src, w_in[:, e:]) + b_in[:, e:]
        k, v = kv[:, :e], kv[:, e:]

    y = jnp.zeros((l_q, e), jnp.float32)
    for h in range(num_heads):
        sl = slice(h * dh, (h + 1) * dh)
        qh = q[:, sl].astype(jnp.bfloat16)
        kh = k[:, sl].astype(jnp.bfloat16)
        vh = v[:, sl].astype(jnp.bfloat16)
        # scores: q @ k^T (transpose_rhs matmul), softmax kept in f32
        s = lax.dot_general(qh, kh, (((1,), (1,)), ((), ())),
                            preferred_element_type=jnp.float32) * scale
        if neg_mask is not None:
            s = s + neg_mask
        s = s - jnp.max(s, axis=-1, keepdims=True)
        p = jnp.exp(s)
        p = p / jnp.sum(p, axis=-1, keepdims=True)          # exact softmax
        ctx = jnp.dot(p.astype(jnp.bfloat16), vh,
                      preferred_element_type=jnp.float32)    # [Lq, dh]
        # out-projection accumulated per head (== concat-heads @ w_o)
        y = y + jnp.dot(ctx.astype(jnp.bfloat16), w_o[sl, :],
                        preferred_element_type=jnp.float32)

    y = y + b_o + x_q                                        # residual
    return _layer_norm(y, ln_g, ln_b, eps)


# ----------------------------------------------------------------------------
# Kernel 1: fused BEV encoder (AnyStage depth=4 + 1x1 proj + 2D pos emb)
# ----------------------------------------------------------------------------

def _bev_encoder_kernel(x_ref, shift_ref, wa_ref, ba_ref, wb_ref, bb_ref,
                        wc_ref, bc_ref, wp_ref, bp_ref, pe_ref, o_ref, *, depth):
    flat = x_ref[...]                                        # [HW, Cin] f32
    for i in range(depth):
        # ResBottleneckBlock i (BatchNorms folded; group_width == width -> dense conv)
        a = jnp.maximum(_mm(flat, wa_ref[i]) + ba_ref[i], 0.0)        # 1x1 conv_a + ReLU
        a16 = a.astype(jnp.bfloat16)
        conv = bb_ref[i]                                              # [1, C] bias
        for t in range(9):
            # pad-free 3x3 conv tap: shift-matrix gather (exact 0/1) then tap weight
            shifted = jnp.dot(shift_ref[t], a16,
                              preferred_element_type=jnp.float32)     # [HW, C]
            conv = conv + jnp.dot(shifted.astype(jnp.bfloat16), wb_ref[i, t],
                                  preferred_element_type=jnp.float32)
        b_act = jnp.maximum(conv, 0.0)                                # 3x3 conv_b + ReLU
        c = _mm(b_act, wc_ref[i]) + bc_ref[i]                         # 1x1 conv_c
        flat = jnp.maximum(flat + c, 0.0)                             # residual + ReLU
    # Conv2d(bev_dim, dim, 1) + LearnedPositionalEncoding2d
    y = _mm(flat, wp_ref[...]) + bp_ref[...] + pe_ref[...]
    o_ref[...] = y.astype(o_ref.dtype)


def bev_encoder(p, bev_nchw):
    B, C, H, W = bev_nchw.shape
    HW = H * W
    dim = p["proj_w"].shape[1]
    depth = p["conv_a_w"].shape[0]
    x = jnp.transpose(bev_nchw, (0, 2, 3, 1)).reshape(B, HW, C)       # NCHW -> [B, HW, C]
    return pl.pallas_call(
        functools.partial(_bev_encoder_kernel, depth=depth),
        out_shape=jax.ShapeDtypeStruct((B, HW, dim), jnp.float32),
        grid=(B,),
        in_specs=[
            _per_batch((HW, C)),
            _rep(p["shift"]),
            _rep(p["conv_a_w"]), _rep(p["conv_a_b"]),
            _rep(p["conv_b_w"]), _rep(p["conv_b_b"]),
            _rep(p["conv_c_w"]), _rep(p["conv_c_b"]),
            _rep(p["proj_w"]), _rep(p["proj_b"]),
            _rep(p["pos_emb_2d"]),
        ],
        out_specs=_per_batch((HW, dim)),
        compiler_params=_cparams(),
    )(x, p["shift"], p["conv_a_w"], p["conv_a_b"], p["conv_b_w"], p["conv_b_b"],
      p["conv_c_w"], p["conv_c_b"], p["proj_w"], p["proj_b"], p["pos_emb_2d"])


# ----------------------------------------------------------------------------
# Kernel 2: fused pos_encoder + static add + ae decode + ALL decoder layers +
#           final pos_decoder
# ----------------------------------------------------------------------------

def _path_decoder_kernel(pos_ref, st_ref, mem_ref,
                         pe_w1, pe_b1, pe_w2, pe_b2, seq_ref,
                         sw1, sb1, sw2, sb2, sw3, sb3,
                         pd_w1, pd_b1, pd_w2, pd_b2,
                         t_win, t_bin, t_wo, t_bo, t_lng, t_lnb,
                         f_w1, f_b1, f_w2, f_b2,
                         pred_ref, ae_ref, *, num_heads, num_layers, eps):
    L = pos_ref.shape[0]

    # --- pos_encoder: Linear(pos_dim->dim) + ReLU + Linear(dim->dim) + seq pos emb
    h = jnp.maximum(_mm(pos_ref[...], pe_w1[...]) + pe_b1[...], 0.0)
    pemb = _mm(h, pe_w2[...]) + pe_b2[...] + seq_ref[...]             # [L, E]

    # --- autoencoder branch: pos_decoder(position_emb); output padded to E lanes
    ah = jnp.maximum(_mm(pemb, pd_w1[...]) + pd_b1[...], 0.0)
    ae_ref[...] = (_mm(ah, pd_w2[...]) + pd_b2[...]).astype(ae_ref.dtype)

    # --- static_encoder MLP (3 layers, BN folded), broadcast-added over the sequence
    s = jnp.maximum(_mm(st_ref[...], sw1[...]) + sb1[...], 0.0)
    s = jnp.maximum(_mm(s, sw2[...]) + sb2[...], 0.0)
    s = _mm(s, sw3[...]) + sb3[...]                                   # [1, E]
    x = pemb + s

    # --- causal additive mask built once from a single [L, L] iota compare
    row = lax.broadcasted_iota(jnp.int32, (L, L), 0)
    col = lax.broadcasted_iota(jnp.int32, (L, L), 1)
    neg_mask = jnp.where(col <= row, 0.0, -1e30).astype(jnp.float32)

    mem = mem_ref[...]                                                # [HW, E]
    # TODO(synk): StockTransformerDecoder internals assumed = stock
    # nn.TransformerDecoder (post-LN, dim_feedforward=4*dim, ReLU FFN, causal mask).
    for l in range(num_layers):
        x = _attention(x, x, t_win[l, 0], t_bin[l, 0], t_wo[l, 0], t_bo[l, 0],
                       t_lng[l, 0], t_lnb[l, 0], neg_mask,
                       num_heads=num_heads, eps=eps)
        x = _attention(x, mem, t_win[l, 1], t_bin[l, 1], t_wo[l, 1], t_bo[l, 1],
                       t_lng[l, 1], t_lnb[l, 1], None,
                       num_heads=num_heads, eps=eps)
        hf = jnp.maximum(_mm(x, f_w1[l]) + f_b1[l], 0.0)              # [L, 4E]
        y = x + _mm(hf, f_w2[l]) + f_b2[l]
        x = _layer_norm(y, t_lng[l, 2], t_lnb[l, 2], eps)

    # --- final pos_decoder (output padded to E lanes; sliced in the wrapper)
    ph = jnp.maximum(_mm(x, pd_w1[...]) + pd_b1[...], 0.0)
    pred_ref[...] = (_mm(ph, pd_w2[...]) + pd_b2[...]).astype(pred_ref.dtype)


def path_decoder(params, pos_bld, static3, mem, *, num_heads):
    B, L, P = pos_bld.shape
    HW, E = mem.shape[1], mem.shape[2]
    S = static3.shape[-1]
    pe = params["pos_encoder"]
    se = params["static_encoder"]
    pd = params["pos_decoder"]
    tr = params["transformer"]
    NL = tr["w_in"].shape[0]
    seq_emb = pe["pos_emb_seq"][:L]                                   # [L, E]

    args = (pos_bld, static3, mem,
            pe["w1"], pe["b1"], pe["w2"], pe["b2"], seq_emb,
            se["w1"], se["b1"], se["w2"], se["b2"], se["w3"], se["b3"],
            pd["w1"], pd["b1"], pd["w2"], pd["b2"],
            tr["w_in"], tr["b_in"], tr["w_o"], tr["b_o"], tr["ln_g"], tr["ln_b"],
            tr["f_w1"], tr["f_b1"], tr["f_w2"], tr["f_b2"])
    in_specs = [_per_batch((L, P)), _per_batch((1, S)), _per_batch((HW, E))]
    in_specs += [_rep(a) for a in args[3:]]

    pred_full, ae_full = pl.pallas_call(
        functools.partial(_path_decoder_kernel, num_heads=num_heads,
                          num_layers=NL, eps=1e-5),
        out_shape=(jax.ShapeDtypeStruct((B, L, E), jnp.float32),
                   jax.ShapeDtypeStruct((B, L, E), jnp.float32)),
        grid=(B,),
        in_specs=in_specs,
        out_specs=(_per_batch((L, E)), _per_batch((L, E))),
        compiler_params=_cparams(),
    )(*args)
    return pred_full, ae_full


# ----------------------------------------------------------------------------
# Model forward (glue only; all compute in the two kernels above)
# ----------------------------------------------------------------------------

def path_transformer_forward(params, bev, positions, static_features, *, num_heads):
    """Mirrors PathAutoRegressiveTransformer.forward (eval mode)."""
    pos_dim = positions.shape[1]
    cross_feats = bev_encoder(params["bev"], bev)                     # [B, H*W, dim]
    pos_bld = jnp.transpose(positions, (0, 2, 1))                     # [B, L, pos_dim]
    static3 = static_features[:, None, :]                             # [B, 1, S]
    pred_full, ae_full = path_decoder(params, pos_bld, static3, cross_feats,
                                      num_heads=num_heads)
    pred_pos = jnp.transpose(pred_full[:, :, :pos_dim], (0, 2, 1))    # [B, pos_dim, L]
    ae_pos = jnp.transpose(ae_full[:, :, :pos_dim], (0, 2, 1))
    return pred_pos, ae_pos


# ----------------------------------------------------------------------------
# Parameter construction (deterministic; BN folded; weights stored in bf16)
# ----------------------------------------------------------------------------

def _make_shift_mats(H, W):
    """0/1 gather matrices S_t so that S_t @ flat(a) == tap-t shifted (zero-padded) a."""
    m = np.zeros((9, H * W, H * W), np.float32)
    for t in range(9):
        dy, dx = t // 3 - 1, t % 3 - 1
        for h in range(H):
            sh = h + dy
            if not 0 <= sh < H:
                continue
            for w in range(W):
                sw = w + dx
                if 0 <= sw < W:
                    m[t, h * W + w, sh * W + sw] = 1.0
    return jnp.asarray(m, jnp.bfloat16)


def init_params(key, *, bev_shape, bev_dim, dim, max_seq_len, static_features,
                pos_dim, num_layers, num_heads, depth=4):
    del num_heads  # head split is purely a runtime view of the packed projections
    H, W = bev_shape
    HW = H * W
    ff = 4 * dim
    ks = iter(jax.random.split(key, 32))

    def w(shape, scale=0.02):
        return (jax.random.normal(next(ks), shape, jnp.float32) * scale).astype(jnp.bfloat16)

    def zeros(shape):
        return jnp.zeros(shape, jnp.float32)

    def ones(shape):
        return jnp.ones(shape, jnp.float32)

    # TODO(synk): with a real checkpoint, fold BatchNorm running stats into these
    # conv/linear weights and repack Conv2d [Cout,Cin,3,3] -> [9, Cin, Cout] and
    # nn.MultiheadAttention in_proj/out_proj -> [E,3E]/[E,E] (transposed) layouts.
    bev_p = {
        "shift": _make_shift_mats(H, W),
        "conv_a_w": w((depth, bev_dim, bev_dim), 0.05),
        "conv_a_b": zeros((depth, 1, bev_dim)),
        "conv_b_w": w((depth, 9, bev_dim, bev_dim), 0.05),
        "conv_b_b": zeros((depth, 1, bev_dim)),
        "conv_c_w": w((depth, bev_dim, bev_dim), 0.05),
        "conv_c_b": zeros((depth, 1, bev_dim)),
        "proj_w": w((bev_dim, dim), 0.05),
        "proj_b": zeros((1, dim)),
        "pos_emb_2d": jax.random.normal(next(ks), (HW, dim), jnp.float32) * 0.02,
    }

    pos_enc = {
        "w1": w((pos_dim, dim)), "b1": zeros((1, dim)),
        "w2": w((dim, dim)), "b2": zeros((1, dim)),
        "pos_emb_seq": jax.random.normal(next(ks), (max_seq_len, dim), jnp.float32) * 0.02,
    }

    # pos_decoder second linear: output padded from pos_dim to dim lanes (lane-dense
    # store inside the kernel; sliced back to pos_dim in the wrapper).
    pd_w2 = jnp.zeros((dim, dim), jnp.float32).at[:, :pos_dim].set(
        jax.random.normal(next(ks), (dim, pos_dim), jnp.float32) * 0.02)
    pos_dec = {
        "w1": w((dim, dim)), "b1": zeros((1, dim)),
        "w2": pd_w2.astype(jnp.bfloat16), "b2": zeros((1, dim)),
    }

    static_enc = {
        "w1": w((static_features, dim)), "b1": zeros((1, dim)),
        "w2": w((dim, dim)), "b2": zeros((1, dim)),
        "w3": w((dim, dim)), "b3": zeros((1, dim)),
    }

    transformer = {
        # index 0 = self-attention, 1 = cross-attention; q|k|v packed along N.
        "w_in": w((num_layers, 2, dim, 3 * dim)),
        "b_in": zeros((num_layers, 2, 1, 3 * dim)),
        "w_o": w((num_layers, 2, dim, dim)),
        "b_o": zeros((num_layers, 2, 1, dim)),
        "ln_g": ones((num_layers, 3, 1, dim)),
        "ln_b": zeros((num_layers, 3, 1, dim)),
        "f_w1": w((num_layers, dim, ff)),
        "f_b1": zeros((num_layers, 1, ff)),
        "f_w2": w((num_layers, ff, dim)),
        "f_b2": zeros((num_layers, 1, dim)),
    }

    return {"bev": bev_p, "pos_encoder": pos_enc, "pos_decoder": pos_dec,
            "static_encoder": static_enc, "transformer": transformer}


# ----------------------------------------------------------------------------
# main
# ----------------------------------------------------------------------------

if __name__ == "__main__":
    BS = 2
    BEV_DIM = 8
    BEV_SHAPE = (8, 8)
    DIM = 32
    POS_DIM = 3
    SEQ_LEN = 8
    MAX_SEQ_LEN = 16
    STATIC_FEATURES = 4
    NUM_HEADS = 4
    NUM_LAYERS = 2

    root = jax.random.PRNGKey(0)
    k_param, k_bev, k_pos, k_static = jax.random.split(root, 4)

    params = init_params(k_param, bev_shape=BEV_SHAPE, bev_dim=BEV_DIM, dim=DIM,
                         max_seq_len=MAX_SEQ_LEN, static_features=STATIC_FEATURES,
                         pos_dim=POS_DIM, num_layers=NUM_LAYERS, num_heads=NUM_HEADS)

    bev = jax.random.normal(k_bev, (BS, BEV_DIM, *BEV_SHAPE), jnp.float32)        # NCHW
    positions = jax.random.normal(k_pos, (BS, POS_DIM, SEQ_LEN), jnp.float32)
    static_features = jax.random.normal(k_static, (BS, STATIC_FEATURES), jnp.float32)

    fwd = jax.jit(functools.partial(path_transformer_forward, num_heads=NUM_HEADS))
    pred_pos, ae_pos = fwd(params, bev, positions, static_features)
    jax.block_until_ready((pred_pos, ae_pos))

    assert pred_pos.shape == (BS, POS_DIM, SEQ_LEN), pred_pos.shape
    assert ae_pos.shape == (BS, POS_DIM, SEQ_LEN), ae_pos.shape
    assert bool(jnp.all(jnp.isfinite(pred_pos))) and bool(jnp.all(jnp.isfinite(ae_pos)))
    print("KERNEL_OK")
</pallas_src>

<mosaic_0001>
module attributes {stable_mosaic.version = 11 : i64} {
  func.func @_bev_encoder_kernel(%arg0: i32, %arg1: memref<1x64x8xf32, #tpu.memory_space<vmem>>, %arg2: memref<9x64x64xbf16, #tpu.memory_space<vmem>>, %arg3: memref<4x8x8xbf16, #tpu.memory_space<vmem>>, %arg4: memref<4x1x8xf32, #tpu.memory_space<vmem>>, %arg5: memref<4x9x8x8xbf16, #tpu.memory_space<vmem>>, %arg6: memref<4x1x8xf32, #tpu.memory_space<vmem>>, %arg7: memref<4x8x8xbf16, #tpu.memory_space<vmem>>, %arg8: memref<4x1x8xf32, #tpu.memory_space<vmem>>, %arg9: memref<8x32xbf16, #tpu.memory_space<vmem>>, %arg10: memref<1x32xf32, #tpu.memory_space<vmem>>, %arg11: memref<64x32xf32, #tpu.memory_space<vmem>>, %arg12: memref<1x64x32xf32, #tpu.memory_space<vmem>>) attributes {dimension_semantics = [#tpu.dimension_semantics<parallel>], iteration_bounds = array<i64: 2>, scalar_prefetch = 0 : i64, scratch_operands = 0 : i64, tpu.core_type = #tpu.core_type<tc>, window_params = [{transform_indices = @transform_0, window_bounds = array<i64: 1, 64, 8>}, {pipeline_mode = #tpu.pipeline_mode<synchronous>, transform_indices = @transform_1, window_bounds = array<i64: 9, 64, 64>}, {pipeline_mode = #tpu.pipeline_mode<synchronous>, transform_indices = @transform_2, window_bounds = array<i64: 4, 8, 8>}, {pipeline_mode = #tpu.pipeline_mode<synchronous>, transform_indices = @transform_3, window_bounds = array<i64: 4, 1, 8>}, {pipeline_mode = #tpu.pipeline_mode<synchronous>, transform_indices = @transform_4, window_bounds = array<i64: 4, 9, 8, 8>}, {pipeline_mode = #tpu.pipeline_mode<synchronous>, transform_indices = @transform_5, window_bounds = array<i64: 4, 1, 8>}, {pipeline_mode = #tpu.pipeline_mode<synchronous>, transform_indices = @transform_6, window_bounds = array<i64: 4, 8, 8>}, {pipeline_mode = #tpu.pipeline_mode<synchronous>, transform_indices = @transform_7, window_bounds = array<i64: 4, 1, 8>}, {pipeline_mode = #tpu.pipeline_mode<synchronous>, transform_indices = @transform_8, window_bounds = array<i64: 8, 32>}, {pipeline_mode = #tpu.pipeline_mode<synchronous>, transform_indices = @transform_9, window_bounds = array<i64: 1, 32>}, {pipeline_mode = #tpu.pipeline_mode<synchronous>, transform_indices = @transform_10, window_bounds = array<i64: 64, 32>}, {transform_indices = @transform_11, window_bounds = array<i64: 1, 64, 32>}]} {
    %c0 = arith.constant 0 : index
    %c0_0 = arith.constant 0 : index
    %c0_1 = arith.constant 0 : index
    %0 = vector.load %arg1[%c0, %c0_0, %c0_1] : memref<1x64x8xf32, #tpu.memory_space<vmem>>, vector<1x64x8xf32>
    %1 = vector.shape_cast %0 : vector<1x64x8xf32> to vector<64x8xf32>
    %c0_2 = arith.constant 0 : index
    %c0_3 = arith.constant 0 : index
    %c0_4 = arith.constant 0 : index
    %2 = vector.load %arg3[%c0_2, %c0_3, %c0_4] : memref<4x8x8xbf16, #tpu.memory_space<vmem>>, vector<1x8x8xbf16>
    %3 = vector.shape_cast %2 : vector<1x8x8xbf16> to vector<8x8xbf16>
    %4 = arith.truncf %1 : vector<64x8xf32> to vector<64x8xbf16>
    %cst = arith.constant dense<0.000000e+00> : vector<64x8xf32>
    %5 = tpu.matmul %4, %3, %cst {dimension_numbers = #tpu.dot_dimension_numbers<[1], [0], [0], [1], [0, 0, 1, 1], [], []>} : vector<64x8xbf16>, vector<8x8xbf16>, vector<64x8xf32> -> vector<64x8xf32>
    %c0_5 = arith.constant 0 : index
    %c0_6 = arith.constant 0 : index
    %c0_7 = arith.constant 0 : index
    %6 = vector.load %arg4[%c0_5, %c0_6, %c0_7] : memref<4x1x8xf32, #tpu.memory_space<vmem>>, vector<1x1x8xf32>
    %7 = vector.shape_cast %6 : vector<1x1x8xf32> to vector<1x8xf32>
    %8 = vector.broadcast %7 : vector<1x8xf32> to vector<64x8xf32>
    %9 = arith.addf %5, %8 : vector<64x8xf32>
    %cst_8 = arith.constant 0.000000e+00 : f32
    %10 = vector.broadcast %cst_8 : f32 to vector<64x8xf32>
    %11 = arith.maximumf %9, %10 : vector<64x8xf32>
    %12 = arith.truncf %11 : vector<64x8xf32> to vector<64x8xbf16>
    %c0_9 = arith.constant 0 : index
    %c0_10 = arith.constant 0 : index
    %c0_11 = arith.constant 0 : index
    %13 = vector.load %arg6[%c0_9, %c0_10, %c0_11] : memref<4x1x8xf32, #tpu.memory_space<vmem>>, vector<1x1x8xf32>
    %14 = vector.shape_cast %13 : vector<1x1x8xf32> to vector<1x8xf32>
    %c0_12 = arith.constant 0 : index
    %c0_13 = arith.constant 0 : index
    %c0_14 = arith.constant 0 : index
    %15 = vector.load %arg2[%c0_12, %c0_13, %c0_14] : memref<9x64x64xbf16, #tpu.memory_space<vmem>>, vector<1x64x64xbf16>
    %16 = vector.shape_cast %15 : vector<1x64x64xbf16> to vector<64x64xbf16>
    %cst_15 = arith.constant dense<0.000000e+00> : vector<64x8xf32>
    %17 = tpu.matmul %16, %12, %cst_15 {dimension_numbers = #tpu.dot_dimension_numbers<[1], [0], [0], [1], [0, 0, 1, 1], [], []>} : vector<64x64xbf16>, vector<64x8xbf16>, vector<64x8xf32> -> vector<64x8xf32>
    %18 = arith.truncf %17 : vector<64x8xf32> to vector<64x8xbf16>
    %c0_16 = arith.constant 0 : index
    %c0_17 = arith.constant 0 : index
    %c0_18 = arith.constant 0 : index
    %c0_19 = arith.constant 0 : index
    %19 = vector.load %arg5[%c0_16, %c0_17, %c0_18, %c0_19] : memref<4x9x8x8xbf16, #tpu.memory_space<vmem>>, vector<1x1x8x8xbf16>
    %20 = vector.shape_cast %19 : vector<1x1x8x8xbf16> to vector<8x8xbf16>
    %cst_20 = arith.constant dense<0.000000e+00> : vector<64x8xf32>
    %21 = tpu.matmul %18, %20, %cst_20 {dimension_numbers = #tpu.dot_dimension_numbers<[1], [0], [0], [1], [0, 0, 1, 1], [], []>} : vector<64x8xbf16>, vector<8x8xbf16>, vector<64x8xf32> -> vector<64x8xf32>
    %22 = vector.broadcast %14 : vector<1x8xf32> to vector<64x8xf32>
    %23 = arith.addf %22, %21 : vector<64x8xf32>
    %c1 = arith.constant 1 : index
    %c0_21 = arith.constant 0 : index
    %c0_22 = arith.constant 0 : index
    %24 = vector.load %arg2[%c1, %c0_21, %c0_22] : memref<9x64x64xbf16, #tpu.memory_space<vmem>>, vector<1x64x64xbf16>
    %25 = vector.shape_cast %24 : vector<1x64x64xbf16> to vector<64x64xbf16>
    %cst_23 = arith.constant dense<0.000000e+00> : vector<64x8xf32>
    %26 = tpu.matmul %25, %12, %cst_23 {dimension_numbers = #tpu.dot_dimension_numbers<[1], [0], [0], [1], [0, 0, 1, 1], [], []>} : vector<64x64xbf16>, vector<64x8xbf16>, vector<64x8xf32> -> vector<64x8xf32>
    %27 = arith.truncf %26 : vector<64x8xf32> to vector<64x8xbf16>
    %c0_24 = arith.constant 0 : index
    %c1_25 = arith.constant 1 : index
    %c0_26 = arith.constant 0 : index
    %c0_27 = arith.constant 0 : index
    %28 = vector.load %arg5[%c0_24, %c1_25, %c0_26, %c0_27] : memref<4x9x8x8xbf16, #tpu.memory_space<vmem>>, vector<1x1x8x8xbf16>
    %29 = vector.shape_cast %28 : vector<1x1x8x8xbf16> to vector<8x8xbf16>
    %cst_28 = arith.constant dense<0.000000e+00> : vector<64x8xf32>
    %30 = tpu.matmul %27, %29, %cst_28 {dimension_numbers = #tpu.dot_dimension_numbers<[1], [0], [0], [1], [0, 0, 1, 1], [], []>} : vector<64x8xbf16>, vector<8x8xbf16>, vector<64x8xf32> -> vector<64x8xf32>
    %31 = arith.addf %23, %30 : vector<64x8xf32>
    %c2 = arith.constant 2 : index
    %c0_29 = arith.constant 0 : index
    %c0_30 = arith.constant 0 : index
    %32 = vector.load %arg2[%c2, %c0_29, %c0_30] : memref<9x64x64xbf16, #tpu.memory_space<vmem>>, vector<1x64x64xbf16>
    %33 = vector.shape_cast %32 : vector<1x64x64xbf16> to vector<64x64xbf16>
    %cst_31 = arith.constant dense<0.000000e+00> : vector<64x8xf32>
    %34 = tpu.matmul %33, %12, %cst_31 {dimension_numbers = #tpu.dot_dimension_numbers<[1], [0], [0], [1], [0, 0, 1, 1], [], []>} : vector<64x64xbf16>, vector<64x8xbf16>, vector<64x8xf32> -> vector<64x8xf32>
    %35 = arith.truncf %34 : vector<64x8xf32> to vector<64x8xbf16>
    %c0_32 = arith.constant 0 : index
    %c2_33 = arith.constant 2 : index
    %c0_34 = arith.constant 0 : index
    %c0_35 = arith.constant 0 : index
    %36 = vector.load %arg5[%c0_32, %c2_33, %c0_34, %c0_35] : memref<4x9x8x8xbf16, #tpu.memory_space<vmem>>, vector<1x1x8x8xbf16>
    %37 = vector.shape_cast %36 : vector<1x1x8x8xbf16> to vector<8x8xbf16>
    %cst_36 = arith.constant dense<0.000000e+00> : vector<64x8xf32>
    %38 = tpu.matmul %35, %37, %cst_36 {dimension_numbers = #tpu.dot_dimension_numbers<[1], [0], [0], [1], [0, 0, 1, 1], [], []>} : vector<64x8xbf16>, vector<8x8xbf16>, vector<64x8xf32> -> vector<64x8xf32>
    %39 = arith.addf %31, %38 : vector<64x8xf32>
    %c3 = arith.constant 3 : index
    %c0_37 = arith.constant 0 : index
    %c0_38 = arith.constant 0 : index
    %40 = vector.load %arg2[%c3, %c0_37, %c0_38] : memref<9x64x64xbf16, #tpu.memory_space<vmem>>, vector<1x64x64xbf16>
    %41 = vector.shape_cast %40 : vector<1x64x64xbf16> to vector<64x64xbf16>
    %cst_39 = arith.constant dense<0.000000e+00> : vector<64x8xf32>
    %42 = tpu.matmul %41, %12, %cst_39 {dimension_numbers = #tpu.dot_dimension_numbers<[1], [0], [0], [1], [0, 0, 1, 1], [], []>} : vector<64x64xbf16>, vector<64x8xbf16>, vector<64x8xf32> -> vector<64x8xf32>
    %43 = arith.truncf %42 : vector<64x8xf32> to vector<64x8xbf16>
    %c0_40 = arith.constant 0 : index
    %c3_41 = arith.constant 3 : index
    %c0_42 = arith.constant 0 : index
    %c0_43 = arith.constant 0 : index
    %44 = vector.load %arg5[%c0_40, %c3_41, %c0_42, %c0_43] : memref<4x9x8x8xbf16, #tpu.memory_space<vmem>>, vector<1x1x8x8xbf16>
    %45 = vector.shape_cast %44 : vector<1x1x8x8xbf16> to vector<8x8xbf16>
    %cst_44 = arith.constant dense<0.000000e+00> : vector<64x8xf32>
    %46 = tpu.matmul %43, %45, %cst_44 {dimension_numbers = #tpu.dot_dimension_numbers<[1], [0], [0], [1], [0, 0, 1, 1], [], []>} : vector<64x8xbf16>, vector<8x8xbf16>, vector<64x8xf32> -> vector<64x8xf32>
    %47 = arith.addf %39, %46 : vector<64x8xf32>
    %c4 = arith.constant 4 : index
    %c0_45 = arith.constant 0 : index
    %c0_46 = arith.constant 0 : index
    %48 = vector.load %arg2[%c4, %c0_45, %c0_46] : memref<9x64x64xbf16, #tpu.memory_space<vmem>>, vector<1x64x64xbf16>
    %49 = vector.shape_cast %48 : vector<1x64x64xbf16> to vector<64x64xbf16>
    %cst_47 = arith.constant dense<0.000000e+00> : vector<64x8xf32>
    %50 = tpu.matmul %49, %12, %cst_47 {dimension_numbers = #tpu.dot_dimension_numbers<[1], [0], [0], [1], [0, 0, 1, 1], [], []>} : vector<64x64xbf16>, vector<64x8xbf16>, vector<64x8xf32> -> vector<64x8xf32>
    %51 = arith.truncf %50 : vector<64x8xf32> to vector<64x8xbf16>
    %c0_48 = arith.constant 0 : index
    %c4_49 = arith.constant 4 : index
    %c0_50 = arith.constant 0 : index
    %c0_51 = arith.constant 0 : index
    %52 = vector.load %arg5[%c0_48, %c4_49, %c0_50, %c0_51] : memref<4x9x8x8xbf16, #tpu.memory_space<vmem>>, vector<1x1x8x8xbf16>
    %53 = vector.shape_cast %52 : vector<1x1x8x8xbf16> to vector<8x8xbf16>
    %cst_52 = arith.constant dense<0.000000e+00> : vector<64x8xf32>
    %54 = tpu.matmul %51, %53, %cst_52 {dimension_numbers = #tpu.dot_dimension_numbers<[1], [0], [0], [1], [0, 0, 1, 1], [], []>} : vector<64x8xbf16>, vector<8x8xbf16>, vector<64x8xf32> -> vector<64x8xf32>
    %55 = arith.addf %47, %54 : vector<64x8xf32>
    %c5 = arith.constant 5 : index
    %c0_53 = arith.constant 0 : index
    %c0_54 = arith.constant 0 : index
    %56 = vector.load %arg2[%c5, %c0_53, %c0_54] : memref<9x64x64xbf16, #tpu.memory_space<vmem>>, vector<1x64x64xbf16>
    %57 = vector.shape_cast %56 : vector<1x64x64xbf16> to vector<64x64xbf16>
    %cst_55 = arith.constant dense<0.000000e+00> : vector<64x8xf32>
    %58 = tpu.matmul %57, %12, %cst_55 {dimension_numbers = #tpu.dot_dimension_numbers<[1], [0], [0], [1], [0, 0, 1, 1], [], []>} : vector<64x64xbf16>, vector<64x8xbf16>, vector<64x8xf32> -> vector<64x8xf32>
    %59 = arith.truncf %58 : vector<64x8xf32> to vector<64x8xbf16>
    %c0_56 = arith.constant 0 : index
    %c5_57 = arith.constant 5 : index
    %c0_58 = arith.constant 0 : index
    %c0_59 = arith.constant 0 : index
    %60 = vector.load %arg5[%c0_56, %c5_57, %c0_58, %c0_59] : memref<4x9x8x8xbf16, #tpu.memory_space<vmem>>, vector<1x1x8x8xbf16>
    %61 = vector.shape_cast %60 : vector<1x1x8x8xbf16> to vector<8x8xbf16>
    %cst_60 = arith.constant dense<0.000000e+00> : vector<64x8xf32>
    %62 = tpu.matmul %59, %61, %cst_60 {dimension_numbers = #tpu.dot_dimension_numbers<[1], [0], [0], [1], [0, 0, 1, 1], [], []>} : vector<64x8xbf16>, vector<8x8xbf16>, vector<64x8xf32> -> vector<64x8xf32>
    %63 = arith.addf %55, %62 : vector<64x8xf32>
    %c6 = arith.constant 6 : index
    %c0_61 = arith.constant 0 : index
    %c0_62 = arith.constant 0 : index
    %64 = vector.load %arg2[%c6, %c0_61, %c0_62] : memref<9x64x64xbf16, #tpu.memory_space<vmem>>, vector<1x64x64xbf16>
    %65 = vector.shape_cast %64 : vector<1x64x64xbf16> to vector<64x64xbf16>
    %cst_63 = arith.constant dense<0.000000e+00> : vector<64x8xf32>
    %66 = tpu.matmul %65, %12, %cst_63 {dimension_numbers = #tpu.dot_dimension_numbers<[1], [0], [0], [1], [0, 0, 1, 1], [], []>} : vector<64x64xbf16>, vector<64x8xbf16>, vector<64x8xf32> -> vector<64x8xf32>
    %67 = arith.truncf %66 : vector<64x8xf32> to vector<64x8xbf16>
    %c0_64 = arith.constant 0 : index
    %c6_65 = arith.constant 6 : index
    %c0_66 = arith.constant 0 : index
    %c0_67 = arith.constant 0 : index
    %68 = vector.load %arg5[%c0_64, %c6_65, %c0_66, %c0_67] : memref<4x9x8x8xbf16, #tpu.memory_space<vmem>>, vector<1x1x8x8xbf16>
    %69 = vector.shape_cast %68 : vector<1x1x8x8xbf16> to vector<8x8xbf16>
    %cst_68 = arith.constant dense<0.000000e+00> : vector<64x8xf32>
    %70 = tpu.matmul %67, %69, %cst_68 {dimension_numbers = #tpu.dot_dimension_numbers<[1], [0], [0], [1], [0, 0, 1, 1], [], []>} : vector<64x8xbf16>, vector<8x8xbf16>, vector<64x8xf32> -> vector<64x8xf32>
    %71 = arith.addf %63, %70 : vector<64x8xf32>
    %c7 = arith.constant 7 : index
    %c0_69 = arith.constant 0 : index
    %c0_70 = arith.constant 0 : index
    %72 = vector.load %arg2[%c7, %c0_69, %c0_70] : memref<9x64x64xbf16, #tpu.memory_space<vmem>>, vector<1x64x64xbf16>
    %73 = vector.shape_cast %72 : vector<1x64x64xbf16> to vector<64x64xbf16>
    %cst_71 = arith.constant dense<0.000000e+00> : vector<64x8xf32>
    %74 = tpu.matmul %73, %12, %cst_71 {dimension_numbers = #tpu.dot_dimension_numbers<[1], [0], [0], [1], [0, 0, 1, 1], [], []>} : vector<64x64xbf16>, vector<64x8xbf16>, vector<64x8xf32> -> vector<64x8xf32>
    %75 = arith.truncf %74 : vector<64x8xf32> to vector<64x8xbf16>
    %c0_72 = arith.constant 0 : index
    %c7_73 = arith.constant 7 : index
    %c0_74 = arith.constant 0 : index
    %c0_75 = arith.constant 0 : index
    %76 = vector.load %arg5[%c0_72, %c7_73, %c0_74, %c0_75] : memref<4x9x8x8xbf16, #tpu.memory_space<vmem>>, vector<1x1x8x8xbf16>
    %77 = vector.shape_cast %76 : vector<1x1x8x8xbf16> to vector<8x8xbf16>
    %cst_76 = arith.constant dense<0.000000e+00> : vector<64x8xf32>
    %78 = tpu.matmul %75, %77, %cst_76 {dimension_numbers = #tpu.dot_dimension_numbers<[1], [0], [0], [1], [0, 0, 1, 1], [], []>} : vector<64x8xbf16>, vector<8x8xbf16>, vector<64x8xf32> -> vector<64x8xf32>
    %79 = arith.addf %71, %78 : vector<64x8xf32>
    %c8 = arith.constant 8 : index
    %c0_77 = arith.constant 0 : index
    %c0_78 = arith.constant 0 : index
    %80 = vector.load %arg2[%c8, %c0_77, %c0_78] : memref<9x64x64xbf16, #tpu.memory_space<vmem>>, vector<1x64x64xbf16>
    %81 = vector.shape_cast %80 : vector<1x64x64xbf16> to vector<64x64xbf16>
    %cst_79 = arith.constant dense<0.000000e+00> : vector<64x8xf32>
    %82 = tpu.matmul %81, %12, %cst_79 {dimension_numbers = #tpu.dot_dimension_numbers<[1], [0], [0], [1], [0, 0, 1, 1], [], []>} : vector<64x64xbf16>, vector<64x8xbf16>, vector<64x8xf32> -> vector<64x8xf32>
    %83 = arith.truncf %82 : vector<64x8xf32> to vector<64x8xbf16>
    %c0_80 = arith.constant 0 : index
    %c8_81 = arith.constant 8 : index
    %c0_82 = arith.constant 0 : index
    %c0_83 = arith.constant 0 : index
    %84 = vector.load %arg5[%c0_80, %c8_81, %c0_82, %c0_83] : memref<4x9x8x8xbf16, #tpu.memory_space<vmem>>, vector<1x1x8x8xbf16>
    %85 = vector.shape_cast %84 : vector<1x1x8x8xbf16> to vector<8x8xbf16>
    %cst_84 = arith.constant dense<0.000000e+00> : vector<64x8xf32>
    %86 = tpu.matmul %83, %85, %cst_84 {dimension_numbers = #tpu.dot_dimension_numbers<[1], [0], [0], [1], [0, 0, 1, 1], [], []>} : vector<64x8xbf16>, vector<8x8xbf16>, vector<64x8xf32> -> vector<64x8xf32>
    %87 = arith.addf %79, %86 : vector<64x8xf32>
    %cst_85 = arith.constant 0.000000e+00 : f32
    %88 = vector.broadcast %cst_85 : f32 to vector<64x8xf32>
    %89 = arith.maximumf %87, %88 : vector<64x8xf32>
    %c0_86 = arith.constant 0 : index
    %c0_87 = arith.constant 0 : index
    %c0_88 = arith.constant 0 : index
    %90 = vector.load %arg7[%c0_86, %c0_87, %c0_88] : memref<4x8x8xbf16, #tpu.memory_space<vmem>>, vector<1x8x8xbf16>
    %91 = vector.shape_cast %90 : vector<1x8x8xbf16> to vector<8x8xbf16>
    %92 = arith.truncf %89 : vector<64x8xf32> to vector<64x8xbf16>
    %cst_89 = arith.constant dense<0.000000e+00> : vector<64x8xf32>
    %93 = tpu.matmul %92, %91, %cst_89 {dimension_numbers = #tpu.dot_dimension_numbers<[1], [0], [0], [1], [0, 0, 1, 1], [], []>} : vector<64x8xbf16>, vector<8x8xbf16>, vector<64x8xf32> -> vector<64x8xf32>
    %c0_90 = arith.constant 0 : index
    %c0_91 = arith.constant 0 : index
    %c0_92 = arith.constant 0 : index
    %94 = vector.load %arg8[%c0_90, %c0_91, %c0_92] : memref<4x1x8xf32, #tpu.memory_space<vmem>>, vector<1x1x8xf32>
    %95 = vector.shape_cast %94 : vector<1x1x8xf32> to vector<1x8xf32>
    %96 = vector.broadcast %95 : vector<1x8xf32> to vector<64x8xf32>
    %97 = arith.addf %93, %96 : vector<64x8xf32>
    %98 = arith.addf %1, %97 : vector<64x8xf32>
    %cst_93 = arith.constant 0.000000e+00 : f32
    %99 = vector.broadcast %cst_93 : f32 to vector<64x8xf32>
    %100 = arith.maximumf %98, %99 : vector<64x8xf32>
    %c1_94 = arith.constant 1 : index
    %c0_95 = arith.constant 0 : index
    %c0_96 = arith.constant 0 : index
    %101 = vector.load %arg3[%c1_94, %c0_95, %c0_96] : memref<4x8x8xbf16, #tpu.memory_space<vmem>>, vector<1x8x8xbf16>
    %102 = vector.shape_cast %101 : vector<1x8x8xbf16> to vector<8x8xbf16>
    %103 = arith.truncf %100 : vector<64x8xf32> to vector<64x8xbf16>
    %cst_97 = arith.constant dense<0.000000e+00> : vector<64x8xf32>
    %104 = tpu.matmul %103, %102, %cst_97 {dimension_numbers = #tpu.dot_dimension_numbers<[1], [0], [0], [1], [0, 0, 1, 1], [], []>} : vector<64x8xbf16>, vector<8x8xbf16>, vector<64x8xf32> -> vector<64x8xf32>
    %c1_98 = arith.constant 1 : index
    %c0_99 = arith.constant 0 : index
    %c0_100 = arith.constant 0 : index
    %105 = vector.load %arg4[%c1_98, %c0_99, %c0_100] : memref<4x1x8xf32, #tpu.memory_space<vmem>>, vector<1x1x8xf32>
    %106 = vector.shape_cast %105 : vector<1x1x8xf32> to vector<1x8xf32>
    %107 = vector.broadcast %106 : vector<1x8xf32> to vector<64x8xf32>
    %108 = arith.addf %104, %107 : vector<64x8xf32>
    %cst_101 = arith.constant 0.000000e+00 : f32
    %109 = vector.broadcast %cst_101 : f32 to vector<64x8xf32>
    %110 = arith.maximumf %108, %109 : vector<64x8xf32>
    %111 = arith.truncf %110 : vector<64x8xf32> to vector<64x8xbf16>
    %c1_102 = arith.constant 1 : index
    %c0_103 = arith.constant 0 : index
    %c0_104 = arith.constant 0 : index
    %112 = vector.load %arg6[%c1_102, %c0_103, %c0_104] : memref<4x1x8xf32, #tpu.memory_space<vmem>>, vector<1x1x8xf32>
    %113 = vector.shape_cast %112 : vector<1x1x8xf32> to vector<1x8xf32>
    %c0_105 = arith.constant 0 : index
    %c0_106 = arith.constant 0 : index
    %c0_107 = arith.constant 0 : index
    %114 = vector.load %arg2[%c0_105, %c0_106, %c0_107] : memref<9x64x64xbf16, #tpu.memory_space<vmem>>, vector<1x64x64xbf16>
    %115 = vector.shape_cast %114 : vector<1x64x64xbf16> to vector<64x64xbf16>
    %cst_108 = arith.constant dense<0.000000e+00> : vector<64x8xf32>
    %116 = tpu.matmul %115, %111, %cst_108 {dimension_numbers = #tpu.dot_dimension_numbers<[1], [0], [0], [1], [0, 0, 1, 1], [], []>} : vector<64x64xbf16>, vector<64x8xbf16>, vector<64x8xf32> -> vector<64x8xf32>
    %117 = arith.truncf %116 : vector<64x8xf32> to vector<64x8xbf16>
    %c1_109 = arith.constant 1 : index
    %c0_110 = arith.constant 0 : index
    %c0_111 = arith.constant 0 : index
    %c0_112 = arith.constant 0 : index
    %118 = vector.load %arg5[%c1_109, %c0_110, %c0_111, %c0_112] : memref<4x9x8x8xbf16, #tpu.memory_space<vmem>>, vector<1x1x8x8xbf16>
    %119 = vector.shape_cast %118 : vector<1x1x8x8xbf16> to vector<8x8xbf16>
    %cst_113 = arith.constant dense<0.000000e+00> : vector<64x8xf32>
    %120 = tpu.matmul %117, %119, %cst_113 {dimension_numbers = #tpu.dot_dimension_numbers<[1], [0], [0], [1], [0, 0, 1, 1], [], []>} : vector<64x8xbf16>, vector<8x8xbf16>, vector<64x8xf32> -> vector<64x8xf32>
    %121 = vector.broadcast %113 : vector<1x8xf32> to vector<64x8xf32>
    %122 = arith.addf %121, %120 : vector<64x8xf32>
    %c1_114 = arith.constant 1 : index
    %c0_115 = arith.constant 0 : index
    %c0_116 = arith.constant 0 : index
    %123 = vector.load %arg2[%c1_114, %c0_115, %c0_116] : memref<9x64x64xbf16, #tpu.memory_space<vmem>>, vector<1x64x64xbf16>
    %124 = vector.shape_cast %123 : vector<1x64x64xbf16> to vector<64x64xbf16>
    %cst_117 = arith.constant dense<0.000000e+00> : vector<64x8xf32>
    %125 = tpu.matmul %124, %111, %cst_117 {dimension_numbers = #tpu.dot_dimension_numbers<[1], [0], [0], [1], [0, 0, 1, 1], [], []>} : vector<64x64xbf16>, vector<64x8xbf16>, vector<64x8xf32> -> vector<64x8xf32>
    %126 = arith.truncf %125 : vector<64x8xf32> to vector<64x8xbf16>
    %c1_118 = arith.constant 1 : index
    %c1_119 = arith.constant 1 : index
    %c0_120 = arith.constant 0 : index
    %c0_121 = arith.constant 0 : index
    %127 = vector.load %arg5[%c1_118, %c1_119, %c0_120, %c0_121] : memref<4x9x8x8xbf16, #tpu.memory_space<vmem>>, vector<1x1x8x8xbf16>
    %128 = vector.shape_cast %127 : vector<1x1x8x8xbf16> to vector<8x8xbf16>
    %cst_122 = arith.constant dense<0.000000e+00> : vector<64x8xf32>
    %129 = tpu.matmul %126, %128, %cst_122 {dimension_numbers = #tpu.dot_dimension_numbers<[1], [0], [0], [1], [0, 0, 1, 1], [], []>} : vector<64x8xbf16>, vector<8x8xbf16>, vector<64x8xf32> -> vector<64x8xf32>
    %130 = arith.addf %122, %129 : vector<64x8xf32>
    %c2_123 = arith.constant 2 : index
    %c0_124 = arith.constant 0 : index
    %c0_125 = arith.constant 0 : index
    %131 = vector.load %arg2[%c2_123, %c0_124, %c0_125] : memref<9x64x64xbf16, #tpu.memory_space<vmem>>, vector<1x64x64xbf16>
    %132 = vector.shape_cast %131 : vector<1x64x64xbf16> to vector<64x64xbf16>
    %cst_126 = arith.constant dense<0.000000e+00> : vector<64x8xf32>
    %133 = tpu.matmul %132, %111, %cst_126 {dimension_numbers = #tpu.dot_dimension_numbers<[1], [0], [0], [1], [0, 0, 1, 1], [], []>} : vector<64x64xbf16>, vector<64x8xbf16>, vector<64x8xf32> -> vector<64x8xf32>
    %134 = arith.truncf %133 : vector<64x8xf32> to vector<64x8xbf16>
    %c1_127 = arith.constant 1 : index
    %c2_128 = arith.constant 2 : index
    %c0_129 = arith.constant 0 : index
    %c0_130 = arith.constant 0 : index
    %135 = vector.load %arg5[%c1_127, %c2_128, %c0_129, %c0_130] : memref<4x9x8x8xbf16, #tpu.memory_space<vmem>>, vector<1x1x8x8xbf16>
    %136 = vector.shape_cast %135 : vector<1x1x8x8xbf16> to vector<8x8xbf16>
    %cst_131 = arith.constant dense<0.000000e+00> : vector<64x8xf32>
    %137 = tpu.matmul %134, %136, %cst_131 {dimension_numbers = #tpu.dot_dimension_numbers<[1], [0], [0], [1], [0, 0, 1, 1], [], []>} : vector<64x8xbf16>, vector<8x8xbf16>, vector<64x8xf32> -> vector<64x8xf32>
    %138 = arith.addf %130, %137 : vector<64x8xf32>
    %c3_132 = arith.constant 3 : index
    %c0_133 = arith.constant 0 : index
    %c0_134 = arith.constant 0 : index
    %139 = vector.load %arg2[%c3_132, %c0_133, %c0_134] : memref<9x64x64xbf16, #tpu.memory_space<vmem>>, vector<1x64x64xbf16>
    %140 = vector.shape_cast %139 : vector<1x64x64xbf16> to vector<64x64xbf16>
    %cst_135 = arith.constant dense<0.000000e+00> : vector<64x8xf32>
    %141 = tpu.matmul %140, %111, %cst_135 {dimension_numbers = #tpu.dot_dimension_numbers<[1], [0], [0], [1], [0, 0, 1, 1], [], []>} : vector<64x64xbf16>, vector<64x8xbf16>, vector<64x8xf32> -> vector<64x8xf32>
    %142 = arith.truncf %141 : vector<64x8xf32> to vector<64x8xbf16>
    %c1_136 = arith.constant 1 : index
    %c3_137 = arith.constant 3 : index
    %c0_138 = arith.constant 0 : index
    %c0_139 = arith.constant 0 : index
    %143 = vector.load %arg5[%c1_136, %c3_137, %c0_138, %c0_139] : memref<4x9x8x8xbf16, #tpu.memory_space<vmem>>, vector<1x1x8x8xbf16>
    %144 = vector.shape_cast %143 : vector<1x1x8x8xbf16> to vector<8x8xbf16>
    %cst_140 = arith.constant dense<0.000000e+00> : vector<64x8xf32>
    %145 = tpu.matmul %142, %144, %cst_140 {dimension_numbers = #tpu.dot_dimension_numbers<[1], [0], [0], [1], [0, 0, 1, 1], [], []>} : vector<64x8xbf16>, vector<8x8xbf16>, vector<64x8xf32> -> vector<64x8xf32>
    %146 = arith.addf %138, %145 : vector<64x8xf32>
    %c4_141 = arith.constant 4 : index
    %c0_142 = arith.constant 0 : index
    %c0_143 = arith.constant 0 : index
    %147 = vector.load %arg2[%c4_141, %c0_142, %c0_143] : memref<9x64x64xbf16, #tpu.memory_space<vmem>>, vector<1x64x64xbf16>
    %148 = vector.shape_cast %147 : vector<1x64x64xbf16> to vector<64x64xbf16>
    %cst_144 = arith.constant dense<0.000000e+00> : vector<64x8xf32>
    %149 = tpu.matmul %148, %111, %cst_144 {dimension_numbers = #tpu.dot_dimension_numbers<[1], [0], [0], [1], [0, 0, 1, 1], [], []>} : vector<64x64xbf16>, vector<64x8xbf16>, vector<64x8xf32> -> vector<64x8xf32>
    %150 = arith.truncf %149 : vector<64x8xf32> to vector<64x8xbf16>
    %c1_145 = arith.constant 1 : index
    %c4_146 = arith.constant 4 : index
    %c0_147 = arith.constant 0 : index
    %c0_148 = arith.constant 0 : index
    %151 = vector.load %arg5[%c1_145, %c4_146, %c0_147, %c0_148] : memref<4x9x8x8xbf16, #tpu.memory_space<vmem>>, vector<1x1x8x8xbf16>
    %152 = vector.shape_cast %151 : vector<1x1x8x8xbf16> to vector<8x8xbf16>
    %cst_149 = arith.constant dense<0.000000e+00> : vector<64x8xf32>
    %153 = tpu.matmul %150, %152, %cst_149 {dimension_numbers = #tpu.dot_dimension_numbers<[1], [0], [0], [1], [0, 0, 1, 1], [], []>} : vector<64x8xbf16>, vector<8x8xbf16>, vector<64x8xf32> -> vector<64x8xf32>
    %154 = arith.addf %146, %153 : vector<64x8xf32>
    %c5_150 = arith.constant 5 : index
    %c0_151 = arith.constant 0 : index
    %c0_152 = arith.constant 0 : index
    %155 = vector.load %arg2[%c5_150, %c0_151, %c0_152] : memref<9x64x64xbf16, #tpu.memory_space<vmem>>, vector<1x64x64xbf16>
    %156 = vector.shape_cast %155 : vector<1x64x64xbf16> to vector<64x64xbf16>
    %cst_153 = arith.constant dense<0.000000e+00> : vector<64x8xf32>
    %157 = tpu.matmul %156, %111, %cst_153 {dimension_numbers = #tpu.dot_dimension_numbers<[1], [0], [0], [1], [0, 0, 1, 1], [], []>} : vector<64x64xbf16>, vector<64x8xbf16>, vector<64x8xf32> -> vector<64x8xf32>
    %158 = arith.truncf %157 : vector<64x8xf32> to vector<64x8xbf16>
    %c1_154 = arith.constant 1 : index
    %c5_155 = arith.constant 5 : index
    %c0_156 = arith.constant 0 : index
    %c0_157 = arith.constant 0 : index
    %159 = vector.load %arg5[%c1_154, %c5_155, %c0_156, %c0_157] : memref<4x9x8x8xbf16, #tpu.memory_space<vmem>>, vector<1x1x8x8xbf16>
    %160 = vector.shape_cast %159 : vector<1x1x8x8xbf16> to vector<8x8xbf16>
    %cst_158 = arith.constant dense<0.000000e+00> : vector<64x8xf32>
    %161 = tpu.matmul %158, %160, %cst_158 {dimension_numbers = #tpu.dot_dimension_numbers<[1], [0], [0], [1], [0, 0, 1, 1], [], []>} : vector<64x8xbf16>, vector<8x8xbf16>, vector<64x8xf32> -> vector<64x8xf32>
    %162 = arith.addf %154, %161 : vector<64x8xf32>
    %c6_159 = arith.constant 6 : index
    %c0_160 = arith.constant 0 : index
    %c0_161 = arith.constant 0 : index
    %163 = vector.load %arg2[%c6_159, %c0_160, %c0_161] : memref<9x64x64xbf16, #tpu.memory_space<vmem>>, vector<1x64x64xbf16>
    %164 = vector.shape_cast %163 : vector<1x64x64xbf16> to vector<64x64xbf16>
    %cst_162 = arith.constant dense<0.000000e+00> : vector<64x8xf32>
    %165 = tpu.matmul %164, %111, %cst_162 {dimension_numbers = #tpu.dot_dimension_numbers<[1], [0], [0], [1], [0, 0, 1, 1], [], []>} : vector<64x64xbf16>, vector<64x8xbf16>, vector<64x8xf32> -> vector<64x8xf32>
    %166 = arith.truncf %165 : vector<64x8xf32> to vector<64x8xbf16>
    %c1_163 = arith.constant 1 : index
    %c6_164 = arith.constant 6 : index
    %c0_165 = arith.constant 0 : index
    %c0_166 = arith.constant 0 : index
    %167 = vector.load %arg5[%c1_163, %c6_164, %c0_165, %c0_166] : memref<4x9x8x8xbf16, #tpu.memory_space<vmem>>, vector<1x1x8x8xbf16>
    %168 = vector.shape_cast %167 : vector<1x1x8x8xbf16> to vector<8x8xbf16>
    %cst_167 = arith.constant dense<0.000000e+00> : vector<64x8xf32>
    %169 = tpu.matmul %166, %168, %cst_167 {dimension_numbers = #tpu.dot_dimension_numbers<[1], [0], [0], [1], [0, 0, 1, 1], [], []>} : vector<64x8xbf16>, vector<8x8xbf16>, vector<64x8xf32> -> vector<64x8xf32>
    %170 = arith.addf %162, %169 : vector<64x8xf32>
    %c7_168 = arith.constant 7 : index
    %c0_169 = arith.constant 0 : index
    %c0_170 = arith.constant 0 : index
    %171 = vector.load %arg2[%c7_168, %c0_169, %c0_170] : memref<9x64x64xbf16, #tpu.memory_space<vmem>>, vector<1x64x64xbf16>
    %172 = vector.shape_cast %171 : vector<1x64x64xbf16> to vector<64x64xbf16>
    %cst_171 = arith.constant dense<0.000000e+00> : vector<64x8xf32>
    %173 = tpu.matmul %172, %111, %cst_171 {dimension_numbers = #tpu.dot_dimension_numbers<[1], [0], [0], [1], [0, 0, 1, 1], [], []>} : vector<64x64xbf16>, vector<64x8xbf16>, vector<64x8xf32> -> vector<64x8xf32>
    %174 = arith.truncf %173 : vector<64x8xf32> to vector<64x8xbf16>
    %c1_172 = arith.constant 1 : index
    %c7_173 = arith.constant 7 : index
    %c0_174 = arith.constant 0 : index
    %c0_175 = arith.constant 0 : index
    %175 = vector.load %arg5[%c1_172, %c7_173, %c0_174, %c0_175] : memref<4x9x8x8xbf16, #tpu.memory_space<vmem>>, vector<1x1x8x8xbf16>
    %176 = vector.shape_cast %175 : vector<1x1x8x8xbf16> to vector<8x8xbf16>
    %cst_176 = arith.constant dense<0.000000e+00> : vector<64x8xf32>
    %177 = tpu.matmul %174, %176, %cst_176 {dimension_numbers = #tpu.dot_dimension_numbers<[1], [0], [0], [1], [0, 0, 1, 1], [], []>} : vector<64x8xbf16>, vector<8x8xbf16>, vector<64x8xf32> -> vector<64x8xf32>
    %178 = arith.addf %170, %177 : vector<64x8xf32>
    %c8_177 = arith.constant 8 : index
    %c0_178 = arith.constant 0 : index
    %c0_179 = arith.constant 0 : index
    %179 = vector.load %arg2[%c8_177, %c0_178, %c0_179] : memref<9x64x64xbf16, #tpu.memory_space<vmem>>, vector<1x64x64xbf16>
    %180 = vector.shape_cast %179 : vector<1x64x64xbf16> to vector<64x64xbf16>
    %cst_180 = arith.constant dense<0.000000e+00> : vector<64x8xf32>
    %181 = tpu.matmul %180, %111, %cst_180 {dimension_numbers = #tpu.dot_dimension_numbers<[1], [0], [0], [1], [0, 0, 1, 1], [], []>} : vector<64x64xbf16>, vector<64x8xbf16>, vector<64x8xf32> -> vector<64x8xf32>
    %182 = arith.truncf %181 : vector<64x8xf32> to vector<64x8xbf16>
    %c1_181 = arith.constant 1 : index
    %c8_182 = arith.constant 8 : index
    %c0_183 = arith.constant 0 : index
    %c0_184 = arith.constant 0 : index
    %183 = vector.load %arg5[%c1_181, %c8_182, %c0_183, %c0_184] : memref<4x9x8x8xbf16, #tpu.memory_space<vmem>>, vector<1x1x8x8xbf16>
    %184 = vector.shape_cast %183 : vector<1x1x8x8xbf16> to vector<8x8xbf16>
    %cst_185 = arith.constant dense<0.000000e+00> : vector<64x8xf32>
    %185 = tpu.matmul %182, %184, %cst_185 {dimension_numbers = #tpu.dot_dimension_numbers<[1], [0], [0], [1], [0, 0, 1, 1], [], []>} : vector<64x8xbf16>, vector<8x8xbf16>, vector<64x8xf32> -> vector<64x8xf32>
    %186 = arith.addf %178, %185 : vector<64x8xf32>
    %cst_186 = arith.constant 0.000000e+00 : f32
    %187 = vector.broadcast %cst_186 : f32 to vector<64x8xf32>
    %188 = arith.maximumf %186, %187 : vector<64x8xf32>
    %c1_187 = arith.constant 1 : index
    %c0_188 = arith.constant 0 : index
    %c0_189 = arith.constant 0 : index
    %189 = vector.load %arg7[%c1_187, %c0_188, %c0_189] : memref<4x8x8xbf16, #tpu.memory_space<vmem>>, vector<1x8x8xbf16>
    %190 = vector.shape_cast %189 : vector<1x8x8xbf16> to vector<8x8xbf16>
    %191 = arith.truncf %188 : vector<64x8xf32> to vector<64x8xbf16>
    %cst_190 = arith.constant dense<0.000000e+00> : vector<64x8xf32>
    %192 = tpu.matmul %191, %190, %cst_190 {dimension_numbers = #tpu.dot_dimension_numbers<[1], [0], [0], [1], [0, 0, 1, 1], [], []>} : vector<64x8xbf16>, vector<8x8xbf16>, vector<64x8xf32> -> vector<64x8xf32>
    %c1_191 = arith.constant 1 : index
    %c0_192 = arith.constant 0 : index
    %c0_193 = arith.constant 0 : index
    %193 = vector.load %arg8[%c1_191, %c0_192, %c0_193] : memref<4x1x8xf32, #tpu.memory_space<vmem>>, vector<1x1x8xf32>
    %194 = vector.shape_cast %193 : vector<1x1x8xf32> to vector<1x8xf32>
    %195 = vector.broadcast %194 : vector<1x8xf32> to vector<64x8xf32>
    %196 = arith.addf %192, %195 : vector<64x8xf32>
    %197 = arith.addf %100, %196 : vector<64x8xf32>
    %cst_194 = arith.constant 0.000000e+00 : f32
    %198 = vector.broadcast %cst_194 : f32 to vector<64x8xf32>
    %199 = arith.maximumf %197, %198 : vector<64x8xf32>
    %c2_195 = arith.constant 2 : index
    %c0_196 = arith.constant 0 : index
    %c0_197 = arith.constant 0 : index
    %200 = vector.load %arg3[%c2_195, %c0_196, %c0_197] : memref<4x8x8xbf16, #tpu.memory_space<vmem>>, vector<1x8x8xbf16>
    %201 = vector.shape_cast %200 : vector<1x8x8xbf16> to vector<8x8xbf16>
    %202 = arith.truncf %199 : vector<64x8xf32> to vector<64x8xbf16>
    %cst_198 = arith.constant dense<0.000000e+00> : vector<64x8xf32>
    %203 = tpu.matmul %202, %201, %cst_198 {dimension_numbers = #tpu.dot_dimension_numbers<[1], [0], [0], [1], [0, 0, 1, 1], [], []>} : vector<64x8xbf16>, vector<8x8xbf16>, vector<64x8xf32> -> vector<64x8xf32>
    %c2_199 = arith.constant 2 : index
    %c0_200 = arith.constant 0 : index
    %c0_201 = arith.constant 0 : index
    %204 = vector.load %arg4[%c2_199, %c0_200, %c0_201] : memref<4x1x8xf32, #tpu.memory_space<vmem>>, vector<1x1x8xf32>
    %205 = vector.shape_cast %204 : vector<1x1x8xf32> to vector<1x8xf32>
    %206 = vector.broadcast %205 : vector<1x8xf32> to vector<64x8xf32>
    %207 = arith.addf %203, %206 : vector<64x8xf32>
    %cst_202 = arith.constant 0.000000e+00 : f32
    %208 = vector.broadcast %cst_202 : f32 to vector<64x8xf32>
    %209 = arith.maximumf %207, %208 : vector<64x8xf32>
    %210 = arith.truncf %209 : vector<64x8xf32> to vector<64x8xbf16>
    %c2_203 = arith.constant 2 : index
    %c0_204 = arith.constant 0 : index
    %c0_205 = arith.constant 0 : index
    %211 = vector.load %arg6[%c2_203, %c0_204, %c0_205] : memref<4x1x8xf32, #tpu.memory_space<vmem>>, vector<1x1x8xf32>
    %212 = vector.shape_cast %211 : vector<1x1x8xf32> to vector<1x8xf32>
    %c0_206 = arith.constant 0 : index
    %c0_207 = arith.constant 0 : index
    %c0_208 = arith.constant 0 : index
    %213 = vector.load %arg2[%c0_206, %c0_207, %c0_208] : memref<9x64x64xbf16, #tpu.memory_space<vmem>>, vector<1x64x64xbf16>
    %214 = vector.shape_cast %213 : vector<1x64x64xbf16> to vector<64x64xbf16>
    %cst_209 = arith.constant dense<0.000000e+00> : vector<64x8xf32>
    %215 = tpu.matmul %214, %210, %cst_209 {dimension_numbers = #tpu.dot_dimension_numbers<[1], [0], [0], [1], [0, 0, 1, 1], [], []>} : vector<64x64xbf16>, vector<64x8xbf16>, vector<64x8xf32> -> vector<64x8xf32>
    %216 = arith.truncf %215 : vector<64x8xf32> to vector<64x8xbf16>
    %c2_210 = arith.constant 2 : index
    %c0_211 = arith.constant 0 : index
    %c0_212 = arith.constant 0 : index
    %c0_213 = arith.constant 0 : index
    %217 = vector.load %arg5[%c2_210, %c0_211, %c0_212, %c0_213] : memref<4x9x8x8xbf16, #tpu.memory_space<vmem>>, vector<1x1x8x8xbf16>
    %218 = vector.shape_cast %217 : vector<1x1x8x8xbf16> to vector<8x8xbf16>
    %cst_214 = arith.constant dense<0.000000e+00> : vector<64x8xf32>
    %219 = tpu.matmul %216, %218, %cst_214 {dimension_numbers = #tpu.dot_dimension_numbers<[1], [0], [0], [1], [0, 0, 1, 1], [], []>} : vector<64x8xbf16>, vector<8x8xbf16>, vector<64x8xf32> -> vector<64x8xf32>
    %220 = vector.broadcast %212 : vector<1x8xf32> to vector<64x8xf32>
    %221 = arith.addf %220, %219 : vector<64x8xf32>
    %c1_215 = arith.constant 1 : index
    %c0_216 = arith.constant 0 : index
    %c0_217 = arith.constant 0 : index
    %222 = vector.load %arg2[%c1_215, %c0_216, %c0_217] : memref<9x64x64xbf16, #tpu.memory_space<vmem>>, vector<1x64x64xbf16>
    %223 = vector.shape_cast %222 : vector<1x64x64xbf16> to vector<64x64xbf16>
    %cst_218 = arith.constant dense<0.000000e+00> : vector<64x8xf32>
    %224 = tpu.matmul %223, %210, %cst_218 {dimension_numbers = #tpu.dot_dimension_numbers<[1], [0], [0], [1], [0, 0, 1, 1], [], []>} : vector<64x64xbf16>, vector<64x8xbf16>, vector<64x8xf32> -> vector<64x8xf32>
    %225 = arith.truncf %224 : vector<64x8xf32> to vector<64x8xbf16>
    %c2_219 = arith.constant 2 : index
    %c1_220 = arith.constant 1 : index
    %c0_221 = arith.constant 0 : index
    %c0_222 = arith.constant 0 : index
    %226 = vector.load %arg5[%c2_219, %c1_220, %c0_221, %c0_222] : memref<4x9x8x8xbf16, #tpu.memory_space<vmem>>, vector<1x1x8x8xbf16>
    %227 = vector.shape_cast %226 : vector<1x1x8x8xbf16> to vector<8x8xbf16>
    %cst_223 = arith.constant dense<0.000000e+00> : vector<64x8xf32>
    %228 = tpu.matmul %225, %227, %cst_223 {dimension_numbers = #tpu.dot_dimension_numbers<[1], [0], [0], [1], [0, 0, 1, 1], [], []>} : vector<64x8xbf16>, vector<8x8xbf16>, vector<64x8xf32> -> vector<64x8xf32>
    %229 = arith.addf %221, %228 : vector<64x8xf32>
    %c2_224 = arith.constant 2 : index
    %c0_225 = arith.constant 0 : index
    %c0_226 = arith.constant 0 : index
    %230 = vector.load %arg2[%c2_224, %c0_225, %c0_226] : memref<9x64x64xbf16, #tpu.memory_space<vmem>>, vector<1x64x64xbf16>
    %231 = vector.shape_cast %230 : vector<1x64x64xbf16> to vector<64x64xbf16>
    %cst_227 = arith.constant dense<0.000000e+00> : vector<64x8xf32>
    %232 = tpu.matmul %231, %210, %cst_227 {dimension_numbers = #tpu.dot_dimension_numbers<[1], [0], [0], [1], [0, 0, 1, 1], [], []>} : vector<64x64xbf16>, vector<64x8xbf16>, vector<64x8xf32> -> vector<64x8xf32>
    %233 = arith.truncf %232 : vector<64x8xf32> to vector<64x8xbf16>
    %c2_228 = arith.constant 2 : index
    %c2_229 = arith.constant 2 : index
    %c0_230 = arith.constant 0 : index
    %c0_231 = arith.constant 0 : index
    %234 = vector.load %arg5[%c2_228, %c2_229, %c0_230, %c0_231] : memref<4x9x8x8xbf16, #tpu.memory_space<vmem>>, vector<1x1x8x8xbf16>
    %235 = vector.shape_cast %234 : vector<1x1x8x8xbf16> to vector<8x8xbf16>
    %cst_232 = arith.constant dense<0.000000e+00> : vector<64x8xf32>
    %236 = tpu.matmul %233, %235, %cst_232 {dimension_numbers = #tpu.dot_dimension_numbers<[1], [0], [0], [1], [0, 0, 1, 1], [], []>} : vector<64x8xbf16>, vector<8x8xbf16>, vector<64x8xf32> -> vector<64x8xf32>
    %237 = arith.addf %229, %236 : vector<64x8xf32>
    %c3_233 = arith.constant 3 : index
    %c0_234 = arith.constant 0 : index
    %c0_235 = arith.constant 0 : index
    %238 = vector.load %arg2[%c3_233, %c0_234, %c0_235] : memref<9x64x64xbf16, #tpu.memory_space<vmem>>, vector<1x64x64xbf16>
    %239 = vector.shape_cast %238 : vector<1x64x64xbf16> to vector<64x64xbf16>
    %cst_236 = arith.constant dense<0.000000e+00> : vector<64x8xf32>
    %240 = tpu.matmul %239, %210, %cst_236 {dimension_numbers = #tpu.dot_dimension_numbers<[1], [0], [0], [1], [0, 0, 1, 1], [], []>} : vector<64x64xbf16>, vector<64x8xbf16>, vector<64x8xf32> -> vector<64x8xf32>
    %241 = arith.truncf %240 : vector<64x8xf32> to vector<64x8xbf16>
    %c2_237 = arith.constant 2 : index
    %c3_238 = arith.constant 3 : index
    %c0_239 = arith.constant 0 : index
    %c0_240 = arith.constant 0 : index
    %242 = vector.load %arg5[%c2_237, %c3_238, %c0_239, %c0_240] : memref<4x9x8x8xbf16, #tpu.memory_space<vmem>>, vector<1x1x8x8xbf16>
    %243 = vector.shape_cast %242 : vector<1x1x8x8xbf16> to vector<8x8xbf16>
    %cst_241 = arith.constant dense<0.000000e+00> : vector<64x8xf32>
    %244 = tpu.matmul %241, %243, %cst_241 {dimension_numbers = #tpu.dot_dimension_numbers<[1], [0], [0], [1], [0, 0, 1, 1], [], []>} : vector<64x8xbf16>, vector<8x8xbf16>, vector<64x8xf32> -> vector<64x8xf32>
    %245 = arith.addf %237, %244 : vector<64x8xf32>
    %c4_242 = arith.constant 4 : index
    %c0_243 = arith.constant 0 : index
    %c0_244 = arith.constant 0 : index
    %246 = vector.load %arg2[%c4_242, %c0_243, %c0_244] : memref<9x64x64xbf16, #tpu.memory_space<vmem>>, vector<1x64x64xbf16>
    %247 = vector.shape_cast %246 : vector<1x64x64xbf16> to vector<64x64xbf16>
    %cst_245 = arith.constant dense<0.000000e+00> : vector<64x8xf32>
    %248 = tpu.matmul %247, %210, %cst_245 {dimension_numbers = #tpu.dot_dimension_numbers<[1], [0], [0], [1], [0, 0, 1, 1], [], []>} : vector<64x64xbf16>, vector<64x8xbf16>, vector<64x8xf32> -> vector<64x8xf32>
    %249 = arith.truncf %248 : vector<64x8xf32> to vector<64x8xbf16>
    %c2_246 = arith.constant 2 : index
    %c4_247 = arith.constant 4 : index
    %c0_248 = arith.constant 0 : index
    %c0_249 = arith.constant 0 : index
    %250 = vector.load %arg5[%c2_246, %c4_247, %c0_248, %c0_249] : memref<4x9x8x8xbf16, #tpu.memory_space<vmem>>, vector<1x1x8x8xbf16>
    %251 = vector.shape_cast %250 : vector<1x1x8x8xbf16> to vector<8x8xbf16>
    %cst_250 = arith.constant dense<0.000000e+00> : vector<64x8xf32>
    %252 = tpu.matmul %249, %251, %cst_250 {dimension_numbers = #tpu.dot_dimension_numbers<[1], [0], [0], [1], [0, 0, 1, 1], [], []>} : vector<64x8xbf16>, vector<8x8xbf16>, vector<64x8xf32> -> vector<64x8xf32>
    %253 = arith.addf %245, %252 : vector<64x8xf32>
    %c5_251 = arith.constant 5 : index
    %c0_252 = arith.constant 0 : index
    %c0_253 = arith.constant 0 : index
    %254 = vector.load %arg2[%c5_251, %c0_252, %c0_253] : memref<9x64x64xbf16, #tpu.memory_space<vmem>>, vector<1x64x64xbf16>
    %255 = vector.shape_cast %254 : vector<1x64x64xbf16> to vector<64x64xbf16>
    %cst_254 = arith.constant dense<0.000000e+00> : vector<64x8xf32>
    %256 = tpu.matmul %255, %210, %cst_254 {dimension_numbers = #tpu.dot_dimension_numbers<[1], [0], [0], [1], [0, 0, 1, 1], [], []>} : vector<64x64xbf16>, vector<64x8xbf16>, vector<64x8xf32> -> vector<64x8xf32>
    %257 = arith.truncf %256 : vector<64x8xf32> to vector<64x8xbf16>
    %c2_255 = arith.constant 2 : index
    %c5_256 = arith.constant 5 : index
    %c0_257 = arith.constant 0 : index
    %c0_258 = arith.constant 0 : index
    %258 = vector.load %arg5[%c2_255, %c5_256, %c0_257, %c0_258] : memref<4x9x8x8xbf16, #tpu.memory_space<vmem>>, vector<1x1x8x8xbf16>
    %259 = vector.shape_cast %258 : vector<1x1x8x8xbf16> to vector<8x8xbf16>
    %cst_259 = arith.constant dense<0.000000e+00> : vector<64x8xf32>
    %260 = tpu.matmul %257, %259, %cst_259 {dimension_numbers = #tpu.dot_dimension_numbers<[1], [0], [0], [1], [0, 0, 1, 1], [], []>} : vector<64x8xbf16>, vector<8x8xbf16>, vector<64x8xf32> -> vector<64x8xf32>
    %261 = arith.addf %253, %260 : vector<64x8xf32>
    %c6_260 = arith.constant 6 : index
    %c0_261 = arith.constant 0 : index
    %c0_262 = arith.constant 0 : index
    %262 = vector.load %arg2[%c6_260, %c0_261, %c0_262] : memref<9x64x64xbf16, #tpu.memory_space<vmem>>, vector<1x64x64xbf16>
    %263 = vector.shape_cast %262 : vector<1x64x64xbf16> to vector<64x64xbf16>
    %cst_263 = arith.constant dense<0.000000e+00> : vector<64x8xf32>
    %264 = tpu.matmul %263, %210, %cst_263 {dimension_numbers = #tpu.dot_dimension_numbers<[1], [0], [0], [1], [0, 0, 1, 1], [], []>} : vector<64x64xbf16>, vector<64x8xbf16>, vector<64x8xf32> -> vector<64x8xf32>
    %265 = arith.truncf %264 : vector<64x8xf32> to vector<64x8xbf16>
    %c2_264 = arith.constant 2 : index
    %c6_265 = arith.constant 6 : index
    %c0_266 = arith.constant 0 : index
    %c0_267 = arith.constant 0 : index
    %266 = vector.load %arg5[%c2_264, %c6_265, %c0_266, %c0_267] : memref<4x9x8x8xbf16, #tpu.memory_space<vmem>>, vector<1x1x8x8xbf16>
    %267 = vector.shape_cast %266 : vector<1x1x8x8xbf16> to vector<8x8xbf16>
    %cst_268 = arith.constant dense<0.000000e+00> : vector<64x8xf32>
    %268 = tpu.matmul %265, %267, %cst_268 {dimension_numbers = #tpu.dot_dimension_numbers<[1], [0], [0], [1], [0, 0, 1, 1], [], []>} : vector<64x8xbf16>, vector<8x8xbf16>, vector<64x8xf32> -> vector<64x8xf32>
    %269 = arith.addf %261, %268 : vector<64x8xf32>
    %c7_269 = arith.constant 7 : index
    %c0_270 = arith.constant 0 : index
    %c0_271 = arith.constant 0 : index
    %270 = vector.load %arg2[%c7_269, %c0_270, %c0_271] : memref<9x64x64xbf16, #tpu.memory_space<vmem>>, vector<1x64x64xbf16>
    %271 = vector.shape_cast %270 : vector<1x64x64xbf16> to vector<64x64xbf16>
    %cst_272 = arith.constant dense<0.000000e+00> : vector<64x8xf32>
    %272 = tpu.matmul %271, %210, %cst_272 {dimension_numbers = #tpu.dot_dimension_numbers<[1], [0], [0], [1], [0, 0, 1, 1], [], []>} : vector<64x64xbf16>, vector<64x8xbf16>, vector<64x8xf32> -> vector<64x8xf32>
    %273 = arith.truncf %272 : vector<64x8xf32> to vector<64x8xbf16>
    %c2_273 = arith.constant 2 : index
    %c7_274 = arith.constant 7 : index
    %c0_275 = arith.constant 0 : index
    %c0_276 = arith.constant 0 : index
    %274 = vector.load %arg5[%c2_273, %c7_274, %c0_275, %c0_276] : memref<4x9x8x8xbf16, #tpu.memory_space<vmem>>, vector<1x1x8x8xbf16>
    %275 = vector.shape_cast %274 : vector<1x1x8x8xbf16> to vector<8x8xbf16>
    %cst_277 = arith.constant dense<0.000000e+00> : vector<64x8xf32>
    %276 = tpu.matmul %273, %275, %cst_277 {dimension_numbers = #tpu.dot_dimension_numbers<[1], [0], [0], [1], [0, 0, 1, 1], [], []>} : vector<64x8xbf16>, vector<8x8xbf16>, vector<64x8xf32> -> vector<64x8xf32>
    %277 = arith.addf %269, %276 : vector<64x8xf32>
    %c8_278 = arith.constant 8 : index
    %c0_279 = arith.constant 0 : index
    %c0_280 = arith.constant 0 : index
    %278 = vector.load %arg2[%c8_278, %c0_279, %c0_280] : memref<9x64x64xbf16, #tpu.memory_space<vmem>>, vector<1x64x64xbf16>
    %279 = vector.shape_cast %278 : vector<1x64x64xbf16> to vector<64x64xbf16>
    %cst_281 = arith.constant dense<0.000000e+00> : vector<64x8xf32>
    %280 = tpu.matmul %279, %210, %cst_281 {dimension_numbers = #tpu.dot_dimension_numbers<[1], [0], [0], [1], [0, 0, 1, 1], [], []>} : vector<64x64xbf16>, vector<64x8xbf16>, vector<64x8xf32> -> vector<64x8xf32>
    %281 = arith.truncf %280 : vector<64x8xf32> to vector<64x8xbf16>
    %c2_282 = arith.constant 2 : index
    %c8_283 = arith.constant 8 : index
    %c0_284 = arith.constant 0 : index
    %c0_285 = arith.constant 0 : index
    %282 = vector.load %arg5[%c2_282, %c8_283, %c0_284, %c0_285] : memref<4x9x8x8xbf16, #tpu.memory_space<vmem>>, vector<1x1x8x8xbf16>
    %283 = vector.shape_cast %282 : vector<1x1x8x8xbf16> to vector<8x8xbf16>
    %cst_286 = arith.constant dense<0.000000e+00> : vector<64x8xf32>
    %284 = tpu.matmul %281, %283, %cst_286 {dimension_numbers = #tpu.dot_dimension_numbers<[1], [0], [0], [1], [0, 0, 1, 1], [], []>} : vector<64x8xbf16>, vector<8x8xbf16>, vector<64x8xf32> -> vector<64x8xf32>
    %285 = arith.addf %277, %284 : vector<64x8xf32>
    %cst_287 = arith.constant 0.000000e+00 : f32
    %286 = vector.broadcast %cst_287 : f32 to vector<64x8xf32>
    %287 = arith.maximumf %285, %286 : vector<64x8xf32>
    %c2_288 = arith.constant 2 : index
    %c0_289 = arith.constant 0 : index
    %c0_290 = arith.constant 0 : index
    %288 = vector.load %arg7[%c2_288, %c0_289, %c0_290] : memref<4x8x8xbf16, #tpu.memory_space<vmem>>, vector<1x8x8xbf16>
    %289 = vector.shape_cast %288 : vector<1x8x8xbf16> to vector<8x8xbf16>
    %290 = arith.truncf %287 : vector<64x8xf32> to vector<64x8xbf16>
    %cst_291 = arith.constant dense<0.000000e+00> : vector<64x8xf32>
    %291 = tpu.matmul %290, %289, %cst_291 {dimension_numbers = #tpu.dot_dimension_numbers<[1], [0], [0], [1], [0, 0, 1, 1], [], []>} : vector<64x8xbf16>, vector<8x8xbf16>, vector<64x8xf32> -> vector<64x8xf32>
    %c2_292 = arith.constant 2 : index
    %c0_293 = arith.constant 0 : index
    %c0_294 = arith.constant 0 : index
    %292 = vector.load %arg8[%c2_292, %c0_293, %c0_294] : memref<4x1x8xf32, #tpu.memory_space<vmem>>, vector<1x1x8xf32>
    %293 = vector.shape_cast %292 : vector<1x1x8xf32> to vector<1x8xf32>
    %294 = vector.broadcast %293 : vector<1x8xf32> to vector<64x8xf32>
    %295 = arith.addf %291, %294 : vector<64x8xf32>
    %296 = arith.addf %199, %295 : vector<64x8xf32>
    %cst_295 = arith.constant 0.000000e+00 : f32
    %297 = vector.broadcast %cst_295 : f32 to vector<64x8xf32>
    %298 = arith.maximumf %296, %297 : vector<64x8xf32>
    %c3_296 = arith.constant 3 : index
    %c0_297 = arith.constant 0 : index
    %c0_298 = arith.constant 0 : index
    %299 = vector.load %arg3[%c3_296, %c0_297, %c0_298] : memref<4x8x8xbf16, #tpu.memory_space<vmem>>, vector<1x8x8xbf16>
    %300 = vector.shape_cast %299 : vector<1x8x8xbf16> to vector<8x8xbf16>
    %301 = arith.truncf %298 : vector<64x8xf32> to vector<64x8xbf16>
    %cst_299 = arith.constant dense<0.000000e+00> : vector<64x8xf32>
    %302 = tpu.matmul %301, %300, %cst_299 {dimension_numbers = #tpu.dot_dimension_numbers<[1], [0], [0], [1], [0, 0, 1, 1], [], []>} : vector<64x8xbf16>, vector<8x8xbf16>, vector<64x8xf32> -> vector<64x8xf32>
    %c3_300 = arith.constant 3 : index
    %c0_301 = arith.constant 0 : index
    %c0_302 = arith.constant 0 : index
    %303 = vector.load %arg4[%c3_300, %c0_301, %c0_302] : memref<4x1x8xf32, #tpu.memory_space<vmem>>, vector<1x1x8xf32>
    %304 = vector.shape_cast %303 : vector<1x1x8xf32> to vector<1x8xf32>
    %305 = vector.broadcast %304 : vector<1x8xf32> to vector<64x8xf32>
    %306 = arith.addf %302, %305 : vector<64x8xf32>
    %cst_303 = arith.constant 0.000000e+00 : f32
    %307 = vector.broadcast %cst_303 : f32 to vector<64x8xf32>
    %308 = arith.maximumf %306, %307 : vector<64x8xf32>
    %309 = arith.truncf %308 : vector<64x8xf32> to vector<64x8xbf16>
    %c3_304 = arith.constant 3 : index
    %c0_305 = arith.constant 0 : index
    %c0_306 = arith.constant 0 : index
    %310 = vector.load %arg6[%c3_304, %c0_305, %c0_306] : memref<4x1x8xf32, #tpu.memory_space<vmem>>, vector<1x1x8xf32>
    %311 = vector.shape_cast %310 : vector<1x1x8xf32> to vector<1x8xf32>
    %c0_307 = arith.constant 0 : index
    %c0_308 = arith.constant 0 : index
    %c0_309 = arith.constant 0 : index
    %312 = vector.load %arg2[%c0_307, %c0_308, %c0_309] : memref<9x64x64xbf16, #tpu.memory_space<vmem>>, vector<1x64x64xbf16>
    %313 = vector.shape_cast %312 : vector<1x64x64xbf16> to vector<64x64xbf16>
    %cst_310 = arith.constant dense<0.000000e+00> : vector<64x8xf32>
    %314 = tpu.matmul %313, %309, %cst_310 {dimension_numbers = #tpu.dot_dimension_numbers<[1], [0], [0], [1], [0, 0, 1, 1], [], []>} : vector<64x64xbf16>, vector<64x8xbf16>, vector<64x8xf32> -> vector<64x8xf32>
    %315 = arith.truncf %314 : vector<64x8xf32> to vector<64x8xbf16>
    %c3_311 = arith.constant 3 : index
    %c0_312 = arith.constant 0 : index
    %c0_313 = arith.constant 0 : index
    %c0_314 = arith.constant 0 : index
    %316 = vector.load %arg5[%c3_311, %c0_312, %c0_313, %c0_314] : memref<4x9x8x8xbf16, #tpu.memory_space<vmem>>, vector<1x1x8x8xbf16>
    %317 = vector.shape_cast %316 : vector<1x1x8x8xbf16> to vector<8x8xbf16>
    %cst_315 = arith.constant dense<0.000000e+00> : vector<64x8xf32>
    %318 = tpu.matmul %315, %317, %cst_315 {dimension_numbers = #tpu.dot_dimension_numbers<[1], [0], [0], [1], [0, 0, 1, 1], [], []>} : vector<64x8xbf16>, vector<8x8xbf16>, vector<64x8xf32> -> vector<64x8xf32>
    %319 = vector.broadcast %311 : vector<1x8xf32> to vector<64x8xf32>
    %320 = arith.addf %319, %318 : vector<64x8xf32>
    %c1_316 = arith.constant 1 : index
    %c0_317 = arith.constant 0 : index
    %c0_318 = arith.constant 0 : index
    %321 = vector.load %arg2[%c1_316, %c0_317, %c0_318] : memref<9x64x64xbf16, #tpu.memory_space<vmem>>, vector<1x64x64xbf16>
    %322 = vector.shape_cast %321 : vector<1x64x64xbf16> to vector<64x64xbf16>
    %cst_319 = arith.constant dense<0.000000e+00> : vector<64x8xf32>
    %323 = tpu.matmul %322, %309, %cst_319 {dimension_numbers = #tpu.dot_dimension_numbers<[1], [0], [0], [1], [0, 0, 1, 1], [], []>} : vector<64x64xbf16>, vector<64x8xbf16>, vector<64x8xf32> -> vector<64x8xf32>
    %324 = arith.truncf %323 : vector<64x8xf32> to vector<64x8xbf16>
    %c3_320 = arith.constant 3 : index
    %c1_321 = arith.constant 1 : index
    %c0_322 = arith.constant 0 : index
    %c0_323 = arith.constant 0 : index
    %325 = vector.load %arg5[%c3_320, %c1_321, %c0_322, %c0_323] : memref<4x9x8x8xbf16, #tpu.memory_space<vmem>>, vector<1x1x8x8xbf16>
    %326 = vector.shape_cast %325 : vector<1x1x8x8xbf16> to vector<8x8xbf16>
    %cst_324 = arith.constant dense<0.000000e+00> : vector<64x8xf32>
    %327 = tpu.matmul %324, %326, %cst_324 {dimension_numbers = #tpu.dot_dimension_numbers<[1], [0], [0], [1], [0, 0, 1, 1], [], []>} : vector<64x8xbf16>, vector<8x8xbf16>, vector<64x8xf32> -> vector<64x8xf32>
    %328 = arith.addf %320, %327 : vector<64x8xf32>
    %c2_325 = arith.constant 2 : index
    %c0_326 = arith.constant 0 : index
    %c0_327 = arith.constant 0 : index
    %329 = vector.load %arg2[%c2_325, %c0_326, %c0_327] : memref<9x64x64xbf16, #tpu.memory_space<vmem>>, vector<1x64x64xbf16>
    %330 = vector.shape_cast %329 : vector<1x64x64xbf16> to vector<64x64xbf16>
    %cst_328 = arith.constant dense<0.000000e+00> : vector<64x8xf32>
    %331 = tpu.matmul %330, %309, %cst_328 {dimension_numbers = #tpu.dot_dimension_numbers<[1], [0], [0], [1], [0, 0, 1, 1], [], []>} : vector<64x64xbf16>, vector<64x8xbf16>, vector<64x8xf32> -> vector<64x8xf32>
    %332 = arith.truncf %331 : vector<64x8xf32> to vector<64x8xbf16>
    %c3_329 = arith.constant 3 : index
    %c2_330 = arith.constant 2 : index
    %c0_331 = arith.constant 0 : index
    %c0_332 = arith.constant 0 : index
    %333 = vector.load %arg5[%c3_329, %c2_330, %c0_331, %c0_332] : memref<4x9x8x8xbf16, #tpu.memory_space<vmem>>, vector<1x1x8x8xbf16>
    %334 = vector.shape_cast %333 : vector<1x1x8x8xbf16> to vector<8x8xbf16>
    %cst_333 = arith.constant dense<0.000000e+00> : vector<64x8xf32>
    %335 = tpu.matmul %332, %334, %cst_333 {dimension_numbers = #tpu.dot_dimension_numbers<[1], [0], [0], [1], [0, 0, 1, 1], [], []>} : vector<64x8xbf16>, vector<8x8xbf16>, vector<64x8xf32> -> vector<64x8xf32>
    %336 = arith.addf %328, %335 : vector<64x8xf32>
    %c3_334 = arith.constant 3 : index
    %c0_335 = arith.constant 0 : index
    %c0_336 = arith.constant 0 : index
    %337 = vector.load %arg2[%c3_334, %c0_335, %c0_336] : memref<9x64x64xbf16, #tpu.memory_space<vmem>>, vector<1x64x64xbf16>
    %338 = vector.shape_cast %337 : vector<1x64x64xbf16> to vector<64x64xbf16>
    %cst_337 = arith.constant dense<0.000000e+00> : vector<64x8xf32>
    %339 = tpu.matmul %338, %309, %cst_337 {dimension_numbers = #tpu.dot_dimension_numbers<[1], [0], [0], [1], [0, 0, 1, 1], [], []>} : vector<64x64xbf16>, vector<64x8xbf16>, vector<64x8xf32> -> vector<64x8xf32>
    %340 = arith.truncf %339 : vector<64x8xf32> to vector<64x8xbf16>
    %c3_338 = arith.constant 3 : index
    %c3_339 = arith.constant 3 : index
    %c0_340 = arith.constant 0 : index
    %c0_341 = arith.constant 0 : index
    %341 = vector.load %arg5[%c3_338, %c3_339, %c0_340, %c0_341] : memref<4x9x8x8xbf16, #tpu.memory_space<vmem>>, vector<1x1x8x8xbf16>
    %342 = vector.shape_cast %341 : vector<1x1x8x8xbf16> to vector<8x8xbf16>
    %cst_342 = arith.constant dense<0.000000e+00> : vector<64x8xf32>
    %343 = tpu.matmul %340, %342, %cst_342 {dimension_numbers = #tpu.dot_dimension_numbers<[1], [0], [0], [1], [0, 0, 1, 1], [], []>} : vector<64x8xbf16>, vector<8x8xbf16>, vector<64x8xf32> -> vector<64x8xf32>
    %344 = arith.addf %336, %343 : vector<64x8xf32>
    %c4_343 = arith.constant 4 : index
    %c0_344 = arith.constant 0 : index
    %c0_345 = arith.constant 0 : index
    %345 = vector.load %arg2[%c4_343, %c0_344, %c0_345] : memref<9x64x64xbf16, #tpu.memory_space<vmem>>, vector<1x64x64xbf16>
    %346 = vector.shape_cast %345 : vector<1x64x64xbf16> to vector<64x64xbf16>
    %cst_346 = arith.constant dense<0.000000e+00> : vector<64x8xf32>
    %347 = tpu.matmul %346, %309, %cst_346 {dimension_numbers = #tpu.dot_dimension_numbers<[1], [0], [0], [1], [0, 0, 1, 1], [], []>} : vector<64x64xbf16>, vector<64x8xbf16>, vector<64x8xf32> -> vector<64x8xf32>
    %348 = arith.truncf %347 : vector<64x8xf32> to vector<64x8xbf16>
    %c3_347 = arith.constant 3 : index
    %c4_348 = arith.constant 4 : index
    %c0_349 = arith.constant 0 : index
    %c0_350 = arith.constant 0 : index
    %349 = vector.load %arg5[%c3_347, %c4_348, %c0_349, %c0_350] : memref<4x9x8x8xbf16, #tpu.memory_space<vmem>>, vector<1x1x8x8xbf16>
    %350 = vector.shape_cast %349 : vector<1x1x8x8xbf16> to vector<8x8xbf16>
    %cst_351 = arith.constant dense<0.000000e+00> : vector<64x8xf32>
    %351 = tpu.matmul %348, %350, %cst_351 {dimension_numbers = #tpu.dot_dimension_numbers<[1], [0], [0], [1], [0, 0, 1, 1], [], []>} : vector<64x8xbf16>, vector<8x8xbf16>, vector<64x8xf32> -> vector<64x8xf32>
    %352 = arith.addf %344, %351 : vector<64x8xf32>
    %c5_352 = arith.constant 5 : index
    %c0_353 = arith.constant 0 : index
    %c0_354 = arith.constant 0 : index
    %353 = vector.load %arg2[%c5_352, %c0_353, %c0_354] : memref<9x64x64xbf16, #tpu.memory_space<vmem>>, vector<1x64x64xbf16>
    %354 = vector.shape_cast %353 : vector<1x64x64xbf16> to vector<64x64xbf16>
    %cst_355 = arith.constant dense<0.000000e+00> : vector<64x8xf32>
    %355 = tpu.matmul %354, %309, %cst_355 {dimension_numbers = #tpu.dot_dimension_numbers<[1], [0], [0], [1], [0, 0, 1, 1], [], []>} : vector<64x64xbf16>, vector<64x8xbf16>, vector<64x8xf32> -> vector<64x8xf32>
    %356 = arith.truncf %355 : vector<64x8xf32> to vector<64x8xbf16>
    %c3_356 = arith.constant 3 : index
    %c5_357 = arith.constant 5 : index
    %c0_358 = arith.constant 0 : index
    %c0_359 = arith.constant 0 : index
    %357 = vector.load %arg5[%c3_356, %c5_357, %c0_358, %c0_359] : memref<4x9x8x8xbf16, #tpu.memory_space<vmem>>, vector<1x1x8x8xbf16>
    %358 = vector.shape_cast %357 : vector<1x1x8x8xbf16> to vector<8x8xbf16>
    %cst_360 = arith.constant dense<0.000000e+00> : vector<64x8xf32>
    %359 = tpu.matmul %356, %358, %cst_360 {dimension_numbers = #tpu.dot_dimension_numbers<[1], [0], [0], [1], [0, 0, 1, 1], [], []>} : vector<64x8xbf16>, vector<8x8xbf16>, vector<64x8xf32> -> vector<64x8xf32>
    %360 = arith.addf %352, %359 : vector<64x8xf32>
    %c6_361 = arith.constant 6 : index
    %c0_362 = arith.constant 0 : index
    %c0_363 = arith.constant 0 : index
    %361 = vector.load %arg2[%c6_361, %c0_362, %c0_363] : memref<9x64x64xbf16, #tpu.memory_space<vmem>>, vector<1x64x64xbf16>
    %362 = vector.shape_cast %361 : vector<1x64x64xbf16> to vector<64x64xbf16>
    %cst_364 = arith.constant dense<0.000000e+00> : vector<64x8xf32>
    %363 = tpu.matmul %362, %309, %cst_364 {dimension_numbers = #tpu.dot_dimension_numbers<[1], [0], [0], [1], [0, 0, 1, 1], [], []>} : vector<64x64xbf16>, vector<64x8xbf16>, vector<64x8xf32> -> vector<64x8xf32>
    %364 = arith.truncf %363 : vector<64x8xf32> to vector<64x8xbf16>
    %c3_365 = arith.constant 3 : index
    %c6_366 = arith.constant 6 : index
    %c0_367 = arith.constant 0 : index
    %c0_368 = arith.constant 0 : index
    %365 = vector.load %arg5[%c3_365, %c6_366, %c0_367, %c0_368] : memref<4x9x8x8xbf16, #tpu.memory_space<vmem>>, vector<1x1x8x8xbf16>
    %366 = vector.shape_cast %365 : vector<1x1x8x8xbf16> to vector<8x8xbf16>
    %cst_369 = arith.constant dense<0.000000e+00> : vector<64x8xf32>
    %367 = tpu.matmul %364, %366, %cst_369 {dimension_numbers = #tpu.dot_dimension_numbers<[1], [0], [0], [1], [0, 0, 1, 1], [], []>} : vector<64x8xbf16>, vector<8x8xbf16>, vector<64x8xf32> -> vector<64x8xf32>
    %368 = arith.addf %360, %367 : vector<64x8xf32>
    %c7_370 = arith.constant 7 : index
    %c0_371 = arith.constant 0 : index
    %c0_372 = arith.constant 0 : index
    %369 = vector.load %arg2[%c7_370, %c0_371, %c0_372] : memref<9x64x64xbf16, #tpu.memory_space<vmem>>, vector<1x64x64xbf16>
    %370 = vector.shape_cast %369 : vector<1x64x64xbf16> to vector<64x64xbf16>
    %cst_373 = arith.constant dense<0.000000e+00> : vector<64x8xf32>
    %371 = tpu.matmul %370, %309, %cst_373 {dimension_numbers = #tpu.dot_dimension_numbers<[1], [0], [0], [1], [0, 0, 1, 1], [], []>} : vector<64x64xbf16>, vector<64x8xbf16>, vector<64x8xf32> -> vector<64x8xf32>
    %372 = arith.truncf %371 : vector<64x8xf32> to vector<64x8xbf16>
    %c3_374 = arith.constant 3 : index
    %c7_375 = arith.constant 7 : index
    %c0_376 = arith.constant 0 : index
    %c0_377 = arith.constant 0 : index
    %373 = vector.load %arg5[%c3_374, %c7_375, %c0_376, %c0_377] : memref<4x9x8x8xbf16, #tpu.memory_space<vmem>>, vector<1x1x8x8xbf16>
    %374 = vector.shape_cast %373 : vector<1x1x8x8xbf16> to vector<8x8xbf16>
    %cst_378 = arith.constant dense<0.000000e+00> : vector<64x8xf32>
    %375 = tpu.matmul %372, %374, %cst_378 {dimension_numbers = #tpu.dot_dimension_numbers<[1], [0], [0], [1], [0, 0, 1, 1], [], []>} : vector<64x8xbf16>, vector<8x8xbf16>, vector<64x8xf32> -> vector<64x8xf32>
    %376 = arith.addf %368, %375 : vector<64x8xf32>
    %c8_379 = arith.constant 8 : index
    %c0_380 = arith.constant 0 : index
    %c0_381 = arith.constant 0 : index
    %377 = vector.load %arg2[%c8_379, %c0_380, %c0_381] : memref<9x64x64xbf16, #tpu.memory_space<vmem>>, vector<1x64x64xbf16>
    %378 = vector.shape_cast %377 : vector<1x64x64xbf16> to vector<64x64xbf16>
    %cst_382 = arith.constant dense<0.000000e+00> : vector<64x8xf32>
    %379 = tpu.matmul %378, %309, %cst_382 {dimension_numbers = #tpu.dot_dimension_numbers<[1], [0], [0], [1], [0, 0, 1, 1], [], []>} : vector<64x64xbf16>, vector<64x8xbf16>, vector<64x8xf32> -> vector<64x8xf32>
    %380 = arith.truncf %379 : vector<64x8xf32> to vector<64x8xbf16>
    %c3_383 = arith.constant 3 : index
    %c8_384 = arith.constant 8 : index
    %c0_385 = arith.constant 0 : index
    %c0_386 = arith.constant 0 : index
    %381 = vector.load %arg5[%c3_383, %c8_384, %c0_385, %c0_386] : memref<4x9x8x8xbf16, #tpu.memory_space<vmem>>, vector<1x1x8x8xbf16>
    %382 = vector.shape_cast %381 : vector<1x1x8x8xbf16> to vector<8x8xbf16>
    %cst_387 = arith.constant dense<0.000000e+00> : vector<64x8xf32>
    %383 = tpu.matmul %380, %382, %cst_387 {dimension_numbers = #tpu.dot_dimension_numbers<[1], [0], [0], [1], [0, 0, 1, 1], [], []>} : vector<64x8xbf16>, vector<8x8xbf16>, vector<64x8xf32> -> vector<64x8xf32>
    %384 = arith.addf %376, %383 : vector<64x8xf32>
    %cst_388 = arith.constant 0.000000e+00 : f32
    %385 = vector.broadcast %cst_388 : f32 to vector<64x8xf32>
    %386 = arith.maximumf %384, %385 : vector<64x8xf32>
    %c3_389 = arith.constant 3 : index
    %c0_390 = arith.constant 0 : index
    %c0_391 = arith.constant 0 : index
    %387 = vector.load %arg7[%c3_389, %c0_390, %c0_391] : memref<4x8x8xbf16, #tpu.memory_space<vmem>>, vector<1x8x8xbf16>
    %388 = vector.shape_cast %387 : vector<1x8x8xbf16> to vector<8x8xbf16>
    %389 = arith.truncf %386 : vector<64x8xf32> to vector<64x8xbf16>
    %cst_392 = arith.constant dense<0.000000e+00> : vector<64x8xf32>
    %390 = tpu.matmul %389, %388, %cst_392 {dimension_numbers = #tpu.dot_dimension_numbers<[1], [0], [0], [1], [0, 0, 1, 1], [], []>} : vector<64x8xbf16>, vector<8x8xbf16>, vector<64x8xf32> -> vector<64x8xf32>
    %c3_393 = arith.constant 3 : index
    %c0_394 = arith.constant 0 : index
    %c0_395 = arith.constant 0 : index
    %391 = vector.load %arg8[%c3_393, %c0_394, %c0_395] : memref<4x1x8xf32, #tpu.memory_space<vmem>>, vector<1x1x8xf32>
    %392 = vector.shape_cast %391 : vector<1x1x8xf32> to vector<1x8xf32>
    %393 = vector.broadcast %392 : vector<1x8xf32> to vector<64x8xf32>
    %394 = arith.addf %390, %393 : vector<64x8xf32>
    %395 = arith.addf %298, %394 : vector<64x8xf32>
    %cst_396 = arith.constant 0.000000e+00 : f32
    %396 = vector.broadcast %cst_396 : f32 to vector<64x8xf32>
    %397 = arith.maximumf %395, %396 : vector<64x8xf32>
    %c0_397 = arith.constant 0 : index
    %c0_398 = arith.constant 0 : index
    %398 = vector.load %arg9[%c0_397, %c0_398] : memref<8x32xbf16, #tpu.memory_space<vmem>>, vector<8x32xbf16>
    %399 = arith.truncf %397 : vector<64x8xf32> to vector<64x8xbf16>
    %cst_399 = arith.constant dense<0.000000e+00> : vector<64x32xf32>
    %400 = tpu.matmul %399, %398, %cst_399 {dimension_numbers = #tpu.dot_dimension_numbers<[1], [0], [0], [1], [0, 0, 1, 1], [], []>} : vector<64x8xbf16>, vector<8x32xbf16>, vector<64x32xf32> -> vector<64x32xf32>
    %c0_400 = arith.constant 0 : index
    %c0_401 = arith.constant 0 : index
    %401 = vector.load %arg10[%c0_400, %c0_401] : memref<1x32xf32, #tpu.memory_space<vmem>>, vector<1x32xf32>
    %402 = vector.broadcast %401 : vector<1x32xf32> to vector<64x32xf32>
    %403 = arith.addf %400, %402 : vector<64x32xf32>
    %c0_402 = arith.constant 0 : index
    %c0_403 = arith.constant 0 : index
    %404 = vector.load %arg11[%c0_402, %c0_403] : memref<64x32xf32, #tpu.memory_space<vmem>>, vector<64x32xf32>
    %405 = arith.addf %403, %404 : vector<64x32xf32>
    %c0_404 = arith.constant 0 : index
    %c0_405 = arith.constant 0 : index
    %c0_406 = arith.constant 0 : index
    %406 = vector.load %arg12[%c0_404, %c0_405, %c0_406] : memref<1x64x32xf32, #tpu.memory_space<vmem>>, vector<1x64x32xf32>
    %407 = vector.shape_cast %406 : vector<1x64x32xf32> to vector<64x32xf32>
    %408 = vector.shape_cast %405 : vector<64x32xf32> to vector<1x64x32xf32>
    tpu.vector_store %arg12[%c0_404, %c0_405, %c0_406], %408 {strides = array<i32>} : memref<1x64x32xf32, #tpu.memory_space<vmem>>, vector<1x64x32xf32>,
    return
  }
  func.func @transform_0(%arg0: i32) -> (i32, i32, i32) {
    %c0_i32 = arith.constant 0 : i32
    %c0_i32_0 = arith.constant 0 : i32
    %c0_i32_1 = arith.constant 0 : i32
    return %arg0, %c0_i32, %c0_i32_0 : i32, i32, i32
  }
  func.func @transform_1(%arg0: i32) -> (i32, i32, i32) {
    %c0_i32 = arith.constant 0 : i32
    %c0_i32_0 = arith.constant 0 : i32
    %c0_i32_1 = arith.constant 0 : i32
    %c0_i32_2 = arith.constant 0 : i32
    return %c0_i32, %c0_i32_0, %c0_i32_1 : i32, i32, i32
  }
  func.func @transform_2(%arg0: i32) -> (i32, i32, i32) {
    %c0_i32 = arith.constant 0 : i32
    %c0_i32_0 = arith.constant 0 : i32
    %c0_i32_1 = arith.constant 0 : i32
    %c0_i32_2 = arith.constant 0 : i32
    return %c0_i32, %c0_i32_0, %c0_i32_1 : i32, i32, i32
  }
  func.func @transform_3(%arg0: i32) -> (i32, i32, i32) {
    %c0_i32 = arith.constant 0 : i32
    %c0_i32_0 = arith.constant 0 : i32
    %c0_i32_1 = arith.constant 0 : i32
    %c0_i32_2 = arith.constant 0 : i32
    return %c0_i32, %c0_i32_0, %c0_i32_1 : i32, i32, i32
  }
  func.func @transform_4(%arg0: i32) -> (i32, i32, i32, i32) {
    %c0_i32 = arith.constant 0 : i32
    %c0_i32_0 = arith.constant 0 : i32
    %c0_i32_1 = arith.constant 0 : i32
    %c0_i32_2 = arith.constant 0 : i32
    %c0_i32_3 = arith.constant 0 : i32
    return %c0_i32, %c0_i32_0, %c0_i32_1, %c0_i32_2 : i32, i32, i32, i32
  }
  func.func @transform_5(%arg0: i32) -> (i32, i32, i32) {
    %c0_i32 = arith.constant 0 : i32
    %c0_i32_0 = arith.constant 0 : i32
    %c0_i32_1 = arith.constant 0 : i32
    %c0_i32_2 = arith.constant 0 : i32
    return %c0_i32, %c0_i32_0, %c0_i32_1 : i32, i32, i32
  }
  func.func @transform_6(%arg0: i32) -> (i32, i32, i32) {
    %c0_i32 = arith.constant 0 : i32
    %c0_i32_0 = arith.constant 0 : i32
    %c0_i32_1 = arith.constant 0 : i32
    %c0_i32_2 = arith.constant 0 : i32
    return %c0_i32, %c0_i32_0, %c0_i32_1 : i32, i32, i32
  }
  func.func @transform_7(%arg0: i32) -> (i32, i32, i32) {
    %c0_i32 = arith.constant 0 : i32
    %c0_i32_0 = arith.constant 0 : i32
    %c0_i32_1 = arith.constant 0 : i32
    %c0_i32_2 = arith.constant 0 : i32
    return %c0_i32, %c0_i32_0, %c0_i32_1 : i32, i32, i32
  }
  func.func @transform_8(%arg0: i32) -> (i32, i32) {
    %c0_i32 = arith.constant 0 : i32
    %c0_i32_0 = arith.constant 0 : i32
    %c0_i32_1 = arith.constant 0 : i32
    return %c0_i32, %c0_i32_0 : i32, i32
  }
  func.func @transform_9(%arg0: i32) -> (i32, i32) {
    %c0_i32 = arith.constant 0 : i32
    %c0_i32_0 = arith.constant 0 : i32
    %c0_i32_1 = arith.constant 0 : i32
    return %c0_i32, %c0_i32_0 : i32, i32
  }
  func.func @transform_10(%arg0: i32) -> (i32, i32) {
    %c0_i32 = arith.constant 0 : i32
    %c0_i32_0 = arith.constant 0 : i32
    %c0_i32_1 = arith.constant 0 : i32
    return %c0_i32, %c0_i32_0 : i32, i32
  }
  func.func @transform_11(%arg0: i32) -> (i32, i32, i32) {
    %c0_i32 = arith.constant 0 : i32
    %c0_i32_0 = arith.constant 0 : i32
    %c0_i32_1 = arith.constant 0 : i32
    return %arg0, %c0_i32, %c0_i32_0 : i32, i32, i32
  }
}

module attributes {stable_mosaic.version = 11 : i64} {
  func.func @_path_decoder_kernel(%arg0: i32, %arg1: memref<1x8x3xf32, #tpu.memory_space<vmem>>, %arg2: memref<1x1x4xf32, #tpu.memory_space<vmem>>, %arg3: memref<1x64x32xf32, #tpu.memory_space<vmem>>, %arg4: memref<3x32xbf16, #tpu.memory_space<vmem>>, %arg5: memref<1x32xf32, #tpu.memory_space<vmem>>, %arg6: memref<32x32xbf16, #tpu.memory_space<vmem>>, %arg7: memref<1x32xf32, #tpu.memory_space<vmem>>, %arg8: memref<8x32xf32, #tpu.memory_space<vmem>>, %arg9: memref<4x32xbf16, #tpu.memory_space<vmem>>, %arg10: memref<1x32xf32, #tpu.memory_space<vmem>>, %arg11: memref<32x32xbf16, #tpu.memory_space<vmem>>, %arg12: memref<1x32xf32, #tpu.memory_space<vmem>>, %arg13: memref<32x32xbf16, #tpu.memory_space<vmem>>, %arg14: memref<1x32xf32, #tpu.memory_space<vmem>>, %arg15: memref<32x32xbf16, #tpu.memory_space<vmem>>, %arg16: memref<1x32xf32, #tpu.memory_space<vmem>>, %arg17: memref<32x32xbf16, #tpu.memory_space<vmem>>, %arg18: memref<1x32xf32, #tpu.memory_space<vmem>>, %arg19: memref<2x2x32x96xbf16, #tpu.memory_space<vmem>>, %arg20: memref<2x2x1x96xf32, #tpu.memory_space<vmem>>, %arg21: memref<2x2x32x32xbf16, #tpu.memory_space<vmem>>, %arg22: memref<2x2x1x32xf32, #tpu.memory_space<vmem>>, %arg23: memref<2x3x1x32xf32, #tpu.memory_space<vmem>>, %arg24: memref<2x3x1x32xf32, #tpu.memory_space<vmem>>, %arg25: memref<2x32x128xbf16, #tpu.memory_space<vmem>>, %arg26: memref<2x1x128xf32, #tpu.memory_space<vmem>>, %arg27: memref<2x128x32xbf16, #tpu.memory_space<vmem>>, %arg28: memref<2x1x32xf32, #tpu.memory_space<vmem>>, %arg29: memref<1x8x32xf32, #tpu.memory_space<vmem>>, %arg30: memref<1x8x32xf32, #tpu.memory_space<vmem>>) attributes {dimension_semantics = [#tpu.dimension_semantics<parallel>], iteration_bounds = array<i64: 2>, scalar_prefetch = 0 : i64, scratch_operands = 0 : i64, tpu.core_type = #tpu.core_type<tc>, window_params = [{transform_indices = @transform_0, window_bounds = array<i64: 1, 8, 3>}, {transform_indices = @transform_1, window_bounds = array<i64: 1, 1, 4>}, {transform_indices = @transform_2, window_bounds = array<i64: 1, 64, 32>}, {pipeline_mode = #tpu.pipeline_mode<synchronous>, transform_indices = @transform_3, window_bounds = array<i64: 3, 32>}, {pipeline_mode = #tpu.pipeline_mode<synchronous>, transform_indices = @transform_4, window_bounds = array<i64: 1, 32>}, {pipeline_mode = #tpu.pipeline_mode<synchronous>, transform_indices = @transform_5, window_bounds = array<i64: 32, 32>}, {pipeline_mode = #tpu.pipeline_mode<synchronous>, transform_indices = @transform_6, window_bounds = array<i64: 1, 32>}, {pipeline_mode = #tpu.pipeline_mode<synchronous>, transform_indices = @transform_7, window_bounds = array<i64: 8, 32>}, {pipeline_mode = #tpu.pipeline_mode<synchronous>, transform_indices = @transform_8, window_bounds = array<i64: 4, 32>}, {pipeline_mode = #tpu.pipeline_mode<synchronous>, transform_indices = @transform_9, window_bounds = array<i64: 1, 32>}, {pipeline_mode = #tpu.pipeline_mode<synchronous>, transform_indices = @transform_10, window_bounds = array<i64: 32, 32>}, {pipeline_mode = #tpu.pipeline_mode<synchronous>, transform_indices = @transform_11, window_bounds = array<i64: 1, 32>}, {pipeline_mode = #tpu.pipeline_mode<synchronous>, transform_indices = @transform_12, window_bounds = array<i64: 32, 32>}, {pipeline_mode = #tpu.pipeline_mode<synchronous>, transform_indices = @transform_13, window_bounds = array<i64: 1, 32>}, {pipeline_mode = #tpu.pipeline_mode<synchronous>, transform_indices = @transform_14, window_bounds = array<i64: 32, 32>}, {pipeline_mode = #tpu.pipeline_mode<synchronous>, transform_indices = @transform_15, window_bounds = array<i64: 1, 32>}, {pipeline_mode = #tpu.pipeline_mode<synchronous>, transform_indices = @transform_16, window_bounds = array<i64: 32, 32>}, {pipeline_mode = #tpu.pipeline_mode<synchronous>, transform_indices = @transform_17, window_bounds = array<i64: 1, 32>}, {pipeline_mode = #tpu.pipeline_mode<synchronous>, transform_indices = @transform_18, window_bounds = array<i64: 2, 2, 32, 96>}, {pipeline_mode = #tpu.pipeline_mode<synchronous>, transform_indices = @transform_19, window_bounds = array<i64: 2, 2, 1, 96>}, {pipeline_mode = #tpu.pipeline_mode<synchronous>, transform_indices = @transform_20, window_bounds = array<i64: 2, 2, 32, 32>}, {pipeline_mode = #tpu.pipeline_mode<synchronous>, transform_indices = @transform_21, window_bounds = array<i64: 2, 2, 1, 32>}, {pipeline_mode = #tpu.pipeline_mode<synchronous>, transform_indices = @transform_22, window_bounds = array<i64: 2, 3, 1, 32>}, {pipeline_mode = #tpu.pipeline_mode<synchronous>, transform_indices = @transform_23, window_bounds = array<i64: 2, 3, 1, 32>}, {pipeline_mode = #tpu.pipeline_mode<synchronous>, transform_indices = @transform_24, window_bounds = array<i64: 2, 32, 128>}, {pipeline_mode = #tpu.pipeline_mode<synchronous>, transform_indices = @transform_25, window_bounds = array<i64: 2, 1, 128>}, {pipeline_mode = #tpu.pipeline_mode<synchronous>, transform_indices = @transform_26, window_bounds = array<i64: 2, 128, 32>}, {pipeline_mode = #tpu.pipeline_mode<synchronous>, transform_indices = @transform_27, window_bounds = array<i64: 2, 1, 32>}, {transform_indices = @transform_28, window_bounds = array<i64: 1, 8, 32>}, {transform_indices = @transform_29, window_bounds = array<i64: 1, 8, 32>}]} {
    %c0 = arith.constant 0 : index
    %c0_0 = arith.constant 0 : index
    %c0_1 = arith.constant 0 : index
    %0 = vector.load %arg1[%c0, %c0_0, %c0_1] : memref<1x8x3xf32, #tpu.memory_space<vmem>>, vector<1x8x3xf32>
    %1 = vector.shape_cast %0 : vector<1x8x3xf32> to vector<8x3xf32>
    %c0_2 = arith.constant 0 : index
    %c0_3 = arith.constant 0 : index
    %2 = vector.load %arg4[%c0_2, %c0_3] : memref<3x32xbf16, #tpu.memory_space<vmem>>, vector<3x32xbf16>
    %3 = arith.truncf %1 : vector<8x3xf32> to vector<8x3xbf16>
    %cst = arith.constant dense<0.000000e+00> : vector<8x32xf32>
    %4 = tpu.matmul %3, %2, %cst {dimension_numbers = #tpu.dot_dimension_numbers<[1], [0], [0], [1], [0, 0, 1, 1], [], []>} : vector<8x3xbf16>, vector<3x32xbf16>, vector<8x32xf32> -> vector<8x32xf32>
    %c0_4 = arith.constant 0 : index
    %c0_5 = arith.constant 0 : index
    %5 = vector.load %arg5[%c0_4, %c0_5] : memref<1x32xf32, #tpu.memory_space<vmem>>, vector<1x32xf32>
    %6 = vector.broadcast %5 : vector<1x32xf32> to vector<8x32xf32>
    %7 = arith.addf %4, %6 : vector<8x32xf32>
    %cst_6 = arith.constant 0.000000e+00 : f32
    %8 = vector.broadcast %cst_6 : f32 to vector<8x32xf32>
    %9 = arith.maximumf %7, %8 : vector<8x32xf32>
    %c0_7 = arith.constant 0 : index
    %c0_8 = arith.constant 0 : index
    %10 = vector.load %arg6[%c0_7, %c0_8] : memref<32x32xbf16, #tpu.memory_space<vmem>>, vector<32x32xbf16>
    %11 = arith.truncf %9 : vector<8x32xf32> to vector<8x32xbf16>
    %cst_9 = arith.constant dense<0.000000e+00> : vector<8x32xf32>
    %12 = tpu.matmul %11, %10, %cst_9 {dimension_numbers = #tpu.dot_dimension_numbers<[1], [0], [0], [1], [0, 0, 1, 1], [], []>} : vector<8x32xbf16>, vector<32x32xbf16>, vector<8x32xf32> -> vector<8x32xf32>
    %c0_10 = arith.constant 0 : index
    %c0_11 = arith.constant 0 : index
    %13 = vector.load %arg7[%c0_10, %c0_11] : memref<1x32xf32, #tpu.memory_space<vmem>>, vector<1x32xf32>
    %14 = vector.broadcast %13 : vector<1x32xf32> to vector<8x32xf32>
    %15 = arith.addf %12, %14 : vector<8x32xf32>
    %c0_12 = arith.constant 0 : index
    %c0_13 = arith.constant 0 : index
    %16 = vector.load %arg8[%c0_12, %c0_13] : memref<8x32xf32, #tpu.memory_space<vmem>>, vector<8x32xf32>
    %17 = arith.addf %15, %16 : vector<8x32xf32>
    %c0_14 = arith.constant 0 : index
    %c0_15 = arith.constant 0 : index
    %18 = vector.load %arg15[%c0_14, %c0_15] : memref<32x32xbf16, #tpu.memory_space<vmem>>, vector<32x32xbf16>
    %19 = arith.truncf %17 : vector<8x32xf32> to vector<8x32xbf16>
    %cst_16 = arith.constant dense<0.000000e+00> : vector<8x32xf32>
    %20 = tpu.matmul %19, %18, %cst_16 {dimension_numbers = #tpu.dot_dimension_numbers<[1], [0], [0], [1], [0, 0, 1, 1], [], []>} : vector<8x32xbf16>, vector<32x32xbf16>, vector<8x32xf32> -> vector<8x32xf32>
    %c0_17 = arith.constant 0 : index
    %c0_18 = arith.constant 0 : index
    %21 = vector.load %arg16[%c0_17, %c0_18] : memref<1x32xf32, #tpu.memory_space<vmem>>, vector<1x32xf32>
    %22 = vector.broadcast %21 : vector<1x32xf32> to vector<8x32xf32>
    %23 = arith.addf %20, %22 : vector<8x32xf32>
    %cst_19 = arith.constant 0.000000e+00 : f32
    %24 = vector.broadcast %cst_19 : f32 to vector<8x32xf32>
    %25 = arith.maximumf %23, %24 : vector<8x32xf32>
    %c0_20 = arith.constant 0 : index
    %c0_21 = arith.constant 0 : index
    %26 = vector.load %arg17[%c0_20, %c0_21] : memref<32x32xbf16, #tpu.memory_space<vmem>>, vector<32x32xbf16>
    %27 = arith.truncf %25 : vector<8x32xf32> to vector<8x32xbf16>
    %cst_22 = arith.constant dense<0.000000e+00> : vector<8x32xf32>
    %28 = tpu.matmul %27, %26, %cst_22 {dimension_numbers = #tpu.dot_dimension_numbers<[1], [0], [0], [1], [0, 0, 1, 1], [], []>} : vector<8x32xbf16>, vector<32x32xbf16>, vector<8x32xf32> -> vector<8x32xf32>
    %c0_23 = arith.constant 0 : index
    %c0_24 = arith.constant 0 : index
    %29 = vector.load %arg18[%c0_23, %c0_24] : memref<1x32xf32, #tpu.memory_space<vmem>>, vector<1x32xf32>
    %30 = vector.broadcast %29 : vector<1x32xf32> to vector<8x32xf32>
    %31 = arith.addf %28, %30 : vector<8x32xf32>
    %c0_25 = arith.constant 0 : index
    %c0_26 = arith.constant 0 : index
    %c0_27 = arith.constant 0 : index
    %32 = vector.load %arg30[%c0_25, %c0_26, %c0_27] : memref<1x8x32xf32, #tpu.memory_space<vmem>>, vector<1x8x32xf32>
    %33 = vector.shape_cast %32 : vector<1x8x32xf32> to vector<8x32xf32>
    %34 = vector.shape_cast %31 : vector<8x32xf32> to vector<1x8x32xf32>
    tpu.vector_store %arg30[%c0_25, %c0_26, %c0_27], %34 {strides = array<i32>} : memref<1x8x32xf32, #tpu.memory_space<vmem>>, vector<1x8x32xf32>,
    %c0_28 = arith.constant 0 : index
    %c0_29 = arith.constant 0 : index
    %c0_30 = arith.constant 0 : index
    %35 = vector.load %arg2[%c0_28, %c0_29, %c0_30] : memref<1x1x4xf32, #tpu.memory_space<vmem>>, vector<1x1x4xf32>
    %36 = vector.shape_cast %35 : vector<1x1x4xf32> to vector<1x4xf32>
    %c0_31 = arith.constant 0 : index
    %c0_32 = arith.constant 0 : index
    %37 = vector.load %arg9[%c0_31, %c0_32] : memref<4x32xbf16, #tpu.memory_space<vmem>>, vector<4x32xbf16>
    %38 = arith.truncf %36 : vector<1x4xf32> to vector<1x4xbf16>
    %cst_33 = arith.constant dense<0.000000e+00> : vector<1x32xf32>
    %39 = tpu.matmul %38, %37, %cst_33 {dimension_numbers = #tpu.dot_dimension_numbers<[1], [0], [0], [1], [0, 0, 1, 1], [], []>} : vector<1x4xbf16>, vector<4x32xbf16>, vector<1x32xf32> -> vector<1x32xf32>
    %c0_34 = arith.constant 0 : index
    %c0_35 = arith.constant 0 : index
    %40 = vector.load %arg10[%c0_34, %c0_35] : memref<1x32xf32, #tpu.memory_space<vmem>>, vector<1x32xf32>
    %41 = arith.addf %39, %40 : vector<1x32xf32>
    %cst_36 = arith.constant 0.000000e+00 : f32
    %42 = vector.broadcast %cst_36 : f32 to vector<1x32xf32>
    %43 = arith.maximumf %41, %42 : vector<1x32xf32>
    %c0_37 = arith.constant 0 : index
    %c0_38 = arith.constant 0 : index
    %44 = vector.load %arg11[%c0_37, %c0_38] : memref<32x32xbf16, #tpu.memory_space<vmem>>, vector<32x32xbf16>
    %45 = arith.truncf %43 : vector<1x32xf32> to vector<1x32xbf16>
    %cst_39 = arith.constant dense<0.000000e+00> : vector<1x32xf32>
    %46 = tpu.matmul %45, %44, %cst_39 {dimension_numbers = #tpu.dot_dimension_numbers<[1], [0], [0], [1], [0, 0, 1, 1], [], []>} : vector<1x32xbf16>, vector<32x32xbf16>, vector<1x32xf32> -> vector<1x32xf32>
    %c0_40 = arith.constant 0 : index
    %c0_41 = arith.constant 0 : index
    %47 = vector.load %arg12[%c0_40, %c0_41] : memref<1x32xf32, #tpu.memory_space<vmem>>, vector<1x32xf32>
    %48 = arith.addf %46, %47 : vector<1x32xf32>
    %cst_42 = arith.constant 0.000000e+00 : f32
    %49 = vector.broadcast %cst_42 : f32 to vector<1x32xf32>
    %50 = arith.maximumf %48, %49 : vector<1x32xf32>
    %c0_43 = arith.constant 0 : index
    %c0_44 = arith.constant 0 : index
    %51 = vector.load %arg13[%c0_43, %c0_44] : memref<32x32xbf16, #tpu.memory_space<vmem>>, vector<32x32xbf16>
    %52 = arith.truncf %50 : vector<1x32xf32> to vector<1x32xbf16>
    %cst_45 = arith.constant dense<0.000000e+00> : vector<1x32xf32>
    %53 = tpu.matmul %52, %51, %cst_45 {dimension_numbers = #tpu.dot_dimension_numbers<[1], [0], [0], [1], [0, 0, 1, 1], [], []>} : vector<1x32xbf16>, vector<32x32xbf16>, vector<1x32xf32> -> vector<1x32xf32>
    %c0_46 = arith.constant 0 : index
    %c0_47 = arith.constant 0 : index
    %54 = vector.load %arg14[%c0_46, %c0_47] : memref<1x32xf32, #tpu.memory_space<vmem>>, vector<1x32xf32>
    %55 = arith.addf %53, %54 : vector<1x32xf32>
    %56 = vector.broadcast %55 : vector<1x32xf32> to vector<8x32xf32>
    %57 = arith.addf %17, %56 : vector<8x32xf32>
    %58 = tpu.iota {dimensions = array<i32: 0>} : vector<8x8xi32>
    %59 = tpu.iota {dimensions = array<i32: 1>} : vector<8x8xi32>
    %60 = arith.cmpi sle, %59, %58 : vector<8x8xi32>
    %cst_48 = arith.constant 0.000000e+00 : f32
    %cst_49 = arith.constant -1.000000e+30 : f32
    %61 = vector.broadcast %cst_48 : f32 to vector<8x8xf32>
    %62 = vector.broadcast %cst_49 : f32 to vector<8x8xf32>
    %63 = arith.select %60, %61, %62 : vector<8x8xi1>, vector<8x8xf32>
    %c0_50 = arith.constant 0 : index
    %c0_51 = arith.constant 0 : index
    %c0_52 = arith.constant 0 : index
    %64 = vector.load %arg3[%c0_50, %c0_51, %c0_52] : memref<1x64x32xf32, #tpu.memory_space<vmem>>, vector<1x64x32xf32>
    %65 = vector.shape_cast %64 : vector<1x64x32xf32> to vector<64x32xf32>
    %c0_53 = arith.constant 0 : index
    %c0_54 = arith.constant 0 : index
    %c0_55 = arith.constant 0 : index
    %c0_56 = arith.constant 0 : index
    %66 = vector.load %arg19[%c0_53, %c0_54, %c0_55, %c0_56] : memref<2x2x32x96xbf16, #tpu.memory_space<vmem>>, vector<1x1x32x96xbf16>
    %67 = vector.shape_cast %66 : vector<1x1x32x96xbf16> to vector<32x96xbf16>
    %c0_57 = arith.constant 0 : index
    %c0_58 = arith.constant 0 : index
    %c0_59 = arith.constant 0 : index
    %c0_60 = arith.constant 0 : index
    %68 = vector.load %arg20[%c0_57, %c0_58, %c0_59, %c0_60] : memref<2x2x1x96xf32, #tpu.memory_space<vmem>>, vector<1x1x1x96xf32>
    %69 = vector.shape_cast %68 : vector<1x1x1x96xf32> to vector<1x96xf32>
    %c0_61 = arith.constant 0 : index
    %c0_62 = arith.constant 0 : index
    %c0_63 = arith.constant 0 : index
    %c0_64 = arith.constant 0 : index
    %70 = vector.load %arg21[%c0_61, %c0_62, %c0_63, %c0_64] : memref<2x2x32x32xbf16, #tpu.memory_space<vmem>>, vector<1x1x32x32xbf16>
    %71 = vector.shape_cast %70 : vector<1x1x32x32xbf16> to vector<32x32xbf16>
    %c0_65 = arith.constant 0 : index
    %c0_66 = arith.constant 0 : index
    %c0_67 = arith.constant 0 : index
    %c0_68 = arith.constant 0 : index
    %72 = vector.load %arg22[%c0_65, %c0_66, %c0_67, %c0_68] : memref<2x2x1x32xf32, #tpu.memory_space<vmem>>, vector<1x1x1x32xf32>
    %73 = vector.shape_cast %72 : vector<1x1x1x32xf32> to vector<1x32xf32>
    %c0_69 = arith.constant 0 : index
    %c0_70 = arith.constant 0 : index
    %c0_71 = arith.constant 0 : index
    %c0_72 = arith.constant 0 : index
    %74 = vector.load %arg23[%c0_69, %c0_70, %c0_71, %c0_72] : memref<2x3x1x32xf32, #tpu.memory_space<vmem>>, vector<1x1x1x32xf32>
    %75 = vector.shape_cast %74 : vector<1x1x1x32xf32> to vector<1x32xf32>
    %c0_73 = arith.constant 0 : index
    %c0_74 = arith.constant 0 : index
    %c0_75 = arith.constant 0 : index
    %c0_76 = arith.constant 0 : index
    %76 = vector.load %arg24[%c0_73, %c0_74, %c0_75, %c0_76] : memref<2x3x1x32xf32, #tpu.memory_space<vmem>>, vector<1x1x1x32xf32>
    %77 = vector.shape_cast %76 : vector<1x1x1x32xf32> to vector<1x32xf32>
    %78 = arith.truncf %57 : vector<8x32xf32> to vector<8x32xbf16>
    %cst_77 = arith.constant dense<0.000000e+00> : vector<8x96xf32>
    %79 = tpu.matmul %78, %67, %cst_77 {dimension_numbers = #tpu.dot_dimension_numbers<[1], [0], [0], [1], [0, 0, 1, 1], [], []>} : vector<8x32xbf16>, vector<32x96xbf16>, vector<8x96xf32> -> vector<8x96xf32>
    %80 = vector.broadcast %69 : vector<1x96xf32> to vector<8x96xf32>
    %81 = arith.addf %79, %80 : vector<8x96xf32>
    %82 = vector.extract_strided_slice %81 {offsets = [0, 0], sizes = [8, 32], strides = [1, 1]} : vector<8x96xf32> to vector<8x32xf32>
    %83 = vector.extract_strided_slice %81 {offsets = [0, 32], sizes = [8, 32], strides = [1, 1]} : vector<8x96xf32> to vector<8x32xf32>
    %84 = vector.extract_strided_slice %81 {offsets = [0, 64], sizes = [8, 32], strides = [1, 1]} : vector<8x96xf32> to vector<8x32xf32>
    %cst_78 = arith.constant 0.000000e+00 : f32
    %85 = vector.broadcast %cst_78 : f32 to vector<8x32xf32>
    %86 = vector.extract_strided_slice %82 {offsets = [0, 0], sizes = [8, 8], strides = [1, 1]} : vector<8x32xf32> to vector<8x8xf32>
    %87 = arith.truncf %86 : vector<8x8xf32> to vector<8x8xbf16>
    %88 = vector.extract_strided_slice %83 {offsets = [0, 0], sizes = [8, 8], strides = [1, 1]} : vector<8x32xf32> to vector<8x8xf32>
    %89 = arith.truncf %88 : vector<8x8xf32> to vector<8x8xbf16>
    %90 = vector.extract_strided_slice %84 {offsets = [0, 0], sizes = [8, 8], strides = [1, 1]} : vector<8x32xf32> to vector<8x8xf32>
    %91 = arith.truncf %90 : vector<8x8xf32> to vector<8x8xbf16>
    %cst_79 = arith.constant dense<0.000000e+00> : vector<8x8xf32>
    %92 = tpu.matmul %87, %89, %cst_79 {dimension_numbers = #tpu.dot_dimension_numbers<[1], [1], [0], [0], [0, 0, 1, 0], [], []>} : vector<8x8xbf16>, vector<8x8xbf16>, vector<8x8xf32> -> vector<8x8xf32>
    %cst_80 = arith.constant 0.353553385 : f32
    %93 = vector.broadcast %cst_80 : f32 to vector<8x8xf32>
    %94 = arith.mulf %92, %93 : vector<8x8xf32>
    %95 = arith.addf %94, %63 : vector<8x8xf32>
    %cst_81 = arith.constant dense<0xFF800000> : vector<8xf32>
    %96 = vector.multi_reduction <maximumf>, %95, %cst_81 [1] : vector<8x8xf32> to vector<8xf32>
    %97 = vector.shape_cast %96 : vector<8xf32> to vector<8x1xf32>
    %98 = vector.broadcast %97 : vector<8x1xf32> to vector<8x8xf32>
    %99 = arith.subf %95, %98 : vector<8x8xf32>
    %100 = math.exp %99 : vector<8x8xf32>
    %cst_82 = arith.constant dense<0.000000e+00> : vector<8xf32>
    %101 = vector.multi_reduction <add>, %100, %cst_82 [1] : vector<8x8xf32> to vector<8xf32>
    %102 = vector.shape_cast %101 : vector<8xf32> to vector<8x1xf32>
    %103 = vector.broadcast %102 : vector<8x1xf32> to vector<8x8xf32>
    %104 = arith.divf %100, %103 : vector<8x8xf32>
    %105 = arith.truncf %104 : vector<8x8xf32> to vector<8x8xbf16>
    %cst_83 = arith.constant dense<0.000000e+00> : vector<8x8xf32>
    %106 = tpu.matmul %105, %91, %cst_83 {dimension_numbers = #tpu.dot_dimension_numbers<[1], [0], [0], [1], [0, 0, 1, 1], [], []>} : vector<8x8xbf16>, vector<8x8xbf16>, vector<8x8xf32> -> vector<8x8xf32>
    %107 = arith.truncf %106 : vector<8x8xf32> to vector<8x8xbf16>
    %108 = vector.extract_strided_slice %71 {offsets = [0, 0], sizes = [8, 32], strides = [1, 1]} : vector<32x32xbf16> to vector<8x32xbf16>
    %cst_84 = arith.constant dense<0.000000e+00> : vector<8x32xf32>
    %109 = tpu.matmul %107, %108, %cst_84 {dimension_numbers = #tpu.dot_dimension_numbers<[1], [0], [0], [1], [0, 0, 1, 1], [], []>} : vector<8x8xbf16>, vector<8x32xbf16>, vector<8x32xf32> -> vector<8x32xf32>
    %110 = arith.addf %85, %109 : vector<8x32xf32>
    %111 = vector.extract_strided_slice %82 {offsets = [0, 8], sizes = [8, 8], strides = [1, 1]} : vector<8x32xf32> to vector<8x8xf32>
    %112 = arith.truncf %111 : vector<8x8xf32> to vector<8x8xbf16>
    %113 = vector.extract_strided_slice %83 {offsets = [0, 8], sizes = [8, 8], strides = [1, 1]} : vector<8x32xf32> to vector<8x8xf32>
    %114 = arith.truncf %113 : vector<8x8xf32> to vector<8x8xbf16>
    %115 = vector.extract_strided_slice %84 {offsets = [0, 8], sizes = [8, 8], strides = [1, 1]} : vector<8x32xf32> to vector<8x8xf32>
    %116 = arith.truncf %115 : vector<8x8xf32> to vector<8x8xbf16>
    %cst_85 = arith.constant dense<0.000000e+00> : vector<8x8xf32>
    %117 = tpu.matmul %112, %114, %cst_85 {dimension_numbers = #tpu.dot_dimension_numbers<[1], [1], [0], [0], [0, 0, 1, 0], [], []>} : vector<8x8xbf16>, vector<8x8xbf16>, vector<8x8xf32> -> vector<8x8xf32>
    %cst_86 = arith.constant 0.353553385 : f32
    %118 = vector.broadcast %cst_86 : f32 to vector<8x8xf32>
    %119 = arith.mulf %117, %118 : vector<8x8xf32>
    %120 = arith.addf %119, %63 : vector<8x8xf32>
    %cst_87 = arith.constant dense<0xFF800000> : vector<8xf32>
    %121 = vector.multi_reduction <maximumf>, %120, %cst_87 [1] : vector<8x8xf32> to vector<8xf32>
    %122 = vector.shape_cast %121 : vector<8xf32> to vector<8x1xf32>
    %123 = vector.broadcast %122 : vector<8x1xf32> to vector<8x8xf32>
    %124 = arith.subf %120, %123 : vector<8x8xf32>
    %125 = math.exp %124 : vector<8x8xf32>
    %cst_88 = arith.constant dense<0.000000e+00> : vector<8xf32>
    %126 = vector.multi_reduction <add>, %125, %cst_88 [1] : vector<8x8xf32> to vector<8xf32>
    %127 = vector.shape_cast %126 : vector<8xf32> to vector<8x1xf32>
    %128 = vector.broadcast %127 : vector<8x1xf32> to vector<8x8xf32>
    %129 = arith.divf %125, %128 : vector<8x8xf32>
    %130 = arith.truncf %129 : vector<8x8xf32> to vector<8x8xbf16>
    %cst_89 = arith.constant dense<0.000000e+00> : vector<8x8xf32>
    %131 = tpu.matmul %130, %116, %cst_89 {dimension_numbers = #tpu.dot_dimension_numbers<[1], [0], [0], [1], [0, 0, 1, 1], [], []>} : vector<8x8xbf16>, vector<8x8xbf16>, vector<8x8xf32> -> vector<8x8xf32>
    %132 = arith.truncf %131 : vector<8x8xf32> to vector<8x8xbf16>
    %133 = vector.extract_strided_slice %71 {offsets = [8, 0], sizes = [8, 32], strides = [1, 1]} : vector<32x32xbf16> to vector<8x32xbf16>
    %cst_90 = arith.constant dense<0.000000e+00> : vector<8x32xf32>
    %134 = tpu.matmul %132, %133, %cst_90 {dimension_numbers = #tpu.dot_dimension_numbers<[1], [0], [0], [1], [0, 0, 1, 1], [], []>} : vector<8x8xbf16>, vector<8x32xbf16>, vector<8x32xf32> -> vector<8x32xf32>
    %135 = arith.addf %110, %134 : vector<8x32xf32>
    %136 = vector.extract_strided_slice %82 {offsets = [0, 16], sizes = [8, 8], strides = [1, 1]} : vector<8x32xf32> to vector<8x8xf32>
    %137 = arith.truncf %136 : vector<8x8xf32> to vector<8x8xbf16>
    %138 = vector.extract_strided_slice %83 {offsets = [0, 16], sizes = [8, 8], strides = [1, 1]} : vector<8x32xf32> to vector<8x8xf32>
    %139 = arith.truncf %138 : vector<8x8xf32> to vector<8x8xbf16>
    %140 = vector.extract_strided_slice %84 {offsets = [0, 16], sizes = [8, 8], strides = [1, 1]} : vector<8x32xf32> to vector<8x8xf32>
    %141 = arith.truncf %140 : vector<8x8xf32> to vector<8x8xbf16>
    %cst_91 = arith.constant dense<0.000000e+00> : vector<8x8xf32>
    %142 = tpu.matmul %137, %139, %cst_91 {dimension_numbers = #tpu.dot_dimension_numbers<[1], [1], [0], [0], [0, 0, 1, 0], [], []>} : vector<8x8xbf16>, vector<8x8xbf16>, vector<8x8xf32> -> vector<8x8xf32>
    %cst_92 = arith.constant 0.353553385 : f32
    %143 = vector.broadcast %cst_92 : f32 to vector<8x8xf32>
    %144 = arith.mulf %142, %143 : vector<8x8xf32>
    %145 = arith.addf %144, %63 : vector<8x8xf32>
    %cst_93 = arith.constant dense<0xFF800000> : vector<8xf32>
    %146 = vector.multi_reduction <maximumf>, %145, %cst_93 [1] : vector<8x8xf32> to vector<8xf32>
    %147 = vector.shape_cast %146 : vector<8xf32> to vector<8x1xf32>
    %148 = vector.broadcast %147 : vector<8x1xf32> to vector<8x8xf32>
    %149 = arith.subf %145, %148 : vector<8x8xf32>
    %150 = math.exp %149 : vector<8x8xf32>
    %cst_94 = arith.constant dense<0.000000e+00> : vector<8xf32>
    %151 = vector.multi_reduction <add>, %150, %cst_94 [1] : vector<8x8xf32> to vector<8xf32>
    %152 = vector.shape_cast %151 : vector<8xf32> to vector<8x1xf32>
    %153 = vector.broadcast %152 : vector<8x1xf32> to vector<8x8xf32>
    %154 = arith.divf %150, %153 : vector<8x8xf32>
    %155 = arith.truncf %154 : vector<8x8xf32> to vector<8x8xbf16>
    %cst_95 = arith.constant dense<0.000000e+00> : vector<8x8xf32>
    %156 = tpu.matmul %155, %141, %cst_95 {dimension_numbers = #tpu.dot_dimension_numbers<[1], [0], [0], [1], [0, 0, 1, 1], [], []>} : vector<8x8xbf16>, vector<8x8xbf16>, vector<8x8xf32> -> vector<8x8xf32>
    %157 = arith.truncf %156 : vector<8x8xf32> to vector<8x8xbf16>
    %158 = vector.extract_strided_slice %71 {offsets = [16, 0], sizes = [8, 32], strides = [1, 1]} : vector<32x32xbf16> to vector<8x32xbf16>
    %cst_96 = arith.constant dense<0.000000e+00> : vector<8x32xf32>
    %159 = tpu.matmul %157, %158, %cst_96 {dimension_numbers = #tpu.dot_dimension_numbers<[1], [0], [0], [1], [0, 0, 1, 1], [], []>} : vector<8x8xbf16>, vector<8x32xbf16>, vector<8x32xf32> -> vector<8x32xf32>
    %160 = arith.addf %135, %159 : vector<8x32xf32>
    %161 = vector.extract_strided_slice %82 {offsets = [0, 24], sizes = [8, 8], strides = [1, 1]} : vector<8x32xf32> to vector<8x8xf32>
    %162 = arith.truncf %161 : vector<8x8xf32> to vector<8x8xbf16>
    %163 = vector.extract_strided_slice %83 {offsets = [0, 24], sizes = [8, 8], strides = [1, 1]} : vector<8x32xf32> to vector<8x8xf32>
    %164 = arith.truncf %163 : vector<8x8xf32> to vector<8x8xbf16>
    %165 = vector.extract_strided_slice %84 {offsets = [0, 24], sizes = [8, 8], strides = [1, 1]} : vector<8x32xf32> to vector<8x8xf32>
    %166 = arith.truncf %165 : vector<8x8xf32> to vector<8x8xbf16>
    %cst_97 = arith.constant dense<0.000000e+00> : vector<8x8xf32>
    %167 = tpu.matmul %162, %164, %cst_97 {dimension_numbers = #tpu.dot_dimension_numbers<[1], [1], [0], [0], [0, 0, 1, 0], [], []>} : vector<8x8xbf16>, vector<8x8xbf16>, vector<8x8xf32> -> vector<8x8xf32>
    %cst_98 = arith.constant 0.353553385 : f32
    %168 = vector.broadcast %cst_98 : f32 to vector<8x8xf32>
    %169 = arith.mulf %167, %168 : vector<8x8xf32>
    %170 = arith.addf %169, %63 : vector<8x8xf32>
    %cst_99 = arith.constant dense<0xFF800000> : vector<8xf32>
    %171 = vector.multi_reduction <maximumf>, %170, %cst_99 [1] : vector<8x8xf32> to vector<8xf32>
    %172 = vector.shape_cast %171 : vector<8xf32> to vector<8x1xf32>
    %173 = vector.broadcast %172 : vector<8x1xf32> to vector<8x8xf32>
    %174 = arith.subf %170, %173 : vector<8x8xf32>
    %175 = math.exp %174 : vector<8x8xf32>
    %cst_100 = arith.constant dense<0.000000e+00> : vector<8xf32>
    %176 = vector.multi_reduction <add>, %175, %cst_100 [1] : vector<8x8xf32> to vector<8xf32>
    %177 = vector.shape_cast %176 : vector<8xf32> to vector<8x1xf32>
    %178 = vector.broadcast %177 : vector<8x1xf32> to vector<8x8xf32>
    %179 = arith.divf %175, %178 : vector<8x8xf32>
    %180 = arith.truncf %179 : vector<8x8xf32> to vector<8x8xbf16>
    %cst_101 = arith.constant dense<0.000000e+00> : vector<8x8xf32>
    %181 = tpu.matmul %180, %166, %cst_101 {dimension_numbers = #tpu.dot_dimension_numbers<[1], [0], [0], [1], [0, 0, 1, 1], [], []>} : vector<8x8xbf16>, vector<8x8xbf16>, vector<8x8xf32> -> vector<8x8xf32>
    %182 = arith.truncf %181 : vector<8x8xf32> to vector<8x8xbf16>
    %183 = vector.extract_strided_slice %71 {offsets = [24, 0], sizes = [8, 32], strides = [1, 1]} : vector<32x32xbf16> to vector<8x32xbf16>
    %cst_102 = arith.constant dense<0.000000e+00> : vector<8x32xf32>
    %184 = tpu.matmul %182, %183, %cst_102 {dimension_numbers = #tpu.dot_dimension_numbers<[1], [0], [0], [1], [0, 0, 1, 1], [], []>} : vector<8x8xbf16>, vector<8x32xbf16>, vector<8x32xf32> -> vector<8x32xf32>
    %185 = arith.addf %160, %184 : vector<8x32xf32>
    %186 = vector.broadcast %73 : vector<1x32xf32> to vector<8x32xf32>
    %187 = arith.addf %185, %186 : vector<8x32xf32>
    %188 = arith.addf %187, %57 : vector<8x32xf32>
    %cst_103 = arith.constant dense<0.000000e+00> : vector<8xf32>
    %189 = vector.multi_reduction <add>, %188, %cst_103 [1] : vector<8x32xf32> to vector<8xf32>
    %190 = vector.shape_cast %189 : vector<8xf32> to vector<8x1xf32>
    %cst_104 = arith.constant 3.200000e+01 : f32
    %191 = vector.broadcast %cst_104 : f32 to vector<8x1xf32>
    %192 = arith.divf %190, %191 : vector<8x1xf32>
    %193 = vector.broadcast %192 : vector<8x1xf32> to vector<8x32xf32>
    %194 = arith.subf %188, %193 : vector<8x32xf32>
    %195 = arith.mulf %194, %194 : vector<8x32xf32>
    %cst_105 = arith.constant dense<0.000000e+00> : vector<8xf32>
    %196 = vector.multi_reduction <add>, %195, %cst_105 [1] : vector<8x32xf32> to vector<8xf32>
    %197 = vector.shape_cast %196 : vector<8xf32> to vector<8x1xf32>
    %cst_106 = arith.constant 3.200000e+01 : f32
    %198 = vector.broadcast %cst_106 : f32 to vector<8x1xf32>
    %199 = arith.divf %197, %198 : vector<8x1xf32>
    %cst_107 = arith.constant 9.99999974E-6 : f32
    %200 = vector.broadcast %cst_107 : f32 to vector<8x1xf32>
    %201 = arith.addf %199, %200 : vector<8x1xf32>
    %202 = math.rsqrt %201 : vector<8x1xf32>
    %203 = vector.broadcast %202 : vector<8x1xf32> to vector<8x32xf32>
    %204 = arith.mulf %194, %203 : vector<8x32xf32>
    %205 = vector.broadcast %75 : vector<1x32xf32> to vector<8x32xf32>
    %206 = arith.mulf %204, %205 : vector<8x32xf32>
    %207 = vector.broadcast %77 : vector<1x32xf32> to vector<8x32xf32>
    %208 = arith.addf %206, %207 : vector<8x32xf32>
    %c0_108 = arith.constant 0 : index
    %c1 = arith.constant 1 : index
    %c0_109 = arith.constant 0 : index
    %c0_110 = arith.constant 0 : index
    %209 = vector.load %arg19[%c0_108, %c1, %c0_109, %c0_110] : memref<2x2x32x96xbf16, #tpu.memory_space<vmem>>, vector<1x1x32x96xbf16>
    %210 = vector.shape_cast %209 : vector<1x1x32x96xbf16> to vector<32x96xbf16>
    %c0_111 = arith.constant 0 : index
    %c1_112 = arith.constant 1 : index
    %c0_113 = arith.constant 0 : index
    %c0_114 = arith.constant 0 : index
    %211 = vector.load %arg20[%c0_111, %c1_112, %c0_113, %c0_114] : memref<2x2x1x96xf32, #tpu.memory_space<vmem>>, vector<1x1x1x96xf32>
    %212 = vector.shape_cast %211 : vector<1x1x1x96xf32> to vector<1x96xf32>
    %c0_115 = arith.constant 0 : index
    %c1_116 = arith.constant 1 : index
    %c0_117 = arith.constant 0 : index
    %c0_118 = arith.constant 0 : index
    %213 = vector.load %arg21[%c0_115, %c1_116, %c0_117, %c0_118] : memref<2x2x32x32xbf16, #tpu.memory_space<vmem>>, vector<1x1x32x32xbf16>
    %214 = vector.shape_cast %213 : vector<1x1x32x32xbf16> to vector<32x32xbf16>
    %c0_119 = arith.constant 0 : index
    %c1_120 = arith.constant 1 : index
    %c0_121 = arith.constant 0 : index
    %c0_122 = arith.constant 0 : index
    %215 = vector.load %arg22[%c0_119, %c1_120, %c0_121, %c0_122] : memref<2x2x1x32xf32, #tpu.memory_space<vmem>>, vector<1x1x1x32xf32>
    %216 = vector.shape_cast %215 : vector<1x1x1x32xf32> to vector<1x32xf32>
    %c0_123 = arith.constant 0 : index
    %c1_124 = arith.constant 1 : index
    %c0_125 = arith.constant 0 : index
    %c0_126 = arith.constant 0 : index
    %217 = vector.load %arg23[%c0_123, %c1_124, %c0_125, %c0_126] : memref<2x3x1x32xf32, #tpu.memory_space<vmem>>, vector<1x1x1x32xf32>
    %218 = vector.shape_cast %217 : vector<1x1x1x32xf32> to vector<1x32xf32>
    %c0_127 = arith.constant 0 : index
    %c1_128 = arith.constant 1 : index
    %c0_129 = arith.constant 0 : index
    %c0_130 = arith.constant 0 : index
    %219 = vector.load %arg24[%c0_127, %c1_128, %c0_129, %c0_130] : memref<2x3x1x32xf32, #tpu.memory_space<vmem>>, vector<1x1x1x32xf32>
    %220 = vector.shape_cast %219 : vector<1x1x1x32xf32> to vector<1x32xf32>
    %221 = vector.extract_strided_slice %210 {offsets = [0, 0], sizes = [32, 32], strides = [1, 1]} : vector<32x96xbf16> to vector<32x32xbf16>
    %222 = arith.truncf %208 : vector<8x32xf32> to vector<8x32xbf16>
    %cst_131 = arith.constant dense<0.000000e+00> : vector<8x32xf32>
    %223 = tpu.matmul %222, %221, %cst_131 {dimension_numbers = #tpu.dot_dimension_numbers<[1], [0], [0], [1], [0, 0, 1, 1], [], []>} : vector<8x32xbf16>, vector<32x32xbf16>, vector<8x32xf32> -> vector<8x32xf32>
    %224 = vector.extract_strided_slice %212 {offsets = [0, 0], sizes = [1, 32], strides = [1, 1]} : vector<1x96xf32> to vector<1x32xf32>
    %225 = vector.broadcast %224 : vector<1x32xf32> to vector<8x32xf32>
    %226 = arith.addf %223, %225 : vector<8x32xf32>
    %227 = vector.extract_strided_slice %210 {offsets = [0, 32], sizes = [32, 64], strides = [1, 1]} : vector<32x96xbf16> to vector<32x64xbf16>
    %228 = arith.truncf %65 : vector<64x32xf32> to vector<64x32xbf16>
    %cst_132 = arith.constant dense<0.000000e+00> : vector<64x64xf32>
    %229 = tpu.matmul %228, %227, %cst_132 {dimension_numbers = #tpu.dot_dimension_numbers<[1], [0], [0], [1], [0, 0, 1, 1], [], []>} : vector<64x32xbf16>, vector<32x64xbf16>, vector<64x64xf32> -> vector<64x64xf32>
    %230 = vector.extract_strided_slice %212 {offsets = [0, 32], sizes = [1, 64], strides = [1, 1]} : vector<1x96xf32> to vector<1x64xf32>
    %231 = vector.broadcast %230 : vector<1x64xf32> to vector<64x64xf32>
    %232 = arith.addf %229, %231 : vector<64x64xf32>
    %233 = vector.extract_strided_slice %232 {offsets = [0, 0], sizes = [64, 32], strides = [1, 1]} : vector<64x64xf32> to vector<64x32xf32>
    %234 = vector.extract_strided_slice %232 {offsets = [0, 32], sizes = [64, 32], strides = [1, 1]} : vector<64x64xf32> to vector<64x32xf32>
    %cst_133 = arith.constant 0.000000e+00 : f32
    %235 = vector.broadcast %cst_133 : f32 to vector<8x32xf32>
    %236 = vector.extract_strided_slice %226 {offsets = [0, 0], sizes = [8, 8], strides = [1, 1]} : vector<8x32xf32> to vector<8x8xf32>
    %237 = arith.truncf %236 : vector<8x8xf32> to vector<8x8xbf16>
    %238 = vector.extract_strided_slice %233 {offsets = [0, 0], sizes = [64, 8], strides = [1, 1]} : vector<64x32xf32> to vector<64x8xf32>
    %239 = arith.truncf %238 : vector<64x8xf32> to vector<64x8xbf16>
    %240 = vector.extract_strided_slice %234 {offsets = [0, 0], sizes = [64, 8], strides = [1, 1]} : vector<64x32xf32> to vector<64x8xf32>
    %241 = arith.truncf %240 : vector<64x8xf32> to vector<64x8xbf16>
    %cst_134 = arith.constant dense<0.000000e+00> : vector<8x64xf32>
    %242 = tpu.matmul %237, %239, %cst_134 {dimension_numbers = #tpu.dot_dimension_numbers<[1], [1], [0], [0], [0, 0, 1, 0], [], []>} : vector<8x8xbf16>, vector<64x8xbf16>, vector<8x64xf32> -> vector<8x64xf32>
    %cst_135 = arith.constant 0.353553385 : f32
    %243 = vector.broadcast %cst_135 : f32 to vector<8x64xf32>
    %244 = arith.mulf %242, %243 : vector<8x64xf32>
    %cst_136 = arith.constant dense<0xFF800000> : vector<8xf32>
    %245 = vector.multi_reduction <maximumf>, %244, %cst_136 [1] : vector<8x64xf32> to vector<8xf32>
    %246 = vector.shape_cast %245 : vector<8xf32> to vector<8x1xf32>
    %247 = vector.broadcast %246 : vector<8x1xf32> to vector<8x64xf32>
    %248 = arith.subf %244, %247 : vector<8x64xf32>
    %249 = math.exp %248 : vector<8x64xf32>
    %cst_137 = arith.constant dense<0.000000e+00> : vector<8xf32>
    %250 = vector.multi_reduction <add>, %249, %cst_137 [1] : vector<8x64xf32> to vector<8xf32>
    %251 = vector.shape_cast %250 : vector<8xf32> to vector<8x1xf32>
    %252 = vector.broadcast %251 : vector<8x1xf32> to vector<8x64xf32>
    %253 = arith.divf %249, %252 : vector<8x64xf32>
    %254 = arith.truncf %253 : vector<8x64xf32> to vector<8x64xbf16>
    %cst_138 = arith.constant dense<0.000000e+00> : vector<8x8xf32>
    %255 = tpu.matmul %254, %241, %cst_138 {dimension_numbers = #tpu.dot_dimension_numbers<[1], [0], [0], [1], [0, 0, 1, 1], [], []>} : vector<8x64xbf16>, vector<64x8xbf16>, vector<8x8xf32> -> vector<8x8xf32>
    %256 = arith.truncf %255 : vector<8x8xf32> to vector<8x8xbf16>
    %257 = vector.extract_strided_slice %214 {offsets = [0, 0], sizes = [8, 32], strides = [1, 1]} : vector<32x32xbf16> to vector<8x32xbf16>
    %cst_139 = arith.constant dense<0.000000e+00> : vector<8x32xf32>
    %258 = tpu.matmul %256, %257, %cst_139 {dimension_numbers = #tpu.dot_dimension_numbers<[1], [0], [0], [1], [0, 0, 1, 1], [], []>} : vector<8x8xbf16>, vector<8x32xbf16>, vector<8x32xf32> -> vector<8x32xf32>
    %259 = arith.addf %235, %258 : vector<8x32xf32>
    %260 = vector.extract_strided_slice %226 {offsets = [0, 8], sizes = [8, 8], strides = [1, 1]} : vector<8x32xf32> to vector<8x8xf32>
    %261 = arith.truncf %260 : vector<8x8xf32> to vector<8x8xbf16>
    %262 = vector.extract_strided_slice %233 {offsets = [0, 8], sizes = [64, 8], strides = [1, 1]} : vector<64x32xf32> to vector<64x8xf32>
    %263 = arith.truncf %262 : vector<64x8xf32> to vector<64x8xbf16>
    %264 = vector.extract_strided_slice %234 {offsets = [0, 8], sizes = [64, 8], strides = [1, 1]} : vector<64x32xf32> to vector<64x8xf32>
    %265 = arith.truncf %264 : vector<64x8xf32> to vector<64x8xbf16>
    %cst_140 = arith.constant dense<0.000000e+00> : vector<8x64xf32>
    %266 = tpu.matmul %261, %263, %cst_140 {dimension_numbers = #tpu.dot_dimension_numbers<[1], [1], [0], [0], [0, 0, 1, 0], [], []>} : vector<8x8xbf16>, vector<64x8xbf16>, vector<8x64xf32> -> vector<8x64xf32>
    %cst_141 = arith.constant 0.353553385 : f32
    %267 = vector.broadcast %cst_141 : f32 to vector<8x64xf32>
    %268 = arith.mulf %266, %267 : vector<8x64xf32>
    %cst_142 = arith.constant dense<0xFF800000> : vector<8xf32>
    %269 = vector.multi_reduction <maximumf>, %268, %cst_142 [1] : vector<8x64xf32> to vector<8xf32>
    %270 = vector.shape_cast %269 : vector<8xf32> to vector<8x1xf32>
    %271 = vector.broadcast %270 : vector<8x1xf32> to vector<8x64xf32>
    %272 = arith.subf %268, %271 : vector<8x64xf32>
    %273 = math.exp %272 : vector<8x64xf32>
    %cst_143 = arith.constant dense<0.000000e+00> : vector<8xf32>
    %274 = vector.multi_reduction <add>, %273, %cst_143 [1] : vector<8x64xf32> to vector<8xf32>
    %275 = vector.shape_cast %274 : vector<8xf32> to vector<8x1xf32>
    %276 = vector.broadcast %275 : vector<8x1xf32> to vector<8x64xf32>
    %277 = arith.divf %273, %276 : vector<8x64xf32>
    %278 = arith.truncf %277 : vector<8x64xf32> to vector<8x64xbf16>
    %cst_144 = arith.constant dense<0.000000e+00> : vector<8x8xf32>
    %279 = tpu.matmul %278, %265, %cst_144 {dimension_numbers = #tpu.dot_dimension_numbers<[1], [0], [0], [1], [0, 0, 1, 1], [], []>} : vector<8x64xbf16>, vector<64x8xbf16>, vector<8x8xf32> -> vector<8x8xf32>
    %280 = arith.truncf %279 : vector<8x8xf32> to vector<8x8xbf16>
    %281 = vector.extract_strided_slice %214 {offsets = [8, 0], sizes = [8, 32], strides = [1, 1]} : vector<32x32xbf16> to vector<8x32xbf16>
    %cst_145 = arith.constant dense<0.000000e+00> : vector<8x32xf32>
    %282 = tpu.matmul %280, %281, %cst_145 {dimension_numbers = #tpu.dot_dimension_numbers<[1], [0], [0], [1], [0, 0, 1, 1], [], []>} : vector<8x8xbf16>, vector<8x32xbf16>, vector<8x32xf32> -> vector<8x32xf32>
    %283 = arith.addf %259, %282 : vector<8x32xf32>
    %284 = vector.extract_strided_slice %226 {offsets = [0, 16], sizes = [8, 8], strides = [1, 1]} : vector<8x32xf32> to vector<8x8xf32>
    %285 = arith.truncf %284 : vector<8x8xf32> to vector<8x8xbf16>
    %286 = vector.extract_strided_slice %233 {offsets = [0, 16], sizes = [64, 8], strides = [1, 1]} : vector<64x32xf32> to vector<64x8xf32>
    %287 = arith.truncf %286 : vector<64x8xf32> to vector<64x8xbf16>
    %288 = vector.extract_strided_slice %234 {offsets = [0, 16], sizes = [64, 8], strides = [1, 1]} : vector<64x32xf32> to vector<64x8xf32>
    %289 = arith.truncf %288 : vector<64x8xf32> to vector<64x8xbf16>
    %cst_146 = arith.constant dense<0.000000e+00> : vector<8x64xf32>
    %290 = tpu.matmul %285, %287, %cst_146 {dimension_numbers = #tpu.dot_dimension_numbers<[1], [1], [0], [0], [0, 0, 1, 0], [], []>} : vector<8x8xbf16>, vector<64x8xbf16>, vector<8x64xf32> -> vector<8x64xf32>
    %cst_147 = arith.constant 0.353553385 : f32
    %291 = vector.broadcast %cst_147 : f32 to vector<8x64xf32>
    %292 = arith.mulf %290, %291 : vector<8x64xf32>
    %cst_148 = arith.constant dense<0xFF800000> : vector<8xf32>
    %293 = vector.multi_reduction <maximumf>, %292, %cst_148 [1] : vector<8x64xf32> to vector<8xf32>
    %294 = vector.shape_cast %293 : vector<8xf32> to vector<8x1xf32>
    %295 = vector.broadcast %294 : vector<8x1xf32> to vector<8x64xf32>
    %296 = arith.subf %292, %295 : vector<8x64xf32>
    %297 = math.exp %296 : vector<8x64xf32>
    %cst_149 = arith.constant dense<0.000000e+00> : vector<8xf32>
    %298 = vector.multi_reduction <add>, %297, %cst_149 [1] : vector<8x64xf32> to vector<8xf32>
    %299 = vector.shape_cast %298 : vector<8xf32> to vector<8x1xf32>
    %300 = vector.broadcast %299 : vector<8x1xf32> to vector<8x64xf32>
    %301 = arith.divf %297, %300 : vector<8x64xf32>
    %302 = arith.truncf %301 : vector<8x64xf32> to vector<8x64xbf16>
    %cst_150 = arith.constant dense<0.000000e+00> : vector<8x8xf32>
    %303 = tpu.matmul %302, %289, %cst_150 {dimension_numbers = #tpu.dot_dimension_numbers<[1], [0], [0], [1], [0, 0, 1, 1], [], []>} : vector<8x64xbf16>, vector<64x8xbf16>, vector<8x8xf32> -> vector<8x8xf32>
    %304 = arith.truncf %303 : vector<8x8xf32> to vector<8x8xbf16>
    %305 = vector.extract_strided_slice %214 {offsets = [16, 0], sizes = [8, 32], strides = [1, 1]} : vector<32x32xbf16> to vector<8x32xbf16>
    %cst_151 = arith.constant dense<0.000000e+00> : vector<8x32xf32>
    %306 = tpu.matmul %304, %305, %cst_151 {dimension_numbers = #tpu.dot_dimension_numbers<[1], [0], [0], [1], [0, 0, 1, 1], [], []>} : vector<8x8xbf16>, vector<8x32xbf16>, vector<8x32xf32> -> vector<8x32xf32>
    %307 = arith.addf %283, %306 : vector<8x32xf32>
    %308 = vector.extract_strided_slice %226 {offsets = [0, 24], sizes = [8, 8], strides = [1, 1]} : vector<8x32xf32> to vector<8x8xf32>
    %309 = arith.truncf %308 : vector<8x8xf32> to vector<8x8xbf16>
    %310 = vector.extract_strided_slice %233 {offsets = [0, 24], sizes = [64, 8], strides = [1, 1]} : vector<64x32xf32> to vector<64x8xf32>
    %311 = arith.truncf %310 : vector<64x8xf32> to vector<64x8xbf16>
    %312 = vector.extract_strided_slice %234 {offsets = [0, 24], sizes = [64, 8], strides = [1, 1]} : vector<64x32xf32> to vector<64x8xf32>
    %313 = arith.truncf %312 : vector<64x8xf32> to vector<64x8xbf16>
    %cst_152 = arith.constant dense<0.000000e+00> : vector<8x64xf32>
    %314 = tpu.matmul %309, %311, %cst_152 {dimension_numbers = #tpu.dot_dimension_numbers<[1], [1], [0], [0], [0, 0, 1, 0], [], []>} : vector<8x8xbf16>, vector<64x8xbf16>, vector<8x64xf32> -> vector<8x64xf32>
    %cst_153 = arith.constant 0.353553385 : f32
    %315 = vector.broadcast %cst_153 : f32 to vector<8x64xf32>
    %316 = arith.mulf %314, %315 : vector<8x64xf32>
    %cst_154 = arith.constant dense<0xFF800000> : vector<8xf32>
    %317 = vector.multi_reduction <maximumf>, %316, %cst_154 [1] : vector<8x64xf32> to vector<8xf32>
    %318 = vector.shape_cast %317 : vector<8xf32> to vector<8x1xf32>
    %319 = vector.broadcast %318 : vector<8x1xf32> to vector<8x64xf32>
    %320 = arith.subf %316, %319 : vector<8x64xf32>
    %321 = math.exp %320 : vector<8x64xf32>
    %cst_155 = arith.constant dense<0.000000e+00> : vector<8xf32>
    %322 = vector.multi_reduction <add>, %321, %cst_155 [1] : vector<8x64xf32> to vector<8xf32>
    %323 = vector.shape_cast %322 : vector<8xf32> to vector<8x1xf32>
    %324 = vector.broadcast %323 : vector<8x1xf32> to vector<8x64xf32>
    %325 = arith.divf %321, %324 : vector<8x64xf32>
    %326 = arith.truncf %325 : vector<8x64xf32> to vector<8x64xbf16>
    %cst_156 = arith.constant dense<0.000000e+00> : vector<8x8xf32>
    %327 = tpu.matmul %326, %313, %cst_156 {dimension_numbers = #tpu.dot_dimension_numbers<[1], [0], [0], [1], [0, 0, 1, 1], [], []>} : vector<8x64xbf16>, vector<64x8xbf16>, vector<8x8xf32> -> vector<8x8xf32>
    %328 = arith.truncf %327 : vector<8x8xf32> to vector<8x8xbf16>
    %329 = vector.extract_strided_slice %214 {offsets = [24, 0], sizes = [8, 32], strides = [1, 1]} : vector<32x32xbf16> to vector<8x32xbf16>
    %cst_157 = arith.constant dense<0.000000e+00> : vector<8x32xf32>
    %330 = tpu.matmul %328, %329, %cst_157 {dimension_numbers = #tpu.dot_dimension_numbers<[1], [0], [0], [1], [0, 0, 1, 1], [], []>} : vector<8x8xbf16>, vector<8x32xbf16>, vector<8x32xf32> -> vector<8x32xf32>
    %331 = arith.addf %307, %330 : vector<8x32xf32>
    %332 = vector.broadcast %216 : vector<1x32xf32> to vector<8x32xf32>
    %333 = arith.addf %331, %332 : vector<8x32xf32>
    %334 = arith.addf %333, %208 : vector<8x32xf32>
    %cst_158 = arith.constant dense<0.000000e+00> : vector<8xf32>
    %335 = vector.multi_reduction <add>, %334, %cst_158 [1] : vector<8x32xf32> to vector<8xf32>
    %336 = vector.shape_cast %335 : vector<8xf32> to vector<8x1xf32>
    %cst_159 = arith.constant 3.200000e+01 : f32
    %337 = vector.broadcast %cst_159 : f32 to vector<8x1xf32>
    %338 = arith.divf %336, %337 : vector<8x1xf32>
    %339 = vector.broadcast %338 : vector<8x1xf32> to vector<8x32xf32>
    %340 = arith.subf %334, %339 : vector<8x32xf32>
    %341 = arith.mulf %340, %340 : vector<8x32xf32>
    %cst_160 = arith.constant dense<0.000000e+00> : vector<8xf32>
    %342 = vector.multi_reduction <add>, %341, %cst_160 [1] : vector<8x32xf32> to vector<8xf32>
    %343 = vector.shape_cast %342 : vector<8xf32> to vector<8x1xf32>
    %cst_161 = arith.constant 3.200000e+01 : f32
    %344 = vector.broadcast %cst_161 : f32 to vector<8x1xf32>
    %345 = arith.divf %343, %344 : vector<8x1xf32>
    %cst_162 = arith.constant 9.99999974E-6 : f32
    %346 = vector.broadcast %cst_162 : f32 to vector<8x1xf32>
    %347 = arith.addf %345, %346 : vector<8x1xf32>
    %348 = math.rsqrt %347 : vector<8x1xf32>
    %349 = vector.broadcast %348 : vector<8x1xf32> to vector<8x32xf32>
    %350 = arith.mulf %340, %349 : vector<8x32xf32>
    %351 = vector.broadcast %218 : vector<1x32xf32> to vector<8x32xf32>
    %352 = arith.mulf %350, %351 : vector<8x32xf32>
    %353 = vector.broadcast %220 : vector<1x32xf32> to vector<8x32xf32>
    %354 = arith.addf %352, %353 : vector<8x32xf32>
    %c0_163 = arith.constant 0 : index
    %c0_164 = arith.constant 0 : index
    %c0_165 = arith.constant 0 : index
    %355 = vector.load %arg25[%c0_163, %c0_164, %c0_165] : memref<2x32x128xbf16, #tpu.memory_space<vmem>>, vector<1x32x128xbf16>
    %356 = vector.shape_cast %355 : vector<1x32x128xbf16> to vector<32x128xbf16>
    %357 = arith.truncf %354 : vector<8x32xf32> to vector<8x32xbf16>
    %cst_166 = arith.constant dense<0.000000e+00> : vector<8x128xf32>
    %358 = tpu.matmul %357, %356, %cst_166 {dimension_numbers = #tpu.dot_dimension_numbers<[1], [0], [0], [1], [0, 0, 1, 1], [], []>} : vector<8x32xbf16>, vector<32x128xbf16>, vector<8x128xf32> -> vector<8x128xf32>
    %c0_167 = arith.constant 0 : index
    %c0_168 = arith.constant 0 : index
    %c0_169 = arith.constant 0 : index
    %359 = vector.load %arg26[%c0_167, %c0_168, %c0_169] : memref<2x1x128xf32, #tpu.memory_space<vmem>>, vector<1x1x128xf32>
    %360 = vector.shape_cast %359 : vector<1x1x128xf32> to vector<1x128xf32>
    %361 = vector.broadcast %360 : vector<1x128xf32> to vector<8x128xf32>
    %362 = arith.addf %358, %361 : vector<8x128xf32>
    %cst_170 = arith.constant 0.000000e+00 : f32
    %363 = vector.broadcast %cst_170 : f32 to vector<8x128xf32>
    %364 = arith.maximumf %362, %363 : vector<8x128xf32>
    %c0_171 = arith.constant 0 : index
    %c0_172 = arith.constant 0 : index
    %c0_173 = arith.constant 0 : index
    %365 = vector.load %arg27[%c0_171, %c0_172, %c0_173] : memref<2x128x32xbf16, #tpu.memory_space<vmem>>, vector<1x128x32xbf16>
    %366 = vector.shape_cast %365 : vector<1x128x32xbf16> to vector<128x32xbf16>
    %367 = arith.truncf %364 : vector<8x128xf32> to vector<8x128xbf16>
    %cst_174 = arith.constant dense<0.000000e+00> : vector<8x32xf32>
    %368 = tpu.matmul %367, %366, %cst_174 {dimension_numbers = #tpu.dot_dimension_numbers<[1], [0], [0], [1], [0, 0, 1, 1], [], []>} : vector<8x128xbf16>, vector<128x32xbf16>, vector<8x32xf32> -> vector<8x32xf32>
    %369 = arith.addf %354, %368 : vector<8x32xf32>
    %c0_175 = arith.constant 0 : index
    %c0_176 = arith.constant 0 : index
    %c0_177 = arith.constant 0 : index
    %370 = vector.load %arg28[%c0_175, %c0_176, %c0_177] : memref<2x1x32xf32, #tpu.memory_space<vmem>>, vector<1x1x32xf32>
    %371 = vector.shape_cast %370 : vector<1x1x32xf32> to vector<1x32xf32>
    %372 = vector.broadcast %371 : vector<1x32xf32> to vector<8x32xf32>
    %373 = arith.addf %369, %372 : vector<8x32xf32>
    %c0_178 = arith.constant 0 : index
    %c2 = arith.constant 2 : index
    %c0_179 = arith.constant 0 : index
    %c0_180 = arith.constant 0 : index
    %374 = vector.load %arg23[%c0_178, %c2, %c0_179, %c0_180] : memref<2x3x1x32xf32, #tpu.memory_space<vmem>>, vector<1x1x1x32xf32>
    %375 = vector.shape_cast %374 : vector<1x1x1x32xf32> to vector<1x32xf32>
    %c0_181 = arith.constant 0 : index
    %c2_182 = arith.constant 2 : index
    %c0_183 = arith.constant 0 : index
    %c0_184 = arith.constant 0 : index
    %376 = vector.load %arg24[%c0_181, %c2_182, %c0_183, %c0_184] : memref<2x3x1x32xf32, #tpu.memory_space<vmem>>, vector<1x1x1x32xf32>
    %377 = vector.shape_cast %376 : vector<1x1x1x32xf32> to vector<1x32xf32>
    %cst_185 = arith.constant dense<0.000000e+00> : vector<8xf32>
    %378 = vector.multi_reduction <add>, %373, %cst_185 [1] : vector<8x32xf32> to vector<8xf32>
    %379 = vector.shape_cast %378 : vector<8xf32> to vector<8x1xf32>
    %cst_186 = arith.constant 3.200000e+01 : f32
    %380 = vector.broadcast %cst_186 : f32 to vector<8x1xf32>
    %381 = arith.divf %379, %380 : vector<8x1xf32>
    %382 = vector.broadcast %381 : vector<8x1xf32> to vector<8x32xf32>
    %383 = arith.subf %373, %382 : vector<8x32xf32>
    %384 = arith.mulf %383, %383 : vector<8x32xf32>
    %cst_187 = arith.constant dense<0.000000e+00> : vector<8xf32>
    %385 = vector.multi_reduction <add>, %384, %cst_187 [1] : vector<8x32xf32> to vector<8xf32>
    %386 = vector.shape_cast %385 : vector<8xf32> to vector<8x1xf32>
    %cst_188 = arith.constant 3.200000e+01 : f32
    %387 = vector.broadcast %cst_188 : f32 to vector<8x1xf32>
    %388 = arith.divf %386, %387 : vector<8x1xf32>
    %cst_189 = arith.constant 9.99999974E-6 : f32
    %389 = vector.broadcast %cst_189 : f32 to vector<8x1xf32>
    %390 = arith.addf %388, %389 : vector<8x1xf32>
    %391 = math.rsqrt %390 : vector<8x1xf32>
    %392 = vector.broadcast %391 : vector<8x1xf32> to vector<8x32xf32>
    %393 = arith.mulf %383, %392 : vector<8x32xf32>
    %394 = vector.broadcast %375 : vector<1x32xf32> to vector<8x32xf32>
    %395 = arith.mulf %393, %394 : vector<8x32xf32>
    %396 = vector.broadcast %377 : vector<1x32xf32> to vector<8x32xf32>
    %397 = arith.addf %395, %396 : vector<8x32xf32>
    %c1_190 = arith.constant 1 : index
    %c0_191 = arith.constant 0 : index
    %c0_192 = arith.constant 0 : index
    %c0_193 = arith.constant 0 : index
    %398 = vector.load %arg19[%c1_190, %c0_191, %c0_192, %c0_193] : memref<2x2x32x96xbf16, #tpu.memory_space<vmem>>, vector<1x1x32x96xbf16>
    %399 = vector.shape_cast %398 : vector<1x1x32x96xbf16> to vector<32x96xbf16>
    %c1_194 = arith.constant 1 : index
    %c0_195 = arith.constant 0 : index
    %c0_196 = arith.constant 0 : index
    %c0_197 = arith.constant 0 : index
    %400 = vector.load %arg20[%c1_194, %c0_195, %c0_196, %c0_197] : memref<2x2x1x96xf32, #tpu.memory_space<vmem>>, vector<1x1x1x96xf32>
    %401 = vector.shape_cast %400 : vector<1x1x1x96xf32> to vector<1x96xf32>
    %c1_198 = arith.constant 1 : index
    %c0_199 = arith.constant 0 : index
    %c0_200 = arith.constant 0 : index
    %c0_201 = arith.constant 0 : index
    %402 = vector.load %arg21[%c1_198, %c0_199, %c0_200, %c0_201] : memref<2x2x32x32xbf16, #tpu.memory_space<vmem>>, vector<1x1x32x32xbf16>
    %403 = vector.shape_cast %402 : vector<1x1x32x32xbf16> to vector<32x32xbf16>
    %c1_202 = arith.constant 1 : index
    %c0_203 = arith.constant 0 : index
    %c0_204 = arith.constant 0 : index
    %c0_205 = arith.constant 0 : index
    %404 = vector.load %arg22[%c1_202, %c0_203, %c0_204, %c0_205] : memref<2x2x1x32xf32, #tpu.memory_space<vmem>>, vector<1x1x1x32xf32>
    %405 = vector.shape_cast %404 : vector<1x1x1x32xf32> to vector<1x32xf32>
    %c1_206 = arith.constant 1 : index
    %c0_207 = arith.constant 0 : index
    %c0_208 = arith.constant 0 : index
    %c0_209 = arith.constant 0 : index
    %406 = vector.load %arg23[%c1_206, %c0_207, %c0_208, %c0_209] : memref<2x3x1x32xf32, #tpu.memory_space<vmem>>, vector<1x1x1x32xf32>
    %407 = vector.shape_cast %406 : vector<1x1x1x32xf32> to vector<1x32xf32>
    %c1_210 = arith.constant 1 : index
    %c0_211 = arith.constant 0 : index
    %c0_212 = arith.constant 0 : index
    %c0_213 = arith.constant 0 : index
    %408 = vector.load %arg24[%c1_210, %c0_211, %c0_212, %c0_213] : memref<2x3x1x32xf32, #tpu.memory_space<vmem>>, vector<1x1x1x32xf32>
    %409 = vector.shape_cast %408 : vector<1x1x1x32xf32> to vector<1x32xf32>
    %410 = arith.truncf %397 : vector<8x32xf32> to vector<8x32xbf16>
    %cst_214 = arith.constant dense<0.000000e+00> : vector<8x96xf32>
    %411 = tpu.matmul %410, %399, %cst_214 {dimension_numbers = #tpu.dot_dimension_numbers<[1], [0], [0], [1], [0, 0, 1, 1], [], []>} : vector<8x32xbf16>, vector<32x96xbf16>, vector<8x96xf32> -> vector<8x96xf32>
    %412 = vector.broadcast %401 : vector<1x96xf32> to vector<8x96xf32>
    %413 = arith.addf %411, %412 : vector<8x96xf32>
    %414 = vector.extract_strided_slice %413 {offsets = [0, 0], sizes = [8, 32], strides = [1, 1]} : vector<8x96xf32> to vector<8x32xf32>
    %415 = vector.extract_strided_slice %413 {offsets = [0, 32], sizes = [8, 32], strides = [1, 1]} : vector<8x96xf32> to vector<8x32xf32>
    %416 = vector.extract_strided_slice %413 {offsets = [0, 64], sizes = [8, 32], strides = [1, 1]} : vector<8x96xf32> to vector<8x32xf32>
    %cst_215 = arith.constant 0.000000e+00 : f32
    %417 = vector.broadcast %cst_215 : f32 to vector<8x32xf32>
    %418 = vector.extract_strided_slice %414 {offsets = [0, 0], sizes = [8, 8], strides = [1, 1]} : vector<8x32xf32> to vector<8x8xf32>
    %419 = arith.truncf %418 : vector<8x8xf32> to vector<8x8xbf16>
    %420 = vector.extract_strided_slice %415 {offsets = [0, 0], sizes = [8, 8], strides = [1, 1]} : vector<8x32xf32> to vector<8x8xf32>
    %421 = arith.truncf %420 : vector<8x8xf32> to vector<8x8xbf16>
    %422 = vector.extract_strided_slice %416 {offsets = [0, 0], sizes = [8, 8], strides = [1, 1]} : vector<8x32xf32> to vector<8x8xf32>
    %423 = arith.truncf %422 : vector<8x8xf32> to vector<8x8xbf16>
    %cst_216 = arith.constant dense<0.000000e+00> : vector<8x8xf32>
    %424 = tpu.matmul %419, %421, %cst_216 {dimension_numbers = #tpu.dot_dimension_numbers<[1], [1], [0], [0], [0, 0, 1, 0], [], []>} : vector<8x8xbf16>, vector<8x8xbf16>, vector<8x8xf32> -> vector<8x8xf32>
    %cst_217 = arith.constant 0.353553385 : f32
    %425 = vector.broadcast %cst_217 : f32 to vector<8x8xf32>
    %426 = arith.mulf %424, %425 : vector<8x8xf32>
    %427 = arith.addf %426, %63 : vector<8x8xf32>
    %cst_218 = arith.constant dense<0xFF800000> : vector<8xf32>
    %428 = vector.multi_reduction <maximumf>, %427, %cst_218 [1] : vector<8x8xf32> to vector<8xf32>
    %429 = vector.shape_cast %428 : vector<8xf32> to vector<8x1xf32>
    %430 = vector.broadcast %429 : vector<8x1xf32> to vector<8x8xf32>
    %431 = arith.subf %427, %430 : vector<8x8xf32>
    %432 = math.exp %431 : vector<8x8xf32>
    %cst_219 = arith.constant dense<0.000000e+00> : vector<8xf32>
    %433 = vector.multi_reduction <add>, %432, %cst_219 [1] : vector<8x8xf32> to vector<8xf32>
    %434 = vector.shape_cast %433 : vector<8xf32> to vector<8x1xf32>
    %435 = vector.broadcast %434 : vector<8x1xf32> to vector<8x8xf32>
    %436 = arith.divf %432, %435 : vector<8x8xf32>
    %437 = arith.truncf %436 : vector<8x8xf32> to vector<8x8xbf16>
    %cst_220 = arith.constant dense<0.000000e+00> : vector<8x8xf32>
    %438 = tpu.matmul %437, %423, %cst_220 {dimension_numbers = #tpu.dot_dimension_numbers<[1], [0], [0], [1], [0, 0, 1, 1], [], []>} : vector<8x8xbf16>, vector<8x8xbf16>, vector<8x8xf32> -> vector<8x8xf32>
    %439 = arith.truncf %438 : vector<8x8xf32> to vector<8x8xbf16>
    %440 = vector.extract_strided_slice %403 {offsets = [0, 0], sizes = [8, 32], strides = [1, 1]} : vector<32x32xbf16> to vector<8x32xbf16>
    %cst_221 = arith.constant dense<0.000000e+00> : vector<8x32xf32>
    %441 = tpu.matmul %439, %440, %cst_221 {dimension_numbers = #tpu.dot_dimension_numbers<[1], [0], [0], [1], [0, 0, 1, 1], [], []>} : vector<8x8xbf16>, vector<8x32xbf16>, vector<8x32xf32> -> vector<8x32xf32>
    %442 = arith.addf %417, %441 : vector<8x32xf32>
    %443 = vector.extract_strided_slice %414 {offsets = [0, 8], sizes = [8, 8], strides = [1, 1]} : vector<8x32xf32> to vector<8x8xf32>
    %444 = arith.truncf %443 : vector<8x8xf32> to vector<8x8xbf16>
    %445 = vector.extract_strided_slice %415 {offsets = [0, 8], sizes = [8, 8], strides = [1, 1]} : vector<8x32xf32> to vector<8x8xf32>
    %446 = arith.truncf %445 : vector<8x8xf32> to vector<8x8xbf16>
    %447 = vector.extract_strided_slice %416 {offsets = [0, 8], sizes = [8, 8], strides = [1, 1]} : vector<8x32xf32> to vector<8x8xf32>
    %448 = arith.truncf %447 : vector<8x8xf32> to vector<8x8xbf16>
    %cst_222 = arith.constant dense<0.000000e+00> : vector<8x8xf32>
    %449 = tpu.matmul %444, %446, %cst_222 {dimension_numbers = #tpu.dot_dimension_numbers<[1], [1], [0], [0], [0, 0, 1, 0], [], []>} : vector<8x8xbf16>, vector<8x8xbf16>, vector<8x8xf32> -> vector<8x8xf32>
    %cst_223 = arith.constant 0.353553385 : f32
    %450 = vector.broadcast %cst_223 : f32 to vector<8x8xf32>
    %451 = arith.mulf %449, %450 : vector<8x8xf32>
    %452 = arith.addf %451, %63 : vector<8x8xf32>
    %cst_224 = arith.constant dense<0xFF800000> : vector<8xf32>
    %453 = vector.multi_reduction <maximumf>, %452, %cst_224 [1] : vector<8x8xf32> to vector<8xf32>
    %454 = vector.shape_cast %453 : vector<8xf32> to vector<8x1xf32>
    %455 = vector.broadcast %454 : vector<8x1xf32> to vector<8x8xf32>
    %456 = arith.subf %452, %455 : vector<8x8xf32>
    %457 = math.exp %456 : vector<8x8xf32>
    %cst_225 = arith.constant dense<0.000000e+00> : vector<8xf32>
    %458 = vector.multi_reduction <add>, %457, %cst_225 [1] : vector<8x8xf32> to vector<8xf32>
    %459 = vector.shape_cast %458 : vector<8xf32> to vector<8x1xf32>
    %460 = vector.broadcast %459 : vector<8x1xf32> to vector<8x8xf32>
    %461 = arith.divf %457, %460 : vector<8x8xf32>
    %462 = arith.truncf %461 : vector<8x8xf32> to vector<8x8xbf16>
    %cst_226 = arith.constant dense<0.000000e+00> : vector<8x8xf32>
    %463 = tpu.matmul %462, %448, %cst_226 {dimension_numbers = #tpu.dot_dimension_numbers<[1], [0], [0], [1], [0, 0, 1, 1], [], []>} : vector<8x8xbf16>, vector<8x8xbf16>, vector<8x8xf32> -> vector<8x8xf32>
    %464 = arith.truncf %463 : vector<8x8xf32> to vector<8x8xbf16>
    %465 = vector.extract_strided_slice %403 {offsets = [8, 0], sizes = [8, 32], strides = [1, 1]} : vector<32x32xbf16> to vector<8x32xbf16>
    %cst_227 = arith.constant dense<0.000000e+00> : vector<8x32xf32>
    %466 = tpu.matmul %464, %465, %cst_227 {dimension_numbers = #tpu.dot_dimension_numbers<[1], [0], [0], [1], [0, 0, 1, 1], [], []>} : vector<8x8xbf16>, vector<8x32xbf16>, vector<8x32xf32> -> vector<8x32xf32>
    %467 = arith.addf %442, %466 : vector<8x32xf32>
    %468 = vector.extract_strided_slice %414 {offsets = [0, 16], sizes = [8, 8], strides = [1, 1]} : vector<8x32xf32> to vector<8x8xf32>
    %469 = arith.truncf %468 : vector<8x8xf32> to vector<8x8xbf16>
    %470 = vector.extract_strided_slice %415 {offsets = [0, 16], sizes = [8, 8], strides = [1, 1]} : vector<8x32xf32> to vector<8x8xf32>
    %471 = arith.truncf %470 : vector<8x8xf32> to vector<8x8xbf16>
    %472 = vector.extract_strided_slice %416 {offsets = [0, 16], sizes = [8, 8], strides = [1, 1]} : vector<8x32xf32> to vector<8x8xf32>
    %473 = arith.truncf %472 : vector<8x8xf32> to vector<8x8xbf16>
    %cst_228 = arith.constant dense<0.000000e+00> : vector<8x8xf32>
    %474 = tpu.matmul %469, %471, %cst_228 {dimension_numbers = #tpu.dot_dimension_numbers<[1], [1], [0], [0], [0, 0, 1, 0], [], []>} : vector<8x8xbf16>, vector<8x8xbf16>, vector<8x8xf32> -> vector<8x8xf32>
    %cst_229 = arith.constant 0.353553385 : f32
    %475 = vector.broadcast %cst_229 : f32 to vector<8x8xf32>
    %476 = arith.mulf %474, %475 : vector<8x8xf32>
    %477 = arith.addf %476, %63 : vector<8x8xf32>
    %cst_230 = arith.constant dense<0xFF800000> : vector<8xf32>
    %478 = vector.multi_reduction <maximumf>, %477, %cst_230 [1] : vector<8x8xf32> to vector<8xf32>
    %479 = vector.shape_cast %478 : vector<8xf32> to vector<8x1xf32>
    %480 = vector.broadcast %479 : vector<8x1xf32> to vector<8x8xf32>
    %481 = arith.subf %477, %480 : vector<8x8xf32>
    %482 = math.exp %481 : vector<8x8xf32>
    %cst_231 = arith.constant dense<0.000000e+00> : vector<8xf32>
    %483 = vector.multi_reduction <add>, %482, %cst_231 [1] : vector<8x8xf32> to vector<8xf32>
    %484 = vector.shape_cast %483 : vector<8xf32> to vector<8x1xf32>
    %485 = vector.broadcast %484 : vector<8x1xf32> to vector<8x8xf32>
    %486 = arith.divf %482, %485 : vector<8x8xf32>
    %487 = arith.truncf %486 : vector<8x8xf32> to vector<8x8xbf16>
    %cst_232 = arith.constant dense<0.000000e+00> : vector<8x8xf32>
    %488 = tpu.matmul %487, %473, %cst_232 {dimension_numbers = #tpu.dot_dimension_numbers<[1], [0], [0], [1], [0, 0, 1, 1], [], []>} : vector<8x8xbf16>, vector<8x8xbf16>, vector<8x8xf32> -> vector<8x8xf32>
    %489 = arith.truncf %488 : vector<8x8xf32> to vector<8x8xbf16>
    %490 = vector.extract_strided_slice %403 {offsets = [16, 0], sizes = [8, 32], strides = [1, 1]} : vector<32x32xbf16> to vector<8x32xbf16>
    %cst_233 = arith.constant dense<0.000000e+00> : vector<8x32xf32>
    %491 = tpu.matmul %489, %490, %cst_233 {dimension_numbers = #tpu.dot_dimension_numbers<[1], [0], [0], [1], [0, 0, 1, 1], [], []>} : vector<8x8xbf16>, vector<8x32xbf16>, vector<8x32xf32> -> vector<8x32xf32>
    %492 = arith.addf %467, %491 : vector<8x32xf32>
    %493 = vector.extract_strided_slice %414 {offsets = [0, 24], sizes = [8, 8], strides = [1, 1]} : vector<8x32xf32> to vector<8x8xf32>
    %494 = arith.truncf %493 : vector<8x8xf32> to vector<8x8xbf16>
    %495 = vector.extract_strided_slice %415 {offsets = [0, 24], sizes = [8, 8], strides = [1, 1]} : vector<8x32xf32> to vector<8x8xf32>
    %496 = arith.truncf %495 : vector<8x8xf32> to vector<8x8xbf16>
    %497 = vector.extract_strided_slice %416 {offsets = [0, 24], sizes = [8, 8], strides = [1, 1]} : vector<8x32xf32> to vector<8x8xf32>
    %498 = arith.truncf %497 : vector<8x8xf32> to vector<8x8xbf16>
    %cst_234 = arith.constant dense<0.000000e+00> : vector<8x8xf32>
    %499 = tpu.matmul %494, %496, %cst_234 {dimension_numbers = #tpu.dot_dimension_numbers<[1], [1], [0], [0], [0, 0, 1, 0], [], []>} : vector<8x8xbf16>, vector<8x8xbf16>, vector<8x8xf32> -> vector<8x8xf32>
    %cst_235 = arith.constant 0.353553385 : f32
    %500 = vector.broadcast %cst_235 : f32 to vector<8x8xf32>
    %501 = arith.mulf %499, %500 : vector<8x8xf32>
    %502 = arith.addf %501, %63 : vector<8x8xf32>
    %cst_236 = arith.constant dense<0xFF800000> : vector<8xf32>
    %503 = vector.multi_reduction <maximumf>, %502, %cst_236 [1] : vector<8x8xf32> to vector<8xf32>
    %504 = vector.shape_cast %503 : vector<8xf32> to vector<8x1xf32>
    %505 = vector.broadcast %504 : vector<8x1xf32> to vector<8x8xf32>
    %506 = arith.subf %502, %505 : vector<8x8xf32>
    %507 = math.exp %506 : vector<8x8xf32>
    %cst_237 = arith.constant dense<0.000000e+00> : vector<8xf32>
    %508 = vector.multi_reduction <add>, %507, %cst_237 [1] : vector<8x8xf32> to vector<8xf32>
    %509 = vector.shape_cast %508 : vector<8xf32> to vector<8x1xf32>
    %510 = vector.broadcast %509 : vector<8x1xf32> to vector<8x8xf32>
    %511 = arith.divf %507, %510 : vector<8x8xf32>
    %512 = arith.truncf %511 : vector<8x8xf32> to vector<8x8xbf16>
    %cst_238 = arith.constant dense<0.000000e+00> : vector<8x8xf32>
    %513 = tpu.matmul %512, %498, %cst_238 {dimension_numbers = #tpu.dot_dimension_numbers<[1], [0], [0], [1], [0, 0, 1, 1], [], []>} : vector<8x8xbf16>, vector<8x8xbf16>, vector<8x8xf32> -> vector<8x8xf32>
    %514 = arith.truncf %513 : vector<8x8xf32> to vector<8x8xbf16>
    %515 = vector.extract_strided_slice %403 {offsets = [24, 0], sizes = [8, 32], strides = [1, 1]} : vector<32x32xbf16> to vector<8x32xbf16>
    %cst_239 = arith.constant dense<0.000000e+00> : vector<8x32xf32>
    %516 = tpu.matmul %514, %515, %cst_239 {dimension_numbers = #tpu.dot_dimension_numbers<[1], [0], [0], [1], [0, 0, 1, 1], [], []>} : vector<8x8xbf16>, vector<8x32xbf16>, vector<8x32xf32> -> vector<8x32xf32>
    %517 = arith.addf %492, %516 : vector<8x32xf32>
    %518 = vector.broadcast %405 : vector<1x32xf32> to vector<8x32xf32>
    %519 = arith.addf %517, %518 : vector<8x32xf32>
    %520 = arith.addf %519, %397 : vector<8x32xf32>
    %cst_240 = arith.constant dense<0.000000e+00> : vector<8xf32>
    %521 = vector.multi_reduction <add>, %520, %cst_240 [1] : vector<8x32xf32> to vector<8xf32>
    %522 = vector.shape_cast %521 : vector<8xf32> to vector<8x1xf32>
    %cst_241 = arith.constant 3.200000e+01 : f32
    %523 = vector.broadcast %cst_241 : f32 to vector<8x1xf32>
    %524 = arith.divf %522, %523 : vector<8x1xf32>
    %525 = vector.broadcast %524 : vector<8x1xf32> to vector<8x32xf32>
    %526 = arith.subf %520, %525 : vector<8x32xf32>
    %527 = arith.mulf %526, %526 : vector<8x32xf32>
    %cst_242 = arith.constant dense<0.000000e+00> : vector<8xf32>
    %528 = vector.multi_reduction <add>, %527, %cst_242 [1] : vector<8x32xf32> to vector<8xf32>
    %529 = vector.shape_cast %528 : vector<8xf32> to vector<8x1xf32>
    %cst_243 = arith.constant 3.200000e+01 : f32
    %530 = vector.broadcast %cst_243 : f32 to vector<8x1xf32>
    %531 = arith.divf %529, %530 : vector<8x1xf32>
    %cst_244 = arith.constant 9.99999974E-6 : f32
    %532 = vector.broadcast %cst_244 : f32 to vector<8x1xf32>
    %533 = arith.addf %531, %532 : vector<8x1xf32>
    %534 = math.rsqrt %533 : vector<8x1xf32>
    %535 = vector.broadcast %534 : vector<8x1xf32> to vector<8x32xf32>
    %536 = arith.mulf %526, %535 : vector<8x32xf32>
    %537 = vector.broadcast %407 : vector<1x32xf32> to vector<8x32xf32>
    %538 = arith.mulf %536, %537 : vector<8x32xf32>
    %539 = vector.broadcast %409 : vector<1x32xf32> to vector<8x32xf32>
    %540 = arith.addf %538, %539 : vector<8x32xf32>
    %c1_245 = arith.constant 1 : index
    %c1_246 = arith.constant 1 : index
    %c0_247 = arith.constant 0 : index
    %c0_248 = arith.constant 0 : index
    %541 = vector.load %arg19[%c1_245, %c1_246, %c0_247, %c0_248] : memref<2x2x32x96xbf16, #tpu.memory_space<vmem>>, vector<1x1x32x96xbf16>
    %542 = vector.shape_cast %541 : vector<1x1x32x96xbf16> to vector<32x96xbf16>
    %c1_249 = arith.constant 1 : index
    %c1_250 = arith.constant 1 : index
    %c0_251 = arith.constant 0 : index
    %c0_252 = arith.constant 0 : index
    %543 = vector.load %arg20[%c1_249, %c1_250, %c0_251, %c0_252] : memref<2x2x1x96xf32, #tpu.memory_space<vmem>>, vector<1x1x1x96xf32>
    %544 = vector.shape_cast %543 : vector<1x1x1x96xf32> to vector<1x96xf32>
    %c1_253 = arith.constant 1 : index
    %c1_254 = arith.constant 1 : index
    %c0_255 = arith.constant 0 : index
    %c0_256 = arith.constant 0 : index
    %545 = vector.load %arg21[%c1_253, %c1_254, %c0_255, %c0_256] : memref<2x2x32x32xbf16, #tpu.memory_space<vmem>>, vector<1x1x32x32xbf16>
    %546 = vector.shape_cast %545 : vector<1x1x32x32xbf16> to vector<32x32xbf16>
    %c1_257 = arith.constant 1 : index
    %c1_258 = arith.constant 1 : index
    %c0_259 = arith.constant 0 : index
    %c0_260 = arith.constant 0 : index
    %547 = vector.load %arg22[%c1_257, %c1_258, %c0_259, %c0_260] : memref<2x2x1x32xf32, #tpu.memory_space<vmem>>, vector<1x1x1x32xf32>
    %548 = vector.shape_cast %547 : vector<1x1x1x32xf32> to vector<1x32xf32>
    %c1_261 = arith.constant 1 : index
    %c1_262 = arith.constant 1 : index
    %c0_263 = arith.constant 0 : index
    %c0_264 = arith.constant 0 : index
    %549 = vector.load %arg23[%c1_261, %c1_262, %c0_263, %c0_264] : memref<2x3x1x32xf32, #tpu.memory_space<vmem>>, vector<1x1x1x32xf32>
    %550 = vector.shape_cast %549 : vector<1x1x1x32xf32> to vector<1x32xf32>
    %c1_265 = arith.constant 1 : index
    %c1_266 = arith.constant 1 : index
    %c0_267 = arith.constant 0 : index
    %c0_268 = arith.constant 0 : index
    %551 = vector.load %arg24[%c1_265, %c1_266, %c0_267, %c0_268] : memref<2x3x1x32xf32, #tpu.memory_space<vmem>>, vector<1x1x1x32xf32>
    %552 = vector.shape_cast %551 : vector<1x1x1x32xf32> to vector<1x32xf32>
    %553 = vector.extract_strided_slice %542 {offsets = [0, 0], sizes = [32, 32], strides = [1, 1]} : vector<32x96xbf16> to vector<32x32xbf16>
    %554 = arith.truncf %540 : vector<8x32xf32> to vector<8x32xbf16>
    %cst_269 = arith.constant dense<0.000000e+00> : vector<8x32xf32>
    %555 = tpu.matmul %554, %553, %cst_269 {dimension_numbers = #tpu.dot_dimension_numbers<[1], [0], [0], [1], [0, 0, 1, 1], [], []>} : vector<8x32xbf16>, vector<32x32xbf16>, vector<8x32xf32> -> vector<8x32xf32>
    %556 = vector.extract_strided_slice %544 {offsets = [0, 0], sizes = [1, 32], strides = [1, 1]} : vector<1x96xf32> to vector<1x32xf32>
    %557 = vector.broadcast %556 : vector<1x32xf32> to vector<8x32xf32>
    %558 = arith.addf %555, %557 : vector<8x32xf32>
    %559 = vector.extract_strided_slice %542 {offsets = [0, 32], sizes = [32, 64], strides = [1, 1]} : vector<32x96xbf16> to vector<32x64xbf16>
    %560 = arith.truncf %65 : vector<64x32xf32> to vector<64x32xbf16>
    %cst_270 = arith.constant dense<0.000000e+00> : vector<64x64xf32>
    %561 = tpu.matmul %560, %559, %cst_270 {dimension_numbers = #tpu.dot_dimension_numbers<[1], [0], [0], [1], [0, 0, 1, 1], [], []>} : vector<64x32xbf16>, vector<32x64xbf16>, vector<64x64xf32> -> vector<64x64xf32>
    %562 = vector.extract_strided_slice %544 {offsets = [0, 32], sizes = [1, 64], strides = [1, 1]} : vector<1x96xf32> to vector<1x64xf32>
    %563 = vector.broadcast %562 : vector<1x64xf32> to vector<64x64xf32>
    %564 = arith.addf %561, %563 : vector<64x64xf32>
    %565 = vector.extract_strided_slice %564 {offsets = [0, 0], sizes = [64, 32], strides = [1, 1]} : vector<64x64xf32> to vector<64x32xf32>
    %566 = vector.extract_strided_slice %564 {offsets = [0, 32], sizes = [64, 32], strides = [1, 1]} : vector<64x64xf32> to vector<64x32xf32>
    %cst_271 = arith.constant 0.000000e+00 : f32
    %567 = vector.broadcast %cst_271 : f32 to vector<8x32xf32>
    %568 = vector.extract_strided_slice %558 {offsets = [0, 0], sizes = [8, 8], strides = [1, 1]} : vector<8x32xf32> to vector<8x8xf32>
    %569 = arith.truncf %568 : vector<8x8xf32> to vector<8x8xbf16>
    %570 = vector.extract_strided_slice %565 {offsets = [0, 0], sizes = [64, 8], strides = [1, 1]} : vector<64x32xf32> to vector<64x8xf32>
    %571 = arith.truncf %570 : vector<64x8xf32> to vector<64x8xbf16>
    %572 = vector.extract_strided_slice %566 {offsets = [0, 0], sizes = [64, 8], strides = [1, 1]} : vector<64x32xf32> to vector<64x8xf32>
    %573 = arith.truncf %572 : vector<64x8xf32> to vector<64x8xbf16>
    %cst_272 = arith.constant dense<0.000000e+00> : vector<8x64xf32>
    %574 = tpu.matmul %569, %571, %cst_272 {dimension_numbers = #tpu.dot_dimension_numbers<[1], [1], [0], [0], [0, 0, 1, 0], [], []>} : vector<8x8xbf16>, vector<64x8xbf16>, vector<8x64xf32> -> vector<8x64xf32>
    %cst_273 = arith.constant 0.353553385 : f32
    %575 = vector.broadcast %cst_273 : f32 to vector<8x64xf32>
    %576 = arith.mulf %574, %575 : vector<8x64xf32>
    %cst_274 = arith.constant dense<0xFF800000> : vector<8xf32>
    %577 = vector.multi_reduction <maximumf>, %576, %cst_274 [1] : vector<8x64xf32> to vector<8xf32>
    %578 = vector.shape_cast %577 : vector<8xf32> to vector<8x1xf32>
    %579 = vector.broadcast %578 : vector<8x1xf32> to vector<8x64xf32>
    %580 = arith.subf %576, %579 : vector<8x64xf32>
    %581 = math.exp %580 : vector<8x64xf32>
    %cst_275 = arith.constant dense<0.000000e+00> : vector<8xf32>
    %582 = vector.multi_reduction <add>, %581, %cst_275 [1] : vector<8x64xf32> to vector<8xf32>
    %583 = vector.shape_cast %582 : vector<8xf32> to vector<8x1xf32>
    %584 = vector.broadcast %583 : vector<8x1xf32> to vector<8x64xf32>
    %585 = arith.divf %581, %584 : vector<8x64xf32>
    %586 = arith.truncf %585 : vector<8x64xf32> to vector<8x64xbf16>
    %cst_276 = arith.constant dense<0.000000e+00> : vector<8x8xf32>
    %587 = tpu.matmul %586, %573, %cst_276 {dimension_numbers = #tpu.dot_dimension_numbers<[1], [0], [0], [1], [0, 0, 1, 1], [], []>} : vector<8x64xbf16>, vector<64x8xbf16>, vector<8x8xf32> -> vector<8x8xf32>
    %588 = arith.truncf %587 : vector<8x8xf32> to vector<8x8xbf16>
    %589 = vector.extract_strided_slice %546 {offsets = [0, 0], sizes = [8, 32], strides = [1, 1]} : vector<32x32xbf16> to vector<8x32xbf16>
    %cst_277 = arith.constant dense<0.000000e+00> : vector<8x32xf32>
    %590 = tpu.matmul %588, %589, %cst_277 {dimension_numbers = #tpu.dot_dimension_numbers<[1], [0], [0], [1], [0, 0, 1, 1], [], []>} : vector<8x8xbf16>, vector<8x32xbf16>, vector<8x32xf32> -> vector<8x32xf32>
    %591 = arith.addf %567, %590 : vector<8x32xf32>
    %592 = vector.extract_strided_slice %558 {offsets = [0, 8], sizes = [8, 8], strides = [1, 1]} : vector<8x32xf32> to vector<8x8xf32>
    %593 = arith.truncf %592 : vector<8x8xf32> to vector<8x8xbf16>
    %594 = vector.extract_strided_slice %565 {offsets = [0, 8], sizes = [64, 8], strides = [1, 1]} : vector<64x32xf32> to vector<64x8xf32>
    %595 = arith.truncf %594 : vector<64x8xf32> to vector<64x8xbf16>
    %596 = vector.extract_strided_slice %566 {offsets = [0, 8], sizes = [64, 8], strides = [1, 1]} : vector<64x32xf32> to vector<64x8xf32>
    %597 = arith.truncf %596 : vector<64x8xf32> to vector<64x8xbf16>
    %cst_278 = arith.constant dense<0.000000e+00> : vector<8x64xf32>
    %598 = tpu.matmul %593, %595, %cst_278 {dimension_numbers = #tpu.dot_dimension_numbers<[1], [1], [0], [0], [0, 0, 1, 0], [], []>} : vector<8x8xbf16>, vector<64x8xbf16>, vector<8x64xf32> -> vector<8x64xf32>
    %cst_279 = arith.constant 0.353553385 : f32
    %599 = vector.broadcast %cst_279 : f32 to vector<8x64xf32>
    %600 = arith.mulf %598, %599 : vector<8x64xf32>
    %cst_280 = arith.constant dense<0xFF800000> : vector<8xf32>
    %601 = vector.multi_reduction <maximumf>, %600, %cst_280 [1] : vector<8x64xf32> to vector<8xf32>
    %602 = vector.shape_cast %601 : vector<8xf32> to vector<8x1xf32>
    %603 = vector.broadcast %602 : vector<8x1xf32> to vector<8x64xf32>
    %604 = arith.subf %600, %603 : vector<8x64xf32>
    %605 = math.exp %604 : vector<8x64xf32>
    %cst_281 = arith.constant dense<0.000000e+00> : vector<8xf32>
    %606 = vector.multi_reduction <add>, %605, %cst_281 [1] : vector<8x64xf32> to vector<8xf32>
    %607 = vector.shape_cast %606 : vector<8xf32> to vector<8x1xf32>
    %608 = vector.broadcast %607 : vector<8x1xf32> to vector<8x64xf32>
    %609 = arith.divf %605, %608 : vector<8x64xf32>
    %610 = arith.truncf %609 : vector<8x64xf32> to vector<8x64xbf16>
    %cst_282 = arith.constant dense<0.000000e+00> : vector<8x8xf32>
    %611 = tpu.matmul %610, %597, %cst_282 {dimension_numbers = #tpu.dot_dimension_numbers<[1], [0], [0], [1], [0, 0, 1, 1], [], []>} : vector<8x64xbf16>, vector<64x8xbf16>, vector<8x8xf32> -> vector<8x8xf32>
    %612 = arith.truncf %611 : vector<8x8xf32> to vector<8x8xbf16>
    %613 = vector.extract_strided_slice %546 {offsets = [8, 0], sizes = [8, 32], strides = [1, 1]} : vector<32x32xbf16> to vector<8x32xbf16>
    %cst_283 = arith.constant dense<0.000000e+00> : vector<8x32xf32>
    %614 = tpu.matmul %612, %613, %cst_283 {dimension_numbers = #tpu.dot_dimension_numbers<[1], [0], [0], [1], [0, 0, 1, 1], [], []>} : vector<8x8xbf16>, vector<8x32xbf16>, vector<8x32xf32> -> vector<8x32xf32>
    %615 = arith.addf %591, %614 : vector<8x32xf32>
    %616 = vector.extract_strided_slice %558 {offsets = [0, 16], sizes = [8, 8], strides = [1, 1]} : vector<8x32xf32> to vector<8x8xf32>
    %617 = arith.truncf %616 : vector<8x8xf32> to vector<8x8xbf16>
    %618 = vector.extract_strided_slice %565 {offsets = [0, 16], sizes = [64, 8], strides = [1, 1]} : vector<64x32xf32> to vector<64x8xf32>
    %619 = arith.truncf %618 : vector<64x8xf32> to vector<64x8xbf16>
    %620 = vector.extract_strided_slice %566 {offsets = [0, 16], sizes = [64, 8], strides = [1, 1]} : vector<64x32xf32> to vector<64x8xf32>
    %621 = arith.truncf %620 : vector<64x8xf32> to vector<64x8xbf16>
    %cst_284 = arith.constant dense<0.000000e+00> : vector<8x64xf32>
    %622 = tpu.matmul %617, %619, %cst_284 {dimension_numbers = #tpu.dot_dimension_numbers<[1], [1], [0], [0], [0, 0, 1, 0], [], []>} : vector<8x8xbf16>, vector<64x8xbf16>, vector<8x64xf32> -> vector<8x64xf32>
    %cst_285 = arith.constant 0.353553385 : f32
    %623 = vector.broadcast %cst_285 : f32 to vector<8x64xf32>
    %624 = arith.mulf %622, %623 : vector<8x64xf32>
    %cst_286 = arith.constant dense<0xFF800000> : vector<8xf32>
    %625 = vector.multi_reduction <maximumf>, %624, %cst_286 [1] : vector<8x64xf32> to vector<8xf32>
    %626 = vector.shape_cast %625 : vector<8xf32> to vector<8x1xf32>
    %627 = vector.broadcast %626 : vector<8x1xf32> to vector<8x64xf32>
    %628 = arith.subf %624, %627 : vector<8x64xf32>
    %629 = math.exp %628 : vector<8x64xf32>
    %cst_287 = arith.constant dense<0.000000e+00> : vector<8xf32>
    %630 = vector.multi_reduction <add>, %629, %cst_287 [1] : vector<8x64xf32> to vector<8xf32>
    %631 = vector.shape_cast %630 : vector<8xf32> to vector<8x1xf32>
    %632 = vector.broadcast %631 : vector<8x1xf32> to vector<8x64xf32>
    %633 = arith.divf %629, %632 : vector<8x64xf32>
    %634 = arith.truncf %633 : vector<8x64xf32> to vector<8x64xbf16>
    %cst_288 = arith.constant dense<0.000000e+00> : vector<8x8xf32>
    %635 = tpu.matmul %634, %621, %cst_288 {dimension_numbers = #tpu.dot_dimension_numbers<[1], [0], [0], [1], [0, 0, 1, 1], [], []>} : vector<8x64xbf16>, vector<64x8xbf16>, vector<8x8xf32> -> vector<8x8xf32>
    %636 = arith.truncf %635 : vector<8x8xf32> to vector<8x8xbf16>
    %637 = vector.extract_strided_slice %546 {offsets = [16, 0], sizes = [8, 32], strides = [1, 1]} : vector<32x32xbf16> to vector<8x32xbf16>
    %cst_289 = arith.constant dense<0.000000e+00> : vector<8x32xf32>
    %638 = tpu.matmul %636, %637, %cst_289 {dimension_numbers = #tpu.dot_dimension_numbers<[1], [0], [0], [1], [0, 0, 1, 1], [], []>} : vector<8x8xbf16>, vector<8x32xbf16>, vector<8x32xf32> -> vector<8x32xf32>
    %639 = arith.addf %615, %638 : vector<8x32xf32>
    %640 = vector.extract_strided_slice %558 {offsets = [0, 24], sizes = [8, 8], strides = [1, 1]} : vector<8x32xf32> to vector<8x8xf32>
    %641 = arith.truncf %640 : vector<8x8xf32> to vector<8x8xbf16>
    %642 = vector.extract_strided_slice %565 {offsets = [0, 24], sizes = [64, 8], strides = [1, 1]} : vector<64x32xf32> to vector<64x8xf32>
    %643 = arith.truncf %642 : vector<64x8xf32> to vector<64x8xbf16>
    %644 = vector.extract_strided_slice %566 {offsets = [0, 24], sizes = [64, 8], strides = [1, 1]} : vector<64x32xf32> to vector<64x8xf32>
    %645 = arith.truncf %644 : vector<64x8xf32> to vector<64x8xbf16>
    %cst_290 = arith.constant dense<0.000000e+00> : vector<8x64xf32>
    %646 = tpu.matmul %641, %643, %cst_290 {dimension_numbers = #tpu.dot_dimension_numbers<[1], [1], [0], [0], [0, 0, 1, 0], [], []>} : vector<8x8xbf16>, vector<64x8xbf16>, vector<8x64xf32> -> vector<8x64xf32>
    %cst_291 = arith.constant 0.353553385 : f32
    %647 = vector.broadcast %cst_291 : f32 to vector<8x64xf32>
    %648 = arith.mulf %646, %647 : vector<8x64xf32>
    %cst_292 = arith.constant dense<0xFF800000> : vector<8xf32>
    %649 = vector.multi_reduction <maximumf>, %648, %cst_292 [1] : vector<8x64xf32> to vector<8xf32>
    %650 = vector.shape_cast %649 : vector<8xf32> to vector<8x1xf32>
    %651 = vector.broadcast %650 : vector<8x1xf32> to vector<8x64xf32>
    %652 = arith.subf %648, %651 : vector<8x64xf32>
    %653 = math.exp %652 : vector<8x64xf32>
    %cst_293 = arith.constant dense<0.000000e+00> : vector<8xf32>
    %654 = vector.multi_reduction <add>, %653, %cst_293 [1] : vector<8x64xf32> to vector<8xf32>
    %655 = vector.shape_cast %654 : vector<8xf32> to vector<8x1xf32>
    %656 = vector.broadcast %655 : vector<8x1xf32> to vector<8x64xf32>
    %657 = arith.divf %653, %656 : vector<8x64xf32>
    %658 = arith.truncf %657 : vector<8x64xf32> to vector<8x64xbf16>
    %cst_294 = arith.constant dense<0.000000e+00> : vector<8x8xf32>
    %659 = tpu.matmul %658, %645, %cst_294 {dimension_numbers = #tpu.dot_dimension_numbers<[1], [0], [0], [1], [0, 0, 1, 1], [], []>} : vector<8x64xbf16>, vector<64x8xbf16>, vector<8x8xf32> -> vector<8x8xf32>
    %660 = arith.truncf %659 : vector<8x8xf32> to vector<8x8xbf16>
    %661 = vector.extract_strided_slice %546 {offsets = [24, 0], sizes = [8, 32], strides = [1, 1]} : vector<32x32xbf16> to vector<8x32xbf16>
    %cst_295 = arith.constant dense<0.000000e+00> : vector<8x32xf32>
    %662 = tpu.matmul %660, %661, %cst_295 {dimension_numbers = #tpu.dot_dimension_numbers<[1], [0], [0], [1], [0, 0, 1, 1], [], []>} : vector<8x8xbf16>, vector<8x32xbf16>, vector<8x32xf32> -> vector<8x32xf32>
    %663 = arith.addf %639, %662 : vector<8x32xf32>
    %664 = vector.broadcast %548 : vector<1x32xf32> to vector<8x32xf32>
    %665 = arith.addf %663, %664 : vector<8x32xf32>
    %666 = arith.addf %665, %540 : vector<8x32xf32>
    %cst_296 = arith.constant dense<0.000000e+00> : vector<8xf32>
    %667 = vector.multi_reduction <add>, %666, %cst_296 [1] : vector<8x32xf32> to vector<8xf32>
    %668 = vector.shape_cast %667 : vector<8xf32> to vector<8x1xf32>
    %cst_297 = arith.constant 3.200000e+01 : f32
    %669 = vector.broadcast %cst_297 : f32 to vector<8x1xf32>
    %670 = arith.divf %668, %669 : vector<8x1xf32>
    %671 = vector.broadcast %670 : vector<8x1xf32> to vector<8x32xf32>
    %672 = arith.subf %666, %671 : vector<8x32xf32>
    %673 = arith.mulf %672, %672 : vector<8x32xf32>
    %cst_298 = arith.constant dense<0.000000e+00> : vector<8xf32>
    %674 = vector.multi_reduction <add>, %673, %cst_298 [1] : vector<8x32xf32> to vector<8xf32>
    %675 = vector.shape_cast %674 : vector<8xf32> to vector<8x1xf32>
    %cst_299 = arith.constant 3.200000e+01 : f32
    %676 = vector.broadcast %cst_299 : f32 to vector<8x1xf32>
    %677 = arith.divf %675, %676 : vector<8x1xf32>
    %cst_300 = arith.constant 9.99999974E-6 : f32
    %678 = vector.broadcast %cst_300 : f32 to vector<8x1xf32>
    %679 = arith.addf %677, %678 : vector<8x1xf32>
    %680 = math.rsqrt %679 : vector<8x1xf32>
    %681 = vector.broadcast %680 : vector<8x1xf32> to vector<8x32xf32>
    %682 = arith.mulf %672, %681 : vector<8x32xf32>
    %683 = vector.broadcast %550 : vector<1x32xf32> to vector<8x32xf32>
    %684 = arith.mulf %682, %683 : vector<8x32xf32>
    %685 = vector.broadcast %552 : vector<1x32xf32> to vector<8x32xf32>
    %686 = arith.addf %684, %685 : vector<8x32xf32>
    %c1_301 = arith.constant 1 : index
    %c0_302 = arith.constant 0 : index
    %c0_303 = arith.constant 0 : index
    %687 = vector.load %arg25[%c1_301, %c0_302, %c0_303] : memref<2x32x128xbf16, #tpu.memory_space<vmem>>, vector<1x32x128xbf16>
    %688 = vector.shape_cast %687 : vector<1x32x128xbf16> to vector<32x128xbf16>
    %689 = arith.truncf %686 : vector<8x32xf32> to vector<8x32xbf16>
    %cst_304 = arith.constant dense<0.000000e+00> : vector<8x128xf32>
    %690 = tpu.matmul %689, %688, %cst_304 {dimension_numbers = #tpu.dot_dimension_numbers<[1], [0], [0], [1], [0, 0, 1, 1], [], []>} : vector<8x32xbf16>, vector<32x128xbf16>, vector<8x128xf32> -> vector<8x128xf32>
    %c1_305 = arith.constant 1 : index
    %c0_306 = arith.constant 0 : index
    %c0_307 = arith.constant 0 : index
    %691 = vector.load %arg26[%c1_305, %c0_306, %c0_307] : memref<2x1x128xf32, #tpu.memory_space<vmem>>, vector<1x1x128xf32>
    %692 = vector.shape_cast %691 : vector<1x1x128xf32> to vector<1x128xf32>
    %693 = vector.broadcast %692 : vector<1x128xf32> to vector<8x128xf32>
    %694 = arith.addf %690, %693 : vector<8x128xf32>
    %cst_308 = arith.constant 0.000000e+00 : f32
    %695 = vector.broadcast %cst_308 : f32 to vector<8x128xf32>
    %696 = arith.maximumf %694, %695 : vector<8x128xf32>
    %c1_309 = arith.constant 1 : index
    %c0_310 = arith.constant 0 : index
    %c0_311 = arith.constant 0 : index
    %697 = vector.load %arg27[%c1_309, %c0_310, %c0_311] : memref<2x128x32xbf16, #tpu.memory_space<vmem>>, vector<1x128x32xbf16>
    %698 = vector.shape_cast %697 : vector<1x128x32xbf16> to vector<128x32xbf16>
    %699 = arith.truncf %696 : vector<8x128xf32> to vector<8x128xbf16>
    %cst_312 = arith.constant dense<0.000000e+00> : vector<8x32xf32>
    %700 = tpu.matmul %699, %698, %cst_312 {dimension_numbers = #tpu.dot_dimension_numbers<[1], [0], [0], [1], [0, 0, 1, 1], [], []>} : vector<8x128xbf16>, vector<128x32xbf16>, vector<8x32xf32> -> vector<8x32xf32>
    %701 = arith.addf %686, %700 : vector<8x32xf32>
    %c1_313 = arith.constant 1 : index
    %c0_314 = arith.constant 0 : index
    %c0_315 = arith.constant 0 : index
    %702 = vector.load %arg28[%c1_313, %c0_314, %c0_315] : memref<2x1x32xf32, #tpu.memory_space<vmem>>, vector<1x1x32xf32>
    %703 = vector.shape_cast %702 : vector<1x1x32xf32> to vector<1x32xf32>
    %704 = vector.broadcast %703 : vector<1x32xf32> to vector<8x32xf32>
    %705 = arith.addf %701, %704 : vector<8x32xf32>
    %c1_316 = arith.constant 1 : index
    %c2_317 = arith.constant 2 : index
    %c0_318 = arith.constant 0 : index
    %c0_319 = arith.constant 0 : index
    %706 = vector.load %arg23[%c1_316, %c2_317, %c0_318, %c0_319] : memref<2x3x1x32xf32, #tpu.memory_space<vmem>>, vector<1x1x1x32xf32>
    %707 = vector.shape_cast %706 : vector<1x1x1x32xf32> to vector<1x32xf32>
    %c1_320 = arith.constant 1 : index
    %c2_321 = arith.constant 2 : index
    %c0_322 = arith.constant 0 : index
    %c0_323 = arith.constant 0 : index
    %708 = vector.load %arg24[%c1_320, %c2_321, %c0_322, %c0_323] : memref<2x3x1x32xf32, #tpu.memory_space<vmem>>, vector<1x1x1x32xf32>
    %709 = vector.shape_cast %708 : vector<1x1x1x32xf32> to vector<1x32xf32>
    %cst_324 = arith.constant dense<0.000000e+00> : vector<8xf32>
    %710 = vector.multi_reduction <add>, %705, %cst_324 [1] : vector<8x32xf32> to vector<8xf32>
    %711 = vector.shape_cast %710 : vector<8xf32> to vector<8x1xf32>
    %cst_325 = arith.constant 3.200000e+01 : f32
    %712 = vector.broadcast %cst_325 : f32 to vector<8x1xf32>
    %713 = arith.divf %711, %712 : vector<8x1xf32>
    %714 = vector.broadcast %713 : vector<8x1xf32> to vector<8x32xf32>
    %715 = arith.subf %705, %714 : vector<8x32xf32>
    %716 = arith.mulf %715, %715 : vector<8x32xf32>
    %cst_326 = arith.constant dense<0.000000e+00> : vector<8xf32>
    %717 = vector.multi_reduction <add>, %716, %cst_326 [1] : vector<8x32xf32> to vector<8xf32>
    %718 = vector.shape_cast %717 : vector<8xf32> to vector<8x1xf32>
    %cst_327 = arith.constant 3.200000e+01 : f32
    %719 = vector.broadcast %cst_327 : f32 to vector<8x1xf32>
    %720 = arith.divf %718, %719 : vector<8x1xf32>
    %cst_328 = arith.constant 9.99999974E-6 : f32
    %721 = vector.broadcast %cst_328 : f32 to vector<8x1xf32>
    %722 = arith.addf %720, %721 : vector<8x1xf32>
    %723 = math.rsqrt %722 : vector<8x1xf32>
    %724 = vector.broadcast %723 : vector<8x1xf32> to vector<8x32xf32>
    %725 = arith.mulf %715, %724 : vector<8x32xf32>
    %726 = vector.broadcast %707 : vector<1x32xf32> to vector<8x32xf32>
    %727 = arith.mulf %725, %726 : vector<8x32xf32>
    %728 = vector.broadcast %709 : vector<1x32xf32> to vector<8x32xf32>
    %729 = arith.addf %727, %728 : vector<8x32xf32>
    %c0_329 = arith.constant 0 : index
    %c0_330 = arith.constant 0 : index
    %730 = vector.load %arg15[%c0_329, %c0_330] : memref<32x32xbf16, #tpu.memory_space<vmem>>, vector<32x32xbf16>
    %731 = arith.truncf %729 : vector<8x32xf32> to vector<8x32xbf16>
    %cst_331 = arith.constant dense<0.000000e+00> : vector<8x32xf32>
    %732 = tpu.matmul %731, %730, %cst_331 {dimension_numbers = #tpu.dot_dimension_numbers<[1], [0], [0], [1], [0, 0, 1, 1], [], []>} : vector<8x32xbf16>, vector<32x32xbf16>, vector<8x32xf32> -> vector<8x32xf32>
    %c0_332 = arith.constant 0 : index
    %c0_333 = arith.constant 0 : index
    %733 = vector.load %arg16[%c0_332, %c0_333] : memref<1x32xf32, #tpu.memory_space<vmem>>, vector<1x32xf32>
    %734 = vector.broadcast %733 : vector<1x32xf32> to vector<8x32xf32>
    %735 = arith.addf %732, %734 : vector<8x32xf32>
    %cst_334 = arith.constant 0.000000e+00 : f32
    %736 = vector.broadcast %cst_334 : f32 to vector<8x32xf32>
    %737 = arith.maximumf %735, %736 : vector<8x32xf32>
    %c0_335 = arith.constant 0 : index
    %c0_336 = arith.constant 0 : index
    %738 = vector.load %arg17[%c0_335, %c0_336] : memref<32x32xbf16, #tpu.memory_space<vmem>>, vector<32x32xbf16>
    %739 = arith.truncf %737 : vector<8x32xf32> to vector<8x32xbf16>
    %cst_337 = arith.constant dense<0.000000e+00> : vector<8x32xf32>
    %740 = tpu.matmul %739, %738, %cst_337 {dimension_numbers = #tpu.dot_dimension_numbers<[1], [0], [0], [1], [0, 0, 1, 1], [], []>} : vector<8x32xbf16>, vector<32x32xbf16>, vector<8x32xf32> -> vector<8x32xf32>
    %c0_338 = arith.constant 0 : index
    %c0_339 = arith.constant 0 : index
    %741 = vector.load %arg18[%c0_338, %c0_339] : memref<1x32xf32, #tpu.memory_space<vmem>>, vector<1x32xf32>
    %742 = vector.broadcast %741 : vector<1x32xf32> to vector<8x32xf32>
    %743 = arith.addf %740, %742 : vector<8x32xf32>
    %c0_340 = arith.constant 0 : index
    %c0_341 = arith.constant 0 : index
    %c0_342 = arith.constant 0 : index
    %744 = vector.load %arg29[%c0_340, %c0_341, %c0_342] : memref<1x8x32xf32, #tpu.memory_space<vmem>>, vector<1x8x32xf32>
    %745 = vector.shape_cast %744 : vector<1x8x32xf32> to vector<8x32xf32>
    %746 = vector.shape_cast %743 : vector<8x32xf32> to vector<1x8x32xf32>
    tpu.vector_store %arg29[%c0_340, %c0_341, %c0_342], %746 {strides = array<i32>} : memref<1x8x32xf32, #tpu.memory_space<vmem>>, vector<1x8x32xf32>,
    return
  }
  func.func @transform_0(%arg0: i32) -> (i32, i32, i32) {
    %c0_i32 = arith.constant 0 : i32
    %c0_i32_0 = arith.constant 0 : i32
    %c0_i32_1 = arith.constant 0 : i32
    return %arg0, %c0_i32, %c0_i32_0 : i32, i32, i32
  }
  func.func @transform_1(%arg0: i32) -> (i32, i32, i32) {
    %c0_i32 = arith.constant 0 : i32
    %c0_i32_0 = arith.constant 0 : i32
    %c0_i32_1 = arith.constant 0 : i32
    return %arg0, %c0_i32, %c0_i32_0 : i32, i32, i32
  }
  func.func @transform_2(%arg0: i32) -> (i32, i32, i32) {
    %c0_i32 = arith.constant 0 : i32
    %c0_i32_0 = arith.constant 0 : i32
    %c0_i32_1 = arith.constant 0 : i32
    return %arg0, %c0_i32, %c0_i32_0 : i32, i32, i32
  }
  func.func @transform_3(%arg0: i32) -> (i32, i32) {
    %c0_i32 = arith.constant 0 : i32
    %c0_i32_0 = arith.constant 0 : i32
    %c0_i32_1 = arith.constant 0 : i32
    return %c0_i32, %c0_i32_0 : i32, i32
  }
  func.func @transform_4(%arg0: i32) -> (i32, i32) {
    %c0_i32 = arith.constant 0 : i32
    %c0_i32_0 = arith.constant 0 : i32
    %c0_i32_1 = arith.constant 0 : i32
    return %c0_i32, %c0_i32_0 : i32, i32
  }
  func.func @transform_5(%arg0: i32) -> (i32, i32) {
    %c0_i32 = arith.constant 0 : i32
    %c0_i32_0 = arith.constant 0 : i32
    %c0_i32_1 = arith.constant 0 : i32
    return %c0_i32, %c0_i32_0 : i32, i32
  }
  func.func @transform_6(%arg0: i32) -> (i32, i32) {
    %c0_i32 = arith.constant 0 : i32
    %c0_i32_0 = arith.constant 0 : i32
    %c0_i32_1 = arith.constant 0 : i32
    return %c0_i32, %c0_i32_0 : i32, i32
  }
  func.func @transform_7(%arg0: i32) -> (i32, i32) {
    %c0_i32 = arith.constant 0 : i32
    %c0_i32_0 = arith.constant 0 : i32
    %c0_i32_1 = arith.constant 0 : i32
    return %c0_i32, %c0_i32_0 : i32, i32
  }
  func.func @transform_8(%arg0: i32) -> (i32, i32) {
    %c0_i32 = arith.constant 0 : i32
    %c0_i32_0 = arith.constant 0 : i32
    %c0_i32_1 = arith.constant 0 : i32
    return %c0_i32, %c0_i32_0 : i32, i32
  }
  func.func @transform_9(%arg0: i32) -> (i32, i32) {
    %c0_i32 = arith.constant 0 : i32
    %c0_i32_0 = arith.constant 0 : i32
    %c0_i32_1 = arith.constant 0 : i32
    return %c0_i32, %c0_i32_0 : i32, i32
  }
  func.func @transform_10(%arg0: i32) -> (i32, i32) {
    %c0_i32 = arith.constant 0 : i32
    %c0_i32_0 = arith.constant 0 : i32
    %c0_i32_1 = arith.constant 0 : i32
    return %c0_i32, %c0_i32_0 : i32, i32
  }
  func.func @transform_11(%arg0: i32) -> (i32, i32) {
    %c0_i32 = arith.constant 0 : i32
    %c0_i32_0 = arith.constant 0 : i32
    %c0_i32_1 = arith.constant 0 : i32
    return %c0_i32, %c0_i32_0 : i32, i32
  }
  func.func @transform_12(%arg0: i32) -> (i32, i32) {
    %c0_i32 = arith.constant 0 : i32
    %c0_i32_0 = arith.constant 0 : i32
    %c0_i32_1 = arith.constant 0 : i32
    return %c0_i32, %c0_i32_0 : i32, i32
  }
  func.func @transform_13(%arg0: i32) -> (i32, i32) {
    %c0_i32 = arith.constant 0 : i32
    %c0_i32_0 = arith.constant 0 : i32
    %c0_i32_1 = arith.constant 0 : i32
    return %c0_i32, %c0_i32_0 : i32, i32
  }
  func.func @transform_14(%arg0: i32) -> (i32, i32) {
    %c0_i32 = arith.constant 0 : i32
    %c0_i32_0 = arith.constant 0 : i32
    %c0_i32_1 = arith.constant 0 : i32
    return %c0_i32, %c0_i32_0 : i32, i32
  }
  func.func @transform_15(%arg0: i32) -> (i32, i32) {
    %c0_i32 = arith.constant 0 : i32
    %c0_i32_0 = arith.constant 0 : i32
    %c0_i32_1 = arith.constant 0 : i32
    return %c0_i32, %c0_i32_0 : i32, i32
  }
  func.func @transform_16(%arg0: i32) -> (i32, i32) {
    %c0_i32 = arith.constant 0 : i32
    %c0_i32_0 = arith.constant 0 : i32
    %c0_i32_1 = arith.constant 0 : i32
    return %c0_i32, %c0_i32_0 : i32, i32
  }
  func.func @transform_17(%arg0: i32) -> (i32, i32) {
    %c0_i32 = arith.constant 0 : i32
    %c0_i32_0 = arith.constant 0 : i32
    %c0_i32_1 = arith.constant 0 : i32
    return %c0_i32, %c0_i32_0 : i32, i32
  }
  func.func @transform_18(%arg0: i32) -> (i32, i32, i32, i32) {
    %c0_i32 = arith.constant 0 : i32
    %c0_i32_0 = arith.constant 0 : i32
    %c0_i32_1 = arith.constant 0 : i32
    %c0_i32_2 = arith.constant 0 : i32
    %c0_i32_3 = arith.constant 0 : i32
    return %c0_i32, %c0_i32_0, %c0_i32_1, %c0_i32_2 : i32, i32, i32, i32
  }
  func.func @transform_19(%arg0: i32) -> (i32, i32, i32, i32) {
    %c0_i32 = arith.constant 0 : i32
    %c0_i32_0 = arith.constant 0 : i32
    %c0_i32_1 = arith.constant 0 : i32
    %c0_i32_2 = arith.constant 0 : i32
    %c0_i32_3 = arith.constant 0 : i32
    return %c0_i32, %c0_i32_0, %c0_i32_1, %c0_i32_2 : i32, i32, i32, i32
  }
  func.func @transform_20(%arg0: i32) -> (i32, i32, i32, i32) {
    %c0_i32 = arith.constant 0 : i32
    %c0_i32_0 = arith.constant 0 : i32
    %c0_i32_1 = arith.constant 0 : i32
    %c0_i32_2 = arith.constant 0 : i32
    %c0_i32_3 = arith.constant 0 : i32
    return %c0_i32, %c0_i32_0, %c0_i32_1, %c0_i32_2 : i32, i32, i32, i32
  }
  func.func @transform_21(%arg0: i32) -> (i32, i32, i32, i32) {
    %c0_i32 = arith.constant 0 : i32
    %c0_i32_0 = arith.constant 0 : i32
    %c0_i32_1 = arith.constant 0 : i32
    %c0_i32_2 = arith.constant 0 : i32
    %c0_i32_3 = arith.constant 0 : i32
    return %c0_i32, %c0_i32_0, %c0_i32_1, %c0_i32_2 : i32, i32, i32, i32
  }
  func.func @transform_22(%arg0: i32) -> (i32, i32, i32, i32) {
    %c0_i32 = arith.constant 0 : i32
    %c0_i32_0 = arith.constant 0 : i32
    %c0_i32_1 = arith.constant 0 : i32
    %c0_i32_2 = arith.constant 0 : i32
    %c0_i32_3 = arith.constant 0 : i32
    return %c0_i32, %c0_i32_0, %c0_i32_1, %c0_i32_2 : i32, i32, i32, i32
  }
  func.func @transform_23(%arg0: i32) -> (i32, i32, i32, i32) {
    %c0_i32 = arith.constant 0 : i32
    %c0_i32_0 = arith.constant 0 : i32
    %c0_i32_1 = arith.constant 0 : i32
    %c0_i32_2 = arith.constant 0 : i32
    %c0_i32_3 = arith.constant 0 : i32
    return %c0_i32, %c0_i32_0, %c0_i32_1, %c0_i32_2 : i32, i32, i32, i32
  }
  func.func @transform_24(%arg0: i32) -> (i32, i32, i32) {
    %c0_i32 = arith.constant 0 : i32
    %c0_i32_0 = arith.constant 0 : i32
    %c0_i32_1 = arith.constant 0 : i32
    %c0_i32_2 = arith.constant 0 : i32
    return %c0_i32, %c0_i32_0, %c0_i32_1 : i32, i32, i32
  }
  func.func @transform_25(%arg0: i32) -> (i32, i32, i32) {
    %c0_i32 = arith.constant 0 : i32
    %c0_i32_0 = arith.constant 0 : i32
    %c0_i32_1 = arith.constant 0 : i32
    %c0_i32_2 = arith.constant 0 : i32
    return %c0_i32, %c0_i32_0, %c0_i32_1 : i32, i32, i32
  }
  func.func @transform_26(%arg0: i32) -> (i32, i32, i32) {
    %c0_i32 = arith.constant 0 : i32
    %c0_i32_0 = arith.constant 0 : i32
    %c0_i32_1 = arith.constant 0 : i32
    %c0_i32_2 = arith.constant 0 : i32
    return %c0_i32, %c0_i32_0, %c0_i32_1 : i32, i32, i32
  }
  func.func @transform_27(%arg0: i32) -> (i32, i32, i32) {
    %c0_i32 = arith.constant 0 : i32
    %c0_i32_0 = arith.constant 0 : i32
    %c0_i32_1 = arith.constant 0 : i32
    %c0_i32_2 = arith.constant 0 : i32
    return %c0_i32, %c0_i32_0, %c0_i32_1 : i32, i32, i32
  }
  func.func @transform_28(%arg0: i32) -> (i32, i32, i32) {
    %c0_i32 = arith.constant 0 : i32
    %c0_i32_0 = arith.constant 0 : i32
    %c0_i32_1 = arith.constant 0 : i32
    return %arg0, %c0_i32, %c0_i32_0 : i32, i32, i32
  }
  func.func @transform_29(%arg0: i32) -> (i32, i32, i32) {
    %c0_i32 = arith.constant 0 : i32
    %c0_i32_0 = arith.constant 0 : i32
    %c0_i32_1 = arith.constant 0 : i32
    return %arg0, %c0_i32, %c0_i32_0 : i32, i32, i32
  }
}

</mosaic_0001>

<bundles_post_ra>
// kernel: path_transformer_forward.3
= control target key start
LH: loop header
LB: loop body
LE: loop exit
PB: predicated region body
PF: predicated region fallthrough
CT: control target
= control target key end

     0   :  { %s6625_s6 = smov 1   ;;  %s6626_s10 = smov 2   ;;  %s7669_s0 = inlined_call_operand.smem [shape: u32[30], index: -1, kind: input, shape index: {}] }
   0x1   :  { %s6677_s5 = sld [smem:[%s7669_s0]]   ;;  %s6627_s14 = smov 3  }
   0x2   :  { %s6682_s9 = sld [smem:[%s7669_s0 + %s6625_s6]]   ;;  %s6628_s18 = smov 4  }
   0x3   :  { %s6687_s13 = sld [smem:[%s7669_s0 + %s6626_s10]]   ;;  %s6629_s22 = smov 5  }
   0x4   :  { %s6692_s17 = sld [smem:[%s7669_s0 + %s6627_s14]]   ;;  %s6630_s26 = smov 6  }
   0x5   :  { %s6697_s21 = sld [smem:[%s7669_s0 + %s6628_s18]]   ;;  %s6631_s30 = smov 7  }
   0x6   :  { %s6702_s25 = sld [smem:[%s7669_s0 + %s6629_s22]]   ;;  %s6632_s4 = smov 8  }
   0x7   :  { %7697 = sst [smem:[#allocation2_spill]] %s6677_s5  ;;  %s6633_s10 = smov 9  }
   0x8   :  { %7698 = sst [smem:[#allocation3_spill]] %s6682_s9  ;;  %s6634_s15 = smov 10  }
   0x9   :  { %7699 = sst [smem:[#allocation4_spill]] %s6687_s13  ;;  %s6635_s20 = smov 11  }
   0xa   :  { %s6707_s29 = sld [smem:[%s7669_s0 + %s6630_s26]]   ;;  %s6636_s26 = smov 12  }
   0xb   :  { %s6712_s3 = sld [smem:[%s7669_s0 + %s6631_s30]]   ;;  %s6637_s1 = smov 13  }
   0xc   :  { %s6717_s8 = sld [smem:[%s7669_s0 + %s6632_s4]]   ;;  %s6638_s7 = smov 14  }
   0xd   :  { %s6722_s14 = sld [smem:[%s7669_s0 + %s6633_s10]]   ;;  %s6640_s22 = smov 16  }
   0xe   :  { %s6727_s19 = sld [smem:[%s7669_s0 + %s6634_s15]]   ;;  %s6639_s15 = smov 15  }
   0xf   :  { %s6732_s24 = sld [smem:[%s7669_s0 + %s6635_s20]]   ;;  %s6641_s28 = smov 17  }
  0x10   :  { %s6737_s30 = sld [smem:[%s7669_s0 + %s6636_s26]]  }
  0x11   :  { %7700 = sst [smem:[#allocation5_spill]] %s6712_s3 }
  0x12   :  { %7701 = sst [smem:[#allocation6_spill]] %s6717_s8 }
  0x13   :  { %7702 = sst [smem:[#allocation7_spill]] %s6722_s14 }
  0x14   :  { %s6742_s6 = sld [smem:[%s7669_s0 + %s6637_s1]]  }
  0x15   :  { %7703 = sst [smem:[#allocation8_spill]] %s6732_s24 }
  0x16   :  { %s6747_s12 = sld [smem:[%s7669_s0 + %s6638_s7]]   ;;  %s6642_s7 = smov 18  }
  0x17   :  { %s6752_s20 = sld [smem:[%s7669_s0 + %s6639_s15]]   ;;  %s6643_s15 = smov 19  }
  0x18   :  { %s6757_s27 = sld [smem:[%s7669_s0 + %s6640_s22]]   ;;  %s6644_s22 = smov 20  }
  0x19   :  { %s6762_s4 = sld [smem:[%s7669_s0 + %s6641_s28]]   ;;  %s6645_s28 = smov 21  }
  0x1a   :  { %7704 = sst [smem:[#allocation9_spill]] %s6742_s6 }
  0x1b   :  { %s6767_s13 = sld [smem:[%s7669_s0 + %s6642_s7]]   ;;  %s6646_s7 = smov 22  }
  0x1c   :  { %s6772_s6 = sld [smem:[%s7669_s0 + %s6643_s15]]   ;;  %s6647_s15 = smov 23  }
  0x1d   :  { %s6777_s24 = sld [smem:[%s7669_s0 + %s6644_s22]]   ;;  %s6648_s22 = smov 24  }
  0x1f   :  { %7705 = sst [smem:[#allocation10_spill]] %s6762_s4 }
  0x20   :  { %s6782_s4 = sld [smem:[%s7669_s0 + %s6645_s28]]   ;;  %s6649_s28 = smov 25  }
  0x21   :  { %7706 = sst [smem:[#allocation11_spill]] %s6767_s13 }
  0x22   :  { %7707 = sst [smem:[#allocation12_spill]] %s6772_s6 }
  0x23   :  { %7708 = sst [smem:[#allocation13_spill]] %s6777_s24 }
  0x24   :  { %s6787_s13 = sld [smem:[%s7669_s0 + %s6646_s7]]   ;;  %s6650_s7 = smov 26  }
  0x25   :  { %s6792_s6 = sld [smem:[%s7669_s0 + %s6647_s15]]   ;;  %s6651_s15 = smov 27  }
  0x26   :  { %7709 = sst [smem:[#allocation14_spill]] %s6782_s4 }
  0x27   :  { %s6797_s24 = sld [smem:[%s7669_s0 + %s6648_s22]]   ;;  %s6652_s22 = smov 28  }
  0x28   :  { %s6802_s4 = sld [smem:[%s7669_s0 + %s6649_s28]]   ;;  %s6653_s28 = smov 29  }
  0x2a   :  { %7710 = sst [smem:[#allocation15_spill]] %s6787_s13 }
  0x2b   :  { %7711 = sst [smem:[#allocation16_spill]] %s6792_s6 }
  0x2c   :  { %s6807_s13 = sld [smem:[%s7669_s0 + %s6650_s7]]   ;;  %s6824_s7 = smov 0  }
  0x2d   :  { %7712 = sst [smem:[#allocation17_spill]] %s6797_s24 }
  0x2e   :  { %7713 = sst [smem:[#allocation18_spill]] %s6802_s4 }
  0x2f   :  { %s6812_s6 = sld [smem:[%s7669_s0 + %s6651_s15]]  }
  0x30   :  { %s6817_s24 = sld [smem:[%s7669_s0 + %s6652_s22]]  }
  0x31   :  { %s6822_s4 = sld [smem:[%s7669_s0 + %s6653_s28]]  }
  0x37   :  { %7714 = sst [smem:[#allocation19_spill]] %s6822_s4 }
  0x38 LB: > { %s5448_s10 = sadd.s32 4294967295, %s6623_s7   ;;  %p5452_p0 = scmp.ge.s32.totalorder %s6623_s7, 1  ;;  %s6623_s7 = sphi %s6824_s7, %s70_s7  }
  0x39   : > { %p837_p1 = scmp.lt.s32.totalorder %s6623_s7, 3 }
  0x3b   : > { %p838_p2 = pnand %p5452_p0, %p837_p1 }
  0x3c   : > { %v945_v0 = vld [vmem:[%s6692_s17] sm:$0x3] (!%p838_p2)  ;;  %vm958_vm0 = vcmask (!%p838_p2), 1040384   ;;  %s7715_s5 = sld [smem:[#allocation2_spill]] (!%p838_p2)  ;;  %vm959_vm1 = vcmask (!%p838_p2), 1041408   ;;  %v6654_v1 = vmov (!%p838_p2), 0.0  }
  0x3d   : > { %841 = sbr.rel (%p838_p2) target bundleno = 16691 (0x4133), region = 132  ;;  %5883 = vmatprep.subr.bf16.mxu0 (!%p838_p2), %v6654_v1  ;;  %v6655_v2 = vmov (!%p838_p2), 65535   ;;  %p923_p3 = scmp.lt.s32.totalorder (!%p838_p2), %s5448_s10, 1  ;;  %5905 = vmatprep.subr.bf16.mxu1 (!%p838_p2), %v6654_v1  ;;  %vm6656_vm2 = vmmov (!%p838_p2), 0   ;;  %vm954_vm3 = vcmask (!%p838_p2), 23552   ;;  %v6499_v8 = vld [vmem:[%s6702_s25] sm:$0xff] (!%p838_p2)  }
  0x3e   : > { %v960_v3 = vsel (!%p838_p2), %vm958_vm0, 4294967295, %v6655_v2  ;;  %5885 = vmatprep.mubr.msk.bf16.mxu0 (!%p838_p2), %vm6656_vm2, %v6654_v1  ;;  %5909 = vmatprep.mubr.msk.bf16.mxu1 (!%p838_p2), %vm6656_vm2, %v6654_v1  ;;  %v6500_v9 = vld [vmem:[%s6702_s25 + $0x8] sm:$0xff] (!%p838_p2)   ;;  %v5458_v10 = vld [vmem:[%s6697_s21] ss:$0 sm:$0xff] (!%p838_p2)  ;;  %s7716_s3 = sld [smem:[#allocation5_spill]] (!%p838_p2)  ;;  %vm1030_vm4 = vcmask (!%p838_p2), 261120  }
  0x3f   : > { %v961_v4 = vsel (!%p838_p2), %vm959_vm1, %v960_v3, 0  ;;  %s7717_s8 = sld [smem:[#allocation6_spill]] (!%p838_p2)  ;;  %v6501_v18 = vld [vmem:[%s6747_s12] sm:$0xff] (!%p838_p2)   ;;  %s7718_s9 = sld [smem:[#allocation3_spill]] (!%p838_p2)  ;;  %v6502_v19 = vld [vmem:[%s6747_s12 + $0x8] sm:$0xff] (!%p838_p2)   ;;  %vm1216_vm5 = vcmask (!%p838_p2), 31744  }
  0x40   : > { %v963_v5 = vand.u32 (!%p838_p2), %v961_v4, %v945_v0  ;;  %v5460_v20 = vld [vmem:[%s6707_s29] ss:$0 sm:$0xff] (!%p838_p2)  ;;  %s7719_s14 = sld [smem:[#allocation7_spill]] (!%p838_p2)  ;;  %v6504_v34 = vld [vmem:[%s6757_s27 + $0x8] sm:$0xff] (!%p838_p2)   ;;  %s7720_s16 = sld [smem:[#allocation10_spill]] (!%p838_p2)  ;;  %vm1484_vm7 = vcmask (!%p838_p2), 64512  }
  0x41   : > { %v6503_v33 = vld [vmem:[%s6757_s27] sm:$0xff] (!%p838_p2)   ;;  %v6506_v46 = vld [vmem:[%s6727_s19 + $0x8] sm:$0xff] (!%p838_p2)   ;;  %s7721_s4 = sld [smem:[#allocation19_spill]] (!%p838_p2)  ;;  %s7722_s18 = sld [smem:[#allocation8_spill]] (!%p838_p2)  ;;  %vm1550_vm8 = vcmask (!%p838_p2), 1043456   ;;  %vm2387_vm9 = vcmask (!%p838_p2), 523264  }
  0x42   : > { %5884 = vmatpush3.bf16.msra.mxu0 (!%p838_p2), %v963_v5  ;;  %5906 = vmatpush3.bf16.msra.mxu1 (!%p838_p2), %v6503_v33  ;;  %v5464_v35 = vld [vmem:[%s6752_s20] ss:$0 sm:$0xff] (!%p838_p2)  ;;  %v6508_v54 = vld [vmem:[%s6737_s30 + $0x8] sm:$0xff] (!%p838_p2)   ;;  %s7723_s23 = sld [smem:[#allocation11_spill]] (!%p838_p2)  ;;  %s7724_s26 = sld [smem:[#allocation9_spill]] (!%p838_p2) }
  0x43   : > { %5889 = vmatprep.subr.bf16.mxu0 (!%p838_p2), %v6654_v1  ;;  %5907 = vmatprep.subr.bf16.mxu1 (!%p838_p2), %v6654_v1  ;;  %v6505_v42 = vld [vmem:[%s6727_s19] sm:$0xff] (!%p838_p2)   ;;  %s7725_s28 = sld [smem:[#allocation12_spill]] (!%p838_p2)  ;;  %s7693_s1 = smov (!%p838_p2), 120   ;;  %v6660_v33 = vmov (!%p838_p2), -1e+30  }
  0x44   : > { %s7745_s10 = smov (!%p923_p3, %s5448_s10), 1  ;;  %v1074_v22 = vld [vmem:[%s7716_s3] sm:$0xff]  ;;  %s7695_s2 = smov 96  }
  0x45   : > { %s6843_s0 = sshll.u32 %s7745_s10, 3  ;;  %v1213_v26 = vld [vmem:[%s7717_s8] sm:$0x3]  ;;  %s929_s15 = scalar_lea.vmem %s7718_s9, %s7745_s10 }
  0x46   : > { %s926_s11 = scalar_lea.vmem %s7715_s5, %s6843_s0  ;;  %v1221_v30 = vsel %vm959_vm1, %v1213_v26, 0  ;;  %v1212_v31 = vld [vmem:[%s929_s15] sm:$0x1]  ;;  %5908 = vmatpush3.bf16.msra.mxu1 %v6504_v34  ;;  %s7679_s15 = smov 64  }
  0x47   : > { %v944_v6 = vld [vmem:[%s926_s11] sm:$0xff]  ;;  %v1214_v32 = vpack.c.bf16 %v1212_v31, %v1212_v31  ;;  %5919 = vmatprep.subr.bf16.mxu1 %v6654_v1  ;;  %s942_s22 = scalar_lea.vmem %s7721_s4, %s6843_s0  ;;  %s7691_s11 = smov 88  }
  0x48   : > { %v946_v7 = vpack.c.bf16 %v944_v6, %v944_v6  ;;  %v1215_v44 = vld [vmem:[%s7719_s14] sm:$0x1]  ;;  %s7735_s3 = smov 72   ;;  %s7736_s4 = sld [smem:[#allocation17_spill]] }
  0x49   : > { %v6507_v53 = vld [vmem:[%s6737_s30] sm:$0xff]   ;;  %s7737_s5 = sld [smem:[#allocation18_spill]]  ;;  %s7738_s8 = smov 96  }
  0x4a   : > { %5886 = vmatmul.mubr.msk.bf16.vlgmr.msra.gmra.mrb[0].mxu0 %vm954_vm3, %v946_v7  ;;  %v5468_v55 = vld [vmem:[%s7720_s16] ss:$0 sm:$0xff]  ;;  %v1387_v7 = vlaneseq  ;;  %s7739_s9 = smov 120   ;;  %s7740_s14 = smov 64  }
  0x4b   : > { %5893 = vmatprep.mubr.msk.bf16.mxu0 %vm6656_vm2, %v6654_v1  ;;  %5890 = vmatpush3.bf16.msra.mxu0 %v6499_v8  ;;  %v1269_v61 = vld [vmem:[%s7722_s18] sm:$0x1]  ;;  %v6510_v8 = vld [vmem:[%s7723_s23 + $0x8] sm:$0xff]   ;;  %s7680_s18 = smov 56  }
  0x4c   : > { %5891 = vmatprep.subr.bf16.mxu0 %v6654_v1  ;;  %v6509_v6 = vld [vmem:[%s7723_s23] sm:$0xff]  }
  0x4f   : > { %5892 = vmatpush3.bf16.msra.mxu0 %v6500_v9  ;;  %v1388_v9 = vshrl.u32 %v1387_v7, 7 }
  0x50   : > { %5897 = vmatprep.subr.bf16.mxu0 %v6654_v1 }
 0x11d   : > { %v999_v11 = vpop.f32.mrb[0].mxu0 }
 0x11e   : > { %v1000_v12 = vadd.f32 %v5458_v10, %v999_v11  ;;  %v5887_v13 = vpop.f32.mrb[1].mxu0  ;;  %v1395_v10 = vand.u32 127, %v1387_v7  ;;  %v1331_v11 = vld [vmem:[%s7724_s26] sm:$0x1]  ;;  %s7681_s26 = smov 80  }
 0x11f   : > { %v1002_v14 = vpop.f32.mrb[2].mxu0 }
 0x120   : > { %v1005_v15 = vmax.f32 %v1000_v12, 0.0  ;;  %v5888_v16 = vpop.f32.mrb[3].mxu0  ;;  %vm1396_vm6 = vcmp.le.s32.totalorder %v1395_v10, %v1388_v9  ;;  %v1389_v12 = vsub.s32 0, %v1388_v9 }
 0x121   : > { %v6940_v34 = vsel %vm1396_vm6, 0.0, %v6660_v33 }
 0x122   : > { %v1010_v17 = vpack.c.bf16 %v1005_v15, %v1005_v15 }
 0x124   : > { %5894 = vmatmul.mubr.msk.bf16.vlgmr.msra.gmra.mrb[4].mxu0 %vm1030_vm4, %v1010_v17 }
 0x125   : > { %5901 = vmatprep.mubr.msk.bf16.mxu0 %vm6656_vm2, %v6654_v1  ;;  %5898 = vmatpush3.bf16.msra.mxu0 %v6501_v18 }
 0x126   : > { %5899 = vmatprep.subr.bf16.mxu0 %v6654_v1 }
 0x129   : > { %5900 = vmatpush3.bf16.msra.mxu0 %v6502_v19 }
 0x12a   : > { %5913 = vmatprep.subr.bf16.mxu0 %v6654_v1 }
 0x1f7   : > { %v1068_v21 = vpop.f32.mrb[4].mxu0 }
 0x1f8   : > { %v1069_v23 = vadd.f32 %v5460_v20, %v1068_v21  ;;  %v5895_v24 = vpop.f32.mrb[5].mxu0  ;;  %v5479_v21 = vld [vmem:[%s7725_s28] ss:$0 sm:$0xff] }
 0x1f9   : > { %v1071_v25 = vpop.f32.mrb[6].mxu0 }
 0x1fa   : > { %v6865_v27 = vadd.f32 %v1074_v22, %v1069_v23  ;;  %v5896_v28 = vpop.f32.mrb[7].mxu0 }
 0x1fc   : > { %v1080_v29 = vpack.c.bf16 %v6865_v27, %v6865_v27 }
 0x1fe   : > { %5902 = vmatmul.mubr.msk.bf16.vlgmr.msra.gmra.mrb[8].mxu0 %vm1030_vm4, %v1080_v29 }
 0x1ff   : > { %5914 = vmatpush3.bf16.msra.mxu0 %v1221_v30  ;;  %5915 = vmatprep.mubr.msk.bf16.mxu0 %vm6656_vm2, %v6654_v1 }
 0x200   : > { %5927 = vmatprep.subr.bf16.mxu0 %v6654_v1 }
 0x206   : > { %5916 = vmatmul.mubr.msk.bf16.vlgmr.msra.gmra.mrb[12].mxu0 %vm1216_vm5, %v1214_v32 }
 0x207   : > { %5931 = vmatprep.mubr.msk.bf16.mxu0 %vm6656_vm2, %v6654_v1  ;;  %5928 = vmatpush3.bf16.msra.mxu0 %v6507_v53 }
 0x208   : > { %5929 = vmatprep.subr.bf16.mxu0 %v6654_v1 }
 0x20b   : > { %5930 = vmatpush3.bf16.msra.mxu0 %v6508_v54 }
 0x20c   : > { %5943 = vmatprep.subr.bf16.mxu0 %v6654_v1 }
 0x2d1   : > { %v1137_v36 = vpop.f32.mrb[8].mxu0 }
 0x2d2   : > { %v1138_v37 = vadd.f32 %v5464_v35, %v1137_v36  ;;  %v5903_v38 = vpop.f32.mrb[9].mxu0 }
 0x2d3   : > { %v1140_v39 = vpop.f32.mrb[10].mxu0 }
 0x2d4   : > { %v1143_v40 = vmax.f32 %v1138_v37, 0.0  ;;  %v5904_v41 = vpop.f32.mrb[11].mxu0 }
 0x2d6   : > { %v1148_v43 = vpack.c.bf16 %v1143_v40, %v1143_v40 }
 0x2d8   : > { %5910 = vmatmul.mubr.msk.bf16.vlgmr.msra.gmra.mrb[0].mxu1 %vm1030_vm4, %v1148_v43 }
 0x2d9   : > { %v1257_v45 = vpop.f32.mrb[12].mxu0  ;;  %5920 = vmatpush3.bf16.msra.mxu1 %v6505_v42  ;;  %5923 = vmatprep.mubr.msk.bf16.mxu1 %vm6656_vm2, %v6654_v1 }
 0x2da   : > { %v1258_v47 = vadd.f32 %v1257_v45, %v1215_v44  ;;  %v5917_v48 = vpop.f32.mrb[13].mxu0  ;;  %5921 = vmatprep.subr.bf16.mxu1 %v6654_v1 }
 0x2db   : > { %v1260_v49 = vpop.f32.mrb[14].mxu0 }
 0x2dc   : > { %v1263_v50 = vmax.f32 %v1258_v47, 0.0  ;;  %v5918_v51 = vpop.f32.mrb[15].mxu0 }
 0x2dd   : > { %5922 = vmatpush3.bf16.msra.mxu1 %v6506_v46 }
 0x2de   : > { %v1268_v52 = vpack.c.bf16 %v1263_v50, %v1263_v50  ;;  %5935 = vmatprep.subr.bf16.mxu1 %v6654_v1 }
 0x2e0   : > { %5924 = vmatmul.mubr.msk.bf16.vlgmr.msra.gmra.mrb[4].mxu1 %vm1030_vm4, %v1268_v52 }
 0x2e1   : > { %5939 = vmatprep.mubr.msk.bf16.mxu1 %vm6656_vm2, %v6654_v1  ;;  %5936 = vmatpush3.bf16.msra.mxu1 %v6509_v6 }
 0x2e2   : > { %5937 = vmatprep.subr.bf16.mxu1 %v6654_v1 }
 0x2e5   : > { %5938 = vmatpush3.bf16.msra.mxu1 %v6510_v8 }
 0x2e6   : > { %5949 = vmatprep.subr.bf16.mxu1 %v6654_v1 }
 0x3ab   : > { %v1205_v56 = vpop.f32.mrb[0].mxu1 }
 0x3ac   : > { %v1206_v57 = vadd.f32 %v5468_v55, %v1205_v56  ;;  %v5911_v58 = vpop.f32.mrb[1].mxu1 }
 0x3ad   : > { %v1208_v59 = vpop.f32.mrb[2].mxu1 }
 0x3ae   : > { %1211 = vst.msk [vmem:[%s942_s22] sm:$0xff] %vm1030_vm4, %v1206_v57  ;;  %v5912_v60 = vpop.f32.mrb[3].mxu1  ;;  %s7683_s22 = smov 112  }
 0x3b3   : > { %v1319_v62 = vpop.f32.mrb[4].mxu1 }
 0x3b4   : > { %v1320_v63 = vadd.f32 %v1319_v62, %v1269_v61  ;;  %v5925_v0 = vpop.f32.mrb[5].mxu1 }
 0x3b5   : > { %v1322_v2 = vpop.f32.mrb[6].mxu1 }
 0x3b6   : > { %v1325_v3 = vmax.f32 %v1320_v63, 0.0  ;;  %v5926_v4 = vpop.f32.mrb[7].mxu1 }
 0x3b8   : > { %v1330_v5 = vpack.c.bf16 %v1325_v3, %v1325_v3 }
 0x3ba   : > { %5932 = vmatmul.mubr.msk.bf16.vlgmr.msra.gmra.mrb[16].mxu0 %vm1030_vm4, %v1330_v5 }
 0x3bb   : > { %5945 = vmatprep.mubr.msk.bf16.mxu0 %vm6656_vm2, %v6654_v1 }
 0x48d   : > { %v1381_v13 = vpop.f32.mrb[16].mxu0 }
 0x48e   : > { %v1382_v14 = vadd.f32 %v1381_v13, %v1331_v11  ;;  %v5933_v15 = vpop.f32.mrb[17].mxu0 }
 0x48f   : > { %v1384_v16 = vpop.f32.mrb[18].mxu0 }
 0x490   : > { %v1390_v17 = vrot.slane %v1382_v14, %v1389_v12  ;;  %v5934_v18 = vpop.f32.mrb[19].mxu0 }
 0x492   : > { %v6912_v19 = vadd.f32 %v1390_v17, %v6865_v27 }
 0x494   : > { %v1418_v20 = vpack.c.bf16 %v6912_v19, %v6912_v19 }
 0x496   : > { %5940 = vmatmul.mubr.msk.bf16.vlgmr.msra.gmra.mrb[8].mxu1 %vm1030_vm4, %v1418_v20 }
 0x497   : > { %5951 = vmatprep.mubr.msk.bf16.mxu1 %vm6656_vm2, %v6654_v1 }
 0x569   : > { %v1474_v22 = vpop.f32.mrb[8].mxu1 }
 0x56a   : > { %v1475_v23 = vadd.f32 %v5479_v21, %v1474_v22  ;;  %v5941_v24 = vpop.f32.mrb[9].mxu1 }
 0x56b   : > { %v1477_v25 = vpop.f32.mrb[10].mxu1 }
 0x56c   : > { %v6920_v26 = vpack.c.bf16 %v1475_v23, %v1475_v23  ;;  %v5942_v28 = vpop.f32.mrb[11].mxu1 }
 0x56e   : > { %1595 = vrot.lane.b32.xlu1 %v6920_v26, %s7693_s1  ;;  %1482 = vrot.lane.b32.xlu0 %v6920_v26, %s7695_s2 }
 0x572   : > { %1597 = vrot.lane.b32.xlu0 %v6920_v26, %s7691_s11 }
 0x5e0   : > { %v1483_v27 = vpop.permute.xlu0 %1482  ;;  %v1596_v32 = vpop.permute.xlu1 %1595 }
 0x5e1   : > { %v1489_v29 = vsel %vm1484_vm7, %v1483_v27, 0 }
 0x5e2   : > { %5944 = vmatpush3.bf16.xpose.msra.mxu0 %v1489_v29 }
 0x5e3   : > { %5955 = vmatprep.subr.bf16.mxu0 %v6654_v1 }
 0x5e4   : > { %v1598_v30 = vpop.permute.xlu0 %1597 }
 0x5e5   : > { %v1603_v31 = vsel %vm1484_vm7, %v1598_v30, 0 }
 0x5e9   : > { %5946 = vmatmul.mubr.msk.bf16.vlgmr.msra.gmra.mrb[20].mxu0 %vm1484_vm7, %v6920_v26 }
 0x5ea   : > { %5956 = vmatpush3.bf16.xpose.msra.mxu0 %v1603_v31  ;;  %5957 = vmatprep.mubr.msk.bf16.mxu0 %vm6656_vm2, %v6654_v1 }
 0x5eb   : > { %5967 = vmatprep.subr.bf16.mxu0 %v6654_v1 }
 0x5f1   : > { %5958 = vmatmul.mubr.msk.bf16.vlgmr.msra.gmra.mrb[24].mxu0 %vm1484_vm7, %v1596_v32 }
 0x5f2   : > { %5969 = vmatprep.mubr.msk.bf16.mxu0 %vm6656_vm2, %v6654_v1 }
 0x6bc   : > { %v1525_v35 = vpop.f32.mrb[20].mxu0 }
 0x6bd   : > { %v1531_v36 = vmul.f32 0.35355338, %v1525_v35  ;;  %v5947_v37 = vpop.f32.mrb[21].mxu0 }
 0x6be   : > { %v1528_v38 = vpop.f32.mrb[22].mxu0 }
 0x6bf   : > { %v5948_v39 = vpop.f32.mrb[23].mxu0  ;;  %v1532_v40 = vadd.f32 %v1531_v36, %v6940_v34 }
 0x6c1   : > { %v1533_v41 = vsel %vm1484_vm7, %v1532_v40, -inf }
 0x6c2   : > { %1534 = vmax.xlane.f32.xlu1 %v1533_v41 }
 0x6c4   : > { %v1639_v42 = vpop.f32.mrb[24].mxu0 }
 0x6c5   : > { %v1645_v43 = vmul.f32 0.35355338, %v1639_v42  ;;  %v5959_v44 = vpop.f32.mrb[25].mxu0 }
 0x6c6   : > { %v1642_v45 = vpop.f32.mrb[26].mxu0 }
 0x6c7   : > { %v5960_v46 = vpop.f32.mrb[27].mxu0  ;;  %v1646_v47 = vadd.f32 %v1645_v43, %v6940_v34 }
 0x6c9   : > { %v1647_v48 = vsel %vm1484_vm7, %v1646_v47, -inf }
 0x6ca   : > { %1648 = vmax.xlane.f32.xlu0 %v1647_v48 }
 0x74f   : > { %v1535_v49 = vpop.xlane.xlu1 %1534 }
 0x750   : > { %v1536_v50 = vsub.f32 %v1532_v40, %v1535_v49 }
 0x752   : > { %v1537_v51 = vmul.f32 1.442695, %v1536_v50 }
 0x754   : > { %6541 = vpow2.f32 %v1537_v51 }
 0x757   : > { %v1649_v52 = vpop.xlane.xlu0 %1648 }
 0x758   : > { %v1650_v53 = vsub.f32 %v1646_v47, %v1649_v52 }
 0x75a   : > { %v1651_v54 = vmul.f32 1.442695, %v1650_v53 }
 0x75c   : > { %6543 = vpow2.f32 %v1651_v54 }
 0x75e   : > { %v6542_v55 = vpop.eup %6541 }
 0x75f   : > { %v1539_v56 = vsel %vm1484_vm7, %v6542_v55, 0.0 }
 0x760   : > { %1540 = vadd.xlane.f32.xlu0 %v1539_v56 }
 0x766   : > { %v6544_v57 = vpop.eup %6543 }
 0x767   : > { %v1653_v58 = vsel %vm1484_vm7, %v6544_v57, 0.0 }
 0x768   : > { %1654 = vadd.xlane.f32.xlu1 %v1653_v58 }
 0x776   : > { %1545 = vrot.lane.b32.xlu0 %v6920_v26, %s7679_s15  ;;  %s7726_s15 = sld [smem:[#allocation13_spill]] }
 0x779   : > { %1659 = vrot.lane.b32.xlu1 %v6920_v26, %s7680_s18  ;;  %s7687_s18 = smov 72  }
 0x77a   : > { %1800 = vrot.lane.b32.xlu0 %v6920_v26, %s7683_s22  ;;  %s7685_s22 = smov 48  }
 0x77c   : > { %v1411_v8 = vld [vmem:[%s7726_s15] sm:$0xf]  ;;  %v1412_v10 = vld [vmem:[%s7726_s15 + $0x4] sm:$0xf]  ;;  %v1413_v58 = vld [vmem:[%s7726_s15 + $0x8] sm:$0xf] }
 0x77d   : > { %1802 = vrot.lane.b32.xlu1 %v6920_v26, %s7681_s26  ;;  %v1758_v9 = vsel %vm1550_vm8, %v1411_v8, 0  ;;  %v1712_v11 = vsel %vm1550_vm8, %v1412_v10, 0  ;;  %s7689_s26 = smov 104  }
 0x77e   : > { %5968 = vmatpush3.bf16.msra.mxu0 %v1712_v11 }
 0x77f   : > { %5979 = vmatprep.subr.bf16.mxu0 %v6654_v1 }
 0x7ed   : > { %v1541_v59 = vpop.xlane.xlu0 %1540 }
 0x7ee   : > { %6545 = vrcp.f32 %v1541_v59  ;;  %v1917_v59 = vsel %vm1550_vm8, %v1413_v58, 0 }
 0x7f1   : > { %v1546_v60 = vpop.permute.xlu0 %1545 }
 0x7f2   : > { %v1552_v61 = vsel %vm1550_vm8, %v1546_v60, 0 }
 0x7f3   : > { %5950 = vmatpush3.bf16.msra.mxu1 %v1552_v61 }
 0x7f4   : > { %5961 = vmatprep.subr.bf16.mxu1 %v6654_v1 }
 0x7f5   : > { %v1655_v62 = vpop.xlane.xlu1 %1654  ;;  %v1801_v25 = vpop.permute.xlu0 %1800 }
 0x7f6   : > { %6547 = vrcp.f32 %v1655_v62 }
 0x7f8   : > { %v6546_v63 = vpop.eup %6545 }
 0x7f9   : > { %v1543_v0 = vmul.f32 %v6546_v63, %v6542_v55  ;;  %v1660_v2 = vpop.permute.xlu1 %1659 }
 0x7fa   : > { %v1665_v4 = vsel %vm1550_vm8, %v1660_v2, 0 }
 0x7fb   : > { %v1544_v3 = vpack.c.bf16 %v1543_v0, %v1543_v0 }
 0x7fd   : > { %5952 = vmatmul.mubr.msk.bf16.vlgmr.msra.gmra.mrb[12].mxu1 %vm1484_vm7, %v1544_v3  ;;  %v1803_v17 = vpop.permute.xlu1 %1802 }
 0x7fe   : > { %5962 = vmatpush3.bf16.msra.mxu1 %v1665_v4  ;;  %5963 = vmatprep.mubr.msk.bf16.mxu1 %vm6656_vm2, %v6654_v1  ;;  %v1808_v23 = vsel %vm1484_vm7, %v1803_v17, 0 }
 0x7ff   : > { %5973 = vmatprep.subr.bf16.mxu1 %v6654_v1 }
 0x800   : > { %v6548_v5 = vpop.eup %6547 }
 0x801   : > { %v1657_v6 = vmul.f32 %v6548_v5, %v6544_v57 }
 0x803   : > { %v1658_v7 = vpack.c.bf16 %v1657_v6, %v1657_v6 }
 0x805   : > { %5964 = vmatmul.mubr.msk.bf16.vlgmr.msra.gmra.mrb[16].mxu1 %vm1484_vm7, %v1658_v7 }
 0x806   : > { %5975 = vmatprep.mubr.msk.bf16.mxu1 %vm6656_vm2, %v6654_v1  ;;  %5974 = vmatpush3.bf16.msra.mxu1 %v1758_v9 }
 0x807   : > { %5985 = vmatprep.subr.bf16.mxu1 %v6654_v1 }
 0x8d0   : > { %v1588_v12 = vpop.f32.mrb[12].mxu1 }
 0x8d1   : > { %v1594_v13 = vpack.c.bf16 %v1588_v12, %v1588_v12  ;;  %v5953_v14 = vpop.f32.mrb[13].mxu1 }
 0x8d2   : > { %v1591_v15 = vpop.f32.mrb[14].mxu1 }
 0x8d3   : > { %v5954_v16 = vpop.f32.mrb[15].mxu1  ;;  %5976 = vmatmul.mubr.msk.bf16.vlgmr.msra.gmra.mrb[20].mxu1 %vm1484_vm7, %v1594_v13 }
 0x8d4   : > { %5987 = vmatprep.mubr.msk.bf16.mxu1 %vm6656_vm2, %v6654_v1  ;;  %v1414_v16 = vld [vmem:[%s7726_s15 + $0xc] sm:$0xf] }
 0x8d5   : > { %v2077_v17 = vsel %vm1550_vm8, %v1414_v16, 0 }
 0x8d8   : > { %v1701_v18 = vpop.f32.mrb[16].mxu1 }
 0x8d9   : > { %v1707_v20 = vpack.c.bf16 %v1701_v18, %v1701_v18  ;;  %v5965_v21 = vpop.f32.mrb[17].mxu1 }
 0x8da   : > { %v1704_v22 = vpop.f32.mrb[18].mxu1 }
 0x8db   : > { %v5966_v24 = vpop.f32.mrb[19].mxu1  ;;  %5970 = vmatmul.mubr.msk.bf16.vlgmr.msra.gmra.mrb[28].mxu0 %vm1484_vm7, %v1707_v20 }
 0x8dc   : > { %5980 = vmatpush3.bf16.xpose.msra.mxu0 %v1808_v23  ;;  %5981 = vmatprep.mubr.msk.bf16.mxu0 %vm6656_vm2, %v6654_v1 }
 0x8dd   : > { %5991 = vmatprep.subr.bf16.mxu0 %v6654_v1 }
 0x8e3   : > { %5982 = vmatmul.mubr.msk.bf16.vlgmr.msra.gmra.mrb[32].mxu0 %vm1484_vm7, %v1801_v25 }
 0x8e4   : > { %5993 = vmatprep.mubr.msk.bf16.mxu0 %vm6656_vm2, %v6654_v1  ;;  %5992 = vmatpush3.bf16.msra.mxu0 %v1917_v59 }
 0x8e5   : > { %6003 = vmatprep.subr.bf16.mxu0 %v6654_v1 }
 0x9a6   : > { %v1794_v28 = vpop.f32.mrb[20].mxu1 }
 0x9a7   : > { %v5977_v27 = vpop.f32.mrb[21].mxu1 }
 0x9a8   : > { %v1797_v29 = vpop.f32.mrb[22].mxu1 }
 0x9a9   : > { %v5978_v30 = vpop.f32.mrb[23].mxu1 }
 0x9ae   : > { %v1748_v31 = vpop.f32.mrb[28].mxu0 }
 0x9af   : > { %v6983_v32 = vadd.f32 %v1794_v28, %v1748_v31  ;;  %v5971_v33 = vpop.f32.mrb[29].mxu0 }
 0x9b0   : > { %v1751_v35 = vpop.f32.mrb[30].mxu0  ;;  %v6511_v33 = vld [vmem:[%s7723_s23 + $0x10] sm:$0xff]  }
 0x9b1   : > { %v5972_v36 = vpop.f32.mrb[31].mxu0  ;;  %v6512_v35 = vld [vmem:[%s7723_s23 + $0x18] sm:$0xff]  }
 0x9b6   : > { %v1844_v37 = vpop.f32.mrb[32].mxu0 }
 0x9b7   : > { %v1850_v38 = vmul.f32 0.35355338, %v1844_v37  ;;  %v5983_v39 = vpop.f32.mrb[33].mxu0 }
 0x9b8   : > { %v1847_v40 = vpop.f32.mrb[34].mxu0 }
 0x9b9   : > { %v5984_v41 = vpop.f32.mrb[35].mxu0  ;;  %v1851_v42 = vadd.f32 %v1850_v38, %v6940_v34 }
 0x9bb   : > { %v1852_v43 = vsel %vm1484_vm7, %v1851_v42, -inf }
 0x9bc   : > { %1853 = vmax.xlane.f32.xlu1 %v1852_v43 }
 0x9cd   : > { %1962 = vrot.lane.b32.xlu1 %v6920_v26, %s7687_s18  ;;  %s7728_s18 = sld [smem:[#allocation4_spill]] }
 0x9d1   : > { %1960 = vrot.lane.b32.xlu1 %v6920_v26, %s7689_s26  ;;  %s5665_s26 = sshll.u32 %s7745_s10, 6  ;;  %s7729_s10 = sld [smem:[#allocation15_spill]] }
 0x9d3   : > { %s934_s11 = scalar_lea.vmem %s7728_s18, %s5665_s26  ;;  %s7730_s18 = sld [smem:[#allocation16_spill]] }
 0x9d4   : > { %s7732_s26 = smov 112  }
 0xa49   : > { %v1854_v44 = vpop.xlane.xlu1 %1853 }
 0xa4a   : > { %v1855_v45 = vsub.f32 %v1851_v42, %v1854_v44 }
 0xa4c   : > { %v1856_v46 = vmul.f32 1.442695, %v1855_v45  ;;  %v1398_v45 = vld [vmem:[%s934_s11] sm:$0xff] }
 0xa4d   : > { %v1963_v54 = vpop.permute.xlu1 %1962 }
 0xa4e   : > { %6549 = vpow2.f32 %v1856_v46  ;;  %v1968_v56 = vsel %vm1484_vm7, %v1963_v54, 0  ;;  %v1399_v46 = vld [vmem:[%s934_s11 + $0x8] sm:$0xff]  ;;  %v1401_v54 = vld [vmem:[%s934_s11 + $0x18] sm:$0xff] }
 0xa51   : > { %v1961_v57 = vpop.permute.xlu1 %1960 }
 0xa58   : > { %v6550_v47 = vpop.eup %6549 }
 0xa59   : > { %v1858_v48 = vsel %vm1484_vm7, %v6550_v47, 0.0 }
 0xa5a   : > { %1859 = vadd.xlane.f32.xlu0 %v1858_v48 }
 0xa70   : > { %1864 = vrot.lane.b32.xlu0 %v6920_v26, %s7685_s22  ;;  %s7686_s22 = smov 40  }
 0xae7   : > { %v1860_v49 = vpop.xlane.xlu0 %1859 }
 0xae8   : > { %6551 = vrcp.f32 %v1860_v49 }
 0xaeb   : > { %v1865_v50 = vpop.permute.xlu0 %1864 }
 0xaec   : > { %v1870_v51 = vsel %vm1550_vm8, %v1865_v50, 0 }
 0xaed   : > { %5986 = vmatpush3.bf16.msra.mxu1 %v1870_v51 }
 0xaee   : > { %5997 = vmatprep.subr.bf16.mxu1 %v6654_v1 }
 0xaf2   : > { %v6552_v52 = vpop.eup %6551 }
 0xaf3   : > { %v1862_v53 = vmul.f32 %v6552_v52, %v6550_v47  ;;  %v7035_v47 = vpack.c.bf16 %v1399_v46, %v1398_v45 }
 0xaf5   : > { %v1863_v55 = vpack.c.bf16 %v1862_v53, %v1862_v53  ;;  %v1400_v53 = vld [vmem:[%s934_s11 + $0x10] sm:$0xff] }
 0xaf6   : > { %v7040_v58 = vpack.c.bf16 %v1401_v54, %v1400_v53 }
 0xaf7   : > { %5988 = vmatmul.mubr.msk.bf16.vlgmr.msra.gmra.mrb[24].mxu1 %vm1484_vm7, %v1863_v55 }
 0xaf8   : > { %5998 = vmatpush3.bf16.xpose.msra.mxu1 %v1968_v56  ;;  %5999 = vmatprep.mubr.msk.bf16.mxu1 %vm6656_vm2, %v6654_v1  ;;  %v1402_v56 = vld [vmem:[%s934_s11 + $0x20] sm:$0xff] }
 0xaf9   : > { %6009 = vmatprep.subr.bf16.mxu1 %v6654_v1 }
 0xaff   : > { %6000 = vmatmul.mubr.msk.bf16.vlgmr.msra.gmra.mrb[28].mxu1 %vm1484_vm7, %v1961_v57  ;;  %v1403_v57 = vld [vmem:[%s934_s11 + $0x28] sm:$0xff] }
 0xb00   : > { %6011 = vmatprep.mubr.msk.bf16.mxu1 %vm6656_vm2, %v6654_v1  ;;  %6010 = vmatpush3.bf16.msra.mxu1 %v2077_v17  ;;  %v7042_v59 = vpack.c.bf16 %v1403_v57, %v1402_v56 }
 0xbca   : > { %v1906_v60 = vpop.f32.mrb[24].mxu1 }
 0xbcb   : > { %v1912_v61 = vpack.c.bf16 %v1906_v60, %v1906_v60  ;;  %v5989_v62 = vpop.f32.mrb[25].mxu1  ;;  %v1404_v60 = vld [vmem:[%s934_s11 + $0x30] sm:$0xff] }
 0xbcc   : > { %v1909_v63 = vpop.f32.mrb[26].mxu1 }
 0xbcd   : > { %v5990_v0 = vpop.f32.mrb[27].mxu1  ;;  %5994 = vmatmul.mubr.msk.bf16.vlgmr.msra.gmra.mrb[36].mxu0 %vm1484_vm7, %v1912_v61  ;;  %v1405_v61 = vld [vmem:[%s934_s11 + $0x38] sm:$0xff]  ;;  %v5510_v63 = vld [vmem:[%s7725_s28 + $0x1] ss:$0 sm:$0xff]  ;;  %s7731_s11 = smov 88  }
 0xbce   : > { %6005 = vmatprep.mubr.msk.bf16.mxu0 %vm6656_vm2, %v6654_v1  ;;  %v7049_v62 = vpack.c.bf16 %v1405_v61, %v1404_v60 }
 0xbd2   : > { %v2004_v2 = vpop.f32.mrb[28].mxu1 }
 0xbd3   : > { %v2010_v3 = vmul.f32 0.35355338, %v2004_v2  ;;  %v6001_v4 = vpop.f32.mrb[29].mxu1 }
 0xbd4   : > { %v2007_v5 = vpop.f32.mrb[30].mxu1 }
 0xbd5   : > { %v6002_v6 = vpop.f32.mrb[31].mxu1  ;;  %v2011_v7 = vadd.f32 %v2010_v3, %v6940_v34  ;;  %v5496_v5 = vld [vmem:[%s7729_s10] ss:$0 sm:$0xff] }
 0xbd7   : > { %v2012_v8 = vsel %vm1484_vm7, %v2011_v7, -inf }
 0xbd8   : > { %2013 = vmax.xlane.f32.xlu0 %v2012_v8 }
 0xbee   : > { %2024 = vrot.lane.b32.xlu0 %v6920_v26, %s7686_s22  ;;  %s7727_s22 = sld [smem:[#allocation14_spill]] }
 0xbf2   : > { %2242 = vrot.lane.b32.xlu0 %v6512_v35, %s7695_s2 }
 0xbf4   : > { %v5495_v36 = vld [vmem:[%s7727_s22] ss:$0 sm:$0xff] }
 0xc65   : > { %v2014_v9 = vpop.xlane.xlu0 %2013 }
 0xc66   : > { %v2015_v10 = vsub.f32 %v2011_v7, %v2014_v9  ;;  %v5497_v7 = vld [vmem:[%s7730_s18] ss:$0 sm:$0xff] }
 0xc68   : > { %v2016_v11 = vmul.f32 1.442695, %v2015_v10 }
 0xc69   : > { %v2025_v12 = vpop.permute.xlu0 %2024 }
 0xc6a   : > { %6553 = vpow2.f32 %v2016_v11  ;;  %v2030_v13 = vsel %vm1550_vm8, %v2025_v12, 0 }
 0xc6b   : > { %6004 = vmatpush3.bf16.msra.mxu0 %v2030_v13 }
 0xc6c   : > { %6015 = vmatprep.subr.bf16.mxu0 %v6654_v1 }
 0xc6d   : > { %v2243_v52 = vpop.permute.xlu0 %2242 }
 0xc74   : > { %v6554_v14 = vpop.eup %6553 }
 0xc75   : > { %v2018_v15 = vsel %vm1484_vm7, %v6554_v14, 0.0 }
 0xc76   : > { %2019 = vadd.xlane.f32.xlu1 %v2018_v15 }
 0xca0   : > { %v1953_v18 = vpop.f32.mrb[36].mxu0 }
 0xca1   : > { %v1959_v26 = vadd.f32 %v1953_v18, %v6983_v32  ;;  %v5995_v20 = vpop.f32.mrb[37].mxu0 }
 0xca2   : > { %v1956_v21 = vpop.f32.mrb[38].mxu0 }
 0xca3   : > { %v5996_v22 = vpop.f32.mrb[39].mxu0 }
 0xd03   : > { %v2020_v23 = vpop.xlane.xlu1 %2019 }
 0xd04   : > { %6555 = vrcp.f32 %v2020_v23 }
 0xd0e   : > { %v6556_v24 = vpop.eup %6555 }
 0xd0f   : > { %v2022_v25 = vmul.f32 %v6556_v24, %v6554_v14 }
 0xd11   : > { %v2023_v28 = vpack.c.bf16 %v2022_v25, %v2022_v25 }
 0xd13   : > { %6006 = vmatmul.mubr.msk.bf16.vlgmr.msra.gmra.mrb[40].mxu0 %vm1484_vm7, %v2023_v28 }
 0xd14   : > { %6019 = vmatprep.mubr.msk.bf16.mxu0 %vm6656_vm2, %v6654_v1  ;;  %6016 = vmatpush3.bf16.msra.mxu0 %v6511_v33 }
 0xd15   : > { %6017 = vmatprep.subr.bf16.mxu0 %v6654_v1 }
 0xd18   : > { %6018 = vmatpush3.bf16.msra.mxu0 %v6512_v35 }
 0xd19   : > { %6035 = vmatprep.subr.bf16.mxu0 %v6654_v1 }
 0xde6   : > { %v2066_v27 = vpop.f32.mrb[40].mxu0 }
 0xde7   : > { %v2072_v29 = vpack.c.bf16 %v2066_v27, %v2066_v27  ;;  %v6007_v30 = vpop.f32.mrb[41].mxu0 }
 0xde8   : > { %v2069_v31 = vpop.f32.mrb[42].mxu0 }
 0xde9   : > { %v6008_v32 = vpop.f32.mrb[43].mxu0  ;;  %6012 = vmatmul.mubr.msk.bf16.vlgmr.msra.gmra.mrb[32].mxu1 %vm1484_vm7, %v2072_v29 }
 0xdea   : > { %6027 = vmatprep.mubr.msk.bf16.mxu1 %vm1030_vm4, %v7035_v47 }
 0xebc   : > { %v2113_v37 = vpop.f32.mrb[32].mxu1 }
 0xebd   : > { %v2119_v38 = vadd.f32 %v2113_v37, %v1959_v26  ;;  %v6013_v39 = vpop.f32.mrb[33].mxu1 }
 0xebe   : > { %v2116_v40 = vpop.f32.mrb[34].mxu1 }
 0xebf   : > { %v2126_v41 = vadd.f32 %v5495_v36, %v2119_v38  ;;  %v6014_v42 = vpop.f32.mrb[35].mxu1 }
 0xec1   : > { %v2127_v43 = vadd.f32 %v2126_v41, %v6912_v19 }
 0xec3   : > { %v2128_v44 = vsel %vm1030_vm4, %v2127_v43, 0.0 }
 0xec4   : > { %2129 = vadd.xlane.f32.xlu1 %v2128_v44 }
 0xed5   : > { %2240 = vrot.lane.b32.xlu1 %v6511_v33, %s7695_s2 }
 0xed9   : > { %2246 = vrot.lane.b32.xlu1 %v5510_v63, %s7695_s2 }
 0xf51   : > { %v2130_v48 = vpop.xlane.xlu1 %2129 }
 0xf52   : > { %v2132_v49 = vmul.f32 0.03125, %v2130_v48 }
 0xf54   : > { %v2133_v50 = vsub.f32 %v2127_v43, %v2132_v49 }
 0xf55   : > { %v2241_v51 = vpop.permute.xlu1 %2240 }
 0xf56   : > { %v2134_v19 = vmul.f32 %v2133_v50, %v2133_v50  ;;  %6023 = vmatprep.subr.bf16.mxu1 %v2241_v51 }
 0xf57   : > { %6024 = vmatpush3.bf16.msra.mxu1 %v2241_v51 }
 0xf58   : > { %v2135_v55 = vsel %vm1030_vm4, %v2134_v19, 0.0  ;;  %6025 = vmatprep.subr.bf16.mxu1 %v2243_v52 }
 0xf59   : > { %2136 = vadd.xlane.f32.xlu0 %v2135_v55  ;;  %v2247_v11 = vpop.permute.xlu1 %2246 }
 0xf5b   : > { %6026 = vmatpush3.bf16.msra.mxu1 %v2243_v52 }
 0xf5c   : > { %6047 = vmatprep.subr.bf16.mxu1 %v6654_v1 }
 0xf5e   : > { %6028 = vmatmul.mubr.msk.bf16.vlgmr.msra.gmra.mrb[36].mxu1 %vm1030_vm4, %v7040_v58 }
 0xf5f   : > { %6031 = vmatprep.mubr.msk.bf16.mxu1 %vm1030_vm4, %v7042_v59 }
 0xf66   : > { %6032 = vmatmul.mubr.msk.bf16.gmra.mrb[40].mxu1 %vm1030_vm4, %v7049_v62 }
 0xf67   : > { %6055 = vmatprep.mubr.msk.bf16.mxu1 %vm6656_vm2, %v6654_v1 }
 0xfe6   : > { %v2137_v0 = vpop.xlane.xlu0 %2136 }
 0xfe7   : > { %v2138_v2 = vmul.f32 0.03125, %v2137_v0 }
 0xfe9   : > { %v2139_v3 = vadd.f32 1e-05, %v2138_v2 }
 0xfeb   : > { %6557 = vrsqrt.f32 %v2139_v3 }
 0xff5   : > { %v6558_v4 = vpop.eup %6557 }
 0xff6   : > { %v2141_v6 = vmul.f32 %v6558_v4, %v2133_v50 }
 0xff8   : > { %v2148_v8 = vmul.f32 %v5496_v5, %v2141_v6 }
 0xffa   : > { %v7059_v9 = vadd.f32 %v5497_v7, %v2148_v8 }
 0xffc   : > { %v2174_v10 = vpack.c.bf16 %v7059_v9, %v7059_v9 }
 0xffe   : > { %6020 = vmatmul.mubr.msk.bf16.vlgmr.msra.gmra.mrb[44].mxu0 %vm1030_vm4, %v2174_v10 }
 0xfff   : > { %6043 = vmatprep.mubr.msk.bf16.mxu0 %vm6656_vm2, %v6654_v1 }
0x1031   : > { %v6029_v12 = vpop.f32.mrb[36].mxu1 }
0x1032   : > { %v2295_v13 = vpop.f32.mrb[37].mxu1  ;;  %v2304_v14 = vadd.f32 %v6029_v12, %v2247_v11 }
0x1033   : > { %v6030_v15 = vpop.f32.mrb[38].mxu1  ;;  %v2296_v16 = vadd.f32 %v2295_v13, %v2247_v11 }
0x1034   : > { %v2307_v17 = vadd.f32 %v6030_v15, %v2247_v11  ;;  %v2298_v18 = vpop.f32.mrb[39].mxu1 }
0x1035   : > { %v2299_v26 = vadd.f32 %v2298_v18, %v2247_v11 }
0x1036   : > { %v7066_v20 = vpack.c.bf16 %v2307_v17, %v2304_v14  ;;  %v5503_v14 = vld [vmem:[%s7726_s15 + $0x10] sm:$0xf] }
0x1037   : > { %v7068_v21 = vpack.c.bf16 %v2299_v26, %v2296_v16  ;;  %v2645_v15 = vsel %vm1550_vm8, %v5503_v14, 0 }
0x1038   : > { %v2338_v33 = vsel %vm1484_vm7, %v7066_v20, 0 }
0x1039   : > { %v2335_v22 = vsel %vm1484_vm7, %v7068_v21, 0  ;;  %v6033_v23 = vpop.f32.mrb[40].mxu1  ;;  %2404 = vrot.lane.b32.xlu0 %v7068_v21, %s7695_s2 }
0x103a   : > { %6036 = vmatpush3.bf16.xpose.msra.mxu0 %v2335_v22  ;;  %v2320_v24 = vadd.f32 %v6033_v23, %v2247_v11  ;;  %v2311_v25 = vpop.f32.mrb[41].mxu1 }
0x103b   : > { %6037 = vmatprep.subr.bf16.mxu0 %v6654_v1  ;;  %v2312_v28 = vadd.f32 %v2311_v25, %v2247_v11  ;;  %v6034_v27 = vpop.f32.mrb[42].mxu1 }
0x103c   : > { %v2323_v29 = vadd.f32 %v6034_v27, %v2247_v11  ;;  %v2314_v30 = vpop.f32.mrb[43].mxu1 }
0x103d   : > { %v2315_v31 = vadd.f32 %v2314_v30, %v2247_v11 }
0x103e   : > { %v7075_v32 = vpack.c.bf16 %v2323_v29, %v2320_v24 }
0x103f   : > { %v7079_v35 = vpack.c.bf16 %v2315_v31, %v2312_v28 }
0x1040   : > { %v2344_v37 = vsel %vm1484_vm7, %v7075_v32, 0 }
0x1041   : > { %2408 = vrot.lane.b32.xlu0 %v7079_v35, %s7695_s2  ;;  %v2341_v36 = vsel %vm1484_vm7, %v7079_v35, 0 }
0x1042   : > { %6038 = vmatpush3.bf16.xpose.msra.mxu0 %v2338_v33 }
0x1043   : > { %6039 = vmatprep.subr.bf16.mxu0 %v6654_v1 }
0x104a   : > { %6040 = vmatpush3.bf16.xpose.msra.mxu0 %v2341_v36 }
0x104b   : > { %6041 = vmatprep.subr.bf16.mxu0 %v6654_v1 }
0x1052   : > { %6042 = vmatpush3.bf16.xpose.msra.mxu0 %v2344_v37 }
0x1053   : > { %6071 = vmatprep.subr.bf16.mxu0 %v6654_v1 }
0x10ab   : > { %v2405_v38 = vpop.permute.xlu0 %2404 }
0x10ac   : > { %6048 = vmatpush3.bf16.msra.mxu1 %v2405_v38 }
0x10ad   : > { %6049 = vmatprep.subr.bf16.mxu1 %v6654_v1 }
0x10b3   : > { %v2409_v55 = vpop.permute.xlu0 %2408 }
0x10d1   : > { %v2230_v39 = vpop.f32.mrb[44].mxu0 }
0x10d2   : > { %v2231_v40 = vadd.f32 %v5510_v63, %v2230_v39  ;;  %v6021_v41 = vpop.f32.mrb[45].mxu0 }
0x10d3   : > { %v2233_v42 = vpop.f32.mrb[46].mxu0 }
0x10d4   : > { %v7091_v43 = vpack.c.bf16 %v2231_v40, %v2231_v40  ;;  %v6022_v44 = vpop.f32.mrb[47].mxu0 }
0x10d6   : > { %6044 = vmatmul.mubr.msk.bf16.vlgmr.msra.gmra.mrb[48].mxu0 %vm1484_vm7, %v7091_v43 }
0x10d7   : > { %6079 = vmatprep.mubr.msk.bf16.mxu0 %vm6656_vm2, %v6654_v1 }
0x11a9   : > { %v2380_v45 = vpop.f32.mrb[48].mxu0 }
0x11aa   : > { %v2386_v46 = vmul.f32 0.35355338, %v2380_v45  ;;  %v6045_v48 = vpop.f32.mrb[49].mxu0 }
0x11ab   : > { %v2383_v49 = vpop.f32.mrb[50].mxu0 }
0x11ac   : > { %v6046_v50 = vpop.f32.mrb[51].mxu0  ;;  %v2388_v51 = vsel %vm2387_vm9, %v2386_v46, -inf  ;;  %v5504_v49 = vld [vmem:[%s7726_s15 + $0x14] sm:$0xf] }
0x11ad   : > { %2389 = vmax.xlane.f32.xlu1 %v2388_v51 }
0x11be   : > { %2406 = vrot.lane.b32.xlu1 %v7066_v20, %s7695_s2 }
0x11c2   : > { %2410 = vrot.lane.b32.xlu1 %v7075_v32, %s7695_s2  ;;  %s7734_s2 = smov 104  }
0x11c6   : > { %2465 = vrot.lane.b32.xlu1 %v7066_v20, %s7693_s1 }
0x11ca   : > { %2469 = vrot.lane.b32.xlu1 %v7075_v32, %s7693_s1 }
0x123a   : > { %v2390_v52 = vpop.xlane.xlu1 %2389 }
0x123b   : > { %v2391_v19 = vsub.f32 %v2386_v46, %v2390_v52  ;;  %v2599_v52 = vsel %vm1550_vm8, %v5504_v49, 0 }
0x123d   : > { %v2392_v53 = vmul.f32 1.442695, %v2391_v19 }
0x123e   : > { %v2407_v54 = vpop.permute.xlu1 %2406 }
0x123f   : > { %6559 = vpow2.f32 %v2392_v53  ;;  %6050 = vmatpush3.bf16.msra.mxu1 %v2407_v54 }
0x1240   : > { %6051 = vmatprep.subr.bf16.mxu1 %v6654_v1 }
0x1242   : > { %v2411_v56 = vpop.permute.xlu1 %2410 }
0x1243   : > { %6052 = vmatpush3.bf16.msra.mxu1 %v2409_v55 }
0x1244   : > { %6053 = vmatprep.subr.bf16.mxu1 %v6654_v1 }
0x1246   : > { %v2466_v8 = vpop.permute.xlu1 %2465 }
0x1247   : > { %6054 = vmatpush3.bf16.msra.mxu1 %v2411_v56  ;;  %v2478_v10 = vsel %vm1484_vm7, %v2466_v8, 0 }
0x1248   : > { %6059 = vmatprep.subr.bf16.mxu1 %v6654_v1 }
0x1249   : > { %v6560_v57 = vpop.eup %6559 }
0x124a   : > { %v2394_v60 = vsel %vm2387_vm9, %v6560_v57, 0.0  ;;  %v2470_v12 = vpop.permute.xlu1 %2469 }
0x124b   : > { %2395 = vadd.xlane.f32.xlu0 %v2394_v60  ;;  %v2484_v13 = vsel %vm1484_vm7, %v2470_v12, 0 }
0x1261   : > { %2463 = vrot.lane.b32.xlu0 %v7068_v21, %s7693_s1 }
0x1265   : > { %2467 = vrot.lane.b32.xlu0 %v7079_v35, %s7693_s1 }
0x1269   : > { %2461 = vrot.lane.b32.xlu0 %v7091_v43, %s7693_s1  ;;  %s7733_s1 = smov 80  }
0x126d   : > { %2539 = vrot.lane.b32.xlu0 %v7068_v21, %s7731_s11 }
0x12d8   : > { %v2396_v61 = vpop.xlane.xlu0 %2395 }
0x12d9   : > { %6561 = vrcp.f32 %v2396_v61 }
0x12dc   : > { %v2464_v63 = vpop.permute.xlu0 %2463 }
0x12dd   : > { %v2475_v6 = vsel %vm1484_vm7, %v2464_v63, 0 }
0x12e0   : > { %v2468_v0 = vpop.permute.xlu0 %2467 }
0x12e1   : > { %v2481_v11 = vsel %vm1484_vm7, %v2468_v0, 0 }
0x12e3   : > { %v6562_v2 = vpop.eup %6561 }
0x12e4   : > { %v2398_v3 = vmul.f32 %v6562_v2, %v6560_v57  ;;  %v2462_v4 = vpop.permute.xlu0 %2461 }
0x12e6   : > { %v2399_v5 = vpack.c.bf16 %v2398_v3, %v2398_v3 }
0x12e8   : > { %v2540_v7 = vpop.permute.xlu0 %2539  ;;  %6056 = vmatmul.mubr.msk.bf16.vlgmr.msra.gmra.mrb[44].mxu1 %vm2387_vm9, %v2399_v5 }
0x12e9   : > { %6060 = vmatpush3.bf16.xpose.msra.mxu1 %v2475_v6  ;;  %6072 = vmatpush3.bf16.msra.mxu0 %v2540_v7 }
0x12ea   : > { %6061 = vmatprep.subr.bf16.mxu1 %v6654_v1  ;;  %6067 = vmatprep.mubr.msk.bf16.mxu1 %vm6656_vm2, %v6654_v1 }
0x12eb   : > { %6073 = vmatprep.subr.bf16.mxu0 %v6654_v1 }
0x12f1   : > { %6062 = vmatpush3.bf16.xpose.msra.mxu1 %v2478_v10 }
0x12f2   : > { %6063 = vmatprep.subr.bf16.mxu1 %v6654_v1 }
0x12f9   : > { %6064 = vmatpush3.bf16.xpose.msra.mxu1 %v2481_v11 }
0x12fa   : > { %6065 = vmatprep.subr.bf16.mxu1 %v6654_v1 }
0x1301   : > { %6066 = vmatpush3.bf16.xpose.msra.mxu1 %v2484_v13 }
0x1302   : > { %6089 = vmatprep.subr.bf16.mxu1 %v6654_v1 }
0x1308   : > { %6068 = vmatmul.mubr.msk.bf16.vlgmr.msra.gmra.mrb[48].mxu1 %vm1484_vm7, %v2462_v4 }
0x1309   : > { %6091 = vmatprep.mubr.msk.bf16.mxu1 %vm6656_vm2, %v6654_v1  ;;  %6090 = vmatpush3.bf16.msra.mxu1 %v2645_v15 }
0x130a   : > { %6107 = vmatprep.subr.bf16.mxu1 %v6654_v1 }
0x13bb   : > { %v2453_v16 = vpop.f32.mrb[44].mxu1 }
0x13bc   : > { %v2459_v17 = vpack.c.bf16 %v2453_v16, %v2453_v16  ;;  %v6057_v18 = vpop.f32.mrb[45].mxu1 }
0x13bd   : > { %v2456_v26 = vpop.f32.mrb[46].mxu1 }
0x13be   : > { %v6058_v22 = vpop.f32.mrb[47].mxu1  ;;  %6092 = vmatmul.mubr.msk.bf16.vlgmr.msra.gmra.mrb[52].mxu1 %vm1484_vm7, %v2459_v17 }
0x13bf   : > { %6115 = vmatprep.mubr.msk.bf16.mxu1 %vm6656_vm2, %v6654_v1 }
0x13db   : > { %v2520_v23 = vpop.f32.mrb[48].mxu1 }
0x13dc   : > { %v2526_v24 = vmul.f32 0.35355338, %v2520_v23  ;;  %v6069_v25 = vpop.f32.mrb[49].mxu1 }
0x13dd   : > { %v2523_v28 = vpop.f32.mrb[50].mxu1 }
0x13de   : > { %v6070_v27 = vpop.f32.mrb[51].mxu1  ;;  %v2527_v29 = vsel %vm2387_vm9, %v2526_v24, -inf }
0x13df   : > { %2528 = vmax.xlane.f32.xlu1 %v2527_v29 }
0x13f0   : > { %2541 = vrot.lane.b32.xlu1 %v7066_v20, %s7731_s11 }
0x13f4   : > { %2543 = vrot.lane.b32.xlu1 %v7079_v35, %s7731_s11 }
0x13f8   : > { %2689 = vrot.lane.b32.xlu1 %v7068_v21, %s7732_s26 }
0x13fc   : > { %2693 = vrot.lane.b32.xlu1 %v7079_v35, %s7732_s26 }
0x1400   : > { %2687 = vrot.lane.b32.xlu1 %v7091_v43, %s7732_s26 }
0x1404   : > { %2767 = vrot.lane.b32.xlu1 %v7066_v20, %s7733_s1 }
0x146c   : > { %v2529_v30 = vpop.xlane.xlu1 %2528 }
0x146d   : > { %v2530_v31 = vsub.f32 %v2526_v24, %v2529_v30 }
0x146f   : > { %v2531_v33 = vmul.f32 1.442695, %v2530_v31 }
0x1470   : > { %v2542_v36 = vpop.permute.xlu1 %2541 }
0x1471   : > { %6563 = vpow2.f32 %v2531_v33  ;;  %6074 = vmatpush3.bf16.msra.mxu0 %v2542_v36 }
0x1472   : > { %6075 = vmatprep.subr.bf16.mxu0 %v6654_v1 }
0x1474   : > { %v2544_v37 = vpop.permute.xlu1 %2543 }
0x1475   : > { %6076 = vmatpush3.bf16.msra.mxu0 %v2544_v37  ;;  %v5505_v37 = vld [vmem:[%s7726_s15 + $0x18] sm:$0xf] }
0x1476   : > { %6077 = vmatprep.subr.bf16.mxu0 %v6654_v1 }
0x1478   : > { %v2690_v19 = vpop.permute.xlu1 %2689 }
0x1479   : > { %v2701_v57 = vsel %vm1484_vm7, %v2690_v19, 0 }
0x147b   : > { %v6564_v38 = vpop.eup %6563 }
0x147c   : > { %v2533_v39 = vsel %vm2387_vm9, %v6564_v38, 0.0  ;;  %v2694_v0 = vpop.permute.xlu1 %2693 }
0x147d   : > { %2534 = vadd.xlane.f32.xlu0 %v2533_v39  ;;  %v2707_v2 = vsel %vm1484_vm7, %v2694_v0, 0 }
0x1480   : > { %v2688_v5 = vpop.permute.xlu1 %2687 }
0x1484   : > { %v2768_v24 = vpop.permute.xlu1 %2767 }
0x1491   : > { %v2681_v40 = vpop.f32.mrb[52].mxu1 }
0x1492   : > { %v6093_v41 = vpop.f32.mrb[53].mxu1 }
0x1493   : > { %2545 = vrot.lane.b32.xlu0 %v7075_v32, %s7731_s11  ;;  %v2684_v42 = vpop.f32.mrb[54].mxu1 }
0x1494   : > { %v6094_v44 = vpop.f32.mrb[55].mxu1 }
0x1497   : > { %2691 = vrot.lane.b32.xlu0 %v7066_v20, %s7732_s26 }
0x149b   : > { %2695 = vrot.lane.b32.xlu0 %v7075_v32, %s7732_s26 }
0x150a   : > { %v2535_v45 = vpop.xlane.xlu0 %2534 }
0x150b   : > { %6565 = vrcp.f32 %v2535_v45 }
0x150e   : > { %v2546_v46 = vpop.permute.xlu0 %2545 }
0x150f   : > { %6078 = vmatpush3.bf16.msra.mxu0 %v2546_v46 }
0x1510   : > { %6083 = vmatprep.subr.bf16.mxu0 %v6654_v1 }
0x1512   : > { %v2692_v61 = vpop.permute.xlu0 %2691 }
0x1513   : > { %v2704_v63 = vsel %vm1484_vm7, %v2692_v61, 0 }
0x1515   : > { %v6566_v48 = vpop.eup %6565 }
0x1516   : > { %v2537_v50 = vmul.f32 %v6566_v48, %v6564_v38  ;;  %v2696_v3 = vpop.permute.xlu0 %2695 }
0x1517   : > { %v2710_v4 = vsel %vm1484_vm7, %v2696_v3, 0 }
0x1518   : > { %v2538_v51 = vpack.c.bf16 %v2537_v50, %v2537_v50 }
0x151a   : > { %6080 = vmatmul.mubr.msk.bf16.vlgmr.msra.gmra.mrb[52].mxu0 %vm2387_vm9, %v2538_v51 }
0x151b   : > { %6084 = vmatpush3.bf16.msra.mxu0 %v2599_v52  ;;  %6085 = vmatprep.mubr.msk.bf16.mxu0 %vm6656_vm2, %v6654_v1 }
0x151c   : > { %6095 = vmatprep.subr.bf16.mxu0 %v6654_v1 }
0x15ed   : > { %v2588_v53 = vpop.f32.mrb[52].mxu0 }
0x15ee   : > { %v2594_v54 = vpack.c.bf16 %v2588_v53, %v2588_v53  ;;  %v6081_v55 = vpop.f32.mrb[53].mxu0 }
0x15ef   : > { %v2591_v56 = vpop.f32.mrb[54].mxu0 }
0x15f0   : > { %v6082_v60 = vpop.f32.mrb[55].mxu0  ;;  %6086 = vmatmul.mubr.msk.bf16.vlgmr.msra.gmra.mrb[56].mxu0 %vm1484_vm7, %v2594_v54 }
0x15f1   : > { %6096 = vmatpush3.bf16.xpose.msra.mxu0 %v2701_v57  ;;  %6103 = vmatprep.mubr.msk.bf16.mxu0 %vm6656_vm2, %v6654_v1 }
0x15f2   : > { %6097 = vmatprep.subr.bf16.mxu0 %v6654_v1 }
0x15f9   : > { %6098 = vmatpush3.bf16.xpose.msra.mxu0 %v2704_v63 }
0x15fa   : > { %6099 = vmatprep.subr.bf16.mxu0 %v6654_v1 }
0x1601   : > { %6100 = vmatpush3.bf16.xpose.msra.mxu0 %v2707_v2 }
0x1602   : > { %6101 = vmatprep.subr.bf16.mxu0 %v6654_v1 }
0x1609   : > { %6102 = vmatpush3.bf16.xpose.msra.mxu0 %v2710_v4 }
0x160a   : > { %6137 = vmatprep.subr.bf16.mxu0 %v6654_v1 }
0x1610   : > { %6104 = vmatmul.mubr.msk.bf16.vlgmr.msra.gmra.mrb[60].mxu0 %vm1484_vm7, %v2688_v5 }
0x1611   : > { %6145 = vmatprep.mubr.msk.bf16.mxu0 %vm6656_vm2, %v6654_v1 }
0x16c3   : > { %v2635_v6 = vpop.f32.mrb[56].mxu0 }
0x16c4   : > { %v7182_v7 = vadd.f32 %v2681_v40, %v2635_v6  ;;  %v6087_v8 = vpop.f32.mrb[57].mxu0  ;;  %v2825_v40 = vsel %vm1550_vm8, %v5505_v37, 0 }
0x16c5   : > { %v2638_v10 = vpop.f32.mrb[58].mxu0 }
0x16c6   : > { %v6088_v11 = vpop.f32.mrb[59].mxu0 }
0x16e3   : > { %v2746_v12 = vpop.f32.mrb[60].mxu0 }
0x16e4   : > { %v2752_v13 = vmul.f32 0.35355338, %v2746_v12  ;;  %v6105_v14 = vpop.f32.mrb[61].mxu0 }
0x16e5   : > { %v2749_v15 = vpop.f32.mrb[62].mxu0 }
0x16e6   : > { %v6106_v16 = vpop.f32.mrb[63].mxu0  ;;  %v2753_v17 = vsel %vm2387_vm9, %v2752_v13, -inf }
0x16e7   : > { %2754 = vmax.xlane.f32.xlu0 %v2753_v17 }
0x16fd   : > { %2765 = vrot.lane.b32.xlu0 %v7068_v21, %s7733_s1 }
0x1701   : > { %2769 = vrot.lane.b32.xlu0 %v7079_v35, %s7733_s1 }
0x1705   : > { %2870 = vrot.lane.b32.xlu0 %v7068_v21, %s7734_s2 }
0x1709   : > { %2874 = vrot.lane.b32.xlu0 %v7079_v35, %s7734_s2 }
0x170d   : > { %2868 = vrot.lane.b32.xlu0 %v7091_v43, %s7734_s2 }
0x1711   : > { %2946 = vrot.lane.b32.xlu0 %v7068_v21, %s7735_s3 }
0x1774   : > { %v2755_v18 = vpop.xlane.xlu0 %2754 }
0x1775   : > { %v2756_v26 = vsub.f32 %v2752_v13, %v2755_v18  ;;  %v5506_v13 = vld [vmem:[%s7726_s15 + $0x1c] sm:$0xf] }
0x1776   : > { %v3006_v16 = vsel %vm1550_vm8, %v5506_v13, 0 }
0x1777   : > { %v2757_v22 = vmul.f32 1.442695, %v2756_v26 }
0x1778   : > { %v2766_v23 = vpop.permute.xlu0 %2765 }
0x1779   : > { %6567 = vpow2.f32 %v2757_v22  ;;  %6108 = vmatpush3.bf16.msra.mxu1 %v2766_v23  ;;  %v5530_v23 = vld [vmem:[%s7727_s22 + $0x1] ss:$0 sm:$0xff] }
0x177a   : > { %6109 = vmatprep.subr.bf16.mxu1 %v6654_v1 }
0x177c   : > { %v2770_v25 = vpop.permute.xlu0 %2769 }
0x177d   : > { %6110 = vmatpush3.bf16.msra.mxu1 %v2768_v24 }
0x177e   : > { %6111 = vmatprep.subr.bf16.mxu1 %v6654_v1 }
0x1780   : > { %v2871_v28 = vpop.permute.xlu0 %2870 }
0x1781   : > { %6112 = vmatpush3.bf16.msra.mxu1 %v2770_v25  ;;  %v2882_v46 = vsel %vm1484_vm7, %v2871_v28, 0 }
0x1782   : > { %6113 = vmatprep.subr.bf16.mxu1 %v6654_v1 }
0x1783   : > { %v6568_v43 = vpop.eup %6567 }
0x1784   : > { %v2875_v27 = vpop.permute.xlu0 %2874  ;;  %v2759_v21 = vsel %vm2387_vm9, %v6568_v43, 0.0 }
0x1785   : > { %2760 = vadd.xlane.f32.xlu1 %v2759_v21  ;;  %v2888_v51 = vsel %vm1484_vm7, %v2875_v27, 0 }
0x1788   : > { %v2869_v29 = vpop.permute.xlu0 %2868 }
0x178c   : > { %v2947_v30 = vpop.permute.xlu0 %2946 }
0x178d   : > { %6138 = vmatpush3.bf16.msra.mxu0 %v2947_v30 }
0x178e   : > { %6139 = vmatprep.subr.bf16.mxu0 %v6654_v1 }
0x1796   : > { %2771 = vrot.lane.b32.xlu1 %v7075_v32, %s7733_s1 }
0x179a   : > { %2872 = vrot.lane.b32.xlu1 %v7066_v20, %s7734_s2 }
0x179e   : > { %2876 = vrot.lane.b32.xlu1 %v7075_v32, %s7734_s2 }
0x1812   : > { %v2761_v31 = vpop.xlane.xlu1 %2760 }
0x1813   : > { %6569 = vrcp.f32 %v2761_v31 }
0x1816   : > { %v2772_v33 = vpop.permute.xlu1 %2771 }
0x1817   : > { %6114 = vmatpush3.bf16.msra.mxu1 %v2772_v33 }
0x1818   : > { %6119 = vmatprep.subr.bf16.mxu1 %v6654_v1 }
0x181a   : > { %v2873_v49 = vpop.permute.xlu1 %2872 }
0x181b   : > { %v2885_v50 = vsel %vm1484_vm7, %v2873_v49, 0 }
0x181d   : > { %v6570_v36 = vpop.eup %6569 }
0x181e   : > { %v2763_v38 = vmul.f32 %v6570_v36, %v6568_v43  ;;  %v2877_v52 = vpop.permute.xlu1 %2876 }
0x181f   : > { %v2891_v19 = vsel %vm1484_vm7, %v2877_v52, 0  ;;  %v5531_v52 = vld [vmem:[%s7729_s10 + $0x1] ss:$0 sm:$0xff] }
0x1820   : > { %v2764_v39 = vpack.c.bf16 %v2763_v38, %v2763_v38 }
0x1822   : > { %6116 = vmatmul.mubr.msk.bf16.vlgmr.msra.gmra.mrb[56].mxu1 %vm2387_vm9, %v2764_v39  ;;  %v6513_v39 = vld [vmem:[%s7736_s4] sm:$0xff]  }
0x1823   : > { %6120 = vmatpush3.bf16.msra.mxu1 %v2825_v40  ;;  %6121 = vmatprep.mubr.msk.bf16.mxu1 %vm6656_vm2, %v6654_v1  ;;  %v6514_v40 = vld [vmem:[%s7736_s4 + $0x8] sm:$0xff]  }
0x1824   : > { %6125 = vmatprep.subr.bf16.mxu1 %v6654_v1 }
0x18f5   : > { %v2814_v41 = vpop.f32.mrb[56].mxu1 }
0x18f6   : > { %v2820_v42 = vpack.c.bf16 %v2814_v41, %v2814_v41  ;;  %v6117_v44 = vpop.f32.mrb[57].mxu1  ;;  %v6516_v41 = vld [vmem:[%s6807_s13 + $0x8] sm:$0xff]  }
0x18f7   : > { %v2817_v45 = vpop.f32.mrb[58].mxu1  ;;  %v6518_v44 = vld [vmem:[%s6807_s13 + $0x18] sm:$0xff]  }
0x18f8   : > { %v6118_v48 = vpop.f32.mrb[59].mxu1  ;;  %6122 = vmatmul.mubr.msk.bf16.vlgmr.msra.gmra.mrb[60].mxu1 %vm1484_vm7, %v2820_v42  ;;  %v6517_v42 = vld [vmem:[%s6807_s13 + $0x10] sm:$0xff]   ;;  %v6519_v45 = vld [vmem:[%s6807_s13 + $0x20] sm:$0xff]  }
0x18f9   : > { %6126 = vmatpush3.bf16.xpose.msra.mxu1 %v2882_v46  ;;  %6133 = vmatprep.mubr.msk.bf16.mxu1 %vm6656_vm2, %v6654_v1  ;;  %v6520_v46 = vld [vmem:[%s6807_s13 + $0x28] sm:$0xff]  }
0x18fa   : > { %6127 = vmatprep.subr.bf16.mxu1 %v6654_v1 }
0x1901   : > { %6128 = vmatpush3.bf16.xpose.msra.mxu1 %v2885_v50 }
0x1902   : > { %6129 = vmatprep.subr.bf16.mxu1 %v6654_v1 }
0x1909   : > { %6130 = vmatpush3.bf16.xpose.msra.mxu1 %v2888_v51 }
0x190a   : > { %6131 = vmatprep.subr.bf16.mxu1 %v6654_v1 }
0x1911   : > { %6132 = vmatpush3.bf16.xpose.msra.mxu1 %v2891_v19 }
0x1912   : > { %6163 = vmatprep.subr.bf16.mxu1 %v6654_v1 }
0x1918   : > { %6134 = vmatmul.mubr.msk.bf16.vlgmr.msra.gmra.mrb[64].mxu1 %vm1484_vm7, %v2869_v29 }
0x1919   : > { %6179 = vmatprep.mubr.msk.bf16.mxu1 %vm6656_vm2, %v6654_v1 }
0x19cb   : > { %v2861_v53 = vpop.f32.mrb[60].mxu1 }
0x19cc   : > { %v2867_v54 = vadd.f32 %v2861_v53, %v7182_v7  ;;  %v6123_v55 = vpop.f32.mrb[61].mxu1  ;;  %v5532_v53 = vld [vmem:[%s7730_s18 + $0x1] ss:$0 sm:$0xff] }
0x19cd   : > { %v2864_v56 = vpop.f32.mrb[62].mxu1 }
0x19ce   : > { %v6124_v57 = vpop.f32.mrb[63].mxu1 }
0x19cf   : > { %v6521_v57 = vld [vmem:[%s6807_s13 + $0x30] sm:$0xff]  }
0x19eb   : > { %v2927_v60 = vpop.f32.mrb[64].mxu1 }
0x19ec   : > { %v2933_v61 = vmul.f32 0.35355338, %v2927_v60  ;;  %v6135_v63 = vpop.f32.mrb[65].mxu1  ;;  %v6522_v60 = vld [vmem:[%s6807_s13 + $0x38] sm:$0xff]  }
0x19ed   : > { %v2930_v0 = vpop.f32.mrb[66].mxu1 }
0x19ee   : > { %v6136_v2 = vpop.f32.mrb[67].mxu1  ;;  %v2934_v3 = vsel %vm2387_vm9, %v2933_v61, -inf }
0x19ef   : > { %2935 = vmax.xlane.f32.xlu1 %v2934_v3 }
0x1a00   : > { %2948 = vrot.lane.b32.xlu1 %v7066_v20, %s7735_s3 }
0x1a04   : > { %2950 = vrot.lane.b32.xlu1 %v7079_v35, %s7735_s3 }
0x1a7c   : > { %v2936_v4 = vpop.xlane.xlu1 %2935 }
0x1a7d   : > { %v2937_v5 = vsub.f32 %v2933_v61, %v2936_v4  ;;  %v5533_v61 = vld [vmem:[%s7737_s5] ss:$0 sm:$0xff] }
0x1a7f   : > { %v2938_v6 = vmul.f32 1.442695, %v2937_v5 }
0x1a80   : > { %v2949_v7 = vpop.permute.xlu1 %2948 }
0x1a81   : > { %6571 = vpow2.f32 %v2938_v6  ;;  %6140 = vmatpush3.bf16.msra.mxu0 %v2949_v7 }
0x1a82   : > { %6141 = vmatprep.subr.bf16.mxu0 %v6654_v1 }
0x1a84   : > { %v2951_v8 = vpop.permute.xlu1 %2950 }
0x1a85   : > { %6142 = vmatpush3.bf16.msra.mxu0 %v2951_v8  ;;  %v5545_v8 = vld [vmem:[%s6812_s6] ss:$0 sm:$0xff] }
0x1a86   : > { %6143 = vmatprep.subr.bf16.mxu0 %v6654_v1 }
0x1a8b   : > { %v6572_v10 = vpop.eup %6571 }
0x1a8c   : > { %v2940_v11 = vsel %vm2387_vm9, %v6572_v10, 0.0 }
0x1a8d   : > { %2941 = vadd.xlane.f32.xlu0 %v2940_v11 }
0x1aa3   : > { %2952 = vrot.lane.b32.xlu0 %v7075_v32, %s7735_s3 }
0x1b1a   : > { %v2942_v20 = vpop.xlane.xlu0 %2941 }
0x1b1b   : > { %6573 = vrcp.f32 %v2942_v20 }
0x1b1e   : > { %v2953_v35 = vpop.permute.xlu0 %2952 }
0x1b1f   : > { %6144 = vmatpush3.bf16.msra.mxu0 %v2953_v35 }
0x1b20   : > { %6149 = vmatprep.subr.bf16.mxu0 %v6654_v1 }
0x1b25   : > { %v6574_v12 = vpop.eup %6573 }
0x1b26   : > { %v2944_v14 = vmul.f32 %v6574_v12, %v6572_v10 }
0x1b28   : > { %v2945_v15 = vpack.c.bf16 %v2944_v14, %v2944_v14 }
0x1b2a   : > { %6146 = vmatmul.mubr.msk.bf16.vlgmr.msra.gmra.mrb[64].mxu0 %vm2387_vm9, %v2945_v15 }
0x1b2b   : > { %6150 = vmatpush3.bf16.msra.mxu0 %v3006_v16  ;;  %6151 = vmatprep.mubr.msk.bf16.mxu0 %vm6656_vm2, %v6654_v1 }
0x1b2c   : > { %6155 = vmatprep.subr.bf16.mxu0 %v6654_v1 }
0x1bfd   : > { %v2995_v32 = vpop.f32.mrb[64].mxu0 }
0x1bfe   : > { %v3001_v17 = vpack.c.bf16 %v2995_v32, %v2995_v32  ;;  %v6147_v18 = vpop.f32.mrb[65].mxu0 }
0x1bff   : > { %v2998_v26 = vpop.f32.mrb[66].mxu0  ;;  %v6523_v18 = vld [vmem:[%s7723_s23 + $0x20] sm:$0xff]  }
0x1c00   : > { %v6148_v22 = vpop.f32.mrb[67].mxu0  ;;  %6152 = vmatmul.mubr.msk.bf16.vlgmr.msra.gmra.mrb[68].mxu0 %vm1484_vm7, %v3001_v17  ;;  %v6524_v26 = vld [vmem:[%s7723_s23 + $0x28] sm:$0xff]  }
0x1c01   : > { %6159 = vmatprep.mubr.msk.bf16.mxu0 %vm6656_vm2, %v6654_v1  ;;  %6156 = vmatpush3.bf16.msra.mxu0 %v6513_v39 }
0x1c02   : > { %6157 = vmatprep.subr.bf16.mxu0 %v6654_v1 }
0x1c05   : > { %6158 = vmatpush3.bf16.msra.mxu0 %v6514_v40 }
0x1c06   : > { %6183 = vmatprep.subr.bf16.mxu0 %v6654_v1 }
0x1cd3   : > { %v3042_v24 = vpop.f32.mrb[68].mxu0 }
0x1cd4   : > { %v3048_v25 = vadd.f32 %v3042_v24, %v2867_v54  ;;  %v6153_v28 = vpop.f32.mrb[69].mxu0 }
0x1cd5   : > { %v3045_v43 = vpop.f32.mrb[70].mxu0  ;;  %v5548_v28 = vld [vmem:[%s7729_s10 + $0x2] ss:$0 sm:$0xff] }
0x1cd6   : > { %v3055_v27 = vadd.f32 %v5530_v23, %v3048_v25  ;;  %v6154_v21 = vpop.f32.mrb[71].mxu0 }
0x1cd8   : > { %v3056_v29 = vadd.f32 %v3055_v27, %v7059_v9  ;;  %v6515_v9 = vld [vmem:[%s6807_s13] sm:$0xff]  }
0x1cd9   : > { %6164 = vmatpush3.bf16.msra.mxu1 %v6515_v9  ;;  %v5549_v27 = vld [vmem:[%s7730_s18 + $0x2] ss:$0 sm:$0xff] }
0x1cda   : > { %v3057_v30 = vsel %vm1030_vm4, %v3056_v29, 0.0  ;;  %6165 = vmatprep.subr.bf16.mxu1 %v6654_v1 }
0x1cdb   : > { %3058 = vadd.xlane.f32.xlu1 %v3057_v30 }
0x1cdd   : > { %6166 = vmatpush3.bf16.msra.mxu1 %v6516_v41 }
0x1cde   : > { %6167 = vmatprep.subr.bf16.mxu1 %v6654_v1 }
0x1ce1   : > { %6168 = vmatpush3.bf16.msra.mxu1 %v6517_v42 }
0x1ce2   : > { %6169 = vmatprep.subr.bf16.mxu1 %v6654_v1 }
0x1ce5   : > { %6170 = vmatpush3.bf16.msra.mxu1 %v6518_v44 }
0x1ce6   : > { %6171 = vmatprep.subr.bf16.mxu1 %v6654_v1 }
0x1ce9   : > { %6172 = vmatpush3.bf16.msra.mxu1 %v6519_v45 }
0x1cea   : > { %6173 = vmatprep.subr.bf16.mxu1 %v6654_v1 }
0x1ced   : > { %6174 = vmatpush3.bf16.msra.mxu1 %v6520_v46 }
0x1cee   : > { %6175 = vmatprep.subr.bf16.mxu1 %v6654_v1 }
0x1cf1   : > { %6176 = vmatpush3.bf16.msra.mxu1 %v6521_v57 }
0x1cf2   : > { %6177 = vmatprep.subr.bf16.mxu1 %v6654_v1 }
0x1cf5   : > { %6178 = vmatpush3.bf16.msra.mxu1 %v6522_v60 }
0x1cf6   : > { %6209 = vmatprep.subr.bf16.mxu1 %v6654_v1 }
0x1d68   : > { %v3059_v31 = vpop.xlane.xlu1 %3058 }
0x1d69   : > { %v3060_v33 = vmul.f32 0.03125, %v3059_v31  ;;  %v5562_v31 = vld [vmem:[%s7725_s28 + $0x2] ss:$0 sm:$0xff] }
0x1d6b   : > { %v3061_v36 = vsub.f32 %v3056_v29, %v3060_v33 }
0x1d6d   : > { %v3062_v37 = vmul.f32 %v3061_v36, %v3061_v36 }
0x1d6f   : > { %v3063_v38 = vsel %vm1030_vm4, %v3062_v37, 0.0 }
0x1d70   : > { %3064 = vadd.xlane.f32.xlu0 %v3063_v38 }
0x1dfd   : > { %v3065_v48 = vpop.xlane.xlu0 %3064 }
0x1dfe   : > { %v3066_v49 = vmul.f32 0.03125, %v3065_v48 }
0x1e00   : > { %v3067_v50 = vadd.f32 1e-05, %v3066_v49 }
0x1e02   : > { %6575 = vrsqrt.f32 %v3067_v50 }
0x1e0c   : > { %v6576_v51 = vpop.eup %6575 }
0x1e0d   : > { %v3069_v19 = vmul.f32 %v6576_v51, %v3061_v36 }
0x1e0f   : > { %v3076_v54 = vmul.f32 %v5531_v52, %v3069_v19 }
0x1e11   : > { %v3083_v55 = vadd.f32 %v5532_v53, %v3076_v54 }
0x1e13   : > { %v3088_v56 = vpack.c.bf16 %v3083_v55, %v3083_v55 }
0x1e15   : > { %6160 = vmatmul.mubr.msk.bf16.vlgmr.msra.gmra.mrb[72].mxu0 %vm1030_vm4, %v3088_v56 }
0x1e16   : > { %6187 = vmatprep.mubr.msk.bf16.mxu0 %vm6656_vm2, %v6654_v1  ;;  %6184 = vmatpush3.bf16.msra.mxu0 %v6523_v18  ;;  %v5556_v18 = vld [vmem:[%s7726_s15 + $0x24] sm:$0xf] }
0x1e17   : > { %6185 = vmatprep.subr.bf16.mxu0 %v6654_v1 }
0x1e1a   : > { %6186 = vmatpush3.bf16.msra.mxu0 %v6524_v26  ;;  %v3607_v26 = vsel %vm1550_vm8, %v5556_v18, 0 }
0x1e1b   : > { %6191 = vmatprep.subr.bf16.mxu0 %v6654_v1 }
0x1ee8   : > { %v3145_v63 = vpop.f32.mrb[72].mxu0 }
0x1ee9   : > { %v3146_v0 = vadd.f32 %v5533_v61, %v3145_v63  ;;  %v6161_v2 = vpop.f32.mrb[73].mxu0 }
0x1eea   : > { %v3148_v3 = vpop.f32.mrb[74].mxu0 }
0x1eeb   : > { %v3151_v4 = vmax.f32 %v3146_v0, 0.0  ;;  %v6162_v5 = vpop.f32.mrb[75].mxu0 }
0x1eed   : > { %v3168_v6 = vpack.c.bf16 %v3151_v4, %v3151_v4 }
0x1eef   : > { %6180 = vmatmul.mubr.bf16.vlgmr.msra.gmra.mrb[68].mxu1 %v3168_v6 }
0x1ef0   : > { %6211 = vmatprep.mubr.msk.bf16.mxu1 %vm6656_vm2, %v6654_v1 }
0x1fc2   : > { %v3251_v7 = vpop.f32.mrb[68].mxu1 }
0x1fc3   : > { %v3257_v10 = vadd.f32 %v3251_v7, %v3083_v55  ;;  %v6181_v11 = vpop.f32.mrb[69].mxu1 }
0x1fc4   : > { %v3254_v20 = vpop.f32.mrb[70].mxu1 }
0x1fc5   : > { %v6182_v35 = vpop.f32.mrb[71].mxu1  ;;  %v3265_v12 = vadd.f32 %v5545_v8, %v3257_v10 }
0x1fc7   : > { %v3270_v13 = vsel %vm1030_vm4, %v3265_v12, 0.0 }
0x1fc8   : > { %3271 = vadd.xlane.f32.xlu0 %v3270_v13 }
0x2055   : > { %v3272_v14 = vpop.xlane.xlu0 %3271 }
0x2056   : > { %v3273_v15 = vmul.f32 0.03125, %v3272_v14 }
0x2058   : > { %v3274_v16 = vsub.f32 %v3265_v12, %v3273_v15 }
0x205a   : > { %v3275_v32 = vmul.f32 %v3274_v16, %v3274_v16 }
0x205c   : > { %v3276_v17 = vsel %vm1030_vm4, %v3275_v32, 0.0 }
0x205d   : > { %3277 = vadd.xlane.f32.xlu1 %v3276_v17 }
0x20ea   : > { %v3278_v22 = vpop.xlane.xlu1 %3277 }
0x20eb   : > { %v3279_v23 = vmul.f32 0.03125, %v3278_v22 }
0x20ed   : > { %v3280_v24 = vadd.f32 1e-05, %v3279_v23 }
0x20ef   : > { %6577 = vrsqrt.f32 %v3280_v24 }
0x20f9   : > { %v6578_v25 = vpop.eup %6577 }
0x20fa   : > { %v3282_v43 = vmul.f32 %v6578_v25, %v3274_v16 }
0x20fc   : > { %v3289_v21 = vmul.f32 %v5548_v28, %v3282_v43  ;;  %v5555_v28 = vld [vmem:[%s7726_s15 + $0x20] sm:$0xf] }
0x20fe   : > { %v7291_v29 = vadd.f32 %v5549_v27, %v3289_v21  ;;  %v3653_v21 = vsel %vm1550_vm8, %v5555_v28, 0 }
0x2100   : > { %v3315_v30 = vpack.c.bf16 %v7291_v29, %v7291_v29 }
0x2102   : > { %6188 = vmatmul.mubr.msk.bf16.vlgmr.msra.gmra.mrb[76].mxu0 %vm1030_vm4, %v3315_v30 }
0x2103   : > { %6193 = vmatprep.mubr.msk.bf16.mxu0 %vm6656_vm2, %v6654_v1 }
0x21d5   : > { %v3371_v33 = vpop.f32.mrb[76].mxu0 }
0x21d6   : > { %v3372_v36 = vadd.f32 %v5562_v31, %v3371_v33  ;;  %v6189_v37 = vpop.f32.mrb[77].mxu0 }
0x21d7   : > { %v3374_v38 = vpop.f32.mrb[78].mxu0 }
0x21d8   : > { %v7299_v39 = vpack.c.bf16 %v3372_v36, %v3372_v36  ;;  %v6190_v40 = vpop.f32.mrb[79].mxu0 }
0x21da   : > { %3379 = vrot.lane.b32.xlu0 %v7299_v39, %s7738_s8 }
0x21de   : > { %3492 = vrot.lane.b32.xlu0 %v7299_v39, %s7731_s11 }
0x21e2   : > { %3490 = vrot.lane.b32.xlu0 %v7299_v39, %s7739_s9 }
0x224c   : > { %v3380_v9 = vpop.permute.xlu0 %3379 }
0x224d   : > { %v3385_v41 = vsel %vm1484_vm7, %v3380_v9, 0 }
0x224e   : > { %6192 = vmatpush3.bf16.xpose.msra.mxu0 %v3385_v41 }
0x224f   : > { %6197 = vmatprep.subr.bf16.mxu0 %v6654_v1 }
0x2250   : > { %v3493_v63 = vpop.permute.xlu0 %3492 }
0x2251   : > { %v3498_v2 = vsel %vm1484_vm7, %v3493_v63, 0 }
0x2254   : > { %v3491_v3 = vpop.permute.xlu0 %3490 }
0x2255   : > { %6194 = vmatmul.mubr.msk.bf16.vlgmr.msra.gmra.mrb[80].mxu0 %vm1484_vm7, %v7299_v39 }
0x2256   : > { %6199 = vmatprep.mubr.msk.bf16.mxu0 %vm6656_vm2, %v6654_v1 }
0x2328   : > { %v3421_v42 = vpop.f32.mrb[80].mxu0 }
0x2329   : > { %v3427_v44 = vmul.f32 0.35355338, %v3421_v42  ;;  %v6195_v45 = vpop.f32.mrb[81].mxu0 }
0x232a   : > { %v3424_v46 = vpop.f32.mrb[82].mxu0 }
0x232b   : > { %v6196_v48 = vpop.f32.mrb[83].mxu0  ;;  %v3428_v49 = vadd.f32 %v3427_v44, %v6940_v34 }
0x232d   : > { %v3429_v50 = vsel %vm1484_vm7, %v3428_v49, -inf }
0x232e   : > { %3430 = vmax.xlane.f32.xlu1 %v3429_v50 }
0x23bb   : > { %v3431_v51 = vpop.xlane.xlu1 %3430 }
0x23bc   : > { %v3432_v52 = vsub.f32 %v3428_v49, %v3431_v51 }
0x23be   : > { %v3433_v19 = vmul.f32 1.442695, %v3432_v52 }
0x23c0   : > { %6579 = vpow2.f32 %v3433_v19 }
0x23ca   : > { %v6580_v53 = vpop.eup %6579 }
0x23cb   : > { %v3435_v54 = vsel %vm1484_vm7, %v6580_v53, 0.0 }
0x23cc   : > { %3436 = vadd.xlane.f32.xlu1 %v3435_v54 }
0x23dd   : > { %3441 = vrot.lane.b32.xlu1 %v7299_v39, %s7740_s14  ;;  %s7741_s14 = smov 56  }
0x2459   : > { %v3437_v55 = vpop.xlane.xlu1 %3436 }
0x245a   : > { %6581 = vrcp.f32 %v3437_v55 }
0x245d   : > { %v3442_v56 = vpop.permute.xlu1 %3441 }
0x245e   : > { %v3447_v57 = vsel %vm1550_vm8, %v3442_v56, 0 }
0x245f   : > { %6198 = vmatpush3.bf16.msra.mxu0 %v3447_v57 }
0x2460   : > { %6203 = vmatprep.subr.bf16.mxu0 %v6654_v1 }
0x2464   : > { %v6582_v60 = vpop.eup %6581 }
0x2465   : > { %v3439_v61 = vmul.f32 %v6582_v60, %v6580_v53 }
0x2467   : > { %v3440_v0 = vpack.c.bf16 %v3439_v61, %v3439_v61 }
0x2469   : > { %6200 = vmatmul.mubr.msk.bf16.vlgmr.msra.gmra.mrb[84].mxu0 %vm1484_vm7, %v3440_v0 }
0x246a   : > { %6204 = vmatpush3.bf16.xpose.msra.mxu0 %v3498_v2  ;;  %6205 = vmatprep.mubr.msk.bf16.mxu0 %vm6656_vm2, %v6654_v1 }
0x246b   : > { %6215 = vmatprep.subr.bf16.mxu0 %v6654_v1 }
0x2471   : > { %6206 = vmatmul.mubr.msk.bf16.vlgmr.msra.gmra.mrb[88].mxu0 %vm1484_vm7, %v3491_v3 }
0x2472   : > { %6217 = vmatprep.mubr.msk.bf16.mxu0 %vm6656_vm2, %v6654_v1  ;;  %6216 = vmatpush3.bf16.msra.mxu0 %v3607_v26 }
0x2473   : > { %6227 = vmatprep.subr.bf16.mxu0 %v6654_v1 }
0x253c   : > { %v3483_v4 = vpop.f32.mrb[84].mxu0 }
0x253d   : > { %v6201_v5 = vpop.f32.mrb[85].mxu0  ;;  %v3489_v30 = vpack.c.bf16 %v3483_v4, %v3483_v4 }
0x253e   : > { %v3486_v6 = vpop.f32.mrb[86].mxu0 }
0x253f   : > { %v6202_v7 = vpop.f32.mrb[87].mxu0 }
0x2544   : > { %v3534_v8 = vpop.f32.mrb[88].mxu0 }
0x2545   : > { %v3540_v10 = vmul.f32 0.35355338, %v3534_v8  ;;  %v6207_v11 = vpop.f32.mrb[89].mxu0 }
0x2546   : > { %v3537_v20 = vpop.f32.mrb[90].mxu0 }
0x2547   : > { %v6208_v35 = vpop.f32.mrb[91].mxu0  ;;  %v3541_v12 = vadd.f32 %v3540_v10, %v6940_v34 }
0x2549   : > { %v3542_v13 = vsel %vm1484_vm7, %v3541_v12, -inf }
0x254a   : > { %3543 = vmax.xlane.f32.xlu1 %v3542_v13 }
0x255b   : > { %3697 = vrot.lane.b32.xlu1 %v7299_v39, %s7733_s1 }
0x255f   : > { %3695 = vrot.lane.b32.xlu1 %v7299_v39, %s7732_s26 }
0x25d7   : > { %v3544_v14 = vpop.xlane.xlu1 %3543 }
0x25d8   : > { %v3545_v15 = vsub.f32 %v3541_v12, %v3544_v14  ;;  %v5557_v12 = vld [vmem:[%s7726_s15 + $0x28] sm:$0xf] }
0x25d9   : > { %v3812_v13 = vsel %vm1550_vm8, %v5557_v12, 0  ;;  %v5579_v12 = vld [vmem:[%s7729_s10 + $0x3] ss:$0 sm:$0xff] }
0x25da   : > { %v3546_v16 = vmul.f32 1.442695, %v3545_v15 }
0x25db   : > { %v3698_v31 = vpop.permute.xlu1 %3697 }
0x25dc   : > { %6583 = vpow2.f32 %v3546_v16  ;;  %v3703_v40 = vsel %vm1484_vm7, %v3698_v31, 0 }
0x25df   : > { %v3696_v44 = vpop.permute.xlu1 %3695 }
0x25e6   : > { %v6584_v32 = vpop.eup %6583 }
0x25e7   : > { %v3548_v17 = vsel %vm1484_vm7, %v6584_v32, 0.0 }
0x25e8   : > { %3549 = vadd.xlane.f32.xlu0 %v3548_v17 }
0x25fe   : > { %3554 = vrot.lane.b32.xlu0 %v7299_v39, %s7741_s14  ;;  %s7742_s14 = smov 48  }
0x2675   : > { %v3550_v22 = vpop.xlane.xlu0 %3549 }
0x2676   : > { %6585 = vrcp.f32 %v3550_v22 }
0x2679   : > { %v3555_v23 = vpop.permute.xlu0 %3554 }
0x267a   : > { %v3560_v24 = vsel %vm1550_vm8, %v3555_v23, 0 }
0x267b   : > { %6210 = vmatpush3.bf16.msra.mxu1 %v3560_v24 }
0x267c   : > { %6221 = vmatprep.subr.bf16.mxu1 %v6654_v1 }
0x2680   : > { %v6586_v25 = vpop.eup %6585 }
0x2681   : > { %v3552_v43 = vmul.f32 %v6586_v25, %v6584_v32 }
0x2683   : > { %v3553_v27 = vpack.c.bf16 %v3552_v43, %v3552_v43 }
0x2685   : > { %6212 = vmatmul.mubr.msk.bf16.vlgmr.msra.gmra.mrb[72].mxu1 %vm1484_vm7, %v3553_v27 }
0x2686   : > { %6222 = vmatpush3.bf16.msra.mxu1 %v3653_v21  ;;  %6223 = vmatprep.mubr.msk.bf16.mxu1 %vm6656_vm2, %v6654_v1 }
0x2687   : > { %6233 = vmatprep.subr.bf16.mxu1 %v6654_v1 }
0x268d   : > { %6224 = vmatmul.mubr.msk.bf16.vlgmr.msra.gmra.mrb[76].mxu1 %vm1484_vm7, %v3489_v30 }
0x268e   : > { %6235 = vmatprep.mubr.msk.bf16.mxu1 %vm6656_vm2, %v6654_v1 }
0x2758   : > { %v3596_v33 = vpop.f32.mrb[72].mxu1 }
0x2759   : > { %v3602_v36 = vpack.c.bf16 %v3596_v33, %v3596_v33  ;;  %v6213_v37 = vpop.f32.mrb[73].mxu1  ;;  %v5558_v33 = vld [vmem:[%s7726_s15 + $0x2c] sm:$0xf] }
0x275a   : > { %v3599_v38 = vpop.f32.mrb[74].mxu1 }
0x275b   : > { %v6214_v9 = vpop.f32.mrb[75].mxu1  ;;  %6218 = vmatmul.mubr.msk.bf16.vlgmr.msra.gmra.mrb[92].mxu0 %vm1484_vm7, %v3602_v36  ;;  %v3972_v36 = vsel %vm1550_vm8, %v5558_v33, 0 }
0x275c   : > { %6228 = vmatpush3.bf16.xpose.msra.mxu0 %v3703_v40  ;;  %6229 = vmatprep.mubr.msk.bf16.mxu0 %vm6656_vm2, %v6654_v1 }
0x275d   : > { %6239 = vmatprep.subr.bf16.mxu0 %v6654_v1 }
0x2760   : > { %v3689_v41 = vpop.f32.mrb[76].mxu1 }
0x2761   : > { %v6225_v42 = vpop.f32.mrb[77].mxu1 }
0x2762   : > { %v3692_v45 = vpop.f32.mrb[78].mxu1 }
0x2763   : > { %v6226_v46 = vpop.f32.mrb[79].mxu1  ;;  %6230 = vmatmul.mubr.msk.bf16.vlgmr.msra.gmra.mrb[96].mxu0 %vm1484_vm7, %v3696_v44 }
0x2764   : > { %6241 = vmatprep.mubr.msk.bf16.mxu0 %vm6656_vm2, %v6654_v1  ;;  %6240 = vmatpush3.bf16.msra.mxu0 %v3812_v13 }
0x2765   : > { %6251 = vmatprep.subr.bf16.mxu0 %v6654_v1 }
0x282e   : > { %v3643_v48 = vpop.f32.mrb[92].mxu0 }
0x282f   : > { %v7359_v49 = vadd.f32 %v3689_v41, %v3643_v48  ;;  %v6219_v50 = vpop.f32.mrb[93].mxu0 }
0x2830   : > { %v3646_v51 = vpop.f32.mrb[94].mxu0 }
0x2831   : > { %v6220_v52 = vpop.f32.mrb[95].mxu0 }
0x2836   : > { %v3739_v19 = vpop.f32.mrb[96].mxu0 }
0x2837   : > { %v3745_v53 = vmul.f32 0.35355338, %v3739_v19  ;;  %v6231_v54 = vpop.f32.mrb[97].mxu0  ;;  %v6525_v19 = vld [vmem:[%s7723_s23 + $0x30] sm:$0xff]  }
0x2838   : > { %v3742_v55 = vpop.f32.mrb[98].mxu0  ;;  %v5578_v54 = vld [vmem:[%s7727_s22 + $0x2] ss:$0 sm:$0xff] }
0x2839   : > { %v6232_v56 = vpop.f32.mrb[99].mxu0  ;;  %v3746_v57 = vadd.f32 %v3745_v53, %v6940_v34  ;;  %v6526_v53 = vld [vmem:[%s7723_s23 + $0x38] sm:$0xff]  }
0x283b   : > { %v3747_v60 = vsel %vm1484_vm7, %v3746_v57, -inf }
0x283c   : > { %3748 = vmax.xlane.f32.xlu0 %v3747_v60 }
0x2852   : > { %3759 = vrot.lane.b32.xlu0 %v7299_v39, %s7742_s14  ;;  %s7743_s14 = smov 40  }
0x2856   : > { %3855 = vrot.lane.b32.xlu0 %v7299_v39, %s7734_s2 }
0x28c9   : > { %v3749_v61 = vpop.xlane.xlu0 %3748 }
0x28ca   : > { %v3750_v63 = vsub.f32 %v3746_v57, %v3749_v61 }
0x28cc   : > { %v3751_v0 = vmul.f32 1.442695, %v3750_v63 }
0x28cd   : > { %v3760_v2 = vpop.permute.xlu0 %3759 }
0x28ce   : > { %6587 = vpow2.f32 %v3751_v0  ;;  %v3765_v3 = vsel %vm1550_vm8, %v3760_v2, 0 }
0x28cf   : > { %6234 = vmatpush3.bf16.msra.mxu1 %v3765_v3 }
0x28d0   : > { %6245 = vmatprep.subr.bf16.mxu1 %v6654_v1 }
0x28d1   : > { %v3856_v35 = vpop.permute.xlu0 %3855 }
0x28d8   : > { %v6588_v4 = vpop.eup %6587 }
0x28d9   : > { %v3753_v5 = vsel %vm1484_vm7, %v6588_v4, 0.0 }
0x28da   : > { %3754 = vadd.xlane.f32.xlu1 %v3753_v5 }
0x28eb   : > { %3857 = vrot.lane.b32.xlu1 %v7299_v39, %s7735_s3 }
0x2967   : > { %v3755_v6 = vpop.xlane.xlu1 %3754 }
0x2968   : > { %6589 = vrcp.f32 %v3755_v6 }
0x296b   : > { %v3858_v10 = vpop.permute.xlu1 %3857 }
0x296c   : > { %v3863_v20 = vsel %vm1484_vm7, %v3858_v10, 0 }
0x2972   : > { %v6590_v7 = vpop.eup %6589 }
0x2973   : > { %v3757_v8 = vmul.f32 %v6590_v7, %v6588_v4 }
0x2975   : > { %v3758_v11 = vpack.c.bf16 %v3757_v8, %v3757_v8 }
0x2977   : > { %6236 = vmatmul.mubr.msk.bf16.vlgmr.msra.gmra.mrb[80].mxu1 %vm1484_vm7, %v3758_v11 }
0x2978   : > { %6246 = vmatpush3.bf16.xpose.msra.mxu1 %v3863_v20  ;;  %6247 = vmatprep.mubr.msk.bf16.mxu1 %vm6656_vm2, %v6654_v1 }
0x2979   : > { %6257 = vmatprep.subr.bf16.mxu1 %v6654_v1 }
0x297f   : > { %6248 = vmatmul.mubr.msk.bf16.vlgmr.msra.gmra.mrb[84].mxu1 %vm1484_vm7, %v3856_v35 }
0x2980   : > { %6259 = vmatprep.mubr.msk.bf16.mxu1 %vm6656_vm2, %v6654_v1  ;;  %6258 = vmatpush3.bf16.msra.mxu1 %v3972_v36 }
0x2a4a   : > { %v3801_v14 = vpop.f32.mrb[80].mxu1 }
0x2a4b   : > { %v3807_v15 = vpack.c.bf16 %v3801_v14, %v3801_v14  ;;  %v6237_v16 = vpop.f32.mrb[81].mxu1 }
0x2a4c   : > { %v3804_v32 = vpop.f32.mrb[82].mxu1 }
0x2a4d   : > { %v6238_v17 = vpop.f32.mrb[83].mxu1  ;;  %6242 = vmatmul.mubr.msk.bf16.vlgmr.msra.gmra.mrb[100].mxu0 %vm1484_vm7, %v3807_v15 }
0x2a4e   : > { %6253 = vmatprep.mubr.msk.bf16.mxu0 %vm6656_vm2, %v6654_v1 }
0x2a52   : > { %v3899_v18 = vpop.f32.mrb[84].mxu1 }
0x2a53   : > { %v3905_v26 = vmul.f32 0.35355338, %v3899_v18  ;;  %v6249_v22 = vpop.f32.mrb[85].mxu1 }
0x2a54   : > { %v3902_v23 = vpop.f32.mrb[86].mxu1 }
0x2a55   : > { %v6250_v24 = vpop.f32.mrb[87].mxu1  ;;  %v3906_v25 = vadd.f32 %v3905_v26, %v6940_v34 }
0x2a57   : > { %v3907_v28 = vsel %vm1484_vm7, %v3906_v25, -inf }
0x2a58   : > { %3908 = vmax.xlane.f32.xlu1 %v3907_v28 }
0x2ae5   : > { %v3909_v43 = vpop.xlane.xlu1 %3908 }
0x2ae6   : > { %v3910_v27 = vsub.f32 %v3906_v25, %v3909_v43 }
0x2ae8   : > { %v3911_v21 = vmul.f32 1.442695, %v3910_v27 }
0x2aea   : > { %6591 = vpow2.f32 %v3911_v21 }
0x2af4   : > { %v6592_v30 = vpop.eup %6591 }
0x2af5   : > { %v3913_v31 = vsel %vm1484_vm7, %v6592_v30, 0.0 }
0x2af6   : > { %3914 = vadd.xlane.f32.xlu0 %v3913_v31 }
0x2b0c   : > { %3919 = vrot.lane.b32.xlu0 %v7299_v39, %s7743_s14 }
0x2b10   : > { %4132 = vrot.lane.b32.xlu0 %v6526_v53, %s7738_s8 }
0x2b20   : > { %v3848_v37 = vpop.f32.mrb[100].mxu0 }
0x2b21   : > { %v3854_v34 = vadd.f32 %v3848_v37, %v7359_v49  ;;  %v6243_v38 = vpop.f32.mrb[101].mxu0 }
0x2b22   : > { %v3851_v40 = vpop.f32.mrb[102].mxu0 }
0x2b23   : > { %v6244_v9 = vpop.f32.mrb[103].mxu0 }
0x2b83   : > { %v3915_v41 = vpop.xlane.xlu0 %3914 }
0x2b84   : > { %6593 = vrcp.f32 %v3915_v41 }
0x2b87   : > { %v3920_v42 = vpop.permute.xlu0 %3919 }
0x2b88   : > { %v3925_v44 = vsel %vm1550_vm8, %v3920_v42, 0 }
0x2b89   : > { %6252 = vmatpush3.bf16.msra.mxu0 %v3925_v44 }
0x2b8a   : > { %6263 = vmatprep.subr.bf16.mxu0 %v6654_v1 }
0x2b8b   : > { %v4133_v6 = vpop.permute.xlu0 %4132 }
0x2b8e   : > { %v6594_v39 = vpop.eup %6593 }
0x2b8f   : > { %v3917_v45 = vmul.f32 %v6594_v39, %v6592_v30 }
0x2b91   : > { %v3918_v46 = vpack.c.bf16 %v3917_v45, %v3917_v45 }
0x2b93   : > { %6254 = vmatmul.mubr.msk.bf16.vlgmr.msra.gmra.mrb[104].mxu0 %vm1484_vm7, %v3918_v46 }
0x2b94   : > { %6267 = vmatprep.mubr.msk.bf16.mxu0 %vm6656_vm2, %v6654_v1  ;;  %6264 = vmatpush3.bf16.msra.mxu0 %v6525_v19 }
0x2b95   : > { %6265 = vmatprep.subr.bf16.mxu0 %v6654_v1 }
0x2b98   : > { %6266 = vmatpush3.bf16.msra.mxu0 %v6526_v53 }
0x2b99   : > { %6283 = vmatprep.subr.bf16.mxu0 %v6654_v1 }
0x2c66   : > { %v3961_v48 = vpop.f32.mrb[104].mxu0 }
0x2c67   : > { %v3967_v49 = vpack.c.bf16 %v3961_v48, %v3961_v48  ;;  %v6255_v50 = vpop.f32.mrb[105].mxu0 }
0x2c68   : > { %v3964_v51 = vpop.f32.mrb[106].mxu0 }
0x2c69   : > { %v6256_v52 = vpop.f32.mrb[107].mxu0  ;;  %6260 = vmatmul.mubr.msk.bf16.vlgmr.msra.gmra.mrb[88].mxu1 %vm1484_vm7, %v3967_v49 }
0x2c6a   : > { %6275 = vmatprep.mubr.msk.bf16.mxu1 %vm1030_vm4, %v7035_v47 }
0x2d3c   : > { %v4008_v55 = vpop.f32.mrb[88].mxu1 }
0x2d3d   : > { %v4014_v56 = vadd.f32 %v4008_v55, %v3854_v34  ;;  %v6261_v57 = vpop.f32.mrb[89].mxu1 }
0x2d3e   : > { %v4011_v60 = vpop.f32.mrb[90].mxu1 }
0x2d3f   : > { %v4021_v61 = vadd.f32 %v5578_v54, %v4014_v56  ;;  %v6262_v63 = vpop.f32.mrb[91].mxu1 }
0x2d41   : > { %v4022_v0 = vadd.f32 %v4021_v61, %v7291_v29  ;;  %v5593_v29 = vld [vmem:[%s7725_s28 + $0x3] ss:$0 sm:$0xff] }
0x2d42   : > { %4136 = vrot.lane.b32.xlu0 %v5593_v29, %s7738_s8 }
0x2d43   : > { %v4023_v47 = vsel %vm1030_vm4, %v4022_v0, 0.0 }
0x2d44   : > { %4024 = vadd.xlane.f32.xlu1 %v4023_v47 }
0x2d55   : > { %4130 = vrot.lane.b32.xlu1 %v6525_v19, %s7738_s8 }
0x2dd1   : > { %v4025_v2 = vpop.xlane.xlu1 %4024 }
0x2dd2   : > { %v4026_v3 = vmul.f32 0.03125, %v4025_v2 }
0x2dd4   : > { %v4027_v4 = vsub.f32 %v4022_v0, %v4026_v3 }
0x2dd5   : > { %v4131_v5 = vpop.permute.xlu1 %4130 }
0x2dd6   : > { %v4028_v7 = vmul.f32 %v4027_v4, %v4027_v4  ;;  %6271 = vmatprep.subr.bf16.mxu1 %v4131_v5 }
0x2dd7   : > { %6272 = vmatpush3.bf16.msra.mxu1 %v4131_v5 }
0x2dd8   : > { %v4029_v8 = vsel %vm1030_vm4, %v4028_v7, 0.0  ;;  %6273 = vmatprep.subr.bf16.mxu1 %v4133_v6 }
0x2dd9   : > { %4030 = vadd.xlane.f32.xlu1 %v4029_v8 }
0x2ddb   : > { %6274 = vmatpush3.bf16.msra.mxu1 %v4133_v6 }
0x2ddc   : > { %6295 = vmatprep.subr.bf16.mxu1 %v6654_v1 }
0x2dde   : > { %6276 = vmatmul.mubr.msk.bf16.vlgmr.msra.gmra.mrb[92].mxu1 %vm1030_vm4, %v7040_v58  ;;  %v5580_v58 = vld [vmem:[%s7730_s18 + $0x3] ss:$0 sm:$0xff] }
0x2ddf   : > { %6279 = vmatprep.mubr.msk.bf16.mxu1 %vm1030_vm4, %v7042_v59 }
0x2de6   : > { %6280 = vmatmul.mubr.msk.bf16.gmra.mrb[96].mxu1 %vm1030_vm4, %v7049_v62  ;;  %v4137_v62 = vpop.permute.xlu0 %4136 }
0x2de7   : > { %6303 = vmatprep.mubr.msk.bf16.mxu1 %vm6656_vm2, %v6654_v1 }
0x2e66   : > { %v4031_v10 = vpop.xlane.xlu1 %4030 }
0x2e67   : > { %v4032_v11 = vmul.f32 0.03125, %v4031_v10 }
0x2e69   : > { %v4033_v20 = vadd.f32 1e-05, %v4032_v11 }
0x2e6b   : > { %6595 = vrsqrt.f32 %v4033_v20 }
0x2e75   : > { %v6596_v35 = vpop.eup %6595 }
0x2e76   : > { %v4035_v13 = vmul.f32 %v6596_v35, %v4027_v4 }
0x2e78   : > { %v4042_v14 = vmul.f32 %v5579_v12, %v4035_v13 }
0x2e7a   : > { %v7425_v15 = vadd.f32 %v5580_v58, %v4042_v14  ;;  %v5586_v58 = vld [vmem:[%s7726_s15 + $0x30] sm:$0xf] }
0x2e7b   : > { %v4522_v14 = vsel %vm1550_vm8, %v5586_v58, 0 }
0x2e7c   : > { %v4068_v59 = vpack.c.bf16 %v7425_v15, %v7425_v15 }
0x2e7e   : > { %6268 = vmatmul.mubr.msk.bf16.vlgmr.msra.gmra.mrb[108].mxu0 %vm1030_vm4, %v4068_v59 }
0x2e7f   : > { %6291 = vmatprep.mubr.msk.bf16.mxu0 %vm6656_vm2, %v6654_v1 }
0x2eb1   : > { %v6277_v16 = vpop.f32.mrb[92].mxu1 }
0x2eb2   : > { %v4173_v32 = vpop.f32.mrb[93].mxu1  ;;  %v4182_v17 = vadd.f32 %v6277_v16, %v4137_v62 }
0x2eb3   : > { %v6278_v18 = vpop.f32.mrb[94].mxu1  ;;  %v4174_v26 = vadd.f32 %v4173_v32, %v4137_v62 }
0x2eb4   : > { %v4185_v22 = vadd.f32 %v6278_v18, %v4137_v62  ;;  %v4176_v23 = vpop.f32.mrb[95].mxu1 }
0x2eb5   : > { %v4177_v24 = vadd.f32 %v4176_v23, %v4137_v62 }
0x2eb6   : > { %v7432_v25 = vpack.c.bf16 %v4185_v22, %v4182_v17 }
0x2eb7   : > { %v7434_v28 = vpack.c.bf16 %v4177_v24, %v4174_v26 }
0x2eb8   : > { %4283 = vrot.lane.b32.xlu1 %v7432_v25, %s7738_s8  ;;  %v4216_v40 = vsel %vm1484_vm7, %v7432_v25, 0 }
0x2eb9   : > { %v4213_v43 = vsel %vm1484_vm7, %v7434_v28, 0  ;;  %v6281_v27 = vpop.f32.mrb[96].mxu1 }
0x2eba   : > { %6284 = vmatpush3.bf16.xpose.msra.mxu0 %v4213_v43  ;;  %v4198_v21 = vadd.f32 %v6281_v27, %v4137_v62  ;;  %v4189_v30 = vpop.f32.mrb[97].mxu1 }
0x2ebb   : > { %6285 = vmatprep.subr.bf16.mxu0 %v6654_v1  ;;  %v4190_v31 = vadd.f32 %v4189_v30, %v4137_v62  ;;  %v6282_v33 = vpop.f32.mrb[98].mxu1 }
0x2ebc   : > { %v4201_v36 = vadd.f32 %v6282_v33, %v4137_v62  ;;  %v4192_v37 = vpop.f32.mrb[99].mxu1 }
0x2ebd   : > { %v4193_v34 = vadd.f32 %v4192_v37, %v4137_v62 }
0x2ebe   : > { %v7441_v38 = vpack.c.bf16 %v4201_v36, %v4198_v21 }
0x2ebf   : > { %v7445_v9 = vpack.c.bf16 %v4193_v34, %v4190_v31 }
0x2ec0   : > { %v4222_v42 = vsel %vm1484_vm7, %v7441_v38, 0 }
0x2ec1   : > { %4285 = vrot.lane.b32.xlu1 %v7445_v9, %s7738_s8  ;;  %v4219_v41 = vsel %vm1484_vm7, %v7445_v9, 0 }
0x2ec2   : > { %6286 = vmatpush3.bf16.xpose.msra.mxu0 %v4216_v40 }
0x2ec3   : > { %6287 = vmatprep.subr.bf16.mxu0 %v6654_v1 }
0x2eca   : > { %6288 = vmatpush3.bf16.xpose.msra.mxu0 %v4219_v41 }
0x2ecb   : > { %6289 = vmatprep.subr.bf16.mxu0 %v6654_v1 }
0x2ed2   : > { %6290 = vmatpush3.bf16.xpose.msra.mxu0 %v4222_v42 }
0x2ed3   : > { %6319 = vmatprep.subr.bf16.mxu0 %v6654_v1 }
0x2f2a   : > { %v4284_v61 = vpop.permute.xlu1 %4283 }
0x2f33   : > { %v4286_v63 = vpop.permute.xlu1 %4285 }
0x2f51   : > { %v4124_v44 = vpop.f32.mrb[108].mxu0 }
0x2f52   : > { %v4125_v39 = vadd.f32 %v5593_v29, %v4124_v44  ;;  %v6269_v45 = vpop.f32.mrb[109].mxu0 }
0x2f53   : > { %v4127_v46 = vpop.f32.mrb[110].mxu0 }
0x2f54   : > { %v7456_v48 = vpack.c.bf16 %v4125_v39, %v4125_v39  ;;  %v6270_v49 = vpop.f32.mrb[111].mxu0 }
0x2f56   : > { %6292 = vmatmul.mubr.msk.bf16.vlgmr.msra.gmra.mrb[112].mxu0 %vm1484_vm7, %v7456_v48 }
0x2f57   : > { %6327 = vmatprep.mubr.msk.bf16.mxu0 %vm6656_vm2, %v6654_v1 }
0x3029   : > { %v4258_v50 = vpop.f32.mrb[112].mxu0 }
0x302a   : > { %v4264_v51 = vmul.f32 0.35355338, %v4258_v50  ;;  %v6293_v52 = vpop.f32.mrb[113].mxu0 }
0x302b   : > { %v4261_v19 = vpop.f32.mrb[114].mxu0 }
0x302c   : > { %v6294_v53 = vpop.f32.mrb[115].mxu0  ;;  %v4265_v54 = vsel %vm2387_vm9, %v4264_v51, -inf  ;;  %v5587_v19 = vld [vmem:[%s7726_s15 + $0x34] sm:$0xf] }
0x302d   : > { %4266 = vmax.xlane.f32.xlu0 %v4265_v54 }
0x3043   : > { %4281 = vrot.lane.b32.xlu0 %v7434_v28, %s7738_s8 }
0x3047   : > { %4287 = vrot.lane.b32.xlu0 %v7441_v38, %s7738_s8 }
0x304b   : > { %4342 = vrot.lane.b32.xlu0 %v7432_v25, %s7739_s9 }
0x304f   : > { %4346 = vrot.lane.b32.xlu0 %v7441_v38, %s7739_s9 }
0x30ba   : > { %v4267_v55 = vpop.xlane.xlu0 %4266 }
0x30bb   : > { %v4268_v56 = vsub.f32 %v4264_v51, %v4267_v55  ;;  %v4476_v55 = vsel %vm1550_vm8, %v5587_v19, 0 }
0x30bd   : > { %v4269_v57 = vmul.f32 1.442695, %v4268_v56 }
0x30be   : > { %v4282_v60 = vpop.permute.xlu0 %4281 }
0x30bf   : > { %6597 = vpow2.f32 %v4269_v57  ;;  %6296 = vmatpush3.bf16.msra.mxu1 %v4282_v60 }
0x30c0   : > { %6297 = vmatprep.subr.bf16.mxu1 %v6654_v1 }
0x30c2   : > { %v4288_v47 = vpop.permute.xlu0 %4287 }
0x30c3   : > { %6298 = vmatpush3.bf16.msra.mxu1 %v4284_v61 }
0x30c4   : > { %6299 = vmatprep.subr.bf16.mxu1 %v6654_v1 }
0x30c6   : > { %v4343_v29 = vpop.permute.xlu0 %4342 }
0x30c7   : > { %6300 = vmatpush3.bf16.msra.mxu1 %v4286_v63  ;;  %v4355_v10 = vsel %vm1484_vm7, %v4343_v29, 0 }
0x30c8   : > { %6301 = vmatprep.subr.bf16.mxu1 %v6654_v1 }
0x30c9   : > { %v6598_v0 = vpop.eup %6597 }
0x30ca   : > { %v4271_v2 = vsel %vm2387_vm9, %v6598_v0, 0.0  ;;  %v4347_v35 = vpop.permute.xlu0 %4346 }
0x30cb   : > { %4272 = vadd.xlane.f32.xlu1 %v4271_v2  ;;  %6302 = vmatpush3.bf16.msra.mxu1 %v4288_v47  ;;  %v4361_v12 = vsel %vm1484_vm7, %v4347_v35, 0 }
0x30cc   : > { %6307 = vmatprep.subr.bf16.mxu1 %v6654_v1 }
0x30dc   : > { %4340 = vrot.lane.b32.xlu1 %v7434_v28, %s7739_s9 }
0x30e0   : > { %4344 = vrot.lane.b32.xlu1 %v7445_v9, %s7739_s9 }
0x30e4   : > { %4338 = vrot.lane.b32.xlu1 %v7456_v48, %s7739_s9  ;;  %s938_s9 = scalar_lea.vmem %s6817_s24, %s6843_s0 }
0x30e8   : > { %4418 = vrot.lane.b32.xlu1 %v7432_v25, %s7731_s11 }
0x3158   : > { %v4273_v3 = vpop.xlane.xlu1 %4272 }
0x3159   : > { %6599 = vrcp.f32 %v4273_v3 }
0x315c   : > { %v4341_v6 = vpop.permute.xlu1 %4340 }
0x315d   : > { %v4352_v8 = vsel %vm1484_vm7, %v4341_v6, 0 }
0x3160   : > { %v4345_v11 = vpop.permute.xlu1 %4344 }
0x3161   : > { %v4358_v20 = vsel %vm1484_vm7, %v4345_v11, 0 }
0x3163   : > { %v6600_v4 = vpop.eup %6599 }
0x3164   : > { %v4275_v5 = vmul.f32 %v6600_v4, %v6598_v0  ;;  %v4339_v13 = vpop.permute.xlu1 %4338 }
0x3166   : > { %v4276_v7 = vpack.c.bf16 %v4275_v5, %v4275_v5 }
0x3168   : > { %6304 = vmatmul.mubr.msk.bf16.vlgmr.msra.gmra.mrb[100].mxu1 %vm2387_vm9, %v4276_v7  ;;  %v4419_v33 = vpop.permute.xlu1 %4418 }
0x3169   : > { %6308 = vmatpush3.bf16.xpose.msra.mxu1 %v4352_v8  ;;  %6315 = vmatprep.mubr.msk.bf16.mxu1 %vm6656_vm2, %v6654_v1 }
0x316a   : > { %6309 = vmatprep.subr.bf16.mxu1 %v6654_v1 }
0x3171   : > { %6310 = vmatpush3.bf16.xpose.msra.mxu1 %v4355_v10 }
0x3172   : > { %6311 = vmatprep.subr.bf16.mxu1 %v6654_v1 }
0x3179   : > { %6312 = vmatpush3.bf16.xpose.msra.mxu1 %v4358_v20 }
0x317a   : > { %6313 = vmatprep.subr.bf16.mxu1 %v6654_v1 }
0x3181   : > { %6314 = vmatpush3.bf16.xpose.msra.mxu1 %v4361_v12 }
0x3182   : > { %6337 = vmatprep.subr.bf16.mxu1 %v6654_v1 }
0x3188   : > { %6316 = vmatmul.mubr.msk.bf16.vlgmr.msra.gmra.mrb[104].mxu1 %vm1484_vm7, %v4339_v13 }
0x3189   : > { %6339 = vmatprep.mubr.msk.bf16.mxu1 %vm6656_vm2, %v6654_v1  ;;  %6338 = vmatpush3.bf16.msra.mxu1 %v4522_v14 }
0x318a   : > { %6355 = vmatprep.subr.bf16.mxu1 %v6654_v1 }
0x323b   : > { %v4330_v59 = vpop.f32.mrb[100].mxu1 }
0x323c   : > { %v4336_v62 = vpack.c.bf16 %v4330_v59, %v4330_v59  ;;  %v6305_v16 = vpop.f32.mrb[101].mxu1 }
0x323d   : > { %v4333_v32 = vpop.f32.mrb[102].mxu1 }
0x323e   : > { %v6306_v17 = vpop.f32.mrb[103].mxu1  ;;  %6340 = vmatmul.mubr.msk.bf16.vlgmr.msra.gmra.mrb[108].mxu1 %vm1484_vm7, %v4336_v62 }
0x323f   : > { %6363 = vmatprep.mubr.msk.bf16.mxu1 %vm6656_vm2, %v6654_v1 }
0x325b   : > { %v4397_v18 = vpop.f32.mrb[104].mxu1 }
0x325c   : > { %v4403_v26 = vmul.f32 0.35355338, %v4397_v18  ;;  %v6317_v22 = vpop.f32.mrb[105].mxu1 }
0x325d   : > { %v4400_v23 = vpop.f32.mrb[106].mxu1 }
0x325e   : > { %v6318_v24 = vpop.f32.mrb[107].mxu1  ;;  %v4404_v43 = vsel %vm2387_vm9, %v4403_v26, -inf  ;;  %v5588_v23 = vld [vmem:[%s7726_s15 + $0x38] sm:$0xf] }
0x325f   : > { %4405 = vmax.xlane.f32.xlu0 %v4404_v43 }
0x3275   : > { %4416 = vrot.lane.b32.xlu0 %v7434_v28, %s7731_s11 }
0x3279   : > { %4420 = vrot.lane.b32.xlu0 %v7445_v9, %s7731_s11 }
0x327d   : > { %4566 = vrot.lane.b32.xlu0 %v7434_v28, %s7732_s26 }
0x3281   : > { %4570 = vrot.lane.b32.xlu0 %v7445_v9, %s7732_s26 }
0x3285   : > { %4564 = vrot.lane.b32.xlu0 %v7456_v48, %s7732_s26 }
0x3289   : > { %4642 = vrot.lane.b32.xlu0 %v7434_v28, %s7733_s1 }
0x32ec   : > { %v4406_v27 = vpop.xlane.xlu0 %4405 }
0x32ed   : > { %v4407_v21 = vsub.f32 %v4403_v26, %v4406_v27  ;;  %v4702_v27 = vsel %vm1550_vm8, %v5588_v23, 0 }
0x32ef   : > { %v4408_v30 = vmul.f32 1.442695, %v4407_v21 }
0x32f0   : > { %v4417_v31 = vpop.permute.xlu0 %4416 }
0x32f1   : > { %6601 = vpow2.f32 %v4408_v30  ;;  %6320 = vmatpush3.bf16.msra.mxu0 %v4417_v31 }
0x32f2   : > { %6321 = vmatprep.subr.bf16.mxu0 %v6654_v1 }
0x32f4   : > { %v4421_v36 = vpop.permute.xlu0 %4420 }
0x32f5   : > { %6322 = vmatpush3.bf16.msra.mxu0 %v4419_v33 }
0x32f6   : > { %6323 = vmatprep.subr.bf16.mxu0 %v6654_v1 }
0x32f8   : > { %v4567_v37 = vpop.permute.xlu0 %4566 }
0x32f9   : > { %6324 = vmatpush3.bf16.msra.mxu0 %v4421_v36  ;;  %v4578_v63 = vsel %vm1484_vm7, %v4567_v37, 0 }
0x32fa   : > { %6325 = vmatprep.subr.bf16.mxu0 %v6654_v1 }
0x32fb   : > { %v6602_v34 = vpop.eup %6601 }
0x32fc   : > { %v4571_v40 = vpop.permute.xlu0 %4570  ;;  %v4410_v41 = vsel %vm2387_vm9, %v6602_v34, 0.0 }
0x32fd   : > { %4411 = vadd.xlane.f32.xlu1 %v4410_v41  ;;  %v4584_v3 = vsel %vm1484_vm7, %v4571_v40, 0 }
0x3300   : > { %v4565_v42 = vpop.permute.xlu0 %4564 }
0x3304   : > { %v4643_v44 = vpop.permute.xlu0 %4642 }
0x3305   : > { %6356 = vmatpush3.bf16.msra.mxu1 %v4643_v44 }
0x3306   : > { %6357 = vmatprep.subr.bf16.mxu1 %v6654_v1 }
0x330e   : > { %4422 = vrot.lane.b32.xlu1 %v7441_v38, %s7731_s11 }
0x3311   : > { %v4558_v39 = vpop.f32.mrb[108].mxu1 }
0x3312   : > { %4568 = vrot.lane.b32.xlu1 %v7432_v25, %s7732_s26  ;;  %v6341_v45 = vpop.f32.mrb[109].mxu1 }
0x3313   : > { %v4561_v46 = vpop.f32.mrb[110].mxu1 }
0x3314   : > { %v6342_v49 = vpop.f32.mrb[111].mxu1 }
0x3316   : > { %4572 = vrot.lane.b32.xlu1 %v7441_v38, %s7732_s26 }
0x338a   : > { %v4412_v50 = vpop.xlane.xlu1 %4411 }
0x338b   : > { %6603 = vrcp.f32 %v4412_v50 }
0x338e   : > { %v4423_v51 = vpop.permute.xlu1 %4422 }
0x338f   : > { %6326 = vmatpush3.bf16.msra.mxu0 %v4423_v51 }
0x3390   : > { %6331 = vmatprep.subr.bf16.mxu0 %v6654_v1 }
0x3392   : > { %v4569_v47 = vpop.permute.xlu1 %4568 }
0x3393   : > { %v4581_v2 = vsel %vm1484_vm7, %v4569_v47, 0 }
0x3395   : > { %v6604_v52 = vpop.eup %6603 }
0x3396   : > { %v4414_v53 = vmul.f32 %v6604_v52, %v6602_v34  ;;  %v4573_v4 = vpop.permute.xlu1 %4572 }
0x3397   : > { %v4587_v5 = vsel %vm1484_vm7, %v4573_v4, 0 }
0x3398   : > { %v4415_v54 = vpack.c.bf16 %v4414_v53, %v4414_v53 }
0x339a   : > { %6328 = vmatmul.mubr.msk.bf16.vlgmr.msra.gmra.mrb[116].mxu0 %vm2387_vm9, %v4415_v54 }
0x339b   : > { %6332 = vmatpush3.bf16.msra.mxu0 %v4476_v55  ;;  %6333 = vmatprep.mubr.msk.bf16.mxu0 %vm6656_vm2, %v6654_v1 }
0x339c   : > { %6343 = vmatprep.subr.bf16.mxu0 %v6654_v1 }
0x346d   : > { %v4465_v56 = vpop.f32.mrb[116].mxu0 }
0x346e   : > { %v4471_v57 = vpack.c.bf16 %v4465_v56, %v4465_v56  ;;  %v6329_v60 = vpop.f32.mrb[117].mxu0 }
0x346f   : > { %v4468_v61 = vpop.f32.mrb[118].mxu0 }
0x3470   : > { %v6330_v0 = vpop.f32.mrb[119].mxu0  ;;  %6334 = vmatmul.mubr.msk.bf16.vlgmr.msra.gmra.mrb[120].mxu0 %vm1484_vm7, %v4471_v57 }
0x3471   : > { %6344 = vmatpush3.bf16.xpose.msra.mxu0 %v4578_v63  ;;  %6351 = vmatprep.mubr.msk.bf16.mxu0 %vm6656_vm2, %v6654_v1 }
0x3472   : > { %6345 = vmatprep.subr.bf16.mxu0 %v6654_v1 }
0x3479   : > { %6346 = vmatpush3.bf16.xpose.msra.mxu0 %v4581_v2 }
0x347a   : > { %6347 = vmatprep.subr.bf16.mxu0 %v6654_v1 }
0x3481   : > { %6348 = vmatpush3.bf16.xpose.msra.mxu0 %v4584_v3 }
0x3482   : > { %6349 = vmatprep.subr.bf16.mxu0 %v6654_v1 }
0x3489   : > { %6350 = vmatpush3.bf16.xpose.msra.mxu0 %v4587_v5 }
0x348a   : > { %6385 = vmatprep.subr.bf16.mxu0 %v6654_v1 }
0x3490   : > { %6352 = vmatmul.mubr.msk.bf16.vlgmr.msra.gmra.mrb[124].mxu0 %vm1484_vm7, %v4565_v42 }
0x3491   : > { %6393 = vmatprep.mubr.msk.bf16.mxu0 %vm6656_vm2, %v6654_v1 }
0x3543   : > { %v4512_v6 = vpop.f32.mrb[120].mxu0 }
0x3544   : > { %v7549_v7 = vadd.f32 %v4558_v39, %v4512_v6  ;;  %v6335_v8 = vpop.f32.mrb[121].mxu0  ;;  %v5589_v6 = vld [vmem:[%s7726_s15 + $0x3c] sm:$0xf] }
0x3545   : > { %v4515_v29 = vpop.f32.mrb[122].mxu0 }
0x3546   : > { %v6336_v10 = vpop.f32.mrb[123].mxu0  ;;  %v4883_v29 = vsel %vm1550_vm8, %v5589_v6, 0 }
0x3563   : > { %v4623_v11 = vpop.f32.mrb[124].mxu0 }
0x3564   : > { %v4629_v20 = vmul.f32 0.35355338, %v4623_v11  ;;  %v6353_v35 = vpop.f32.mrb[125].mxu0 }
0x3565   : > { %v4626_v12 = vpop.f32.mrb[126].mxu0 }
0x3566   : > { %v6354_v13 = vpop.f32.mrb[127].mxu0  ;;  %v4630_v58 = vsel %vm2387_vm9, %v4629_v20, -inf  ;;  %v5613_v12 = vld [vmem:[%s7727_s22 + $0x3] ss:$0 sm:$0xff] }
0x3567   : > { %4631 = vmax.xlane.f32.xlu1 %v4630_v58 }
0x3578   : > { %4644 = vrot.lane.b32.xlu1 %v7432_v25, %s7733_s1 }
0x357c   : > { %4646 = vrot.lane.b32.xlu1 %v7445_v9, %s7733_s1 }
0x3580   : > { %4747 = vrot.lane.b32.xlu1 %v7434_v28, %s7734_s2 }
0x3584   : > { %4751 = vrot.lane.b32.xlu1 %v7445_v9, %s7734_s2 }
0x3588   : > { %4745 = vrot.lane.b32.xlu1 %v7456_v48, %s7734_s2 }
0x358c   : > { %4825 = vrot.lane.b32.xlu1 %v7432_v25, %s7735_s3 }
0x35f4   : > { %v4632_v14 = vpop.xlane.xlu1 %4631 }
0x35f5   : > { %v4633_v59 = vsub.f32 %v4629_v20, %v4632_v14 }
0x35f7   : > { %v4634_v62 = vmul.f32 1.442695, %v4633_v59 }
0x35f8   : > { %v4645_v16 = vpop.permute.xlu1 %4644 }
0x35f9   : > { %6605 = vpow2.f32 %v4634_v62  ;;  %6358 = vmatpush3.bf16.msra.mxu1 %v4645_v16 }
0x35fa   : > { %6359 = vmatprep.subr.bf16.mxu1 %v6654_v1 }
0x35fc   : > { %v4647_v32 = vpop.permute.xlu1 %4646 }
0x35fd   : > { %6360 = vmatpush3.bf16.msra.mxu1 %v4647_v32 }
0x35fe   : > { %6361 = vmatprep.subr.bf16.mxu1 %v6654_v1 }
0x3603   : > { %v6606_v17 = vpop.eup %6605 }
0x3604   : > { %v4636_v18 = vsel %vm2387_vm9, %v6606_v17, 0.0 }
0x3605   : > { %4637 = vadd.xlane.f32.xlu0 %v4636_v18 }
0x361b   : > { %4648 = vrot.lane.b32.xlu0 %v7441_v38, %s7733_s1 }
0x361f   : > { %4749 = vrot.lane.b32.xlu0 %v7432_v25, %s7734_s2  ;;  %v4748_v25 = vpop.permute.xlu1 %4747 }
0x3620   : > { %v4759_v36 = vsel %vm1484_vm7, %v4748_v25, 0  ;;  %v6531_v25 = vld [vmem:[%s6807_s13 + $0x50] sm:$0xff]  }
0x3623   : > { %4753 = vrot.lane.b32.xlu0 %v7441_v38, %s7734_s2  ;;  %v4752_v41 = vpop.permute.xlu1 %4751 }
0x3624   : > { %v4765_v42 = vsel %vm1484_vm7, %v4752_v41, 0 }
0x3627   : > { %v4746_v45 = vpop.permute.xlu1 %4745 }
0x362b   : > { %v4826_v47 = vpop.permute.xlu1 %4825 }
0x3692   : > { %v4638_v48 = vpop.xlane.xlu0 %4637 }
0x3693   : > { %6607 = vrcp.f32 %v4638_v48 }
0x3696   : > { %v4649_v26 = vpop.permute.xlu0 %4648 }
0x3697   : > { %6362 = vmatpush3.bf16.msra.mxu1 %v4649_v26 }
0x3698   : > { %6367 = vmatprep.subr.bf16.mxu1 %v6654_v1 }
0x369a   : > { %v4750_v34 = vpop.permute.xlu0 %4749 }
0x369b   : > { %v4762_v40 = vsel %vm1484_vm7, %v4750_v34, 0 }
0x369d   : > { %v6608_v22 = vpop.eup %6607 }
0x369e   : > { %v4640_v24 = vmul.f32 %v6608_v22, %v6606_v17  ;;  %v4754_v44 = vpop.permute.xlu0 %4753 }
0x369f   : > { %v4768_v39 = vsel %vm1484_vm7, %v4754_v44, 0 }
0x36a0   : > { %v4641_v43 = vpack.c.bf16 %v4640_v24, %v4640_v24  ;;  %v6527_v24 = vld [vmem:[%s7736_s4 + $0x10] sm:$0xff]  }
0x36a2   : > { %6364 = vmatmul.mubr.msk.bf16.vlgmr.msra.gmra.mrb[112].mxu1 %vm2387_vm9, %v4641_v43  ;;  %v6528_v43 = vld [vmem:[%s7736_s4 + $0x18] sm:$0xff]  }
0x36a3   : > { %6368 = vmatpush3.bf16.msra.mxu1 %v4702_v27  ;;  %6369 = vmatprep.mubr.msk.bf16.mxu1 %vm6656_vm2, %v6654_v1  ;;  %v6530_v27 = vld [vmem:[%s6807_s13 + $0x48] sm:$0xff]  }
0x36a4   : > { %6373 = vmatprep.subr.bf16.mxu1 %v6654_v1 }
0x3775   : > { %v4691_v21 = vpop.f32.mrb[112].mxu1 }
0x3776   : > { %v4697_v30 = vpack.c.bf16 %v4691_v21, %v4691_v21  ;;  %v6365_v31 = vpop.f32.mrb[113].mxu1  ;;  %v6532_v21 = vld [vmem:[%s6807_s13 + $0x58] sm:$0xff]  }
0x3777   : > { %v4694_v33 = vpop.f32.mrb[114].mxu1  ;;  %v6534_v31 = vld [vmem:[%s6807_s13 + $0x68] sm:$0xff]  }
0x3778   : > { %v6366_v37 = vpop.f32.mrb[115].mxu1  ;;  %6370 = vmatmul.mubr.msk.bf16.vlgmr.msra.gmra.mrb[116].mxu1 %vm1484_vm7, %v4697_v30  ;;  %v6533_v30 = vld [vmem:[%s6807_s13 + $0x60] sm:$0xff]  }
0x3779   : > { %6374 = vmatpush3.bf16.xpose.msra.mxu1 %v4759_v36  ;;  %6381 = vmatprep.mubr.msk.bf16.mxu1 %vm6656_vm2, %v6654_v1 }
0x377a   : > { %6375 = vmatprep.subr.bf16.mxu1 %v6654_v1 }
0x3781   : > { %6376 = vmatpush3.bf16.xpose.msra.mxu1 %v4762_v40  ;;  %v5614_v40 = vld [vmem:[%s7729_s10 + $0x4] ss:$0 sm:$0xff] }
0x3782   : > { %6377 = vmatprep.subr.bf16.mxu1 %v6654_v1 }
0x3789   : > { %6378 = vmatpush3.bf16.xpose.msra.mxu1 %v4765_v42  ;;  %v5615_v42 = vld [vmem:[%s7730_s18 + $0x4] ss:$0 sm:$0xff] }
0x378a   : > { %6379 = vmatprep.subr.bf16.mxu1 %v6654_v1 }
0x3791   : > { %6380 = vmatpush3.bf16.xpose.msra.mxu1 %v4768_v39 }
0x3792   : > { %6411 = vmatprep.subr.bf16.mxu1 %v6654_v1 }
0x3798   : > { %6382 = vmatmul.mubr.msk.bf16.vlgmr.msra.gmra.mrb[120].mxu1 %vm1484_vm7, %v4746_v45 }
0x3799   : > { %6427 = vmatprep.mubr.msk.bf16.mxu1 %vm6656_vm2, %v6654_v1 }
0x384b   : > { %v4738_v46 = vpop.f32.mrb[116].mxu1 }
0x384c   : > { %v4744_v49 = vadd.f32 %v4738_v46, %v7549_v7  ;;  %v6371_v50 = vpop.f32.mrb[117].mxu1  ;;  %v6535_v46 = vld [vmem:[%s6807_s13 + $0x70] sm:$0xff]  }
0x384d   : > { %v4741_v51 = vpop.f32.mrb[118].mxu1  ;;  %v5621_v50 = vld [vmem:[%s7737_s5 + $0x1] ss:$0 sm:$0xff] }
0x384e   : > { %v6372_v52 = vpop.f32.mrb[119].mxu1 }
0x386b   : > { %v4804_v19 = vpop.f32.mrb[120].mxu1 }
0x386c   : > { %v4810_v53 = vmul.f32 0.35355338, %v4804_v19  ;;  %v6383_v54 = vpop.f32.mrb[121].mxu1 }
0x386d   : > { %v4807_v55 = vpop.f32.mrb[122].mxu1 }
0x386e   : > { %v6384_v56 = vpop.f32.mrb[123].mxu1  ;;  %v4811_v57 = vsel %vm2387_vm9, %v4810_v53, -inf }
0x386f   : > { %4812 = vmax.xlane.f32.xlu0 %v4811_v57 }
0x3885   : > { %4823 = vrot.lane.b32.xlu0 %v7434_v28, %s7735_s3 }
0x3889   : > { %4827 = vrot.lane.b32.xlu0 %v7445_v9, %s7735_s3 }
0x38fc   : > { %v4813_v60 = vpop.xlane.xlu0 %4812 }
0x38fd   : > { %v4814_v61 = vsub.f32 %v4810_v53, %v4813_v60  ;;  %v5650_v60 = vld [vmem:[%s6812_s6 + $0x1] ss:$0 sm:$0xff] }
0x38ff   : > { %v4815_v63 = vmul.f32 1.442695, %v4814_v61 }
0x3900   : > { %v4824_v0 = vpop.permute.xlu0 %4823 }
0x3901   : > { %6609 = vpow2.f32 %v4815_v63  ;;  %6386 = vmatpush3.bf16.msra.mxu0 %v4824_v0 }
0x3902   : > { %6387 = vmatprep.subr.bf16.mxu0 %v6654_v1 }
0x3904   : > { %v4828_v2 = vpop.permute.xlu0 %4827 }
0x3905   : > { %6388 = vmatpush3.bf16.msra.mxu0 %v4826_v47 }
0x3906   : > { %6389 = vmatprep.subr.bf16.mxu0 %v6654_v1 }
0x3909   : > { %6390 = vmatpush3.bf16.msra.mxu0 %v4828_v2 }
0x390a   : > { %6391 = vmatprep.subr.bf16.mxu0 %v6654_v1 }
0x390b   : > { %v6610_v28 = vpop.eup %6609 }
0x390c   : > { %v4817_v9 = vsel %vm2387_vm9, %v6610_v28, 0.0 }
0x390d   : > { %4818 = vadd.xlane.f32.xlu1 %v4817_v9 }
0x391e   : > { %4829 = vrot.lane.b32.xlu1 %v7441_v38, %s7735_s3 }
0x399a   : > { %v4819_v3 = vpop.xlane.xlu1 %4818 }
0x399b   : > { %6611 = vrcp.f32 %v4819_v3 }
0x399e   : > { %v4830_v4 = vpop.permute.xlu1 %4829 }
0x399f   : > { %6392 = vmatpush3.bf16.msra.mxu0 %v4830_v4 }
0x39a0   : > { %6397 = vmatprep.subr.bf16.mxu0 %v6654_v1 }
0x39a5   : > { %v6612_v5 = vpop.eup %6611 }
0x39a6   : > { %v4821_v7 = vmul.f32 %v6612_v5, %v6610_v28 }
0x39a8   : > { %v4822_v8 = vpack.c.bf16 %v4821_v7, %v4821_v7  ;;  %v6537_v7 = vld [vmem:[%s6747_s12] sm:$0xff]  }
0x39aa   : > { %6394 = vmatmul.mubr.msk.bf16.vlgmr.msra.gmra.mrb[128].mxu0 %vm2387_vm9, %v4822_v8  ;;  %v6538_v8 = vld [vmem:[%s6747_s12 + $0x8] sm:$0xff]  }
0x39ab   : > { %6398 = vmatpush3.bf16.msra.mxu0 %v4883_v29  ;;  %6399 = vmatprep.mubr.msk.bf16.mxu0 %vm6656_vm2, %v6654_v1 }
0x39ac   : > { %6403 = vmatprep.subr.bf16.mxu0 %v6654_v1 }
0x3a7d   : > { %v4872_v38 = vpop.f32.mrb[128].mxu0 }
0x3a7e   : > { %v4878_v10 = vpack.c.bf16 %v4872_v38, %v4872_v38  ;;  %v6395_v11 = vpop.f32.mrb[129].mxu0 }
0x3a7f   : > { %v4875_v20 = vpop.f32.mrb[130].mxu0 }
0x3a80   : > { %v6396_v35 = vpop.f32.mrb[131].mxu0  ;;  %6400 = vmatmul.mubr.msk.bf16.vlgmr.msra.gmra.mrb[132].mxu0 %vm1484_vm7, %v4878_v10  ;;  %v5653_v20 = vld [vmem:[%s7729_s10 + $0x5] ss:$0 sm:$0xff] }
0x3a81   : > { %6407 = vmatprep.mubr.msk.bf16.mxu0 %vm6656_vm2, %v6654_v1  ;;  %6404 = vmatpush3.bf16.msra.mxu0 %v6527_v24  ;;  %v5659_v24 = vld [vmem:[%s7720_s16] ss:$0 sm:$0xff] }
0x3a82   : > { %6405 = vmatprep.subr.bf16.mxu0 %v6654_v1 }
0x3a85   : > { %6406 = vmatpush3.bf16.msra.mxu0 %v6528_v43 }
0x3a86   : > { %6431 = vmatprep.subr.bf16.mxu0 %v6654_v1 }
0x3b53   : > { %v4919_v13 = vpop.f32.mrb[132].mxu0 }
0x3b54   : > { %v4925_v58 = vadd.f32 %v4919_v13, %v4744_v49  ;;  %v6401_v14 = vpop.f32.mrb[133].mxu0  ;;  %v6536_v49 = vld [vmem:[%s6807_s13 + $0x78] sm:$0xff]  }
0x3b55   : > { %v4922_v59 = vpop.f32.mrb[134].mxu0 }
0x3b56   : > { %v4932_v62 = vadd.f32 %v5613_v12, %v4925_v58  ;;  %v6402_v16 = vpop.f32.mrb[135].mxu0  ;;  %v5654_v12 = vld [vmem:[%s7730_s18 + $0x5] ss:$0 sm:$0xff] }
0x3b57   : > { %v6539_v59 = vld [vmem:[%s6757_s27] sm:$0xff]  }
0x3b58   : > { %v4933_v32 = vadd.f32 %v4932_v62, %v7425_v15  ;;  %v6529_v15 = vld [vmem:[%s6807_s13 + $0x40] sm:$0xff]   ;;  %v6540_v62 = vld [vmem:[%s6757_s27 + $0x8] sm:$0xff]  }
0x3b59   : > { %6412 = vmatpush3.bf16.msra.mxu1 %v6529_v15  ;;  %v5655_v16 = vld [vmem:[%s6752_s20] ss:$0 sm:$0xff] }
0x3b5a   : > { %v4934_v17 = vsel %vm1030_vm4, %v4933_v32, 0.0  ;;  %6413 = vmatprep.subr.bf16.mxu1 %v6654_v1 }
0x3b5b   : > { %4935 = vadd.xlane.f32.xlu0 %v4934_v17 }
0x3b5d   : > { %6414 = vmatpush3.bf16.msra.mxu1 %v6530_v27 }
0x3b5e   : > { %6415 = vmatprep.subr.bf16.mxu1 %v6654_v1 }
0x3b61   : > { %6416 = vmatpush3.bf16.msra.mxu1 %v6531_v25 }
0x3b62   : > { %6417 = vmatprep.subr.bf16.mxu1 %v6654_v1 }
0x3b65   : > { %6418 = vmatpush3.bf16.msra.mxu1 %v6532_v21 }
0x3b66   : > { %6419 = vmatprep.subr.bf16.mxu1 %v6654_v1 }
0x3b69   : > { %6420 = vmatpush3.bf16.msra.mxu1 %v6533_v30 }
0x3b6a   : > { %6421 = vmatprep.subr.bf16.mxu1 %v6654_v1 }
0x3b6d   : > { %6422 = vmatpush3.bf16.msra.mxu1 %v6534_v31 }
0x3b6e   : > { %6423 = vmatprep.subr.bf16.mxu1 %v6654_v1 }
0x3b71   : > { %6424 = vmatpush3.bf16.msra.mxu1 %v6535_v46 }
0x3b72   : > { %6425 = vmatprep.subr.bf16.mxu1 %v6654_v1 }
0x3b75   : > { %6426 = vmatpush3.bf16.msra.mxu1 %v6536_v49 }
0x3be8   : > { %v4936_v18 = vpop.xlane.xlu0 %4935 }
0x3be9   : > { %v4937_v48 = vmul.f32 0.03125, %v4936_v18 }
0x3beb   : > { %v4938_v26 = vsub.f32 %v4933_v32, %v4937_v48 }
0x3bed   : > { %v4939_v22 = vmul.f32 %v4938_v26, %v4938_v26 }
0x3bef   : > { %v4940_v23 = vsel %vm1030_vm4, %v4939_v22, 0.0 }
0x3bf0   : > { %4941 = vadd.xlane.f32.xlu1 %v4940_v23 }
0x3c7d   : > { %v4942_v33 = vpop.xlane.xlu1 %4941 }
0x3c7e   : > { %v4943_v36 = vmul.f32 0.03125, %v4942_v33 }
0x3c80   : > { %v4944_v37 = vadd.f32 1e-05, %v4943_v36 }
0x3c82   : > { %6613 = vrsqrt.f32 %v4944_v37 }
0x3c8c   : > { %v6614_v34 = vpop.eup %6613 }
0x3c8d   : > { %v4946_v41 = vmul.f32 %v6614_v34, %v4938_v26 }
0x3c8f   : > { %v4953_v44 = vmul.f32 %v5614_v40, %v4946_v41 }
0x3c91   : > { %v4960_v39 = vadd.f32 %v5615_v42, %v4953_v44 }
0x3c93   : > { %v4966_v45 = vpack.c.bf16 %v4960_v39, %v4960_v39 }
0x3c95   : > { %6408 = vmatmul.mubr.msk.bf16.vlgmr.msra.gmra.mrb[136].mxu0 %vm1030_vm4, %v4966_v45 }
0x3c96   : > { %6435 = vmatprep.mubr.msk.bf16.mxu0 %vm6656_vm2, %v6654_v1  ;;  %6432 = vmatpush3.bf16.msra.mxu0 %v6537_v7 }
0x3c97   : > { %6433 = vmatprep.subr.bf16.mxu0 %v6654_v1 }
0x3c9a   : > { %6434 = vmatpush3.bf16.msra.mxu0 %v6538_v8 }
0x3c9b   : > { %6439 = vmatprep.subr.bf16.mxu0 %v6654_v1 }
0x3d68   : > { %v5024_v51 = vpop.f32.mrb[136].mxu0 }
0x3d69   : > { %v5025_v52 = vadd.f32 %v5621_v50, %v5024_v51  ;;  %v6409_v19 = vpop.f32.mrb[137].mxu0 }
0x3d6a   : > { %v5027_v53 = vpop.f32.mrb[138].mxu0 }
0x3d6b   : > { %v5030_v54 = vmax.f32 %v5025_v52, 0.0  ;;  %v6410_v55 = vpop.f32.mrb[139].mxu0 }
0x3d6d   : > { %v5048_v56 = vpack.c.bf16 %v5030_v54, %v5030_v54 }
0x3d6f   : > { %6428 = vmatmul.mubr.bf16.vlgmr.msra.gmra.mrb[124].mxu1 %v5048_v56 }
0x3e42   : > { %v5131_v57 = vpop.f32.mrb[124].mxu1 }
0x3e43   : > { %v5137_v61 = vadd.f32 %v5131_v57, %v4960_v39  ;;  %v6429_v63 = vpop.f32.mrb[125].mxu1 }
0x3e44   : > { %v5134_v0 = vpop.f32.mrb[126].mxu1 }
0x3e45   : > { %v5146_v47 = vadd.f32 %v5650_v60, %v5137_v61  ;;  %v6430_v2 = vpop.f32.mrb[127].mxu1 }
0x3e47   : > { %v5151_v28 = vsel %vm1030_vm4, %v5146_v47, 0.0 }
0x3e48   : > { %5152 = vadd.xlane.f32.xlu0 %v5151_v28 }
0x3ed5   : > { %v5153_v9 = vpop.xlane.xlu0 %5152 }
0x3ed6   : > { %v5154_v3 = vmul.f32 0.03125, %v5153_v9 }
0x3ed8   : > { %v5155_v4 = vsub.f32 %v5146_v47, %v5154_v3 }
0x3eda   : > { %v5156_v5 = vmul.f32 %v5155_v4, %v5155_v4 }
0x3edc   : > { %v5157_v6 = vsel %vm1030_vm4, %v5156_v5, 0.0 }
0x3edd   : > { %5158 = vadd.xlane.f32.xlu0 %v5157_v6 }
0x3f6a   : > { %v5159_v29 = vpop.xlane.xlu0 %5158 }
0x3f6b   : > { %v5160_v38 = vmul.f32 0.03125, %v5159_v29 }
0x3f6d   : > { %v5161_v10 = vadd.f32 1e-05, %v5160_v38 }
0x3f6f   : > { %6615 = vrsqrt.f32 %v5161_v10 }
0x3f79   : > { %v6616_v11 = vpop.eup %6615 }
0x3f7a   : > { %v5163_v35 = vmul.f32 %v6616_v11, %v5155_v4 }
0x3f7c   : > { %v5170_v13 = vmul.f32 %v5653_v20, %v5163_v35 }
0x3f7e   : > { %v5177_v58 = vadd.f32 %v5654_v12, %v5170_v13 }
0x3f80   : > { %v5182_v14 = vpack.c.bf16 %v5177_v58, %v5177_v58 }
0x3f82   : > { %6436 = vmatmul.mubr.msk.bf16.vlgmr.msra.gmra.mrb[140].mxu0 %vm1030_vm4, %v5182_v14 }
0x3f83   : > { %6443 = vmatprep.mubr.msk.bf16.mxu0 %vm6656_vm2, %v6654_v1  ;;  %6440 = vmatpush3.bf16.msra.mxu0 %v6539_v59 }
0x3f84   : > { %6441 = vmatprep.subr.bf16.mxu0 %v6654_v1 }
0x3f87   : > { %6442 = vmatpush3.bf16.msra.mxu0 %v6540_v62 }
0x4055   : > { %v5239_v32 = vpop.f32.mrb[140].mxu0 }
0x4056   : > { %v5240_v17 = vadd.f32 %v5655_v16, %v5239_v32  ;;  %v6437_v18 = vpop.f32.mrb[141].mxu0 }
0x4057   : > { %v5242_v48 = vpop.f32.mrb[142].mxu0 }
0x4058   : > { %v5245_v26 = vmax.f32 %v5240_v17, 0.0  ;;  %v6438_v22 = vpop.f32.mrb[143].mxu0 }
0x405a   : > { %v5250_v23 = vpack.c.bf16 %v5245_v26, %v5245_v26 }
0x405c   : > { %6444 = vmatmul.mubr.msk.bf16.vlgmr.msra.gmra.mrb[144].mxu0 %vm1030_vm4, %v5250_v23 }
0x412f   : > { %v5307_v43 = vpop.f32.mrb[144].mxu0 }
0x4130   : > { %v5308_v15 = vadd.f32 %v5659_v24, %v5307_v43  ;;  %v6445_v27 = vpop.f32.mrb[145].mxu0 }
0x4131   : > { %v5310_v25 = vpop.f32.mrb[146].mxu0 }
0x4132   : > { %5313 = vst.msk [vmem:[%s938_s9] sm:$0xff] %vm1030_vm4, %v5308_v15  ;;  %v6446_v1 = vpop.f32.mrb[147].mxu0 }
0x4133 PF: > { %s70_s7 = sadd.s32 1, %s6623_s7  }
0x4134   : > { %p67_p4 = scmp.ge.s32.totalorder %s70_s7, 4  }
0x4136   :  { %69 = sbr.rel (!%p67_p4) target bundleno = 56 (0x38), region = 235 }

// kernel: path_transformer_forward.2
= control target key start
LH: loop header
LB: loop body
LE: loop exit
PB: predicated region body
PF: predicated region fallthrough
CT: control target
= control target key end

     0   :  { %s10105_s17 = smov 0   ;;  %s11783_s0 = inlined_call_operand.vmem [shape: f32[2,64,8], index: 0, kind: input, shape index: {}]   ;;  %s11784_s1 = inlined_call_operand.vmem [shape: bf16[9,64,64], index: 1, kind: input, shape index: {}]   ;;  %s11785_s2 = inlined_call_operand.vmem [shape: bf16[4,8,8], index: 2, kind: input, shape index: {}]   ;;  %s11786_s3 = inlined_call_operand.vmem [shape: f32[4,1,8], index: 3, kind: input, shape index: {}]   ;;  %s11787_s4 = inlined_call_operand.vmem [shape: bf16[4,9,8,8], index: 4, kind: input, shape index: {}]   ;;  %s11788_s5 = inlined_call_operand.vmem [shape: f32[4,1,8], index: 5, kind: input, shape index: {}]   ;;  %s11789_s6 = inlined_call_operand.vmem [shape: bf16[4,8,8], index: 6, kind: input, shape index: {}]   ;;  %s11790_s7 = inlined_call_operand.vmem [shape: f32[4,1,8], index: 7, kind: input, shape index: {}]   ;;  %s11791_s8 = inlined_call_operand.vmem [shape: bf16[8,32], index: 8, kind: input, shape index: {}]   ;;  %s11792_s9 = inlined_call_operand.vmem [shape: f32[1,32], index: 9, kind: input, shape index: {}]   ;;  %s11793_s10 = inlined_call_operand.vmem [shape: f32[64,32], index: 10, kind: input, shape index: {}]   ;;  %s11794_s11 = inlined_call_operand.vmem [shape: f32[2,64,32], index: 11, kind: output, shape index: {}]  }
   0x1 LB: > { %s7585_s18 = sadd.s32 4294967295, %s10043_s17   ;;  %p7589_p0 = scmp.ge.s32.totalorder %s10043_s17, 1  ;;  %s10043_s17 = sphi %s10105_s17, %s21_s17  }
   0x2   : > { %p337_p1 = scmp.lt.s32.totalorder %s10043_s17, 3 }
   0x4   : > { %p338_p2 = pnand %p7589_p0, %p337_p1 }
   0x6   : > { %341 = sbr.rel (%p338_p2) target bundleno = 4366 (0x110e), region = 64 }
   0xd   : > { %v396_v0 = vld [vmem:[%s11785_s2] sm:$0xf]  ;;  %vm421_vm0 = vcmask 1043456   ;;  %p377_p3 = scmp.lt.s32.totalorder %s7585_s18, 1  ;;  %vm408_vm1 = vcmask 64512   ;;  %vm531_vm2 = vcmask 523264  }
   0xe   : > { %9912 = vmatprep.subr.msk.bf16.mxu0 %vm421_vm0, %v396_v0  ;;  %v423_v1 = vsel %vm421_vm0, %v396_v0, 0  ;;  %v10157_v14 = vld [vmem:[%s11784_s1] sm:$0xff]   ;;  %v10182_v44 = vld [vmem:[%s11784_s1 + $0x8] sm:$0xff]   ;;  %v10188_v45 = vld [vmem:[%s11784_s1 + $0x10] sm:$0xff]   ;;  %vm7521_vm3 = vcmask 261120  }
   0xf   : > { %8599 = vmatpush3.bf16.msra.mxu0 %v423_v1  ;;  %s11842_s18 = smov (!%p377_p3, %s7585_s18), 1  ;;  %8616 = vmatprep.mubr.msk.bf16.mxu1 %vm531_vm2, %v10157_v14  ;;  %v7594_v15 = vld [vmem:[%s11786_s3] ss:$0 sm:$0xff]  ;;  %v10200_v46 = vld [vmem:[%s11784_s1 + $0x18] sm:$0xff]   ;;  %v10223_v50 = vld [vmem:[%s11784_s1 + $0x28] sm:$0xff]  }
  0x10   : > { %s8083_s21 = sshll.u32 %s11842_s18, 6  ;;  %v10206_v47 = vld [vmem:[%s11784_s1 + $0x20] sm:$0xff]   ;;  %v10229_v51 = vld [vmem:[%s11784_s1 + $0x30] sm:$0xff]   ;;  %v10241_v52 = vld [vmem:[%s11784_s1 + $0x38] sm:$0xff]  }
  0x11   : > { %s381_s24 = scalar_lea.vmem %s11783_s0, %s8083_s21  ;;  %v613_v48 = vld [vmem:[%s11787_s4] sm:$0xf]  ;;  %v10259_v54 = vld [vmem:[%s11784_s1 + $0x48] sm:$0xff]   ;;  %v10265_v55 = vld [vmem:[%s11784_s1 + $0x50] sm:$0xff]   ;;  %s11744_s14 = scalar_lea.vmem %s11794_s11, %s8083_s21 }
  0x12   : > { %v10126_v2 = vld [vmem:[%s381_s24] sm:$0xff]  ;;  %v10128_v3 = vld [vmem:[%s381_s24 + $0x8] sm:$0xff]  ;;  %v10130_v4 = vld [vmem:[%s381_s24 + $0x10] sm:$0xff]  ;;  %v627_v49 = vsel %vm421_vm0, %v613_v48, 0  ;;  %9913 = vmatprep.subr.msk.bf16.mxu0 %vm421_vm0, %v613_v48 }
  0x13   : > { %v397_v5 = vpack.c.bf16 %v10128_v3, %v10126_v2  ;;  %v10134_v6 = vld [vmem:[%s381_s24 + $0x18] sm:$0xff]  ;;  %v10136_v7 = vld [vmem:[%s381_s24 + $0x20] sm:$0xff]  ;;  %v10138_v8 = vld [vmem:[%s381_s24 + $0x28] sm:$0xff] }
  0x14   : > { %v398_v9 = vpack.c.bf16 %v10134_v6, %v10130_v4  ;;  %v399_v10 = vpack.c.bf16 %v10138_v8, %v10136_v7  ;;  %v10145_v11 = vld [vmem:[%s381_s24 + $0x30] sm:$0xff]  ;;  %v10147_v12 = vld [vmem:[%s381_s24 + $0x38] sm:$0xff]  ;;  %v10247_v53 = vld [vmem:[%s11784_s1 + $0x40] sm:$0xff]  }
  0x15   : > { %8600 = vmatprep.mubr.msk.bf16.mxu0 %vm408_vm1, %v397_v5  ;;  %v400_v13 = vpack.c.bf16 %v10147_v12, %v10145_v11  ;;  %v10277_v56 = vld [vmem:[%s11784_s1 + $0x58] sm:$0xff]   ;;  %v10283_v57 = vld [vmem:[%s11784_s1 + $0x60] sm:$0xff]   ;;  %v10295_v58 = vld [vmem:[%s11784_s1 + $0x68] sm:$0xff]  }
  0x16   : > { %8601 = vmatmul.mubr.msk.bf16.vlgmr.msra.gmra.mrb[0].mxu0 %vm408_vm1, %v398_v9  ;;  %v10301_v59 = vld [vmem:[%s11784_s1 + $0x70] sm:$0xff]   ;;  %v10313_v60 = vld [vmem:[%s11784_s1 + $0x78] sm:$0xff]   ;;  %v10319_v61 = vld [vmem:[%s11784_s1 + $0x80] sm:$0xff]  }
  0x17   : > { %8604 = vmatprep.mubr.msk.bf16.mxu0 %vm408_vm1, %v399_v10  ;;  %8625 = vmatpush3.bf16.msra.mxu0 %v627_v49  ;;  %v10331_v62 = vld [vmem:[%s11784_s1 + $0x88] sm:$0xff]   ;;  %v10337_v63 = vld [vmem:[%s11784_s1 + $0x90] sm:$0xff]   ;;  %v10349_v0 = vld [vmem:[%s11784_s1 + $0x98] sm:$0xff]  }
  0x18   : > { %v10355_v1 = vld [vmem:[%s11784_s1 + $0xa0] sm:$0xff]   ;;  %v10367_v5 = vld [vmem:[%s11784_s1 + $0xa8] sm:$0xff]   ;;  %v10373_v9 = vld [vmem:[%s11784_s1 + $0xb0] sm:$0xff]  }
  0x19   : > { %v10385_v10 = vld [vmem:[%s11784_s1 + $0xb8] sm:$0xff]  }
  0x1e   : > { %8605 = vmatmul.mubr.msk.bf16.gmra.mrb[4].mxu0 %vm408_vm1, %v400_v13  ;;  %v10391_v13 = vld [vmem:[%s11784_s1 + $0xc0] sm:$0xff]  }
  0xe9   : > { %v8602_v16 = vpop.f32.mrb[0].mxu0 }
  0xea   : > { %v468_v17 = vadd.f32 %v8602_v16, %v7594_v15  ;;  %v459_v18 = vpop.f32.mrb[1].mxu0  ;;  %v10407_v16 = vld [vmem:[%s11784_s1 + $0xc8] sm:$0xff]  }
  0xeb   : > { %v460_v19 = vadd.f32 %v7594_v15, %v459_v18  ;;  %v8603_v20 = vpop.f32.mrb[2].mxu0  ;;  %v10425_v18 = vld [vmem:[%s11784_s1 + $0xd8] sm:$0xff]  }
  0xec   : > { %v471_v21 = vadd.f32 %v8603_v20, %v7594_v15  ;;  %v462_v22 = vpop.f32.mrb[3].mxu0  ;;  %v492_v24 = vmax.f32 %v468_v17, 0.0  ;;  %v10413_v17 = vld [vmem:[%s11784_s1 + $0xd0] sm:$0xff]   ;;  %v10443_v20 = vld [vmem:[%s11784_s1 + $0xe8] sm:$0xff]  }
  0xed   : > { %v463_v23 = vadd.f32 %v7594_v15, %v462_v22  ;;  %v490_v26 = vmax.f32 %v460_v19, 0.0  ;;  %v10431_v19 = vld [vmem:[%s11784_s1 + $0xe0] sm:$0xff]   ;;  %v10461_v22 = vld [vmem:[%s11784_s1 + $0xf8] sm:$0xff]  }
  0xee   : > { %v493_v25 = vmax.f32 %v471_v21, 0.0  ;;  %v10449_v21 = vld [vmem:[%s11784_s1 + $0xf0] sm:$0xff]  }
  0xef   : > { %v491_v27 = vmax.f32 %v463_v23, 0.0  ;;  %v10467_v23 = vld [vmem:[%s11784_s1 + $0x100] sm:$0xff]  }
  0xf0   : > { %v10164_v28 = vpack.c.bf16 %v493_v25, %v492_v24  ;;  %v10479_v24 = vld [vmem:[%s11784_s1 + $0x108] sm:$0xff]   ;;  %v10485_v25 = vld [vmem:[%s11784_s1 + $0x110] sm:$0xff]  }
  0xf1   : > { %v10166_v29 = vpack.c.bf16 %v491_v27, %v490_v26  ;;  %v8606_v30 = vpop.f32.mrb[4].mxu0  ;;  %v10494_v26 = vld [vmem:[%s11784_s1 + $0x118] sm:$0xff]  }
  0xf2   : > { %v484_v31 = vadd.f32 %v8606_v30, %v7594_v15  ;;  %v475_v32 = vpop.f32.mrb[5].mxu0  ;;  %11817 = vst [vmem:[#allocation2_spill] sm:$0xff] %v10494_v26 }
  0xf3   : > { %v476_v33 = vadd.f32 %v7594_v15, %v475_v32  ;;  %v8607_v34 = vpop.f32.mrb[6].mxu0  ;;  %8608 = vmatprep.subr.bf16.mxu1 %v10166_v29 }
  0xf4   : > { %v487_v35 = vadd.f32 %v8607_v34, %v7594_v15  ;;  %v478_v36 = vpop.f32.mrb[7].mxu0  ;;  %8609 = vmatpush3.bf16.msra.mxu1 %v10166_v29  ;;  %v496_v38 = vmax.f32 %v484_v31, 0.0  ;;  %v7649_v34 = vld [vmem:[%s11787_s4 + $0x8] sm:$0xf] }
  0xf5   : > { %v479_v37 = vadd.f32 %v7594_v15, %v478_v36  ;;  %8610 = vmatprep.subr.bf16.mxu1 %v10164_v28  ;;  %v494_v40 = vmax.f32 %v476_v33, 0.0  ;;  %v7628_v15 = vld [vmem:[%s11787_s4 + $0x4] sm:$0xf] }
  0xf6   : > { %v497_v39 = vmax.f32 %v487_v35, 0.0  ;;  %9914 = vmatprep.subr.msk.bf16.mxu0 %vm421_vm0, %v7628_v15  ;;  %v833_v33 = vsel %vm421_vm0, %v7628_v15, 0 }
  0xf7   : > { %v495_v41 = vmax.f32 %v479_v37, 0.0 }
  0xf8   : > { %v10171_v42 = vpack.c.bf16 %v497_v39, %v496_v38  ;;  %8611 = vmatpush3.bf16.msra.mxu1 %v10164_v28 }
  0xf9   : > { %v10174_v43 = vpack.c.bf16 %v495_v41, %v494_v40  ;;  %v2316_v41 = vld [vmem:[%s11789_s6] sm:$0xf] }
  0xfb   : > { %8612 = vmatprep.subr.bf16.mxu1 %v10174_v43 }
  0xfc   : > { %8613 = vmatpush3.bf16.msra.mxu1 %v10174_v43 }
  0xfd   : > { %8614 = vmatprep.subr.bf16.mxu1 %v10171_v42 }
 0x100   : > { %8615 = vmatpush3.bf16.msra.mxu1 %v10171_v42 }
 0x101   : > { %8634 = vmatprep.subr.bf16.mxu1 %v10166_v29 }
 0x103   : > { %8617 = vmatmul.mubr.msk.bf16.vlgmr.msra.gmra.mrb[0].mxu1 %vm531_vm2, %v10182_v44 }
 0x104   : > { %8635 = vmatpush3.bf16.msra.mxu1 %v10166_v29  ;;  %8620 = vmatprep.mubr.msk.bf16.mxu1 %vm531_vm2, %v10188_v45 }
 0x105   : > { %8636 = vmatprep.subr.bf16.mxu1 %v10164_v28 }
 0x108   : > { %8637 = vmatpush3.bf16.msra.mxu1 %v10164_v28 }
 0x109   : > { %8638 = vmatprep.subr.bf16.mxu1 %v10174_v43 }
 0x10b   : > { %8621 = vmatmul.mubr.msk.bf16.gmra.mrb[4].mxu1 %vm531_vm2, %v10200_v46 }
 0x10c   : > { %8639 = vmatpush3.bf16.msra.mxu1 %v10174_v43  ;;  %8642 = vmatprep.mubr.msk.bf16.mxu1 %vm531_vm2, %v10206_v47 }
 0x10d   : > { %8640 = vmatprep.subr.bf16.mxu1 %v10171_v42 }
 0x110   : > { %8641 = vmatpush3.bf16.msra.mxu1 %v10171_v42 }
 0x111   : > { %8660 = vmatprep.subr.bf16.mxu1 %v10166_v29 }
 0x113   : > { %8643 = vmatmul.mubr.msk.bf16.vlgmr.msra.gmra.mrb[8].mxu1 %vm531_vm2, %v10223_v50 }
 0x114   : > { %8661 = vmatpush3.bf16.msra.mxu1 %v10166_v29  ;;  %8646 = vmatprep.mubr.msk.bf16.mxu1 %vm531_vm2, %v10229_v51 }
 0x115   : > { %8662 = vmatprep.subr.bf16.mxu1 %v10164_v28 }
 0x118   : > { %8663 = vmatpush3.bf16.msra.mxu1 %v10164_v28 }
 0x119   : > { %8664 = vmatprep.subr.bf16.mxu1 %v10174_v43 }
 0x11b   : > { %8647 = vmatmul.mubr.msk.bf16.gmra.mrb[12].mxu1 %vm531_vm2, %v10241_v52 }
 0x11c   : > { %8665 = vmatpush3.bf16.msra.mxu1 %v10174_v43  ;;  %8668 = vmatprep.mubr.msk.bf16.mxu1 %vm531_vm2, %v10247_v53 }
 0x11d   : > { %8666 = vmatprep.subr.bf16.mxu1 %v10171_v42 }
 0x120   : > { %8667 = vmatpush3.bf16.msra.mxu1 %v10171_v42 }
 0x121   : > { %8686 = vmatprep.subr.bf16.mxu1 %v10166_v29 }
 0x123   : > { %8669 = vmatmul.mubr.msk.bf16.vlgmr.msra.gmra.mrb[16].mxu1 %vm531_vm2, %v10259_v54 }
 0x124   : > { %8687 = vmatpush3.bf16.msra.mxu1 %v10166_v29  ;;  %8672 = vmatprep.mubr.msk.bf16.mxu1 %vm531_vm2, %v10265_v55 }
 0x125   : > { %8688 = vmatprep.subr.bf16.mxu1 %v10164_v28 }
 0x128   : > { %8689 = vmatpush3.bf16.msra.mxu1 %v10164_v28 }
 0x129   : > { %8690 = vmatprep.subr.bf16.mxu1 %v10174_v43 }
 0x12b   : > { %8673 = vmatmul.mubr.msk.bf16.gmra.mrb[20].mxu1 %vm531_vm2, %v10277_v56 }
 0x12c   : > { %8691 = vmatpush3.bf16.msra.mxu1 %v10174_v43  ;;  %8694 = vmatprep.mubr.msk.bf16.mxu1 %vm531_vm2, %v10283_v57 }
 0x12d   : > { %8692 = vmatprep.subr.bf16.mxu1 %v10171_v42 }
 0x130   : > { %8693 = vmatpush3.bf16.msra.mxu1 %v10171_v42 }
 0x131   : > { %8712 = vmatprep.subr.bf16.mxu1 %v10166_v29 }
 0x133   : > { %8695 = vmatmul.mubr.msk.bf16.vlgmr.msra.gmra.mrb[24].mxu1 %vm531_vm2, %v10295_v58 }
 0x134   : > { %8713 = vmatpush3.bf16.msra.mxu1 %v10166_v29  ;;  %8698 = vmatprep.mubr.msk.bf16.mxu1 %vm531_vm2, %v10301_v59 }
 0x135   : > { %8714 = vmatprep.subr.bf16.mxu1 %v10164_v28 }
 0x138   : > { %8715 = vmatpush3.bf16.msra.mxu1 %v10164_v28 }
 0x139   : > { %8716 = vmatprep.subr.bf16.mxu1 %v10174_v43 }
 0x13b   : > { %8699 = vmatmul.mubr.msk.bf16.gmra.mrb[28].mxu1 %vm531_vm2, %v10313_v60 }
 0x13c   : > { %8717 = vmatpush3.bf16.msra.mxu1 %v10174_v43  ;;  %8720 = vmatprep.mubr.msk.bf16.mxu1 %vm531_vm2, %v10319_v61 }
 0x13d   : > { %8718 = vmatprep.subr.bf16.mxu1 %v10171_v42 }
 0x140   : > { %8719 = vmatpush3.bf16.msra.mxu1 %v10171_v42 }
 0x141   : > { %8738 = vmatprep.subr.bf16.mxu1 %v10166_v29 }
 0x143   : > { %8721 = vmatmul.mubr.msk.bf16.vlgmr.msra.gmra.mrb[32].mxu1 %vm531_vm2, %v10331_v62 }
 0x144   : > { %8739 = vmatpush3.bf16.msra.mxu1 %v10166_v29  ;;  %8724 = vmatprep.mubr.msk.bf16.mxu1 %vm531_vm2, %v10337_v63 }
 0x145   : > { %8740 = vmatprep.subr.bf16.mxu1 %v10164_v28 }
 0x148   : > { %8741 = vmatpush3.bf16.msra.mxu1 %v10164_v28 }
 0x149   : > { %8742 = vmatprep.subr.bf16.mxu1 %v10174_v43 }
 0x14b   : > { %8725 = vmatmul.mubr.msk.bf16.gmra.mrb[36].mxu1 %vm531_vm2, %v10349_v0 }
 0x14c   : > { %8743 = vmatpush3.bf16.msra.mxu1 %v10174_v43  ;;  %8746 = vmatprep.mubr.msk.bf16.mxu1 %vm531_vm2, %v10355_v1 }
 0x14d   : > { %8744 = vmatprep.subr.bf16.mxu1 %v10171_v42 }
 0x150   : > { %8745 = vmatpush3.bf16.msra.mxu1 %v10171_v42 }
 0x151   : > { %8764 = vmatprep.subr.bf16.mxu1 %v10166_v29 }
 0x153   : > { %8747 = vmatmul.mubr.msk.bf16.vlgmr.msra.gmra.mrb[40].mxu1 %vm531_vm2, %v10367_v5 }
 0x154   : > { %8765 = vmatpush3.bf16.msra.mxu1 %v10166_v29  ;;  %8750 = vmatprep.mubr.msk.bf16.mxu1 %vm531_vm2, %v10373_v9 }
 0x155   : > { %8766 = vmatprep.subr.bf16.mxu1 %v10164_v28 }
 0x158   : > { %8767 = vmatpush3.bf16.msra.mxu1 %v10164_v28 }
 0x159   : > { %8768 = vmatprep.subr.bf16.mxu1 %v10174_v43 }
 0x15b   : > { %8751 = vmatmul.mubr.msk.bf16.gmra.mrb[44].mxu1 %vm531_vm2, %v10385_v10 }
 0x15c   : > { %8769 = vmatpush3.bf16.msra.mxu1 %v10174_v43  ;;  %8772 = vmatprep.mubr.msk.bf16.mxu1 %vm531_vm2, %v10391_v13 }
 0x15d   : > { %8770 = vmatprep.subr.bf16.mxu1 %v10171_v42 }
 0x160   : > { %8771 = vmatpush3.bf16.msra.mxu1 %v10171_v42 }
 0x161   : > { %8790 = vmatprep.subr.bf16.mxu1 %v10166_v29 }
 0x163   : > { %8773 = vmatmul.mubr.msk.bf16.vlgmr.msra.gmra.mrb[48].mxu1 %vm531_vm2, %v10407_v16 }
 0x164   : > { %8791 = vmatpush3.bf16.msra.mxu1 %v10166_v29  ;;  %8776 = vmatprep.mubr.msk.bf16.mxu1 %vm531_vm2, %v10413_v17 }
 0x165   : > { %8792 = vmatprep.subr.bf16.mxu1 %v10164_v28 }
 0x168   : > { %8793 = vmatpush3.bf16.msra.mxu1 %v10164_v28 }
 0x169   : > { %8794 = vmatprep.subr.bf16.mxu1 %v10174_v43 }
 0x16b   : > { %8777 = vmatmul.mubr.msk.bf16.gmra.mrb[52].mxu1 %vm531_vm2, %v10425_v18 }
 0x16c   : > { %8795 = vmatpush3.bf16.msra.mxu1 %v10174_v43  ;;  %8798 = vmatprep.mubr.msk.bf16.mxu1 %vm531_vm2, %v10431_v19 }
 0x16d   : > { %8796 = vmatprep.subr.bf16.mxu1 %v10171_v42 }
 0x170   : > { %8797 = vmatpush3.bf16.msra.mxu1 %v10171_v42 }
 0x171   : > { %8816 = vmatprep.subr.bf16.mxu1 %v10166_v29 }
 0x173   : > { %8799 = vmatmul.mubr.msk.bf16.vlgmr.msra.gmra.mrb[56].mxu1 %vm531_vm2, %v10443_v20 }
 0x174   : > { %8817 = vmatpush3.bf16.msra.mxu1 %v10166_v29  ;;  %8802 = vmatprep.mubr.msk.bf16.mxu1 %vm531_vm2, %v10449_v21 }
 0x175   : > { %8818 = vmatprep.subr.bf16.mxu1 %v10164_v28 }
 0x178   : > { %8819 = vmatpush3.bf16.msra.mxu1 %v10164_v28 }
 0x179   : > { %8820 = vmatprep.subr.bf16.mxu1 %v10174_v43 }
 0x17b   : > { %8803 = vmatmul.mubr.msk.bf16.gmra.mrb[60].mxu1 %vm531_vm2, %v10461_v22 }
 0x17c   : > { %8821 = vmatpush3.bf16.msra.mxu1 %v10174_v43  ;;  %8824 = vmatprep.mubr.msk.bf16.mxu1 %vm531_vm2, %v10467_v23  ;;  %v2341_v43 = vsel %vm421_vm0, %v2316_v41, 0 }
 0x17d   : > { %8822 = vmatprep.subr.bf16.mxu1 %v10171_v42 }
 0x180   : > { %8823 = vmatpush3.bf16.msra.mxu1 %v10171_v42 }
 0x181   : > { %9922 = vmatprep.subr.msk.bf16.mxu1 %vm421_vm0, %v2316_v41 }
 0x183   : > { %8825 = vmatmul.mubr.msk.bf16.vlgmr.msra.gmra.mrb[64].mxu1 %vm531_vm2, %v10479_v24 }
 0x184   : > { %8828 = vmatprep.mubr.msk.bf16.mxu1 %vm531_vm2, %v10485_v25  ;;  %8843 = vmatpush3.bf16.msra.mxu1 %v2341_v43 }
 0x18b   : > { %8829 = vmatmul.mubr.msk.bf16.gmra.mrb[68].mxu1 %vm531_vm2, %v10494_v26 }
 0x1d6   : > { %v8618_v27 = vpop.f32.mrb[0].mxu1 }
 0x1d7   : > { %v578_v28 = vpop.f32.mrb[1].mxu1 }
 0x1d8   : > { %v8619_v29 = vpop.f32.mrb[2].mxu1 }
 0x1d9   : > { %v610_v30 = vpack.c.bf16 %v8619_v29, %v8618_v27  ;;  %v581_v31 = vpop.f32.mrb[3].mxu1  ;;  %v1033_v29 = vsel %vm421_vm0, %v7649_v34, 0 }
 0x1da   : > { %v609_v32 = vpack.c.bf16 %v581_v31, %v578_v28 }
 0x1dc   : > { %8626 = vmatprep.mubr.msk.bf16.mxu0 %vm408_vm1, %v609_v32 }
 0x1dd   : > { %8627 = vmatmul.mubr.msk.bf16.vlgmr.msra.gmra.mrb[8].mxu0 %vm408_vm1, %v610_v30  ;;  %v7670_v30 = vld [vmem:[%s11787_s4 + $0xc] sm:$0xf] }
 0x1de   : > { %v8622_v35 = vpop.f32.mrb[4].mxu1  ;;  %8651 = vmatpush3.bf16.msra.mxu0 %v833_v33  ;;  %v1233_v43 = vsel %vm421_vm0, %v7670_v30, 0 }
 0x1df   : > { %v594_v36 = vpop.f32.mrb[5].mxu1  ;;  %9915 = vmatprep.subr.msk.bf16.mxu0 %vm421_vm0, %v7649_v34 }
 0x1e0   : > { %v8623_v37 = vpop.f32.mrb[6].mxu1 }
 0x1e1   : > { %v612_v38 = vpack.c.bf16 %v8623_v37, %v8622_v35  ;;  %v597_v39 = vpop.f32.mrb[7].mxu1 }
 0x1e2   : > { %v611_v40 = vpack.c.bf16 %v597_v39, %v594_v36 }
 0x1e4   : > { %8630 = vmatprep.mubr.msk.bf16.mxu0 %vm408_vm1, %v611_v40 }
 0x1e5   : > { %8631 = vmatmul.mubr.msk.bf16.gmra.mrb[12].mxu0 %vm408_vm1, %v612_v38 }
 0x1e6   : > { %v8644_v42 = vpop.f32.mrb[8].mxu1 }
 0x1e7   : > { %v783_v48 = vpop.f32.mrb[9].mxu1 }
 0x1e8   : > { %v8645_v49 = vpop.f32.mrb[10].mxu1 }
 0x1e9   : > { %v815_v15 = vpack.c.bf16 %v8645_v49, %v8644_v42  ;;  %v786_v27 = vpop.f32.mrb[11].mxu1 }
 0x1ea   : > { %v814_v28 = vpack.c.bf16 %v786_v27, %v783_v48  ;;  %v7691_v48 = vld [vmem:[%s11787_s4 + $0x10] sm:$0xf] }
 0x1ec   : > { %8652 = vmatprep.mubr.msk.bf16.mxu0 %vm408_vm1, %v814_v28 }
 0x1ed   : > { %8653 = vmatmul.mubr.msk.bf16.vlgmr.msra.gmra.mrb[8].mxu0 %vm408_vm1, %v815_v15 }
 0x1ee   : > { %v8648_v31 = vpop.f32.mrb[12].mxu1  ;;  %8677 = vmatpush3.bf16.msra.mxu0 %v1033_v29 }
 0x1ef   : > { %v799_v32 = vpop.f32.mrb[13].mxu1  ;;  %9916 = vmatprep.subr.msk.bf16.mxu0 %vm421_vm0, %v7670_v30 }
 0x1f0   : > { %v8649_v33 = vpop.f32.mrb[14].mxu1 }
 0x1f1   : > { %v817_v35 = vpack.c.bf16 %v8649_v33, %v8648_v31  ;;  %v802_v36 = vpop.f32.mrb[15].mxu1 }
 0x1f2   : > { %v816_v37 = vpack.c.bf16 %v802_v36, %v799_v32 }
 0x1f4   : > { %8656 = vmatprep.mubr.msk.bf16.mxu0 %vm408_vm1, %v816_v37 }
 0x1f5   : > { %8657 = vmatmul.mubr.msk.bf16.gmra.mrb[12].mxu0 %vm408_vm1, %v817_v35 }
 0x1f6   : > { %v8670_v34 = vpop.f32.mrb[16].mxu1 }
 0x1f7   : > { %v983_v38 = vpop.f32.mrb[17].mxu1 }
 0x1f8   : > { %v8671_v39 = vpop.f32.mrb[18].mxu1 }
 0x1f9   : > { %v1015_v40 = vpack.c.bf16 %v8671_v39, %v8670_v34  ;;  %v986_v41 = vpop.f32.mrb[19].mxu1  ;;  %v1433_v34 = vsel %vm421_vm0, %v7691_v48, 0 }
 0x1fa   : > { %v1014_v42 = vpack.c.bf16 %v986_v41, %v983_v38  ;;  %v7712_v38 = vld [vmem:[%s11787_s4 + $0x14] sm:$0xf] }
 0x1fc   : > { %8678 = vmatprep.mubr.msk.bf16.mxu0 %vm408_vm1, %v1014_v42 }
 0x1fd   : > { %8679 = vmatmul.mubr.msk.bf16.vlgmr.msra.gmra.mrb[8].mxu0 %vm408_vm1, %v1015_v40 }
 0x1fe   : > { %v8674_v49 = vpop.f32.mrb[20].mxu1  ;;  %8703 = vmatpush3.bf16.msra.mxu0 %v1233_v43 }
 0x1ff   : > { %v999_v15 = vpop.f32.mrb[21].mxu1  ;;  %9917 = vmatprep.subr.msk.bf16.mxu0 %vm421_vm0, %v7691_v48 }
 0x200   : > { %v8675_v27 = vpop.f32.mrb[22].mxu1 }
 0x201   : > { %v1017_v28 = vpack.c.bf16 %v8675_v27, %v8674_v49  ;;  %v1002_v29 = vpop.f32.mrb[23].mxu1 }
 0x202   : > { %v1016_v31 = vpack.c.bf16 %v1002_v29, %v999_v15 }
 0x204   : > { %8682 = vmatprep.mubr.msk.bf16.mxu0 %vm408_vm1, %v1016_v31 }
 0x205   : > { %8683 = vmatmul.mubr.msk.bf16.gmra.mrb[12].mxu0 %vm408_vm1, %v1017_v28 }
 0x206   : > { %v8696_v30 = vpop.f32.mrb[24].mxu1 }
 0x207   : > { %v1183_v32 = vpop.f32.mrb[25].mxu1 }
 0x208   : > { %v8697_v33 = vpop.f32.mrb[26].mxu1 }
 0x209   : > { %v1215_v35 = vpack.c.bf16 %v8697_v33, %v8696_v30  ;;  %v1186_v36 = vpop.f32.mrb[27].mxu1  ;;  %v1633_v30 = vsel %vm421_vm0, %v7712_v38, 0 }
 0x20a   : > { %v1214_v37 = vpack.c.bf16 %v1186_v36, %v1183_v32  ;;  %v7733_v32 = vld [vmem:[%s11787_s4 + $0x18] sm:$0xf] }
 0x20c   : > { %8704 = vmatprep.mubr.msk.bf16.mxu0 %vm408_vm1, %v1214_v37 }
 0x20d   : > { %8705 = vmatmul.mubr.msk.bf16.vlgmr.msra.gmra.mrb[8].mxu0 %vm408_vm1, %v1215_v35 }
 0x20e   : > { %v8700_v39 = vpop.f32.mrb[28].mxu1  ;;  %8729 = vmatpush3.bf16.msra.mxu0 %v1433_v34 }
 0x20f   : > { %v1199_v40 = vpop.f32.mrb[29].mxu1  ;;  %9918 = vmatprep.subr.msk.bf16.mxu0 %vm421_vm0, %v7712_v38 }
 0x210   : > { %v8701_v41 = vpop.f32.mrb[30].mxu1 }
 0x211   : > { %v1217_v42 = vpack.c.bf16 %v8701_v41, %v8700_v39  ;;  %v1202_v43 = vpop.f32.mrb[31].mxu1 }
 0x212   : > { %v1216_v49 = vpack.c.bf16 %v1202_v43, %v1199_v40 }
 0x214   : > { %8708 = vmatprep.mubr.msk.bf16.mxu0 %vm408_vm1, %v1216_v49 }
 0x215   : > { %8709 = vmatmul.mubr.msk.bf16.gmra.mrb[12].mxu0 %vm408_vm1, %v1217_v42 }
 0x216   : > { %v8722_v48 = vpop.f32.mrb[32].mxu1 }
 0x217   : > { %v1383_v15 = vpop.f32.mrb[33].mxu1 }
 0x218   : > { %v8723_v27 = vpop.f32.mrb[34].mxu1 }
 0x219   : > { %v1415_v28 = vpack.c.bf16 %v8723_v27, %v8722_v48  ;;  %v1386_v29 = vpop.f32.mrb[35].mxu1  ;;  %v1833_v48 = vsel %vm421_vm0, %v7733_v32, 0 }
 0x21a   : > { %v1414_v31 = vpack.c.bf16 %v1386_v29, %v1383_v15  ;;  %v7754_v15 = vld [vmem:[%s11787_s4 + $0x1c] sm:$0xf] }
 0x21c   : > { %8730 = vmatprep.mubr.msk.bf16.mxu0 %vm408_vm1, %v1414_v31 }
 0x21d   : > { %8731 = vmatmul.mubr.msk.bf16.vlgmr.msra.gmra.mrb[8].mxu0 %vm408_vm1, %v1415_v28 }
 0x21e   : > { %v8726_v33 = vpop.f32.mrb[36].mxu1  ;;  %8755 = vmatpush3.bf16.msra.mxu0 %v1633_v30 }
 0x21f   : > { %v1399_v35 = vpop.f32.mrb[37].mxu1  ;;  %9919 = vmatprep.subr.msk.bf16.mxu0 %vm421_vm0, %v7733_v32 }
 0x220   : > { %v8727_v36 = vpop.f32.mrb[38].mxu1 }
 0x221   : > { %v1417_v37 = vpack.c.bf16 %v8727_v36, %v8726_v33  ;;  %v1402_v34 = vpop.f32.mrb[39].mxu1 }
 0x222   : > { %v1416_v39 = vpack.c.bf16 %v1402_v34, %v1399_v35 }
 0x224   : > { %8734 = vmatprep.mubr.msk.bf16.mxu0 %vm408_vm1, %v1416_v39 }
 0x225   : > { %8735 = vmatmul.mubr.msk.bf16.gmra.mrb[12].mxu0 %vm408_vm1, %v1417_v37 }
 0x226   : > { %v8748_v38 = vpop.f32.mrb[40].mxu1 }
 0x227   : > { %v1583_v40 = vpop.f32.mrb[41].mxu1 }
 0x228   : > { %v8749_v41 = vpop.f32.mrb[42].mxu1 }
 0x229   : > { %v1615_v42 = vpack.c.bf16 %v8749_v41, %v8748_v38  ;;  %v1586_v43 = vpop.f32.mrb[43].mxu1  ;;  %v2033_v38 = vsel %vm421_vm0, %v7754_v15, 0 }
 0x22a   : > { %v1614_v49 = vpack.c.bf16 %v1586_v43, %v1583_v40  ;;  %v7775_v40 = vld [vmem:[%s11787_s4 + $0x20] sm:$0xf] }
 0x22c   : > { %8756 = vmatprep.mubr.msk.bf16.mxu0 %vm408_vm1, %v1614_v49 }
 0x22d   : > { %8757 = vmatmul.mubr.msk.bf16.vlgmr.msra.gmra.mrb[8].mxu0 %vm408_vm1, %v1615_v42 }
 0x22e   : > { %v8752_v27 = vpop.f32.mrb[44].mxu1  ;;  %8781 = vmatpush3.bf16.msra.mxu0 %v1833_v48 }
 0x22f   : > { %v1599_v28 = vpop.f32.mrb[45].mxu1  ;;  %9920 = vmatprep.subr.msk.bf16.mxu0 %vm421_vm0, %v7754_v15 }
 0x230   : > { %v8753_v29 = vpop.f32.mrb[46].mxu1 }
 0x231   : > { %v1617_v31 = vpack.c.bf16 %v8753_v29, %v8752_v27  ;;  %v1602_v30 = vpop.f32.mrb[47].mxu1 }
 0x232   : > { %v1616_v33 = vpack.c.bf16 %v1602_v30, %v1599_v28 }
 0x234   : > { %8760 = vmatprep.mubr.msk.bf16.mxu0 %vm408_vm1, %v1616_v33 }
 0x235   : > { %8761 = vmatmul.mubr.msk.bf16.gmra.mrb[12].mxu0 %vm408_vm1, %v1617_v31 }
 0x236   : > { %v8774_v32 = vpop.f32.mrb[48].mxu1 }
 0x237   : > { %v1783_v35 = vpop.f32.mrb[49].mxu1 }
 0x238   : > { %v8775_v36 = vpop.f32.mrb[50].mxu1 }
 0x239   : > { %v1815_v37 = vpack.c.bf16 %v8775_v36, %v8774_v32  ;;  %v1786_v34 = vpop.f32.mrb[51].mxu1  ;;  %v2233_v32 = vsel %vm421_vm0, %v7775_v40, 0 }
 0x23a   : > { %v1814_v39 = vpack.c.bf16 %v1786_v34, %v1783_v35 }
 0x23c   : > { %8782 = vmatprep.mubr.msk.bf16.mxu0 %vm408_vm1, %v1814_v39 }
 0x23d   : > { %8783 = vmatmul.mubr.msk.bf16.vlgmr.msra.gmra.mrb[8].mxu0 %vm408_vm1, %v1815_v37 }
 0x23e   : > { %v8778_v41 = vpop.f32.mrb[52].mxu1  ;;  %8807 = vmatpush3.bf16.msra.mxu0 %v2033_v38 }
 0x23f   : > { %v1799_v42 = vpop.f32.mrb[53].mxu1  ;;  %9921 = vmatprep.subr.msk.bf16.mxu0 %vm421_vm0, %v7775_v40 }
 0x240   : > { %v8779_v43 = vpop.f32.mrb[54].mxu1 }
 0x241   : > { %v1817_v49 = vpack.c.bf16 %v8779_v43, %v8778_v41  ;;  %v1802_v48 = vpop.f32.mrb[55].mxu1 }
 0x242   : > { %v1816_v27 = vpack.c.bf16 %v1802_v48, %v1799_v42 }
 0x244   : > { %8786 = vmatprep.mubr.msk.bf16.mxu0 %vm408_vm1, %v1816_v27 }
 0x245   : > { %8787 = vmatmul.mubr.msk.bf16.gmra.mrb[12].mxu0 %vm408_vm1, %v1817_v49 }
 0x246   : > { %v8800_v15 = vpop.f32.mrb[56].mxu1 }
 0x247   : > { %v1983_v28 = vpop.f32.mrb[57].mxu1 }
 0x248   : > { %v8801_v29 = vpop.f32.mrb[58].mxu1 }
 0x249   : > { %v2015_v31 = vpack.c.bf16 %v8801_v29, %v8800_v15  ;;  %v1986_v30 = vpop.f32.mrb[59].mxu1 }
 0x24a   : > { %v2014_v33 = vpack.c.bf16 %v1986_v30, %v1983_v28 }
 0x24c   : > { %8808 = vmatprep.mubr.msk.bf16.mxu0 %vm408_vm1, %v2014_v33  ;;  %v7785_v33 = vld [vmem:[%s11785_s2 + $0x4] sm:$0xf] }
 0x24d   : > { %8809 = vmatmul.mubr.msk.bf16.vlgmr.msra.gmra.mrb[8].mxu0 %vm408_vm1, %v2015_v31 }
 0x24e   : > { %v8804_v35 = vpop.f32.mrb[60].mxu1  ;;  %8833 = vmatpush3.bf16.msra.mxu0 %v2233_v32  ;;  %v2451_v32 = vsel %vm421_vm0, %v7785_v33, 0 }
 0x24f   : > { %v1999_v36 = vpop.f32.mrb[61].mxu1  ;;  %9923 = vmatprep.subr.msk.bf16.mxu0 %vm421_vm0, %v7785_v33 }
 0x250   : > { %v8805_v37 = vpop.f32.mrb[62].mxu1 }
 0x251   : > { %v2017_v34 = vpack.c.bf16 %v8805_v37, %v8804_v35  ;;  %v2002_v39 = vpop.f32.mrb[63].mxu1  ;;  %v7611_v35 = vld [vmem:[%s11788_s5] ss:$0 sm:$0xff] }
 0x252   : > { %v2016_v38 = vpack.c.bf16 %v2002_v39, %v1999_v36 }
 0x254   : > { %8812 = vmatprep.mubr.msk.bf16.mxu0 %vm408_vm1, %v2016_v38 }
 0x255   : > { %8813 = vmatmul.mubr.msk.bf16.gmra.mrb[12].mxu0 %vm408_vm1, %v2017_v34 }
 0x256   : > { %v8826_v41 = vpop.f32.mrb[64].mxu1 }
 0x257   : > { %v2183_v42 = vpop.f32.mrb[65].mxu1 }
 0x258   : > { %v8827_v43 = vpop.f32.mrb[66].mxu1 }
 0x259   : > { %v2215_v49 = vpack.c.bf16 %v8827_v43, %v8826_v41  ;;  %v2186_v40 = vpop.f32.mrb[67].mxu1 }
 0x25a   : > { %v2214_v48 = vpack.c.bf16 %v2186_v40, %v2183_v42 }
 0x25c   : > { %8834 = vmatprep.mubr.msk.bf16.mxu0 %vm408_vm1, %v2214_v48 }
 0x25d   : > { %8835 = vmatmul.mubr.msk.bf16.vlgmr.msra.gmra.mrb[8].mxu0 %vm408_vm1, %v2215_v49 }
 0x25e   : > { %v8830_v27 = vpop.f32.mrb[68].mxu1  ;;  %8853 = vmatpush3.bf16.msra.mxu0 %v2451_v32 }
 0x25f   : > { %v2199_v15 = vpop.f32.mrb[69].mxu1 }
 0x260   : > { %v8831_v28 = vpop.f32.mrb[70].mxu1 }
 0x261   : > { %v2217_v29 = vpack.c.bf16 %v8831_v28, %v8830_v27  ;;  %v2202_v31 = vpop.f32.mrb[71].mxu1 }
 0x262   : > { %v2216_v30 = vpack.c.bf16 %v2202_v31, %v2199_v15 }
 0x264   : > { %8838 = vmatprep.mubr.msk.bf16.mxu0 %vm408_vm1, %v2216_v30 }
 0x265   : > { %8839 = vmatmul.mubr.msk.bf16.gmra.mrb[12].mxu0 %vm408_vm1, %v2217_v29 }
 0x330   : > { %v8836_v36 = vpop.f32.mrb[8].mxu0 }
 0x331   : > { %v9624_v37 = vadd.f32 %v8836_v36, %v7611_v35  ;;  %v2269_v34 = vpop.f32.mrb[9].mxu0 }
 0x332   : > { %v9625_v39 = vadd.f32 %v7611_v35, %v2269_v34  ;;  %v8837_v38 = vpop.f32.mrb[10].mxu0 }
 0x333   : > { %v9626_v41 = vadd.f32 %v8837_v38, %v7611_v35  ;;  %v2272_v42 = vpop.f32.mrb[11].mxu0  ;;  %v2310_v49 = vmax.f32 %v9624_v37, 0.0 }
 0x334   : > { %v9627_v43 = vadd.f32 %v7611_v35, %v2272_v42  ;;  %v2308_v48 = vmax.f32 %v9625_v39, 0.0 }
 0x335   : > { %v2311_v40 = vmax.f32 %v9626_v41, 0.0 }
 0x336   : > { %v2309_v27 = vmax.f32 %v9627_v43, 0.0 }
 0x337   : > { %v2318_v15 = vpack.c.bf16 %v2311_v40, %v2310_v49  ;;  %v7780_v49 = vld [vmem:[%s11790_s7] ss:$0 sm:$0xff] }
 0x338   : > { %v2317_v28 = vpack.c.bf16 %v2309_v27, %v2308_v48  ;;  %v8840_v29 = vpop.f32.mrb[12].mxu0 }
 0x339   : > { %v9628_v31 = vadd.f32 %v8840_v29, %v7611_v35  ;;  %v2285_v30 = vpop.f32.mrb[13].mxu0 }
 0x33a   : > { %v9629_v33 = vadd.f32 %v7611_v35, %v2285_v30  ;;  %v8841_v32 = vpop.f32.mrb[14].mxu0  ;;  %8844 = vmatprep.mubr.msk.bf16.mxu1 %vm408_vm1, %v2317_v28 }
 0x33b   : > { %v9630_v36 = vadd.f32 %v8841_v32, %v7611_v35  ;;  %v2288_v26 = vpop.f32.mrb[15].mxu0  ;;  %8845 = vmatmul.mubr.msk.bf16.vlgmr.msra.gmra.mrb[72].mxu1 %vm408_vm1, %v2318_v15  ;;  %v2314_v38 = vmax.f32 %v9628_v31, 0.0 }
 0x33c   : > { %v9631_v34 = vadd.f32 %v7611_v35, %v2288_v26  ;;  %v2312_v37 = vmax.f32 %v9629_v33, 0.0 }
 0x33d   : > { %v2315_v42 = vmax.f32 %v9630_v36, 0.0 }
 0x33e   : > { %v2313_v41 = vmax.f32 %v9631_v34, 0.0 }
 0x33f   : > { %v2320_v39 = vpack.c.bf16 %v2315_v42, %v2314_v38 }
 0x340   : > { %v2319_v43 = vpack.c.bf16 %v2313_v41, %v2312_v37 }
 0x342   : > { %8848 = vmatprep.mubr.msk.bf16.mxu1 %vm408_vm1, %v2319_v43 }
 0x343   : > { %8849 = vmatmul.mubr.msk.bf16.gmra.mrb[76].mxu1 %vm408_vm1, %v2320_v39 }
 0x344   : > { %8870 = vmatprep.mubr.msk.bf16.mxu1 %vm531_vm2, %v10157_v14 }
 0x40e   : > { %v8846_v40 = vpop.f32.mrb[72].mxu1 }
 0x40f   : > { %v2386_v48 = vadd.f32 %v8846_v40, %v7780_v49  ;;  %v2377_v26 = vpop.f32.mrb[73].mxu1 }
 0x410   : > { %v2378_v35 = vadd.f32 %v7780_v49, %v2377_v26  ;;  %v8847_v27 = vpop.f32.mrb[74].mxu1 }
 0x411   : > { %v2389_v15 = vadd.f32 %v8847_v27, %v7780_v49  ;;  %v2380_v28 = vpop.f32.mrb[75].mxu1  ;;  %v10596_v30 = vadd.f32 %v2386_v48, %v10130_v4 }
 0x412   : > { %v10593_v29 = vadd.f32 %v2378_v35, %v10126_v2  ;;  %v2381_v31 = vadd.f32 %v7780_v49, %v2380_v28 }
 0x413   : > { %v10599_v14 = vadd.f32 %v2389_v15, %v10134_v6  ;;  %v2418_v2 = vmax.f32 %v10596_v30, 0.0 }
 0x414   : > { %v10602_v33 = vadd.f32 %v2381_v31, %v10128_v3  ;;  %v2416_v36 = vmax.f32 %v10593_v29, 0.0 }
 0x415   : > { %v11801_v32 = vmax.f32 %v10599_v14, 0.0 }
 0x416   : > { %v11800_v34 = vmax.f32 %v10602_v33, 0.0  ;;  %v8850_v38 = vpop.f32.mrb[76].mxu1 }
 0x417   : > { %v2402_v42 = vadd.f32 %v8850_v38, %v7780_v49  ;;  %v2393_v37 = vpop.f32.mrb[77].mxu1  ;;  %v2427_v3 = vpack.c.bf16 %v11801_v32, %v2418_v2 }
 0x418   : > { %v2426_v4 = vpack.c.bf16 %v11800_v34, %v2416_v36  ;;  %v2394_v6 = vadd.f32 %v7780_v49, %v2393_v37  ;;  %v8851_v41 = vpop.f32.mrb[78].mxu1 }
 0x419   : > { %v2405_v39 = vadd.f32 %v8851_v41, %v7780_v49  ;;  %v2396_v43 = vpop.f32.mrb[79].mxu1  ;;  %v10621_v26 = vadd.f32 %v2402_v42, %v10145_v11 }
 0x41a   : > { %v10617_v40 = vadd.f32 %v2394_v6, %v10136_v7  ;;  %v2397_v48 = vadd.f32 %v7780_v49, %v2396_v43  ;;  %8854 = vmatprep.mubr.msk.bf16.mxu0 %vm408_vm1, %v2426_v4 }
 0x41b   : > { %v10624_v35 = vadd.f32 %v2405_v39, %v10147_v12  ;;  %8855 = vmatmul.mubr.msk.bf16.vlgmr.msra.gmra.mrb[16].mxu0 %vm408_vm1, %v2427_v3  ;;  %v11798_v49 = vmax.f32 %v10621_v26, 0.0 }
 0x41c   : > { %v10628_v27 = vadd.f32 %v2397_v48, %v10138_v8  ;;  %v11799_v28 = vmax.f32 %v10617_v40, 0.0  ;;  %v7787_v8 = vld [vmem:[%s11786_s3 + $0x1] ss:$0 sm:$0xff] }
 0x41d   : > { %v11797_v15 = vmax.f32 %v10624_v35, 0.0 }
 0x41e   : > { %v11796_v7 = vmax.f32 %v10628_v27, 0.0 }
 0x41f   : > { %v2429_v12 = vpack.c.bf16 %v11797_v15, %v11798_v49 }
 0x420   : > { %v2428_v11 = vpack.c.bf16 %v11796_v7, %v11799_v28 }
 0x422   : > { %8858 = vmatprep.mubr.msk.bf16.mxu0 %vm408_vm1, %v2428_v11 }
 0x423   : > { %8859 = vmatmul.mubr.msk.bf16.gmra.mrb[20].mxu0 %vm408_vm1, %v2429_v12 }
 0x4ee   : > { %v8856_v31 = vpop.f32.mrb[16].mxu0 }
 0x4ef   : > { %v2496_v38 = vadd.f32 %v8856_v31, %v7787_v8  ;;  %v2487_v42 = vpop.f32.mrb[17].mxu0 }
 0x4f0   : > { %v2488_v37 = vadd.f32 %v7787_v8, %v2487_v42  ;;  %v8857_v4 = vpop.f32.mrb[18].mxu0 }
 0x4f1   : > { %v2499_v6 = vadd.f32 %v8857_v4, %v7787_v8  ;;  %v2490_v41 = vpop.f32.mrb[19].mxu0  ;;  %v2520_v39 = vmax.f32 %v2496_v38, 0.0 }
 0x4f2   : > { %v2491_v3 = vadd.f32 %v7787_v8, %v2490_v41  ;;  %v2518_v48 = vmax.f32 %v2488_v37, 0.0 }
 0x4f3   : > { %v2521_v43 = vmax.f32 %v2499_v6, 0.0 }
 0x4f4   : > { %v2519_v7 = vmax.f32 %v2491_v3, 0.0 }
 0x4f5   : > { %v10647_v15 = vpack.c.bf16 %v2521_v43, %v2520_v39  ;;  %v7834_v43 = vld [vmem:[%s11787_s4 + $0x34] sm:$0xf] }
 0x4f6   : > { %v10649_v11 = vpack.c.bf16 %v2519_v7, %v2518_v48  ;;  %v8860_v12 = vpop.f32.mrb[20].mxu0 }
 0x4f7   : > { %v2512_v49 = vadd.f32 %v8860_v12, %v7787_v8  ;;  %v2503_v28 = vpop.f32.mrb[21].mxu0 }
 0x4f8   : > { %v2504_v34 = vadd.f32 %v7787_v8, %v2503_v28  ;;  %v8861_v32 = vpop.f32.mrb[22].mxu0  ;;  %8862 = vmatprep.subr.bf16.mxu1 %v10649_v11 }
 0x4f9   : > { %v2515_v31 = vadd.f32 %v8861_v32, %v7787_v8  ;;  %v2506_v42 = vpop.f32.mrb[23].mxu0  ;;  %8863 = vmatpush3.bf16.msra.mxu1 %v10649_v11  ;;  %v2524_v38 = vmax.f32 %v2512_v49, 0.0  ;;  %v7797_v32 = vld [vmem:[%s11787_s4 + $0x24] sm:$0xf] }
 0x4fa   : > { %v2507_v4 = vadd.f32 %v7787_v8, %v2506_v42  ;;  %8864 = vmatprep.subr.bf16.mxu1 %v10647_v15  ;;  %v2522_v6 = vmax.f32 %v2504_v34, 0.0  ;;  %9924 = vmatprep.subr.msk.bf16.mxu0 %vm421_vm0, %v7797_v32 }
 0x4fb   : > { %v2525_v37 = vmax.f32 %v2515_v31, 0.0 }
 0x4fc   : > { %v2523_v41 = vmax.f32 %v2507_v4, 0.0 }
 0x4fd   : > { %v10654_v7 = vpack.c.bf16 %v2525_v37, %v2524_v38  ;;  %8865 = vmatpush3.bf16.msra.mxu1 %v10647_v15 }
 0x4fe   : > { %v10657_v3 = vpack.c.bf16 %v2523_v41, %v2522_v6 }
 0x500   : > { %8866 = vmatprep.subr.bf16.mxu1 %v10657_v3 }
 0x501   : > { %8867 = vmatpush3.bf16.msra.mxu1 %v10657_v3 }
 0x502   : > { %8868 = vmatprep.subr.bf16.mxu1 %v10654_v7 }
 0x505   : > { %8869 = vmatpush3.bf16.msra.mxu1 %v10654_v7 }
 0x506   : > { %8888 = vmatprep.subr.bf16.mxu1 %v10649_v11 }
 0x508   : > { %8871 = vmatmul.mubr.msk.bf16.vlgmr.msra.gmra.mrb[80].mxu1 %vm531_vm2, %v10182_v44  ;;  %v2616_v44 = vsel %vm421_vm0, %v7797_v32, 0  ;;  %v3258_v32 = vsel %vm421_vm0, %v7834_v43, 0 }
 0x509   : > { %8889 = vmatpush3.bf16.msra.mxu1 %v10649_v11  ;;  %8874 = vmatprep.mubr.msk.bf16.mxu1 %vm531_vm2, %v10188_v45  ;;  %v7807_v45 = vld [vmem:[%s11787_s4 + $0x28] sm:$0xf] }
 0x50a   : > { %8890 = vmatprep.subr.bf16.mxu1 %v10647_v15  ;;  %8879 = vmatpush3.bf16.msra.mxu0 %v2616_v44  ;;  %v7843_v44 = vld [vmem:[%s11787_s4 + $0x38] sm:$0xf] }
 0x50b   : > { %9925 = vmatprep.subr.msk.bf16.mxu0 %vm421_vm0, %v7807_v45 }
 0x50d   : > { %8891 = vmatpush3.bf16.msra.mxu1 %v10647_v15 }
 0x50e   : > { %8892 = vmatprep.subr.bf16.mxu1 %v10657_v3 }
 0x510   : > { %8875 = vmatmul.mubr.msk.bf16.gmra.mrb[84].mxu1 %vm531_vm2, %v10200_v46  ;;  %v11818_v46 = vld [vmem:[#allocation2_spill] sm:$0xff] }
 0x511   : > { %8893 = vmatpush3.bf16.msra.mxu1 %v10657_v3  ;;  %8896 = vmatprep.mubr.msk.bf16.mxu1 %vm531_vm2, %v10206_v47 }
 0x512   : > { %8894 = vmatprep.subr.bf16.mxu1 %v10654_v7 }
 0x515   : > { %8895 = vmatpush3.bf16.msra.mxu1 %v10654_v7 }
 0x516   : > { %8914 = vmatprep.subr.bf16.mxu1 %v10649_v11 }
 0x518   : > { %8897 = vmatmul.mubr.msk.bf16.vlgmr.msra.gmra.mrb[88].mxu1 %vm531_vm2, %v10223_v50 }
 0x519   : > { %8915 = vmatpush3.bf16.msra.mxu1 %v10649_v11  ;;  %8900 = vmatprep.mubr.msk.bf16.mxu1 %vm531_vm2, %v10229_v51 }
 0x51a   : > { %8916 = vmatprep.subr.bf16.mxu1 %v10647_v15 }
 0x51d   : > { %8917 = vmatpush3.bf16.msra.mxu1 %v10647_v15 }
 0x51e   : > { %8918 = vmatprep.subr.bf16.mxu1 %v10657_v3 }
 0x520   : > { %8901 = vmatmul.mubr.msk.bf16.gmra.mrb[92].mxu1 %vm531_vm2, %v10241_v52 }
 0x521   : > { %8919 = vmatpush3.bf16.msra.mxu1 %v10657_v3  ;;  %8922 = vmatprep.mubr.msk.bf16.mxu1 %vm531_vm2, %v10247_v53 }
 0x522   : > { %8920 = vmatprep.subr.bf16.mxu1 %v10654_v7 }
 0x525   : > { %8921 = vmatpush3.bf16.msra.mxu1 %v10654_v7 }
 0x526   : > { %8940 = vmatprep.subr.bf16.mxu1 %v10649_v11 }
 0x528   : > { %8923 = vmatmul.mubr.msk.bf16.vlgmr.msra.gmra.mrb[96].mxu1 %vm531_vm2, %v10259_v54 }
 0x529   : > { %8941 = vmatpush3.bf16.msra.mxu1 %v10649_v11  ;;  %8926 = vmatprep.mubr.msk.bf16.mxu1 %vm531_vm2, %v10265_v55  ;;  %v2781_v55 = vsel %vm421_vm0, %v7807_v45, 0 }
 0x52a   : > { %8942 = vmatprep.subr.bf16.mxu1 %v10647_v15 }
 0x52d   : > { %8943 = vmatpush3.bf16.msra.mxu1 %v10647_v15 }
 0x52e   : > { %8944 = vmatprep.subr.bf16.mxu1 %v10657_v3 }
 0x530   : > { %8927 = vmatmul.mubr.msk.bf16.gmra.mrb[100].mxu1 %vm531_vm2, %v10277_v56  ;;  %v7816_v56 = vld [vmem:[%s11787_s4 + $0x2c] sm:$0xf] }
 0x531   : > { %8945 = vmatpush3.bf16.msra.mxu1 %v10657_v3  ;;  %8948 = vmatprep.mubr.msk.bf16.mxu1 %vm531_vm2, %v10283_v57 }
 0x532   : > { %8946 = vmatprep.subr.bf16.mxu1 %v10654_v7 }
 0x535   : > { %8947 = vmatpush3.bf16.msra.mxu1 %v10654_v7 }
 0x536   : > { %8966 = vmatprep.subr.bf16.mxu1 %v10649_v11 }
 0x538   : > { %8949 = vmatmul.mubr.msk.bf16.vlgmr.msra.gmra.mrb[104].mxu1 %vm531_vm2, %v10295_v58 }
 0x539   : > { %8967 = vmatpush3.bf16.msra.mxu1 %v10649_v11  ;;  %8952 = vmatprep.mubr.msk.bf16.mxu1 %vm531_vm2, %v10301_v59 }
 0x53a   : > { %8968 = vmatprep.subr.bf16.mxu1 %v10647_v15 }
 0x53d   : > { %8969 = vmatpush3.bf16.msra.mxu1 %v10647_v15 }
 0x53e   : > { %8970 = vmatprep.subr.bf16.mxu1 %v10657_v3 }
 0x540   : > { %8953 = vmatmul.mubr.msk.bf16.gmra.mrb[108].mxu1 %vm531_vm2, %v10313_v60 }
 0x541   : > { %8971 = vmatpush3.bf16.msra.mxu1 %v10657_v3  ;;  %8974 = vmatprep.mubr.msk.bf16.mxu1 %vm531_vm2, %v10319_v61 }
 0x542   : > { %8972 = vmatprep.subr.bf16.mxu1 %v10654_v7 }
 0x545   : > { %8973 = vmatpush3.bf16.msra.mxu1 %v10654_v7 }
 0x546   : > { %8992 = vmatprep.subr.bf16.mxu1 %v10649_v11 }
 0x548   : > { %8975 = vmatmul.mubr.msk.bf16.vlgmr.msra.gmra.mrb[112].mxu1 %vm531_vm2, %v10331_v62 }
 0x549   : > { %8993 = vmatpush3.bf16.msra.mxu1 %v10649_v11  ;;  %8978 = vmatprep.mubr.msk.bf16.mxu1 %vm531_vm2, %v10337_v63  ;;  %v7875_v63 = vld [vmem:[%s11789_s6 + $0x4] sm:$0xf] }
 0x54a   : > { %8994 = vmatprep.subr.bf16.mxu1 %v10647_v15 }
 0x54d   : > { %8995 = vmatpush3.bf16.msra.mxu1 %v10647_v15 }
 0x54e   : > { %8996 = vmatprep.subr.bf16.mxu1 %v10657_v3 }
 0x550   : > { %8979 = vmatmul.mubr.msk.bf16.gmra.mrb[116].mxu1 %vm531_vm2, %v10349_v0 }
 0x551   : > { %8997 = vmatpush3.bf16.msra.mxu1 %v10657_v3  ;;  %9000 = vmatprep.mubr.msk.bf16.mxu1 %vm531_vm2, %v10355_v1  ;;  %v4004_v1 = vsel %vm421_vm0, %v7875_v63, 0 }
 0x552   : > { %8998 = vmatprep.subr.bf16.mxu1 %v10654_v7 }
 0x555   : > { %8999 = vmatpush3.bf16.msra.mxu1 %v10654_v7 }
 0x556   : > { %9018 = vmatprep.subr.bf16.mxu1 %v10649_v11 }
 0x558   : > { %9001 = vmatmul.mubr.msk.bf16.vlgmr.msra.gmra.mrb[120].mxu1 %vm531_vm2, %v10367_v5 }
 0x559   : > { %9019 = vmatpush3.bf16.msra.mxu1 %v10649_v11  ;;  %9004 = vmatprep.mubr.msk.bf16.mxu1 %vm531_vm2, %v10373_v9 }
 0x55a   : > { %9020 = vmatprep.subr.bf16.mxu1 %v10647_v15 }
 0x55d   : > { %9021 = vmatpush3.bf16.msra.mxu1 %v10647_v15 }
 0x55e   : > { %9022 = vmatprep.subr.bf16.mxu1 %v10657_v3 }
 0x560   : > { %9005 = vmatmul.mubr.msk.bf16.gmra.mrb[124].mxu1 %vm531_vm2, %v10385_v10 }
 0x561   : > { %9023 = vmatpush3.bf16.msra.mxu1 %v10657_v3  ;;  %9026 = vmatprep.mubr.msk.bf16.mxu1 %vm531_vm2, %v10391_v13 }
 0x562   : > { %9024 = vmatprep.subr.bf16.mxu1 %v10654_v7 }
 0x565   : > { %9025 = vmatpush3.bf16.msra.mxu1 %v10654_v7 }
 0x566   : > { %9044 = vmatprep.subr.bf16.mxu1 %v10649_v11 }
 0x568   : > { %9027 = vmatmul.mubr.msk.bf16.vlgmr.msra.gmra.mrb[128].mxu1 %vm531_vm2, %v10407_v16 }
 0x569   : > { %9045 = vmatpush3.bf16.msra.mxu1 %v10649_v11  ;;  %9030 = vmatprep.mubr.msk.bf16.mxu1 %vm531_vm2, %v10413_v17  ;;  %v2940_v17 = vsel %vm421_vm0, %v7816_v56, 0 }
 0x56a   : > { %9046 = vmatprep.subr.bf16.mxu1 %v10647_v15 }
 0x56d   : > { %9047 = vmatpush3.bf16.msra.mxu1 %v10647_v15 }
 0x56e   : > { %9048 = vmatprep.subr.bf16.mxu1 %v10657_v3 }
 0x570   : > { %9031 = vmatmul.mubr.msk.bf16.gmra.mrb[132].mxu1 %vm531_vm2, %v10425_v18  ;;  %v7825_v18 = vld [vmem:[%s11787_s4 + $0x30] sm:$0xf] }
 0x571   : > { %9049 = vmatpush3.bf16.msra.mxu1 %v10657_v3  ;;  %9052 = vmatprep.mubr.msk.bf16.mxu1 %vm531_vm2, %v10431_v19  ;;  %v3099_v39 = vsel %vm421_vm0, %v7825_v18, 0 }
 0x572   : > { %9050 = vmatprep.subr.bf16.mxu1 %v10654_v7 }
 0x575   : > { %9051 = vmatpush3.bf16.msra.mxu1 %v10654_v7 }
 0x576   : > { %9070 = vmatprep.subr.bf16.mxu1 %v10649_v11 }
 0x578   : > { %9053 = vmatmul.mubr.msk.bf16.vlgmr.msra.gmra.mrb[136].mxu1 %vm531_vm2, %v10443_v20 }
 0x579   : > { %9071 = vmatpush3.bf16.msra.mxu1 %v10649_v11  ;;  %9056 = vmatprep.mubr.msk.bf16.mxu1 %vm531_vm2, %v10449_v21 }
 0x57a   : > { %9072 = vmatprep.subr.bf16.mxu1 %v10647_v15 }
 0x57d   : > { %9073 = vmatpush3.bf16.msra.mxu1 %v10647_v15 }
 0x57e   : > { %9074 = vmatprep.subr.bf16.mxu1 %v10657_v3 }
 0x580   : > { %9057 = vmatmul.mubr.msk.bf16.gmra.mrb[140].mxu1 %vm531_vm2, %v10461_v22 }
 0x581   : > { %9075 = vmatpush3.bf16.msra.mxu1 %v10657_v3  ;;  %9078 = vmatprep.mubr.msk.bf16.mxu1 %vm531_vm2, %v10467_v23 }
 0x582   : > { %9076 = vmatprep.subr.bf16.mxu1 %v10654_v7 }
 0x585   : > { %9077 = vmatpush3.bf16.msra.mxu1 %v10654_v7 }
 0x586   : > { %9933 = vmatprep.subr.msk.bf16.mxu1 %vm421_vm0, %v7875_v63 }
 0x588   : > { %9079 = vmatmul.mubr.msk.bf16.vlgmr.msra.gmra.mrb[144].mxu1 %vm531_vm2, %v10479_v24 }
 0x589   : > { %9082 = vmatprep.mubr.msk.bf16.mxu1 %vm531_vm2, %v10485_v25  ;;  %9097 = vmatpush3.bf16.msra.mxu1 %v4004_v1 }
 0x590   : > { %9083 = vmatmul.mubr.msk.bf16.gmra.mrb[148].mxu1 %vm531_vm2, %v11818_v46 }
 0x5db   : > { %v8872_v47 = vpop.f32.mrb[80].mxu1 }
 0x5dc   : > { %v2566_v50 = vpop.f32.mrb[81].mxu1 }
 0x5dd   : > { %v8873_v51 = vpop.f32.mrb[82].mxu1 }
 0x5de   : > { %v2598_v52 = vpack.c.bf16 %v8873_v51, %v8872_v47  ;;  %v2569_v53 = vpop.f32.mrb[83].mxu1 }
 0x5df   : > { %v2597_v54 = vpack.c.bf16 %v2569_v53, %v2566_v50 }
 0x5e1   : > { %8880 = vmatprep.mubr.msk.bf16.mxu0 %vm408_vm1, %v2597_v54 }
 0x5e2   : > { %8881 = vmatmul.mubr.msk.bf16.vlgmr.msra.gmra.mrb[24].mxu0 %vm408_vm1, %v2598_v52 }
 0x5e3   : > { %v8876_v57 = vpop.f32.mrb[84].mxu1  ;;  %8905 = vmatpush3.bf16.msra.mxu0 %v2781_v55 }
 0x5e4   : > { %v2582_v58 = vpop.f32.mrb[85].mxu1  ;;  %9926 = vmatprep.subr.msk.bf16.mxu0 %vm421_vm0, %v7816_v56 }
 0x5e5   : > { %v8877_v59 = vpop.f32.mrb[86].mxu1 }
 0x5e6   : > { %v2600_v60 = vpack.c.bf16 %v8877_v59, %v8876_v57  ;;  %v2585_v61 = vpop.f32.mrb[87].mxu1  ;;  %v3417_v59 = vsel %vm421_vm0, %v7843_v44, 0 }
 0x5e7   : > { %v2599_v62 = vpack.c.bf16 %v2585_v61, %v2582_v58 }
 0x5e9   : > { %8884 = vmatprep.mubr.msk.bf16.mxu0 %vm408_vm1, %v2599_v62 }
 0x5ea   : > { %8885 = vmatmul.mubr.msk.bf16.gmra.mrb[28].mxu0 %vm408_vm1, %v2600_v60  ;;  %v7852_v60 = vld [vmem:[%s11787_s4 + $0x3c] sm:$0xf] }
 0x5eb   : > { %v8898_v0 = vpop.f32.mrb[88].mxu1 }
 0x5ec   : > { %v2731_v5 = vpop.f32.mrb[89].mxu1 }
 0x5ed   : > { %v8899_v9 = vpop.f32.mrb[90].mxu1 }
 0x5ee   : > { %v2763_v10 = vpack.c.bf16 %v8899_v9, %v8898_v0  ;;  %v2734_v13 = vpop.f32.mrb[91].mxu1 }
 0x5ef   : > { %v2762_v16 = vpack.c.bf16 %v2734_v13, %v2731_v5 }
 0x5f1   : > { %8906 = vmatprep.mubr.msk.bf16.mxu0 %vm408_vm1, %v2762_v16 }
 0x5f2   : > { %8907 = vmatmul.mubr.msk.bf16.vlgmr.msra.gmra.mrb[24].mxu0 %vm408_vm1, %v2763_v10 }
 0x5f3   : > { %v8902_v19 = vpop.f32.mrb[92].mxu1  ;;  %8931 = vmatpush3.bf16.msra.mxu0 %v2940_v17 }
 0x5f4   : > { %v2747_v20 = vpop.f32.mrb[93].mxu1  ;;  %9927 = vmatprep.subr.msk.bf16.mxu0 %vm421_vm0, %v7825_v18 }
 0x5f5   : > { %v8903_v21 = vpop.f32.mrb[94].mxu1 }
 0x5f6   : > { %v2765_v22 = vpack.c.bf16 %v8903_v21, %v8902_v19  ;;  %v2750_v23 = vpop.f32.mrb[95].mxu1  ;;  %v3576_v19 = vsel %vm421_vm0, %v7852_v60, 0 }
 0x5f7   : > { %v2764_v24 = vpack.c.bf16 %v2750_v23, %v2747_v20  ;;  %v7861_v20 = vld [vmem:[%s11787_s4 + $0x40] sm:$0xf] }
 0x5f9   : > { %8910 = vmatprep.mubr.msk.bf16.mxu0 %vm408_vm1, %v2764_v24 }
 0x5fa   : > { %8911 = vmatmul.mubr.msk.bf16.gmra.mrb[28].mxu0 %vm408_vm1, %v2765_v22 }
 0x5fb   : > { %v8924_v25 = vpop.f32.mrb[96].mxu1 }
 0x5fc   : > { %v2890_v34 = vpop.f32.mrb[97].mxu1 }
 0x5fd   : > { %v8925_v15 = vpop.f32.mrb[98].mxu1 }
 0x5fe   : > { %v2922_v28 = vpack.c.bf16 %v8925_v15, %v8924_v25  ;;  %v2893_v49 = vpop.f32.mrb[99].mxu1 }
 0x5ff   : > { %v2921_v8 = vpack.c.bf16 %v2893_v49, %v2890_v34 }
 0x601   : > { %8932 = vmatprep.mubr.msk.bf16.mxu0 %vm408_vm1, %v2921_v8 }
 0x602   : > { %8933 = vmatmul.mubr.msk.bf16.vlgmr.msra.gmra.mrb[24].mxu0 %vm408_vm1, %v2922_v28 }
 0x603   : > { %v8928_v48 = vpop.f32.mrb[100].mxu1  ;;  %8957 = vmatpush3.bf16.msra.mxu0 %v3099_v39 }
 0x604   : > { %v2906_v11 = vpop.f32.mrb[101].mxu1  ;;  %9928 = vmatprep.subr.msk.bf16.mxu0 %vm421_vm0, %v7834_v43 }
 0x605   : > { %v8929_v12 = vpop.f32.mrb[102].mxu1 }
 0x606   : > { %v2924_v31 = vpack.c.bf16 %v8929_v12, %v8928_v48  ;;  %v2909_v42 = vpop.f32.mrb[103].mxu1  ;;  %v3735_v48 = vsel %vm421_vm0, %v7861_v20, 0 }
 0x607   : > { %v2923_v4 = vpack.c.bf16 %v2909_v42, %v2906_v11  ;;  %v7870_v11 = vld [vmem:[%s11787_s4 + $0x44] sm:$0xf] }
 0x609   : > { %8936 = vmatprep.mubr.msk.bf16.mxu0 %vm408_vm1, %v2923_v4 }
 0x60a   : > { %8937 = vmatmul.mubr.msk.bf16.gmra.mrb[28].mxu0 %vm408_vm1, %v2924_v31 }
 0x60b   : > { %v8950_v38 = vpop.f32.mrb[104].mxu1 }
 0x60c   : > { %v3049_v37 = vpop.f32.mrb[105].mxu1 }
 0x60d   : > { %v8951_v6 = vpop.f32.mrb[106].mxu1 }
 0x60e   : > { %v3081_v41 = vpack.c.bf16 %v8951_v6, %v8950_v38  ;;  %v3052_v7 = vpop.f32.mrb[107].mxu1 }
 0x60f   : > { %v3080_v3 = vpack.c.bf16 %v3052_v7, %v3049_v37 }
 0x611   : > { %8958 = vmatprep.mubr.msk.bf16.mxu0 %vm408_vm1, %v3080_v3 }
 0x612   : > { %8959 = vmatmul.mubr.msk.bf16.vlgmr.msra.gmra.mrb[24].mxu0 %vm408_vm1, %v3081_v41 }
 0x613   : > { %v8954_v45 = vpop.f32.mrb[108].mxu1  ;;  %8983 = vmatpush3.bf16.msra.mxu0 %v3258_v32 }
 0x614   : > { %v3065_v46 = vpop.f32.mrb[109].mxu1  ;;  %9929 = vmatprep.subr.msk.bf16.mxu0 %vm421_vm0, %v7843_v44 }
 0x615   : > { %v8955_v47 = vpop.f32.mrb[110].mxu1 }
 0x616   : > { %v3083_v50 = vpack.c.bf16 %v8955_v47, %v8954_v45  ;;  %v3068_v51 = vpop.f32.mrb[111].mxu1  ;;  %v3894_v45 = vsel %vm421_vm0, %v7870_v11, 0 }
 0x617   : > { %v3082_v52 = vpack.c.bf16 %v3068_v51, %v3065_v46 }
 0x619   : > { %8962 = vmatprep.mubr.msk.bf16.mxu0 %vm408_vm1, %v3082_v52 }
 0x61a   : > { %8963 = vmatmul.mubr.msk.bf16.gmra.mrb[28].mxu0 %vm408_vm1, %v3083_v50 }
 0x61b   : > { %v8976_v53 = vpop.f32.mrb[112].mxu1 }
 0x61c   : > { %v3208_v54 = vpop.f32.mrb[113].mxu1 }
 0x61d   : > { %v8977_v55 = vpop.f32.mrb[114].mxu1 }
 0x61e   : > { %v3240_v56 = vpack.c.bf16 %v8977_v55, %v8976_v53  ;;  %v3211_v57 = vpop.f32.mrb[115].mxu1 }
 0x61f   : > { %v3239_v58 = vpack.c.bf16 %v3211_v57, %v3208_v54 }
 0x621   : > { %8984 = vmatprep.mubr.msk.bf16.mxu0 %vm408_vm1, %v3239_v58 }
 0x622   : > { %8985 = vmatmul.mubr.msk.bf16.vlgmr.msra.gmra.mrb[24].mxu0 %vm408_vm1, %v3240_v56 }
 0x623   : > { %v8980_v61 = vpop.f32.mrb[116].mxu1  ;;  %9009 = vmatpush3.bf16.msra.mxu0 %v3417_v59 }
 0x624   : > { %v3224_v62 = vpop.f32.mrb[117].mxu1  ;;  %9930 = vmatprep.subr.msk.bf16.mxu0 %vm421_vm0, %v7852_v60 }
 0x625   : > { %v8981_v63 = vpop.f32.mrb[118].mxu1 }
 0x626   : > { %v3242_v0 = vpack.c.bf16 %v8981_v63, %v8980_v61  ;;  %v3227_v1 = vpop.f32.mrb[119].mxu1 }
 0x627   : > { %v3241_v5 = vpack.c.bf16 %v3227_v1, %v3224_v62 }
 0x629   : > { %8988 = vmatprep.mubr.msk.bf16.mxu0 %vm408_vm1, %v3241_v5  ;;  %v7882_v5 = vld [vmem:[%s11785_s2 + $0x8] sm:$0xf] }
 0x62a   : > { %8989 = vmatmul.mubr.msk.bf16.gmra.mrb[28].mxu0 %vm408_vm1, %v3242_v0 }
 0x62b   : > { %v9002_v9 = vpop.f32.mrb[120].mxu1 }
 0x62c   : > { %v3367_v10 = vpop.f32.mrb[121].mxu1 }
 0x62d   : > { %v9003_v13 = vpop.f32.mrb[122].mxu1 }
 0x62e   : > { %v3399_v16 = vpack.c.bf16 %v9003_v13, %v9002_v9  ;;  %v3370_v17 = vpop.f32.mrb[123].mxu1  ;;  %v4114_v9 = vsel %vm421_vm0, %v7882_v5, 0 }
 0x62f   : > { %v3398_v18 = vpack.c.bf16 %v3370_v17, %v3367_v10  ;;  %v7802_v10 = vld [vmem:[%s11788_s5 + $0x1] ss:$0 sm:$0xff] }
 0x631   : > { %9010 = vmatprep.mubr.msk.bf16.mxu0 %vm408_vm1, %v3398_v18 }
 0x632   : > { %9011 = vmatmul.mubr.msk.bf16.vlgmr.msra.gmra.mrb[24].mxu0 %vm408_vm1, %v3399_v16 }
 0x633   : > { %v9006_v21 = vpop.f32.mrb[124].mxu1  ;;  %9035 = vmatpush3.bf16.msra.mxu0 %v3576_v19 }
 0x634   : > { %v3383_v22 = vpop.f32.mrb[125].mxu1  ;;  %9931 = vmatprep.subr.msk.bf16.mxu0 %vm421_vm0, %v7861_v20 }
 0x635   : > { %v9007_v23 = vpop.f32.mrb[126].mxu1 }
 0x636   : > { %v3401_v24 = vpack.c.bf16 %v9007_v23, %v9006_v21  ;;  %v3386_v25 = vpop.f32.mrb[127].mxu1 }
 0x637   : > { %v3400_v34 = vpack.c.bf16 %v3386_v25, %v3383_v22 }
 0x639   : > { %9014 = vmatprep.mubr.msk.bf16.mxu0 %vm408_vm1, %v3400_v34 }
 0x63a   : > { %9015 = vmatmul.mubr.msk.bf16.gmra.mrb[28].mxu0 %vm408_vm1, %v3401_v24 }
 0x63b   : > { %v9028_v15 = vpop.f32.mrb[128].mxu1 }
 0x63c   : > { %v3526_v28 = vpop.f32.mrb[129].mxu1 }
 0x63d   : > { %v9029_v49 = vpop.f32.mrb[130].mxu1 }
 0x63e   : > { %v3558_v8 = vpack.c.bf16 %v9029_v49, %v9028_v15  ;;  %v3529_v39 = vpop.f32.mrb[131].mxu1 }
 0x63f   : > { %v3557_v43 = vpack.c.bf16 %v3529_v39, %v3526_v28 }
 0x641   : > { %9036 = vmatprep.mubr.msk.bf16.mxu0 %vm408_vm1, %v3557_v43 }
 0x642   : > { %9037 = vmatmul.mubr.msk.bf16.vlgmr.msra.gmra.mrb[24].mxu0 %vm408_vm1, %v3558_v8 }
 0x643   : > { %v9032_v12 = vpop.f32.mrb[132].mxu1  ;;  %9061 = vmatpush3.bf16.msra.mxu0 %v3735_v48 }
 0x644   : > { %v3542_v31 = vpop.f32.mrb[133].mxu1  ;;  %9932 = vmatprep.subr.msk.bf16.mxu0 %vm421_vm0, %v7870_v11 }
 0x645   : > { %v9033_v42 = vpop.f32.mrb[134].mxu1 }
 0x646   : > { %v3560_v4 = vpack.c.bf16 %v9033_v42, %v9032_v12  ;;  %v3545_v38 = vpop.f32.mrb[135].mxu1 }
 0x647   : > { %v3559_v37 = vpack.c.bf16 %v3545_v38, %v3542_v31 }
 0x649   : > { %9040 = vmatprep.mubr.msk.bf16.mxu0 %vm408_vm1, %v3559_v37 }
 0x64a   : > { %9041 = vmatmul.mubr.msk.bf16.gmra.mrb[28].mxu0 %vm408_vm1, %v3560_v4 }
 0x64b   : > { %v9054_v6 = vpop.f32.mrb[136].mxu1 }
 0x64c   : > { %v3685_v41 = vpop.f32.mrb[137].mxu1 }
 0x64d   : > { %v9055_v7 = vpop.f32.mrb[138].mxu1 }
 0x64e   : > { %v3717_v3 = vpack.c.bf16 %v9055_v7, %v9054_v6  ;;  %v3688_v32 = vpop.f32.mrb[139].mxu1  ;;  %v10898_v7 = vld [vmem:[%s11784_s1] sm:$0xff]  }
 0x64f   : > { %v3716_v44 = vpack.c.bf16 %v3688_v32, %v3685_v41 }
 0x651   : > { %9062 = vmatprep.mubr.msk.bf16.mxu0 %vm408_vm1, %v3716_v44 }
 0x652   : > { %9063 = vmatmul.mubr.msk.bf16.vlgmr.msra.gmra.mrb[24].mxu0 %vm408_vm1, %v3717_v3  ;;  %v7877_v3 = vld [vmem:[%s11790_s7 + $0x1] ss:$0 sm:$0xff] }
 0x653   : > { %v9058_v46 = vpop.f32.mrb[140].mxu1  ;;  %9087 = vmatpush3.bf16.msra.mxu0 %v3894_v45 }
 0x654   : > { %v3701_v47 = vpop.f32.mrb[141].mxu1  ;;  %9934 = vmatprep.subr.msk.bf16.mxu0 %vm421_vm0, %v7882_v5  ;;  %v11821_v5 = vmax.f32 %v10617_v40, 0.0 }
 0x655   : > { %v9059_v50 = vpop.f32.mrb[142].mxu1 }
 0x656   : > { %v3719_v51 = vpack.c.bf16 %v9059_v50, %v9058_v46  ;;  %v3704_v52 = vpop.f32.mrb[143].mxu1 }
 0x657   : > { %v3718_v53 = vpack.c.bf16 %v3704_v52, %v3701_v47 }
 0x659   : > { %9066 = vmatprep.mubr.msk.bf16.mxu0 %vm408_vm1, %v3718_v53 }
 0x65a   : > { %9067 = vmatmul.mubr.msk.bf16.gmra.mrb[28].mxu0 %vm408_vm1, %v3719_v51 }
 0x65b   : > { %v9080_v54 = vpop.f32.mrb[144].mxu1 }
 0x65c   : > { %v3844_v55 = vpop.f32.mrb[145].mxu1 }
 0x65d   : > { %v9081_v56 = vpop.f32.mrb[146].mxu1 }
 0x65e   : > { %v3876_v57 = vpack.c.bf16 %v9081_v56, %v9080_v54  ;;  %v3847_v58 = vpop.f32.mrb[147].mxu1 }
 0x65f   : > { %v3875_v59 = vpack.c.bf16 %v3847_v58, %v3844_v55  ;;  %v11819_v55 = vmax.f32 %v10599_v14, 0.0 }
 0x661   : > { %9088 = vmatprep.mubr.msk.bf16.mxu0 %vm408_vm1, %v3875_v59 }
 0x662   : > { %9089 = vmatmul.mubr.msk.bf16.vlgmr.msra.gmra.mrb[24].mxu0 %vm408_vm1, %v3876_v57  ;;  %v11820_v57 = vmax.f32 %v10602_v33, 0.0 }
 0x663   : > { %v9084_v60 = vpop.f32.mrb[148].mxu1  ;;  %9107 = vmatpush3.bf16.msra.mxu0 %v4114_v9 }
 0x664   : > { %v3860_v61 = vpop.f32.mrb[149].mxu1 }
 0x665   : > { %v9085_v62 = vpop.f32.mrb[150].mxu1 }
 0x666   : > { %v3878_v63 = vpack.c.bf16 %v9085_v62, %v9084_v60  ;;  %v3863_v0 = vpop.f32.mrb[151].mxu1 }
 0x667   : > { %v3877_v1 = vpack.c.bf16 %v3863_v0, %v3860_v61 }
 0x669   : > { %9092 = vmatprep.mubr.msk.bf16.mxu0 %vm408_vm1, %v3877_v1 }
 0x66a   : > { %9093 = vmatmul.mubr.msk.bf16.gmra.mrb[28].mxu0 %vm408_vm1, %v3878_v63 }
 0x735   : > { %v9090_v13 = vpop.f32.mrb[24].mxu0 }
 0x736   : > { %v9632_v16 = vadd.f32 %v9090_v13, %v7802_v10  ;;  %v3930_v17 = vpop.f32.mrb[25].mxu0  ;;  %v11822_v13 = vmax.f32 %v10621_v26, 0.0 }
 0x737   : > { %v9633_v18 = vadd.f32 %v7802_v10, %v3930_v17  ;;  %v9091_v19 = vpop.f32.mrb[26].mxu0  ;;  %v11823_v17 = vmax.f32 %v10624_v35, 0.0 }
 0x738   : > { %v9634_v20 = vadd.f32 %v9091_v19, %v7802_v10  ;;  %v3933_v21 = vpop.f32.mrb[27].mxu0  ;;  %v3971_v23 = vmax.f32 %v9632_v16, 0.0  ;;  %v11824_v19 = vmax.f32 %v10628_v27, 0.0 }
 0x739   : > { %v9635_v22 = vadd.f32 %v7802_v10, %v3933_v21  ;;  %v3969_v25 = vmax.f32 %v9633_v18, 0.0 }
 0x73a   : > { %v3972_v24 = vmax.f32 %v9634_v20, 0.0 }
 0x73b   : > { %v3970_v34 = vmax.f32 %v9635_v22, 0.0 }
 0x73c   : > { %v3980_v15 = vpack.c.bf16 %v3972_v24, %v3971_v23  ;;  %v7884_v23 = vld [vmem:[%s11786_s3 + $0x2] ss:$0 sm:$0xff] }
 0x73d   : > { %v3979_v28 = vpack.c.bf16 %v3970_v34, %v3969_v25  ;;  %v9094_v49 = vpop.f32.mrb[28].mxu0 }
 0x73e   : > { %v9636_v8 = vadd.f32 %v9094_v49, %v7802_v10  ;;  %v3946_v39 = vpop.f32.mrb[29].mxu0 }
 0x73f   : > { %v9637_v43 = vadd.f32 %v7802_v10, %v3946_v39  ;;  %v9095_v48 = vpop.f32.mrb[30].mxu0  ;;  %9098 = vmatprep.mubr.msk.bf16.mxu1 %vm408_vm1, %v3979_v28 }
 0x740   : > { %v9638_v11 = vadd.f32 %v9095_v48, %v7802_v10  ;;  %v3949_v12 = vpop.f32.mrb[31].mxu0  ;;  %9099 = vmatmul.mubr.msk.bf16.vlgmr.msra.gmra.mrb[152].mxu1 %vm408_vm1, %v3980_v15  ;;  %v3975_v42 = vmax.f32 %v9636_v8, 0.0 }
 0x741   : > { %v9639_v31 = vadd.f32 %v7802_v10, %v3949_v12  ;;  %v3973_v38 = vmax.f32 %v9637_v43, 0.0 }
 0x742   : > { %v3976_v4 = vmax.f32 %v9638_v11, 0.0 }
 0x743   : > { %v3974_v37 = vmax.f32 %v9639_v31, 0.0 }
 0x744   : > { %v3982_v6 = vpack.c.bf16 %v3976_v4, %v3975_v42 }
 0x745   : > { %v3981_v41 = vpack.c.bf16 %v3974_v37, %v3973_v38 }
 0x747   : > { %9102 = vmatprep.mubr.msk.bf16.mxu1 %vm408_vm1, %v3981_v41 }
 0x748   : > { %9103 = vmatmul.mubr.msk.bf16.gmra.mrb[156].mxu1 %vm408_vm1, %v3982_v6 }
 0x749   : > { %9124 = vmatprep.mubr.msk.bf16.mxu1 %vm531_vm2, %v10898_v7 }
 0x813   : > { %v9100_v32 = vpop.f32.mrb[152].mxu1 }
 0x814   : > { %v4049_v44 = vadd.f32 %v9100_v32, %v7877_v3  ;;  %v4040_v45 = vpop.f32.mrb[153].mxu1 }
 0x815   : > { %v4041_v46 = vadd.f32 %v7877_v3, %v4040_v45  ;;  %v9101_v47 = vpop.f32.mrb[154].mxu1 }
 0x816   : > { %v4052_v50 = vadd.f32 %v9101_v47, %v7877_v3  ;;  %v4043_v51 = vpop.f32.mrb[155].mxu1  ;;  %v10911_v54 = vadd.f32 %v4049_v44, %v2418_v2 }
 0x817   : > { %v10907_v52 = vadd.f32 %v4041_v46, %v2416_v36  ;;  %v4044_v53 = vadd.f32 %v7877_v3, %v4043_v51 }
 0x818   : > { %v10915_v56 = vadd.f32 %v4052_v50, %v11819_v55  ;;  %v11808_v61 = vmax.f32 %v10911_v54, 0.0  ;;  %v10988_v55 = vld [vmem:[%s11784_s1 + $0x8] sm:$0xff]  }
 0x819   : > { %v10919_v58 = vadd.f32 %v4044_v53, %v11820_v57  ;;  %v11809_v60 = vmax.f32 %v10907_v52, 0.0  ;;  %v10996_v57 = vld [vmem:[%s11784_s1 + $0x10] sm:$0xff]  }
 0x81a   : > { %v11807_v59 = vmax.f32 %v10915_v56, 0.0 }
 0x81b   : > { %v11806_v29 = vmax.f32 %v10919_v58, 0.0  ;;  %v9104_v36 = vpop.f32.mrb[156].mxu1 }
 0x81c   : > { %v4065_v30 = vadd.f32 %v9104_v36, %v7877_v3  ;;  %v4056_v2 = vpop.f32.mrb[157].mxu1  ;;  %v4090_v63 = vpack.c.bf16 %v11807_v59, %v11808_v61  ;;  %v11006_v36 = vld [vmem:[%s11784_s1 + $0x18] sm:$0xff]  }
 0x81d   : > { %v4089_v14 = vpack.c.bf16 %v11806_v29, %v11809_v60  ;;  %v4057_v62 = vadd.f32 %v7877_v3, %v4056_v2  ;;  %v9105_v33 = vpop.f32.mrb[158].mxu1  ;;  %v11017_v2 = vld [vmem:[%s11784_s1 + $0x20] sm:$0xff]  }
 0x81e   : > { %v4068_v0 = vadd.f32 %v9105_v33, %v7877_v3  ;;  %v4059_v1 = vpop.f32.mrb[159].mxu1  ;;  %v10940_v16 = vadd.f32 %v4065_v30, %v11822_v13  ;;  %v7894_v30 = vld [vmem:[%s11787_s4 + $0x48] sm:$0xf]  ;;  %v11037_v33 = vld [vmem:[%s11784_s1 + $0x30] sm:$0xff]   ;;  %v11091_v13 = vld [vmem:[%s11784_s1 + $0x60] sm:$0xff]  }
 0x81f   : > { %v10935_v9 = vadd.f32 %v4057_v62, %v11821_v5  ;;  %v4060_v10 = vadd.f32 %v7877_v3, %v4059_v1  ;;  %9108 = vmatprep.mubr.msk.bf16.mxu0 %vm408_vm1, %v4089_v14  ;;  %v4279_v14 = vsel %vm421_vm0, %v7894_v30, 0  ;;  %9935 = vmatprep.subr.msk.bf16.mxu0 %vm421_vm0, %v7894_v30  ;;  %v11029_v62 = vld [vmem:[%s11784_s1 + $0x28] sm:$0xff]   ;;  %v11073_v5 = vld [vmem:[%s11784_s1 + $0x50] sm:$0xff]  }
 0x820   : > { %v10944_v18 = vadd.f32 %v4068_v0, %v11823_v17  ;;  %9109 = vmatmul.mubr.msk.bf16.vlgmr.msra.gmra.mrb[32].mxu0 %vm408_vm1, %v4090_v63  ;;  %v11804_v26 = vmax.f32 %v10940_v16, 0.0  ;;  %v11047_v63 = vld [vmem:[%s11784_s1 + $0x38] sm:$0xff]   ;;  %v11055_v0 = vld [vmem:[%s11784_s1 + $0x40] sm:$0xff]   ;;  %v11065_v1 = vld [vmem:[%s11784_s1 + $0x48] sm:$0xff]  }
 0x821   : > { %v10949_v20 = vadd.f32 %v4060_v10, %v11824_v19  ;;  %v11805_v21 = vmax.f32 %v10935_v9, 0.0  ;;  %9133 = vmatpush3.bf16.msra.mxu0 %v4279_v14  ;;  %v11083_v10 = vld [vmem:[%s11784_s1 + $0x58] sm:$0xff]   ;;  %v11101_v17 = vld [vmem:[%s11784_s1 + $0x68] sm:$0xff]   ;;  %v11109_v19 = vld [vmem:[%s11784_s1 + $0x70] sm:$0xff]  }
 0x822   : > { %v11803_v40 = vmax.f32 %v10944_v18, 0.0 }
 0x823   : > { %v11802_v22 = vmax.f32 %v10949_v20, 0.0 }
 0x824   : > { %v4092_v27 = vpack.c.bf16 %v11803_v40, %v11804_v26 }
 0x825   : > { %v4091_v35 = vpack.c.bf16 %v11802_v22, %v11805_v21 }
 0x827   : > { %9112 = vmatprep.mubr.msk.bf16.mxu0 %vm408_vm1, %v4091_v35  ;;  %v11119_v35 = vld [vmem:[%s11784_s1 + $0x78] sm:$0xff]  }
 0x828   : > { %9113 = vmatmul.mubr.msk.bf16.gmra.mrb[36].mxu0 %vm408_vm1, %v4092_v27  ;;  %v11127_v27 = vld [vmem:[%s11784_s1 + $0x80] sm:$0xff]  }
 0x8f3   : > { %v9110_v24 = vpop.f32.mrb[32].mxu0 }
 0x8f4   : > { %v4159_v25 = vadd.f32 %v9110_v24, %v7884_v23  ;;  %v4150_v34 = vpop.f32.mrb[33].mxu0  ;;  %v11145_v24 = vld [vmem:[%s11784_s1 + $0x90] sm:$0xff]  }
 0x8f5   : > { %v4151_v15 = vadd.f32 %v7884_v23, %v4150_v34  ;;  %v9111_v28 = vpop.f32.mrb[34].mxu0  ;;  %v11163_v34 = vld [vmem:[%s11784_s1 + $0xa0] sm:$0xff]  }
 0x8f6   : > { %v4162_v49 = vadd.f32 %v9111_v28, %v7884_v23  ;;  %v4153_v8 = vpop.f32.mrb[35].mxu0  ;;  %v4183_v43 = vmax.f32 %v4159_v25, 0.0  ;;  %v11155_v25 = vld [vmem:[%s11784_s1 + $0x98] sm:$0xff]   ;;  %v11181_v28 = vld [vmem:[%s11784_s1 + $0xb0] sm:$0xff]  }
 0x8f7   : > { %v4154_v39 = vadd.f32 %v7884_v23, %v4153_v8  ;;  %v4181_v11 = vmax.f32 %v4151_v15, 0.0  ;;  %v11173_v15 = vld [vmem:[%s11784_s1 + $0xa8] sm:$0xff]   ;;  %v11199_v8 = vld [vmem:[%s11784_s1 + $0xc0] sm:$0xff]  }
 0x8f8   : > { %v4184_v48 = vmax.f32 %v4162_v49, 0.0  ;;  %v11191_v49 = vld [vmem:[%s11784_s1 + $0xb8] sm:$0xff]  }
 0x8f9   : > { %v4182_v12 = vmax.f32 %v4154_v39, 0.0  ;;  %v7904_v39 = vld [vmem:[%s11787_s4 + $0x4c] sm:$0xf] }
 0x8fa   : > { %v10968_v31 = vpack.c.bf16 %v4184_v48, %v4183_v43  ;;  %9936 = vmatprep.subr.msk.bf16.mxu0 %vm421_vm0, %v7904_v39  ;;  %v11213_v43 = vld [vmem:[%s11784_s1 + $0xc8] sm:$0xff]   ;;  %v11221_v48 = vld [vmem:[%s11784_s1 + $0xd0] sm:$0xff]  }
 0x8fb   : > { %v10970_v42 = vpack.c.bf16 %v4182_v12, %v4181_v11  ;;  %v9114_v4 = vpop.f32.mrb[36].mxu0  ;;  %v11231_v11 = vld [vmem:[%s11784_s1 + $0xd8] sm:$0xff]   ;;  %v11239_v12 = vld [vmem:[%s11784_s1 + $0xe0] sm:$0xff]  }
 0x8fc   : > { %v4175_v38 = vadd.f32 %v9114_v4, %v7884_v23  ;;  %v4166_v37 = vpop.f32.mrb[37].mxu0  ;;  %v11249_v4 = vld [vmem:[%s11784_s1 + $0xe8] sm:$0xff]  }
 0x8fd   : > { %v4167_v6 = vadd.f32 %v7884_v23, %v4166_v37  ;;  %v9115_v41 = vpop.f32.mrb[38].mxu0  ;;  %9116 = vmatprep.subr.bf16.mxu1 %v10970_v42  ;;  %v11267_v37 = vld [vmem:[%s11784_s1 + $0xf8] sm:$0xff]  }
 0x8fe   : > { %v4178_v3 = vadd.f32 %v9115_v41, %v7884_v23  ;;  %v4169_v32 = vpop.f32.mrb[39].mxu0  ;;  %9117 = vmatpush3.bf16.msra.mxu1 %v10970_v42  ;;  %v4187_v45 = vmax.f32 %v4175_v38, 0.0  ;;  %v11257_v38 = vld [vmem:[%s11784_s1 + $0xf0] sm:$0xff]   ;;  %v11298_v41 = vld [vmem:[%s11784_s1 + $0x118] sm:$0xff]  }
 0x8ff   : > { %v4170_v44 = vadd.f32 %v7884_v23, %v4169_v32  ;;  %9118 = vmatprep.subr.bf16.mxu1 %v10968_v31  ;;  %v4185_v47 = vmax.f32 %v4167_v6, 0.0  ;;  %v11137_v23 = vld [vmem:[%s11784_s1 + $0x88] sm:$0xff]   ;;  %v11291_v6 = vld [vmem:[%s11784_s1 + $0x110] sm:$0xff]   ;;  %11825 = vst [vmem:[#allocation2_spill] sm:$0xff] %v11298_v41 }
 0x900   : > { %v4188_v46 = vmax.f32 %v4178_v3, 0.0 }
 0x901   : > { %v4186_v50 = vmax.f32 %v4170_v44, 0.0 }
 0x902   : > { %v10975_v51 = vpack.c.bf16 %v4188_v46, %v4187_v45  ;;  %9119 = vmatpush3.bf16.msra.mxu1 %v10968_v31 }
 0x903   : > { %v10978_v53 = vpack.c.bf16 %v4186_v50, %v4185_v47  ;;  %v4444_v50 = vsel %vm421_vm0, %v7904_v39, 0  ;;  %v7972_v39 = vld [vmem:[%s11789_s6 + $0x8] sm:$0xf] }
 0x905   : > { %9120 = vmatprep.subr.bf16.mxu1 %v10978_v53 }
 0x906   : > { %9121 = vmatpush3.bf16.msra.mxu1 %v10978_v53 }
 0x907   : > { %9122 = vmatprep.subr.bf16.mxu1 %v10975_v51 }
 0x90a   : > { %9123 = vmatpush3.bf16.msra.mxu1 %v10975_v51 }
 0x90b   : > { %9142 = vmatprep.subr.bf16.mxu1 %v10970_v42 }
 0x90d   : > { %9125 = vmatmul.mubr.msk.bf16.vlgmr.msra.gmra.mrb[160].mxu1 %vm531_vm2, %v10988_v55 }
 0x90e   : > { %9143 = vmatpush3.bf16.msra.mxu1 %v10970_v42  ;;  %9128 = vmatprep.mubr.msk.bf16.mxu1 %vm531_vm2, %v10996_v57 }
 0x90f   : > { %9144 = vmatprep.subr.bf16.mxu1 %v10968_v31 }
 0x912   : > { %9145 = vmatpush3.bf16.msra.mxu1 %v10968_v31 }
 0x913   : > { %9146 = vmatprep.subr.bf16.mxu1 %v10978_v53 }
 0x915   : > { %9129 = vmatmul.mubr.msk.bf16.gmra.mrb[164].mxu1 %vm531_vm2, %v11006_v36 }
 0x916   : > { %9147 = vmatpush3.bf16.msra.mxu1 %v10978_v53  ;;  %9150 = vmatprep.mubr.msk.bf16.mxu1 %vm531_vm2, %v11017_v2 }
 0x917   : > { %9148 = vmatprep.subr.bf16.mxu1 %v10975_v51 }
 0x91a   : > { %9149 = vmatpush3.bf16.msra.mxu1 %v10975_v51 }
 0x91b   : > { %9168 = vmatprep.subr.bf16.mxu1 %v10970_v42 }
 0x91d   : > { %9151 = vmatmul.mubr.msk.bf16.vlgmr.msra.gmra.mrb[168].mxu1 %vm531_vm2, %v11029_v62 }
 0x91e   : > { %9169 = vmatpush3.bf16.msra.mxu1 %v10970_v42  ;;  %9154 = vmatprep.mubr.msk.bf16.mxu1 %vm531_vm2, %v11037_v33 }
 0x91f   : > { %9170 = vmatprep.subr.bf16.mxu1 %v10968_v31 }
 0x922   : > { %9171 = vmatpush3.bf16.msra.mxu1 %v10968_v31 }
 0x923   : > { %9172 = vmatprep.subr.bf16.mxu1 %v10978_v53 }
 0x925   : > { %9155 = vmatmul.mubr.msk.bf16.gmra.mrb[172].mxu1 %vm531_vm2, %v11047_v63 }
 0x926   : > { %9173 = vmatpush3.bf16.msra.mxu1 %v10978_v53  ;;  %9176 = vmatprep.mubr.msk.bf16.mxu1 %vm531_vm2, %v11055_v0 }
 0x927   : > { %9174 = vmatprep.subr.bf16.mxu1 %v10975_v51 }
 0x92a   : > { %9175 = vmatpush3.bf16.msra.mxu1 %v10975_v51 }
 0x92b   : > { %9194 = vmatprep.subr.bf16.mxu1 %v10970_v42 }
 0x92d   : > { %9177 = vmatmul.mubr.msk.bf16.vlgmr.msra.gmra.mrb[176].mxu1 %vm531_vm2, %v11065_v1 }
 0x92e   : > { %9195 = vmatpush3.bf16.msra.mxu1 %v10970_v42  ;;  %9180 = vmatprep.mubr.msk.bf16.mxu1 %vm531_vm2, %v11073_v5 }
 0x92f   : > { %9196 = vmatprep.subr.bf16.mxu1 %v10968_v31 }
 0x932   : > { %9197 = vmatpush3.bf16.msra.mxu1 %v10968_v31 }
 0x933   : > { %9198 = vmatprep.subr.bf16.mxu1 %v10978_v53 }
 0x935   : > { %9181 = vmatmul.mubr.msk.bf16.gmra.mrb[180].mxu1 %vm531_vm2, %v11083_v10 }
 0x936   : > { %9199 = vmatpush3.bf16.msra.mxu1 %v10978_v53  ;;  %9202 = vmatprep.mubr.msk.bf16.mxu1 %vm531_vm2, %v11091_v13 }
 0x937   : > { %9200 = vmatprep.subr.bf16.mxu1 %v10975_v51 }
 0x93a   : > { %9201 = vmatpush3.bf16.msra.mxu1 %v10975_v51 }
 0x93b   : > { %9220 = vmatprep.subr.bf16.mxu1 %v10970_v42 }
 0x93d   : > { %9203 = vmatmul.mubr.msk.bf16.vlgmr.msra.gmra.mrb[184].mxu1 %vm531_vm2, %v11101_v17 }
 0x93e   : > { %9221 = vmatpush3.bf16.msra.mxu1 %v10970_v42  ;;  %9206 = vmatprep.mubr.msk.bf16.mxu1 %vm531_vm2, %v11109_v19 }
 0x93f   : > { %9222 = vmatprep.subr.bf16.mxu1 %v10968_v31 }
 0x942   : > { %9223 = vmatpush3.bf16.msra.mxu1 %v10968_v31 }
 0x943   : > { %9224 = vmatprep.subr.bf16.mxu1 %v10978_v53 }
 0x945   : > { %9207 = vmatmul.mubr.msk.bf16.gmra.mrb[188].mxu1 %vm531_vm2, %v11119_v35 }
 0x946   : > { %9225 = vmatpush3.bf16.msra.mxu1 %v10978_v53  ;;  %9228 = vmatprep.mubr.msk.bf16.mxu1 %vm531_vm2, %v11127_v27 }
 0x947   : > { %9226 = vmatprep.subr.bf16.mxu1 %v10975_v51 }
 0x94a   : > { %9227 = vmatpush3.bf16.msra.mxu1 %v10975_v51 }
 0x94b   : > { %9246 = vmatprep.subr.bf16.mxu1 %v10970_v42 }
 0x94d   : > { %9229 = vmatmul.mubr.msk.bf16.vlgmr.msra.gmra.mrb[192].mxu1 %vm531_vm2, %v11137_v23 }
 0x94e   : > { %9247 = vmatpush3.bf16.msra.mxu1 %v10970_v42  ;;  %9232 = vmatprep.mubr.msk.bf16.mxu1 %vm531_vm2, %v11145_v24 }
 0x94f   : > { %9248 = vmatprep.subr.bf16.mxu1 %v10968_v31 }
 0x952   : > { %9249 = vmatpush3.bf16.msra.mxu1 %v10968_v31 }
 0x953   : > { %9250 = vmatprep.subr.bf16.mxu1 %v10978_v53 }
 0x955   : > { %9233 = vmatmul.mubr.msk.bf16.gmra.mrb[196].mxu1 %vm531_vm2, %v11155_v25 }
 0x956   : > { %9251 = vmatpush3.bf16.msra.mxu1 %v10978_v53  ;;  %9254 = vmatprep.mubr.msk.bf16.mxu1 %vm531_vm2, %v11163_v34 }
 0x957   : > { %9252 = vmatprep.subr.bf16.mxu1 %v10975_v51 }
 0x95a   : > { %9253 = vmatpush3.bf16.msra.mxu1 %v10975_v51 }
 0x95b   : > { %9272 = vmatprep.subr.bf16.mxu1 %v10970_v42 }
 0x95d   : > { %9255 = vmatmul.mubr.msk.bf16.vlgmr.msra.gmra.mrb[200].mxu1 %vm531_vm2, %v11173_v15 }
 0x95e   : > { %9273 = vmatpush3.bf16.msra.mxu1 %v10970_v42  ;;  %9258 = vmatprep.mubr.msk.bf16.mxu1 %vm531_vm2, %v11181_v28 }
 0x95f   : > { %9274 = vmatprep.subr.bf16.mxu1 %v10968_v31 }
 0x962   : > { %9275 = vmatpush3.bf16.msra.mxu1 %v10968_v31 }
 0x963   : > { %9276 = vmatprep.subr.bf16.mxu1 %v10978_v53 }
 0x965   : > { %9259 = vmatmul.mubr.msk.bf16.gmra.mrb[204].mxu1 %vm531_vm2, %v11191_v49 }
 0x966   : > { %9277 = vmatpush3.bf16.msra.mxu1 %v10978_v53  ;;  %9280 = vmatprep.mubr.msk.bf16.mxu1 %vm531_vm2, %v11199_v8 }
 0x967   : > { %9278 = vmatprep.subr.bf16.mxu1 %v10975_v51 }
 0x96a   : > { %9279 = vmatpush3.bf16.msra.mxu1 %v10975_v51 }
 0x96b   : > { %9298 = vmatprep.subr.bf16.mxu1 %v10970_v42 }
 0x96d   : > { %9281 = vmatmul.mubr.msk.bf16.vlgmr.msra.gmra.mrb[208].mxu1 %vm531_vm2, %v11213_v43 }
 0x96e   : > { %9299 = vmatpush3.bf16.msra.mxu1 %v10970_v42  ;;  %9284 = vmatprep.mubr.msk.bf16.mxu1 %vm531_vm2, %v11221_v48 }
 0x96f   : > { %9300 = vmatprep.subr.bf16.mxu1 %v10968_v31 }
 0x972   : > { %9301 = vmatpush3.bf16.msra.mxu1 %v10968_v31 }
 0x973   : > { %9302 = vmatprep.subr.bf16.mxu1 %v10978_v53 }
 0x975   : > { %9285 = vmatmul.mubr.msk.bf16.gmra.mrb[212].mxu1 %vm531_vm2, %v11231_v11 }
 0x976   : > { %9303 = vmatpush3.bf16.msra.mxu1 %v10978_v53  ;;  %9306 = vmatprep.mubr.msk.bf16.mxu1 %vm531_vm2, %v11239_v12 }
 0x977   : > { %9304 = vmatprep.subr.bf16.mxu1 %v10975_v51 }
 0x97a   : > { %9305 = vmatpush3.bf16.msra.mxu1 %v10975_v51 }
 0x97b   : > { %9324 = vmatprep.subr.bf16.mxu1 %v10970_v42 }
 0x97d   : > { %9307 = vmatmul.mubr.msk.bf16.vlgmr.msra.gmra.mrb[216].mxu1 %vm531_vm2, %v11249_v4 }
 0x97e   : > { %9325 = vmatpush3.bf16.msra.mxu1 %v10970_v42  ;;  %9310 = vmatprep.mubr.msk.bf16.mxu1 %vm531_vm2, %v11257_v38  ;;  %v11275_v42 = vld [vmem:[%s11784_s1 + $0x100] sm:$0xff]  }
 0x97f   : > { %9326 = vmatprep.subr.bf16.mxu1 %v10968_v31 }
 0x982   : > { %9327 = vmatpush3.bf16.msra.mxu1 %v10968_v31  ;;  %v11284_v31 = vld [vmem:[%s11784_s1 + $0x108] sm:$0xff]  }
 0x983   : > { %9328 = vmatprep.subr.bf16.mxu1 %v10978_v53 }
 0x985   : > { %9311 = vmatmul.mubr.msk.bf16.gmra.mrb[220].mxu1 %vm531_vm2, %v11267_v37 }
 0x986   : > { %9329 = vmatpush3.bf16.msra.mxu1 %v10978_v53  ;;  %9332 = vmatprep.mubr.msk.bf16.mxu1 %vm531_vm2, %v11275_v42 }
 0x987   : > { %9330 = vmatprep.subr.bf16.mxu1 %v10975_v51 }
 0x98a   : > { %9331 = vmatpush3.bf16.msra.mxu1 %v10975_v51  ;;  %v7913_v51 = vld [vmem:[%s11787_s4 + $0x50] sm:$0xf] }
 0x98b   : > { %9944 = vmatprep.subr.msk.bf16.mxu1 %vm421_vm0, %v7972_v39 }
 0x98d   : > { %9333 = vmatmul.mubr.msk.bf16.vlgmr.msra.gmra.mrb[224].mxu1 %vm531_vm2, %v11284_v31 }
 0x98e   : > { %9336 = vmatprep.mubr.msk.bf16.mxu1 %vm531_vm2, %v11291_v6 }
 0x995   : > { %9337 = vmatmul.mubr.msk.bf16.gmra.mrb[228].mxu1 %vm531_vm2, %v11298_v41 }
 0x9e0   : > { %v9126_v3 = vpop.f32.mrb[160].mxu1 }
 0x9e1   : > { %v4229_v32 = vpop.f32.mrb[161].mxu1 }
 0x9e2   : > { %v9127_v44 = vpop.f32.mrb[162].mxu1 }
 0x9e3   : > { %v4261_v45 = vpack.c.bf16 %v9127_v44, %v9126_v3  ;;  %v4232_v46 = vpop.f32.mrb[163].mxu1 }
 0x9e4   : > { %v4260_v47 = vpack.c.bf16 %v4232_v46, %v4229_v32 }
 0x9e6   : > { %9134 = vmatprep.mubr.msk.bf16.mxu0 %vm408_vm1, %v4260_v47 }
 0x9e7   : > { %9135 = vmatmul.mubr.msk.bf16.vlgmr.msra.gmra.mrb[40].mxu0 %vm408_vm1, %v4261_v45  ;;  %v5667_v45 = vsel %vm421_vm0, %v7972_v39, 0 }
 0x9e8   : > { %v9130_v53 = vpop.f32.mrb[164].mxu1  ;;  %9159 = vmatpush3.bf16.msra.mxu0 %v4444_v50  ;;  %9351 = vmatpush3.bf16.msra.mxu1 %v5667_v45 }
 0x9e9   : > { %v4245_v30 = vpop.f32.mrb[165].mxu1  ;;  %9937 = vmatprep.subr.msk.bf16.mxu0 %vm421_vm0, %v7913_v51 }
 0x9ea   : > { %v9131_v14 = vpop.f32.mrb[166].mxu1 }
 0x9eb   : > { %v4263_v22 = vpack.c.bf16 %v9131_v14, %v9130_v53  ;;  %v4248_v3 = vpop.f32.mrb[167].mxu1 }
 0x9ec   : > { %v4262_v44 = vpack.c.bf16 %v4248_v3, %v4245_v30  ;;  %v4603_v30 = vsel %vm421_vm0, %v7913_v51, 0 }
 0x9ee   : > { %9138 = vmatprep.mubr.msk.bf16.mxu0 %vm408_vm1, %v4262_v44 }
 0x9ef   : > { %9139 = vmatmul.mubr.msk.bf16.gmra.mrb[44].mxu0 %vm408_vm1, %v4263_v22  ;;  %v7922_v22 = vld [vmem:[%s11787_s4 + $0x54] sm:$0xf] }
 0x9f0   : > { %v9152_v32 = vpop.f32.mrb[168].mxu1 }
 0x9f1   : > { %v4394_v46 = vpop.f32.mrb[169].mxu1 }
 0x9f2   : > { %v9153_v47 = vpop.f32.mrb[170].mxu1 }
 0x9f3   : > { %v4426_v50 = vpack.c.bf16 %v9153_v47, %v9152_v32  ;;  %v4397_v53 = vpop.f32.mrb[171].mxu1 }
 0x9f4   : > { %v4425_v14 = vpack.c.bf16 %v4397_v53, %v4394_v46 }
 0x9f6   : > { %9160 = vmatprep.mubr.msk.bf16.mxu0 %vm408_vm1, %v4425_v14 }
 0x9f7   : > { %9161 = vmatmul.mubr.msk.bf16.vlgmr.msra.gmra.mrb[40].mxu0 %vm408_vm1, %v4426_v50  ;;  %v4762_v50 = vsel %vm421_vm0, %v7922_v22, 0 }
 0x9f8   : > { %v9156_v3 = vpop.f32.mrb[172].mxu1  ;;  %9185 = vmatpush3.bf16.msra.mxu0 %v4603_v30  ;;  %v7931_v30 = vld [vmem:[%s11787_s4 + $0x58] sm:$0xf] }
 0x9f9   : > { %v4410_v44 = vpop.f32.mrb[173].mxu1  ;;  %9938 = vmatprep.subr.msk.bf16.mxu0 %vm421_vm0, %v7922_v22 }
 0x9fa   : > { %v9157_v39 = vpop.f32.mrb[174].mxu1 }
 0x9fb   : > { %v4428_v45 = vpack.c.bf16 %v9157_v39, %v9156_v3  ;;  %v4413_v32 = vpop.f32.mrb[175].mxu1 }
 0x9fc   : > { %v4427_v47 = vpack.c.bf16 %v4413_v32, %v4410_v44 }
 0x9fe   : > { %9164 = vmatprep.mubr.msk.bf16.mxu0 %vm408_vm1, %v4427_v47 }
 0x9ff   : > { %9165 = vmatmul.mubr.msk.bf16.gmra.mrb[44].mxu0 %vm408_vm1, %v4428_v45 }
 0xa00   : > { %v9178_v51 = vpop.f32.mrb[176].mxu1 }
 0xa01   : > { %v4553_v46 = vpop.f32.mrb[177].mxu1 }
 0xa02   : > { %v9179_v53 = vpop.f32.mrb[178].mxu1 }
 0xa03   : > { %v4585_v14 = vpack.c.bf16 %v9179_v53, %v9178_v51  ;;  %v4556_v40 = vpop.f32.mrb[179].mxu1 }
 0xa04   : > { %v4584_v26 = vpack.c.bf16 %v4556_v40, %v4553_v46 }
 0xa06   : > { %9186 = vmatprep.mubr.msk.bf16.mxu0 %vm408_vm1, %v4584_v26 }
 0xa07   : > { %9187 = vmatmul.mubr.msk.bf16.vlgmr.msra.gmra.mrb[40].mxu0 %vm408_vm1, %v4585_v14  ;;  %v4921_v14 = vsel %vm421_vm0, %v7931_v30, 0 }
 0xa08   : > { %v9182_v3 = vpop.f32.mrb[180].mxu1  ;;  %9211 = vmatpush3.bf16.msra.mxu0 %v4762_v50  ;;  %v7940_v50 = vld [vmem:[%s11787_s4 + $0x5c] sm:$0xf] }
 0xa09   : > { %v4569_v44 = vpop.f32.mrb[181].mxu1  ;;  %9939 = vmatprep.subr.msk.bf16.mxu0 %vm421_vm0, %v7931_v30 }
 0xa0a   : > { %v9183_v39 = vpop.f32.mrb[182].mxu1 }
 0xa0b   : > { %v4587_v45 = vpack.c.bf16 %v9183_v39, %v9182_v3  ;;  %v4572_v32 = vpop.f32.mrb[183].mxu1 }
 0xa0c   : > { %v4586_v47 = vpack.c.bf16 %v4572_v32, %v4569_v44 }
 0xa0e   : > { %9190 = vmatprep.mubr.msk.bf16.mxu0 %vm408_vm1, %v4586_v47 }
 0xa0f   : > { %9191 = vmatmul.mubr.msk.bf16.gmra.mrb[44].mxu0 %vm408_vm1, %v4587_v45 }
 0xa10   : > { %v9204_v40 = vpop.f32.mrb[184].mxu1 }
 0xa11   : > { %v4712_v26 = vpop.f32.mrb[185].mxu1 }
 0xa12   : > { %v9205_v22 = vpop.f32.mrb[186].mxu1 }
 0xa13   : > { %v4744_v51 = vpack.c.bf16 %v9205_v22, %v9204_v40  ;;  %v4715_v46 = vpop.f32.mrb[187].mxu1 }
 0xa14   : > { %v4743_v53 = vpack.c.bf16 %v4715_v46, %v4712_v26 }
 0xa16   : > { %9212 = vmatprep.mubr.msk.bf16.mxu0 %vm408_vm1, %v4743_v53 }
 0xa17   : > { %9213 = vmatmul.mubr.msk.bf16.vlgmr.msra.gmra.mrb[40].mxu0 %vm408_vm1, %v4744_v51  ;;  %v5080_v51 = vsel %vm421_vm0, %v7940_v50, 0 }
 0xa18   : > { %v9208_v3 = vpop.f32.mrb[188].mxu1  ;;  %9237 = vmatpush3.bf16.msra.mxu0 %v4921_v14  ;;  %v7949_v14 = vld [vmem:[%s11787_s4 + $0x60] sm:$0xf] }
 0xa19   : > { %v4728_v44 = vpop.f32.mrb[189].mxu1  ;;  %9940 = vmatprep.subr.msk.bf16.mxu0 %vm421_vm0, %v7940_v50 }
 0xa1a   : > { %v9209_v39 = vpop.f32.mrb[190].mxu1 }
 0xa1b   : > { %v4746_v45 = vpack.c.bf16 %v9209_v39, %v9208_v3  ;;  %v4731_v32 = vpop.f32.mrb[191].mxu1 }
 0xa1c   : > { %v4745_v47 = vpack.c.bf16 %v4731_v32, %v4728_v44 }
 0xa1e   : > { %9216 = vmatprep.mubr.msk.bf16.mxu0 %vm408_vm1, %v4745_v47 }
 0xa1f   : > { %9217 = vmatmul.mubr.msk.bf16.gmra.mrb[44].mxu0 %vm408_vm1, %v4746_v45 }
 0xa20   : > { %v9230_v30 = vpop.f32.mrb[192].mxu1 }
 0xa21   : > { %v4871_v40 = vpop.f32.mrb[193].mxu1 }
 0xa22   : > { %v9231_v26 = vpop.f32.mrb[194].mxu1 }
 0xa23   : > { %v4903_v22 = vpack.c.bf16 %v9231_v26, %v9230_v30  ;;  %v4874_v46 = vpop.f32.mrb[195].mxu1 }
 0xa24   : > { %v4902_v53 = vpack.c.bf16 %v4874_v46, %v4871_v40 }
 0xa26   : > { %9238 = vmatprep.mubr.msk.bf16.mxu0 %vm408_vm1, %v4902_v53 }
 0xa27   : > { %9239 = vmatmul.mubr.msk.bf16.vlgmr.msra.gmra.mrb[40].mxu0 %vm408_vm1, %v4903_v22  ;;  %v5239_v22 = vsel %vm421_vm0, %v7949_v14, 0 }
 0xa28   : > { %v9234_v3 = vpop.f32.mrb[196].mxu1  ;;  %9263 = vmatpush3.bf16.msra.mxu0 %v5080_v51  ;;  %v7958_v51 = vld [vmem:[%s11787_s4 + $0x64] sm:$0xf] }
 0xa29   : > { %v4887_v44 = vpop.f32.mrb[197].mxu1  ;;  %9941 = vmatprep.subr.msk.bf16.mxu0 %vm421_vm0, %v7949_v14 }
 0xa2a   : > { %v9235_v39 = vpop.f32.mrb[198].mxu1 }
 0xa2b   : > { %v4905_v45 = vpack.c.bf16 %v9235_v39, %v9234_v3  ;;  %v4890_v32 = vpop.f32.mrb[199].mxu1 }
 0xa2c   : > { %v4904_v47 = vpack.c.bf16 %v4890_v32, %v4887_v44 }
 0xa2e   : > { %9242 = vmatprep.mubr.msk.bf16.mxu0 %vm408_vm1, %v4904_v47 }
 0xa2f   : > { %9243 = vmatmul.mubr.msk.bf16.gmra.mrb[44].mxu0 %vm408_vm1, %v4905_v45 }
 0xa30   : > { %v9256_v50 = vpop.f32.mrb[200].mxu1 }
 0xa31   : > { %v5030_v30 = vpop.f32.mrb[201].mxu1 }
 0xa32   : > { %v9257_v40 = vpop.f32.mrb[202].mxu1 }
 0xa33   : > { %v5062_v26 = vpack.c.bf16 %v9257_v40, %v9256_v50  ;;  %v5033_v46 = vpop.f32.mrb[203].mxu1 }
 0xa34   : > { %v5061_v53 = vpack.c.bf16 %v5033_v46, %v5030_v30 }
 0xa36   : > { %9264 = vmatprep.mubr.msk.bf16.mxu0 %vm408_vm1, %v5061_v53 }
 0xa37   : > { %9265 = vmatmul.mubr.msk.bf16.vlgmr.msra.gmra.mrb[40].mxu0 %vm408_vm1, %v5062_v26  ;;  %v5398_v26 = vsel %vm421_vm0, %v7958_v51, 0 }
 0xa38   : > { %v9260_v3 = vpop.f32.mrb[204].mxu1  ;;  %9289 = vmatpush3.bf16.msra.mxu0 %v5239_v22  ;;  %v7967_v22 = vld [vmem:[%s11787_s4 + $0x68] sm:$0xf] }
 0xa39   : > { %v5046_v44 = vpop.f32.mrb[205].mxu1  ;;  %9942 = vmatprep.subr.msk.bf16.mxu0 %vm421_vm0, %v7958_v51 }
 0xa3a   : > { %v9261_v39 = vpop.f32.mrb[206].mxu1 }
 0xa3b   : > { %v5064_v45 = vpack.c.bf16 %v9261_v39, %v9260_v3  ;;  %v5049_v32 = vpop.f32.mrb[207].mxu1 }
 0xa3c   : > { %v5063_v47 = vpack.c.bf16 %v5049_v32, %v5046_v44 }
 0xa3e   : > { %9268 = vmatprep.mubr.msk.bf16.mxu0 %vm408_vm1, %v5063_v47 }
 0xa3f   : > { %9269 = vmatmul.mubr.msk.bf16.gmra.mrb[44].mxu0 %vm408_vm1, %v5064_v45 }
 0xa40   : > { %v9282_v14 = vpop.f32.mrb[208].mxu1 }
 0xa41   : > { %v5189_v50 = vpop.f32.mrb[209].mxu1 }
 0xa42   : > { %v9283_v30 = vpop.f32.mrb[210].mxu1 }
 0xa43   : > { %v5221_v40 = vpack.c.bf16 %v9283_v30, %v9282_v14  ;;  %v5192_v46 = vpop.f32.mrb[211].mxu1 }
 0xa44   : > { %v5220_v53 = vpack.c.bf16 %v5192_v46, %v5189_v50 }
 0xa46   : > { %9290 = vmatprep.mubr.msk.bf16.mxu0 %vm408_vm1, %v5220_v53 }
 0xa47   : > { %9291 = vmatmul.mubr.msk.bf16.vlgmr.msra.gmra.mrb[40].mxu0 %vm408_vm1, %v5221_v40  ;;  %v5557_v40 = vsel %vm421_vm0, %v7967_v22, 0 }
 0xa48   : > { %v9286_v3 = vpop.f32.mrb[212].mxu1  ;;  %9315 = vmatpush3.bf16.msra.mxu0 %v5398_v26 }
 0xa49   : > { %v5205_v44 = vpop.f32.mrb[213].mxu1  ;;  %9943 = vmatprep.subr.msk.bf16.mxu0 %vm421_vm0, %v7967_v22 }
 0xa4a   : > { %v9287_v39 = vpop.f32.mrb[214].mxu1 }
 0xa4b   : > { %v5223_v45 = vpack.c.bf16 %v9287_v39, %v9286_v3  ;;  %v5208_v32 = vpop.f32.mrb[215].mxu1 }
 0xa4c   : > { %v5222_v47 = vpack.c.bf16 %v5208_v32, %v5205_v44 }
 0xa4e   : > { %9294 = vmatprep.mubr.msk.bf16.mxu0 %vm408_vm1, %v5222_v47 }
 0xa4f   : > { %9295 = vmatmul.mubr.msk.bf16.gmra.mrb[44].mxu0 %vm408_vm1, %v5223_v45 }
 0xa50   : > { %v9308_v51 = vpop.f32.mrb[216].mxu1 }
 0xa51   : > { %v5348_v14 = vpop.f32.mrb[217].mxu1 }
 0xa52   : > { %v9309_v50 = vpop.f32.mrb[218].mxu1 }
 0xa53   : > { %v5380_v30 = vpack.c.bf16 %v9309_v50, %v9308_v51  ;;  %v5351_v46 = vpop.f32.mrb[219].mxu1 }
 0xa54   : > { %v5379_v53 = vpack.c.bf16 %v5351_v46, %v5348_v14 }
 0xa56   : > { %9316 = vmatprep.mubr.msk.bf16.mxu0 %vm408_vm1, %v5379_v53 }
 0xa57   : > { %9317 = vmatmul.mubr.msk.bf16.vlgmr.msra.gmra.mrb[40].mxu0 %vm408_vm1, %v5380_v30 }
 0xa58   : > { %v9312_v26 = vpop.f32.mrb[220].mxu1  ;;  %9341 = vmatpush3.bf16.msra.mxu0 %v5557_v40 }
 0xa59   : > { %v5364_v3 = vpop.f32.mrb[221].mxu1 }
 0xa5a   : > { %v9313_v44 = vpop.f32.mrb[222].mxu1 }
 0xa5b   : > { %v5382_v39 = vpack.c.bf16 %v9313_v44, %v9312_v26  ;;  %v5367_v32 = vpop.f32.mrb[223].mxu1 }
 0xa5c   : > { %v5381_v47 = vpack.c.bf16 %v5367_v32, %v5364_v3 }
 0xa5e   : > { %9320 = vmatprep.mubr.msk.bf16.mxu0 %vm408_vm1, %v5381_v47  ;;  %v7899_v47 = vld [vmem:[%s11788_s5 + $0x2] ss:$0 sm:$0xff] }
 0xa5f   : > { %9321 = vmatmul.mubr.msk.bf16.gmra.mrb[44].mxu0 %vm408_vm1, %v5382_v39  ;;  %v7979_v39 = vld [vmem:[%s11785_s2 + $0xc] sm:$0xf] }
 0xa60   : > { %v9334_v45 = vpop.f32.mrb[224].mxu1  ;;  %9945 = vmatprep.subr.msk.bf16.mxu0 %vm421_vm0, %v7979_v39  ;;  %v5777_v32 = vsel %vm421_vm0, %v7979_v39, 0 }
 0xa61   : > { %v5507_v51 = vpop.f32.mrb[225].mxu1 }
 0xa62   : > { %v9335_v14 = vpop.f32.mrb[226].mxu1 }
 0xa63   : > { %v5539_v50 = vpack.c.bf16 %v9335_v14, %v9334_v45  ;;  %v5510_v22 = vpop.f32.mrb[227].mxu1 }
 0xa64   : > { %v5538_v46 = vpack.c.bf16 %v5510_v22, %v5507_v51 }
 0xa66   : > { %9342 = vmatprep.mubr.msk.bf16.mxu0 %vm408_vm1, %v5538_v46 }
 0xa67   : > { %9343 = vmatmul.mubr.msk.bf16.vlgmr.msra.gmra.mrb[40].mxu0 %vm408_vm1, %v5539_v50 }
 0xa68   : > { %v9338_v30 = vpop.f32.mrb[228].mxu1  ;;  %9361 = vmatpush3.bf16.msra.mxu0 %v5777_v32 }
 0xa69   : > { %v5523_v53 = vpop.f32.mrb[229].mxu1 }
 0xa6a   : > { %v9339_v40 = vpop.f32.mrb[230].mxu1 }
 0xa6b   : > { %v5541_v26 = vpack.c.bf16 %v9339_v40, %v9338_v30  ;;  %v5526_v44 = vpop.f32.mrb[231].mxu1 }
 0xa6c   : > { %v5540_v3 = vpack.c.bf16 %v5526_v44, %v5523_v53 }
 0xa6e   : > { %9346 = vmatprep.mubr.msk.bf16.mxu0 %vm408_vm1, %v5540_v3 }
 0xa6f   : > { %9347 = vmatmul.mubr.msk.bf16.gmra.mrb[44].mxu0 %vm408_vm1, %v5541_v26 }
 0xb3a   : > { %v9344_v45 = vpop.f32.mrb[40].mxu0 }
 0xb3b   : > { %v9640_v51 = vadd.f32 %v9344_v45, %v7899_v47  ;;  %v5593_v14 = vpop.f32.mrb[41].mxu0 }
 0xb3c   : > { %v9641_v50 = vadd.f32 %v7899_v47, %v5593_v14  ;;  %v9345_v22 = vpop.f32.mrb[42].mxu0 }
 0xb3d   : > { %v9642_v46 = vadd.f32 %v9345_v22, %v7899_v47  ;;  %v5596_v30 = vpop.f32.mrb[43].mxu0  ;;  %v5634_v40 = vmax.f32 %v9640_v51, 0.0 }
 0xb3e   : > { %v9643_v53 = vadd.f32 %v7899_v47, %v5596_v30  ;;  %v5632_v44 = vmax.f32 %v9641_v50, 0.0 }
 0xb3f   : > { %v5635_v26 = vmax.f32 %v9642_v46, 0.0 }
 0xb40   : > { %v5633_v3 = vmax.f32 %v9643_v53, 0.0 }
 0xb41   : > { %v5643_v21 = vpack.c.bf16 %v5635_v26, %v5634_v40  ;;  %v11826_v26 = vmax.f32 %v10907_v52, 0.0 }
 0xb42   : > { %v5642_v29 = vpack.c.bf16 %v5633_v3, %v5632_v44  ;;  %v9348_v39 = vpop.f32.mrb[44].mxu0 }
 0xb43   : > { %v9644_v32 = vadd.f32 %v9348_v39, %v7899_v47  ;;  %v5609_v59 = vpop.f32.mrb[45].mxu0  ;;  %v11827_v39 = vmax.f32 %v10911_v54, 0.0 }
 0xb44   : > { %v9645_v61 = vadd.f32 %v7899_v47, %v5609_v59  ;;  %v9349_v60 = vpop.f32.mrb[46].mxu0  ;;  %9352 = vmatprep.mubr.msk.bf16.mxu1 %vm408_vm1, %v5642_v29  ;;  %v7974_v59 = vld [vmem:[%s11790_s7 + $0x2] ss:$0 sm:$0xff] }
 0xb45   : > { %v9646_v45 = vadd.f32 %v9349_v60, %v7899_v47  ;;  %v5612_v41 = vpop.f32.mrb[47].mxu0  ;;  %9353 = vmatmul.mubr.msk.bf16.vlgmr.msra.gmra.mrb[232].mxu1 %vm408_vm1, %v5643_v21  ;;  %v5638_v22 = vmax.f32 %v9644_v32, 0.0 }
 0xb46   : > { %v9647_v14 = vadd.f32 %v7899_v47, %v5612_v41  ;;  %v5636_v51 = vmax.f32 %v9645_v61, 0.0 }
 0xb47   : > { %v5639_v30 = vmax.f32 %v9646_v45, 0.0 }
 0xb48   : > { %v5637_v46 = vmax.f32 %v9647_v14, 0.0  ;;  %v11829_v14 = vmax.f32 %v10919_v58, 0.0 }
 0xb49   : > { %v5645_v50 = vpack.c.bf16 %v5639_v30, %v5638_v22 }
 0xb4a   : > { %v5644_v53 = vpack.c.bf16 %v5637_v46, %v5636_v51 }
 0xb4c   : > { %9356 = vmatprep.mubr.msk.bf16.mxu1 %vm408_vm1, %v5644_v53 }
 0xb4d   : > { %9357 = vmatmul.mubr.msk.bf16.gmra.mrb[236].mxu1 %vm408_vm1, %v5645_v50 }
 0xb4e   : > { %9378 = vmatprep.mubr.msk.bf16.mxu1 %vm531_vm2, %v10898_v7  ;;  %v11828_v7 = vmax.f32 %v10915_v56, 0.0 }
 0xc18   : > { %v9354_v60 = vpop.f32.mrb[232].mxu1 }
 0xc19   : > { %v5712_v29 = vadd.f32 %v9354_v60, %v7974_v59  ;;  %v5703_v21 = vpop.f32.mrb[233].mxu1 }
 0xc1a   : > { %v5704_v41 = vadd.f32 %v7974_v59, %v5703_v21  ;;  %v9355_v47 = vpop.f32.mrb[234].mxu1 }
 0xc1b   : > { %v5715_v61 = vadd.f32 %v9355_v47, %v7974_v59  ;;  %v5706_v40 = vpop.f32.mrb[235].mxu1  ;;  %v11402_v32 = vadd.f32 %v5712_v29, %v11827_v39  ;;  %v11830_v47 = vmax.f32 %v10935_v9, 0.0  ;;  %v11832_v39 = vmax.f32 %v10944_v18, 0.0 }
 0xc1c   : > { %v11398_v44 = vadd.f32 %v5704_v41, %v11826_v26  ;;  %v5707_v3 = vadd.f32 %v7974_v59, %v5706_v40  ;;  %v11831_v26 = vmax.f32 %v10940_v16, 0.0 }
 0xc1d   : > { %v11406_v45 = vadd.f32 %v5715_v61, %v11828_v7  ;;  %v5744_v50 = vmax.f32 %v11402_v32, 0.0 }
 0xc1e   : > { %v11410_v22 = vadd.f32 %v5707_v3, %v11829_v14  ;;  %v5742_v51 = vmax.f32 %v11398_v44, 0.0  ;;  %v11833_v14 = vmax.f32 %v10949_v20, 0.0 }
 0xc1f   : > { %v11816_v30 = vmax.f32 %v11406_v45, 0.0 }
 0xc20   : > { %v11815_v52 = vmax.f32 %v11410_v22, 0.0  ;;  %v9358_v46 = vpop.f32.mrb[236].mxu1 }
 0xc21   : > { %v5728_v54 = vadd.f32 %v9358_v46, %v7974_v59  ;;  %v5719_v53 = vpop.f32.mrb[237].mxu1  ;;  %v5753_v29 = vpack.c.bf16 %v11816_v30, %v5744_v50 }
 0xc22   : > { %v5752_v56 = vpack.c.bf16 %v11815_v52, %v5742_v51  ;;  %v5720_v60 = vadd.f32 %v7974_v59, %v5719_v53  ;;  %v9359_v58 = vpop.f32.mrb[238].mxu1 }
 0xc23   : > { %v5731_v21 = vadd.f32 %v9359_v58, %v7974_v59  ;;  %v5722_v41 = vpop.f32.mrb[239].mxu1  ;;  %v11431_v3 = vadd.f32 %v5728_v54, %v11831_v26  ;;  %v7981_v54 = vld [vmem:[%s11786_s3 + $0x3] ss:$0 sm:$0xff] }
 0xc24   : > { %v11426_v61 = vadd.f32 %v5720_v60, %v11830_v47  ;;  %v5723_v40 = vadd.f32 %v7974_v59, %v5722_v41  ;;  %9362 = vmatprep.mubr.msk.bf16.mxu0 %vm408_vm1, %v5752_v56 }
 0xc25   : > { %v11435_v7 = vadd.f32 %v5731_v21, %v11832_v39  ;;  %9363 = vmatmul.mubr.msk.bf16.vlgmr.msra.gmra.mrb[48].mxu0 %vm408_vm1, %v5753_v29  ;;  %v11814_v16 = vmax.f32 %v11431_v3, 0.0  ;;  %v11837_v44 = vmax.f32 %v11431_v3, 0.0 }
 0xc26   : > { %v11440_v46 = vadd.f32 %v5723_v40, %v11833_v14  ;;  %v11813_v59 = vmax.f32 %v11426_v61, 0.0 }
 0xc27   : > { %v11812_v9 = vmax.f32 %v11435_v7, 0.0 }
 0xc28   : > { %v11811_v53 = vmax.f32 %v11440_v46, 0.0 }
 0xc29   : > { %v5755_v20 = vpack.c.bf16 %v11812_v9, %v11814_v16 }
 0xc2a   : > { %v5754_v18 = vpack.c.bf16 %v11811_v53, %v11813_v59 }
 0xc2c   : > { %9366 = vmatprep.mubr.msk.bf16.mxu0 %vm408_vm1, %v5754_v18 }
 0xc2d   : > { %9367 = vmatmul.mubr.msk.bf16.gmra.mrb[52].mxu0 %vm408_vm1, %v5755_v20 }
 0xcf8   : > { %v9364_v56 = vpop.f32.mrb[48].mxu0 }
 0xcf9   : > { %v5822_v60 = vadd.f32 %v9364_v56, %v7981_v54  ;;  %v5813_v58 = vpop.f32.mrb[49].mxu0 }
 0xcfa   : > { %v5814_v29 = vadd.f32 %v7981_v54, %v5813_v58  ;;  %v9365_v21 = vpop.f32.mrb[50].mxu0 }
 0xcfb   : > { %v5825_v41 = vadd.f32 %v9365_v21, %v7981_v54  ;;  %v5816_v47 = vpop.f32.mrb[51].mxu0  ;;  %v5846_v26 = vmax.f32 %v5822_v60, 0.0 }
 0xcfc   : > { %v5817_v40 = vadd.f32 %v7981_v54, %v5816_v47  ;;  %v5844_v14 = vmax.f32 %v5814_v29, 0.0 }
 0xcfd   : > { %v5847_v39 = vmax.f32 %v5825_v41, 0.0 }
 0xcfe   : > { %v5845_v53 = vmax.f32 %v5817_v40, 0.0 }
 0xcff   : > { %v11459_v9 = vpack.c.bf16 %v5847_v39, %v5846_v26  ;;  %v8028_v39 = vld [vmem:[%s11787_s4 + $0x7c] sm:$0xf] }
 0xd00   : > { %v11461_v18 = vpack.c.bf16 %v5845_v53, %v5844_v14  ;;  %v9368_v20 = vpop.f32.mrb[52].mxu0 }
 0xd01   : > { %v5838_v59 = vadd.f32 %v9368_v20, %v7981_v54  ;;  %v5829_v16 = vpop.f32.mrb[53].mxu0 }
 0xd02   : > { %v5830_v52 = vadd.f32 %v7981_v54, %v5829_v16  ;;  %v9369_v30 = vpop.f32.mrb[54].mxu0  ;;  %9370 = vmatprep.subr.bf16.mxu1 %v11461_v18 }
 0xd03   : > { %v5841_v56 = vadd.f32 %v9369_v30, %v7981_v54  ;;  %v5832_v58 = vpop.f32.mrb[55].mxu0  ;;  %9371 = vmatpush3.bf16.msra.mxu1 %v11461_v18  ;;  %v5850_v60 = vmax.f32 %v5838_v59, 0.0  ;;  %v7991_v30 = vld [vmem:[%s11787_s4 + $0x6c] sm:$0xf] }
 0xd04   : > { %v5833_v21 = vadd.f32 %v7981_v54, %v5832_v58  ;;  %9372 = vmatprep.subr.bf16.mxu1 %v11459_v9  ;;  %v5848_v41 = vmax.f32 %v5830_v52, 0.0  ;;  %9946 = vmatprep.subr.msk.bf16.mxu0 %vm421_vm0, %v7991_v30 }
 0xd05   : > { %v5851_v29 = vmax.f32 %v5841_v56, 0.0 }
 0xd06   : > { %v5849_v47 = vmax.f32 %v5833_v21, 0.0 }
 0xd07   : > { %v11466_v53 = vpack.c.bf16 %v5851_v29, %v5850_v60  ;;  %9373 = vmatpush3.bf16.msra.mxu1 %v11459_v9 }
 0xd08   : > { %v11469_v40 = vpack.c.bf16 %v5849_v47, %v5848_v41 }
 0xd0a   : > { %9374 = vmatprep.subr.bf16.mxu1 %v11469_v40 }
 0xd0b   : > { %9375 = vmatpush3.bf16.msra.mxu1 %v11469_v40 }
 0xd0c   : > { %9376 = vmatprep.subr.bf16.mxu1 %v11466_v53 }
 0xd0f   : > { %9377 = vmatpush3.bf16.msra.mxu1 %v11466_v53 }
 0xd10   : > { %9396 = vmatprep.subr.bf16.mxu1 %v11461_v18 }
 0xd12   : > { %9379 = vmatmul.mubr.msk.bf16.vlgmr.msra.gmra.mrb[240].mxu1 %vm531_vm2, %v10988_v55  ;;  %v5942_v55 = vsel %vm421_vm0, %v7991_v30, 0  ;;  %v6584_v30 = vsel %vm421_vm0, %v8028_v39, 0 }
 0xd13   : > { %9397 = vmatpush3.bf16.msra.mxu1 %v11461_v18  ;;  %9382 = vmatprep.mubr.msk.bf16.mxu1 %vm531_vm2, %v10996_v57  ;;  %v8001_v57 = vld [vmem:[%s11787_s4 + $0x70] sm:$0xf] }
 0xd14   : > { %9398 = vmatprep.subr.bf16.mxu1 %v11459_v9  ;;  %9387 = vmatpush3.bf16.msra.mxu0 %v5942_v55  ;;  %v8037_v55 = vld [vmem:[%s11787_s4 + $0x80] sm:$0xf] }
 0xd15   : > { %9947 = vmatprep.subr.msk.bf16.mxu0 %vm421_vm0, %v8001_v57 }
 0xd17   : > { %9399 = vmatpush3.bf16.msra.mxu1 %v11459_v9 }
 0xd18   : > { %9400 = vmatprep.subr.bf16.mxu1 %v11469_v40 }
 0xd1a   : > { %9383 = vmatmul.mubr.msk.bf16.gmra.mrb[244].mxu1 %vm531_vm2, %v11006_v36  ;;  %v11834_v36 = vld [vmem:[#allocation2_spill] sm:$0xff] }
 0xd1b   : > { %9401 = vmatpush3.bf16.msra.mxu1 %v11469_v40  ;;  %9404 = vmatprep.mubr.msk.bf16.mxu1 %vm531_vm2, %v11017_v2 }
 0xd1c   : > { %9402 = vmatprep.subr.bf16.mxu1 %v11466_v53 }
 0xd1f   : > { %9403 = vmatpush3.bf16.msra.mxu1 %v11466_v53 }
 0xd20   : > { %9422 = vmatprep.subr.bf16.mxu1 %v11461_v18 }
 0xd22   : > { %9405 = vmatmul.mubr.msk.bf16.vlgmr.msra.gmra.mrb[248].mxu1 %vm531_vm2, %v11029_v62 }
 0xd23   : > { %9423 = vmatpush3.bf16.msra.mxu1 %v11461_v18  ;;  %9408 = vmatprep.mubr.msk.bf16.mxu1 %vm531_vm2, %v11037_v33 }
 0xd24   : > { %9424 = vmatprep.subr.bf16.mxu1 %v11459_v9 }
 0xd27   : > { %9425 = vmatpush3.bf16.msra.mxu1 %v11459_v9 }
 0xd28   : > { %9426 = vmatprep.subr.bf16.mxu1 %v11469_v40 }
 0xd2a   : > { %9409 = vmatmul.mubr.msk.bf16.gmra.mrb[252].mxu1 %vm531_vm2, %v11047_v63 }
 0xd2b   : > { %9427 = vmatpush3.bf16.msra.mxu1 %v11469_v40  ;;  %9430 = vmatprep.mubr.msk.bf16.mxu1 %vm531_vm2, %v11055_v0 }
 0xd2c   : > { %9428 = vmatprep.subr.bf16.mxu1 %v11466_v53 }
 0xd2f   : > { %9429 = vmatpush3.bf16.msra.mxu1 %v11466_v53 }
 0xd30   : > { %9448 = vmatprep.subr.bf16.mxu1 %v11461_v18 }
 0xd32   : > { %9431 = vmatmul.mubr.msk.bf16.vlgmr.msra.gmra.mrb[0].mxu1 %vm531_vm2, %v11065_v1 }
 0xd33   : > { %9449 = vmatpush3.bf16.msra.mxu1 %v11461_v18  ;;  %9434 = vmatprep.mubr.msk.bf16.mxu1 %vm531_vm2, %v11073_v5  ;;  %v6107_v5 = vsel %vm421_vm0, %v8001_v57, 0 }
 0xd34   : > { %9450 = vmatprep.subr.bf16.mxu1 %v11459_v9 }
 0xd37   : > { %9451 = vmatpush3.bf16.msra.mxu1 %v11459_v9 }
 0xd38   : > { %9452 = vmatprep.subr.bf16.mxu1 %v11469_v40 }
 0xd3a   : > { %9435 = vmatmul.mubr.msk.bf16.gmra.mrb[4].mxu1 %vm531_vm2, %v11083_v10  ;;  %v8010_v10 = vld [vmem:[%s11787_s4 + $0x74] sm:$0xf] }
 0xd3b   : > { %9453 = vmatpush3.bf16.msra.mxu1 %v11469_v40  ;;  %9456 = vmatprep.mubr.msk.bf16.mxu1 %vm531_vm2, %v11091_v13 }
 0xd3c   : > { %9454 = vmatprep.subr.bf16.mxu1 %v11466_v53 }
 0xd3f   : > { %9455 = vmatpush3.bf16.msra.mxu1 %v11466_v53 }
 0xd40   : > { %9474 = vmatprep.subr.bf16.mxu1 %v11461_v18 }
 0xd42   : > { %9457 = vmatmul.mubr.msk.bf16.vlgmr.msra.gmra.mrb[8].mxu1 %vm531_vm2, %v11101_v17 }
 0xd43   : > { %9475 = vmatpush3.bf16.msra.mxu1 %v11461_v18  ;;  %9460 = vmatprep.mubr.msk.bf16.mxu1 %vm531_vm2, %v11109_v19 }
 0xd44   : > { %9476 = vmatprep.subr.bf16.mxu1 %v11459_v9 }
 0xd47   : > { %9477 = vmatpush3.bf16.msra.mxu1 %v11459_v9 }
 0xd48   : > { %9478 = vmatprep.subr.bf16.mxu1 %v11469_v40 }
 0xd4a   : > { %9461 = vmatmul.mubr.msk.bf16.gmra.mrb[12].mxu1 %vm531_vm2, %v11119_v35 }
 0xd4b   : > { %9479 = vmatpush3.bf16.msra.mxu1 %v11469_v40  ;;  %9482 = vmatprep.mubr.msk.bf16.mxu1 %vm531_vm2, %v11127_v27 }
 0xd4c   : > { %9480 = vmatprep.subr.bf16.mxu1 %v11466_v53 }
 0xd4f   : > { %9481 = vmatpush3.bf16.msra.mxu1 %v11466_v53 }
 0xd50   : > { %9500 = vmatprep.subr.bf16.mxu1 %v11461_v18 }
 0xd52   : > { %9483 = vmatmul.mubr.msk.bf16.vlgmr.msra.gmra.mrb[16].mxu1 %vm531_vm2, %v11137_v23 }
 0xd53   : > { %9501 = vmatpush3.bf16.msra.mxu1 %v11461_v18  ;;  %9486 = vmatprep.mubr.msk.bf16.mxu1 %vm531_vm2, %v11145_v24  ;;  %v8069_v24 = vld [vmem:[%s11789_s6 + $0xc] sm:$0xf] }
 0xd54   : > { %9502 = vmatprep.subr.bf16.mxu1 %v11459_v9 }
 0xd57   : > { %9503 = vmatpush3.bf16.msra.mxu1 %v11459_v9 }
 0xd58   : > { %9504 = vmatprep.subr.bf16.mxu1 %v11469_v40 }
 0xd5a   : > { %9487 = vmatmul.mubr.msk.bf16.gmra.mrb[20].mxu1 %vm531_vm2, %v11155_v25 }
 0xd5b   : > { %9505 = vmatpush3.bf16.msra.mxu1 %v11469_v40  ;;  %9508 = vmatprep.mubr.msk.bf16.mxu1 %vm531_vm2, %v11163_v34  ;;  %v7330_v34 = vsel %vm421_vm0, %v8069_v24, 0 }
 0xd5c   : > { %9506 = vmatprep.subr.bf16.mxu1 %v11466_v53 }
 0xd5f   : > { %9507 = vmatpush3.bf16.msra.mxu1 %v11466_v53 }
 0xd60   : > { %9526 = vmatprep.subr.bf16.mxu1 %v11461_v18 }
 0xd62   : > { %9509 = vmatmul.mubr.msk.bf16.vlgmr.msra.gmra.mrb[24].mxu1 %vm531_vm2, %v11173_v15 }
 0xd63   : > { %9527 = vmatpush3.bf16.msra.mxu1 %v11461_v18  ;;  %9512 = vmatprep.mubr.msk.bf16.mxu1 %vm531_vm2, %v11181_v28 }
 0xd64   : > { %9528 = vmatprep.subr.bf16.mxu1 %v11459_v9 }
 0xd67   : > { %9529 = vmatpush3.bf16.msra.mxu1 %v11459_v9 }
 0xd68   : > { %9530 = vmatprep.subr.bf16.mxu1 %v11469_v40 }
 0xd6a   : > { %9513 = vmatmul.mubr.msk.bf16.gmra.mrb[28].mxu1 %vm531_vm2, %v11191_v49 }
 0xd6b   : > { %9531 = vmatpush3.bf16.msra.mxu1 %v11469_v40  ;;  %9534 = vmatprep.mubr.msk.bf16.mxu1 %vm531_vm2, %v11199_v8 }
 0xd6c   : > { %9532 = vmatprep.subr.bf16.mxu1 %v11466_v53 }
 0xd6f   : > { %9533 = vmatpush3.bf16.msra.mxu1 %v11466_v53 }
 0xd70   : > { %9552 = vmatprep.subr.bf16.mxu1 %v11461_v18 }
 0xd72   : > { %9535 = vmatmul.mubr.msk.bf16.vlgmr.msra.gmra.mrb[32].mxu1 %vm531_vm2, %v11213_v43 }
 0xd73   : > { %9553 = vmatpush3.bf16.msra.mxu1 %v11461_v18  ;;  %9538 = vmatprep.mubr.msk.bf16.mxu1 %vm531_vm2, %v11221_v48  ;;  %v6266_v48 = vsel %vm421_vm0, %v8010_v10, 0 }
 0xd74   : > { %9554 = vmatprep.subr.bf16.mxu1 %v11459_v9 }
 0xd77   : > { %9555 = vmatpush3.bf16.msra.mxu1 %v11459_v9 }
 0xd78   : > { %9556 = vmatprep.subr.bf16.mxu1 %v11469_v40 }
 0xd7a   : > { %9539 = vmatmul.mubr.msk.bf16.gmra.mrb[36].mxu1 %vm531_vm2, %v11231_v11  ;;  %v8019_v11 = vld [vmem:[%s11787_s4 + $0x78] sm:$0xf] }
 0xd7b   : > { %9557 = vmatpush3.bf16.msra.mxu1 %v11469_v40  ;;  %9560 = vmatprep.mubr.msk.bf16.mxu1 %vm531_vm2, %v11239_v12  ;;  %v6425_v26 = vsel %vm421_vm0, %v8019_v11, 0 }
 0xd7c   : > { %9558 = vmatprep.subr.bf16.mxu1 %v11466_v53 }
 0xd7f   : > { %9559 = vmatpush3.bf16.msra.mxu1 %v11466_v53 }
 0xd80   : > { %9578 = vmatprep.subr.bf16.mxu1 %v11461_v18 }
 0xd82   : > { %9561 = vmatmul.mubr.msk.bf16.vlgmr.msra.gmra.mrb[40].mxu1 %vm531_vm2, %v11249_v4 }
 0xd83   : > { %9579 = vmatpush3.bf16.msra.mxu1 %v11461_v18  ;;  %9564 = vmatprep.mubr.msk.bf16.mxu1 %vm531_vm2, %v11257_v38 }
 0xd84   : > { %9580 = vmatprep.subr.bf16.mxu1 %v11459_v9 }
 0xd87   : > { %9581 = vmatpush3.bf16.msra.mxu1 %v11459_v9 }
 0xd88   : > { %9582 = vmatprep.subr.bf16.mxu1 %v11469_v40 }
 0xd8a   : > { %9565 = vmatmul.mubr.msk.bf16.gmra.mrb[44].mxu1 %vm531_vm2, %v11267_v37 }
 0xd8b   : > { %9583 = vmatpush3.bf16.msra.mxu1 %v11469_v40  ;;  %9586 = vmatprep.mubr.msk.bf16.mxu1 %vm531_vm2, %v11275_v42 }
 0xd8c   : > { %9584 = vmatprep.subr.bf16.mxu1 %v11466_v53 }
 0xd8f   : > { %9585 = vmatpush3.bf16.msra.mxu1 %v11466_v53 }
 0xd90   : > { %9955 = vmatprep.subr.msk.bf16.mxu1 %vm421_vm0, %v8069_v24 }
 0xd92   : > { %9587 = vmatmul.mubr.msk.bf16.vlgmr.msra.gmra.mrb[48].mxu1 %vm531_vm2, %v11284_v31 }
 0xd93   : > { %9590 = vmatprep.mubr.msk.bf16.mxu1 %vm531_vm2, %v11291_v6  ;;  %9605 = vmatpush3.bf16.msra.mxu1 %v7330_v34 }
 0xd9a   : > { %9591 = vmatmul.mubr.msk.bf16.gmra.mrb[52].mxu1 %vm531_vm2, %v11834_v36 }
 0xde5   : > { %v9380_v2 = vpop.f32.mrb[240].mxu1 }
 0xde6   : > { %v5892_v62 = vpop.f32.mrb[241].mxu1 }
 0xde7   : > { %v9381_v33 = vpop.f32.mrb[242].mxu1 }
 0xde8   : > { %v5924_v63 = vpack.c.bf16 %v9381_v33, %v9380_v2  ;;  %v5895_v0 = vpop.f32.mrb[243].mxu1 }
 0xde9   : > { %v5923_v1 = vpack.c.bf16 %v5895_v0, %v5892_v62 }
 0xdeb   : > { %9388 = vmatprep.mubr.msk.bf16.mxu0 %vm408_vm1, %v5923_v1 }
 0xdec   : > { %9389 = vmatmul.mubr.msk.bf16.vlgmr.msra.gmra.mrb[56].mxu0 %vm408_vm1, %v5924_v63 }
 0xded   : > { %v9384_v13 = vpop.f32.mrb[244].mxu1  ;;  %9413 = vmatpush3.bf16.msra.mxu0 %v6107_v5 }
 0xdee   : > { %v5908_v17 = vpop.f32.mrb[245].mxu1  ;;  %9948 = vmatprep.subr.msk.bf16.mxu0 %vm421_vm0, %v8010_v10 }
 0xdef   : > { %v9385_v19 = vpop.f32.mrb[246].mxu1 }
 0xdf0   : > { %v5926_v35 = vpack.c.bf16 %v9385_v19, %v9384_v13  ;;  %v5911_v27 = vpop.f32.mrb[247].mxu1  ;;  %v6743_v19 = vsel %vm421_vm0, %v8037_v55, 0 }
 0xdf1   : > { %v5925_v23 = vpack.c.bf16 %v5911_v27, %v5908_v17 }
 0xdf3   : > { %9392 = vmatprep.mubr.msk.bf16.mxu0 %vm408_vm1, %v5925_v23 }
 0xdf4   : > { %9393 = vmatmul.mubr.msk.bf16.gmra.mrb[60].mxu0 %vm408_vm1, %v5926_v35  ;;  %v8046_v35 = vld [vmem:[%s11787_s4 + $0x84] sm:$0xf] }
 0xdf5   : > { %v9406_v25 = vpop.f32.mrb[248].mxu1 }
 0xdf6   : > { %v6057_v15 = vpop.f32.mrb[249].mxu1 }
 0xdf7   : > { %v9407_v28 = vpop.f32.mrb[250].mxu1 }
 0xdf8   : > { %v6089_v49 = vpack.c.bf16 %v9407_v28, %v9406_v25  ;;  %v6060_v8 = vpop.f32.mrb[251].mxu1 }
 0xdf9   : > { %v6088_v43 = vpack.c.bf16 %v6060_v8, %v6057_v15 }
 0xdfb   : > { %9414 = vmatprep.mubr.msk.bf16.mxu0 %vm408_vm1, %v6088_v43 }
 0xdfc   : > { %9415 = vmatmul.mubr.msk.bf16.vlgmr.msra.gmra.mrb[56].mxu0 %vm408_vm1, %v6089_v49 }
 0xdfd   : > { %v9410_v12 = vpop.f32.mrb[252].mxu1  ;;  %9439 = vmatpush3.bf16.msra.mxu0 %v6266_v48 }
 0xdfe   : > { %v6073_v4 = vpop.f32.mrb[253].mxu1  ;;  %9949 = vmatprep.subr.msk.bf16.mxu0 %vm421_vm0, %v8019_v11 }
 0xdff   : > { %v9411_v38 = vpop.f32.mrb[254].mxu1 }
 0xe00   : > { %v6091_v37 = vpack.c.bf16 %v9411_v38, %v9410_v12  ;;  %v6076_v42 = vpop.f32.mrb[255].mxu1  ;;  %v6902_v12 = vsel %vm421_vm0, %v8046_v35, 0 }
 0xe01   : > { %v6090_v31 = vpack.c.bf16 %v6076_v42, %v6073_v4  ;;  %v8055_v4 = vld [vmem:[%s11787_s4 + $0x88] sm:$0xf] }
 0xe03   : > { %9418 = vmatprep.mubr.msk.bf16.mxu0 %vm408_vm1, %v6090_v31 }
 0xe04   : > { %9419 = vmatmul.mubr.msk.bf16.gmra.mrb[60].mxu0 %vm408_vm1, %v6091_v37 }
 0xe05   : > { %v9432_v6 = vpop.f32.mrb[0].mxu1 }
 0xe06   : > { %v6216_v52 = vpop.f32.mrb[1].mxu1 }
 0xe07   : > { %v9433_v9 = vpop.f32.mrb[2].mxu1 }
 0xe08   : > { %v6248_v59 = vpack.c.bf16 %v9433_v9, %v9432_v6  ;;  %v6219_v16 = vpop.f32.mrb[3].mxu1 }
 0xe09   : > { %v6247_v54 = vpack.c.bf16 %v6219_v16, %v6216_v52 }
 0xe0b   : > { %9440 = vmatprep.mubr.msk.bf16.mxu0 %vm408_vm1, %v6247_v54 }
 0xe0c   : > { %9441 = vmatmul.mubr.msk.bf16.vlgmr.msra.gmra.mrb[56].mxu0 %vm408_vm1, %v6248_v59 }
 0xe0d   : > { %v9436_v14 = vpop.f32.mrb[4].mxu1  ;;  %9465 = vmatpush3.bf16.msra.mxu0 %v6425_v26 }
 0xe0e   : > { %v6232_v18 = vpop.f32.mrb[5].mxu1  ;;  %9950 = vmatprep.subr.msk.bf16.mxu0 %vm421_vm0, %v8028_v39 }
 0xe0f   : > { %v9437_v20 = vpop.f32.mrb[6].mxu1 }
 0xe10   : > { %v6250_v56 = vpack.c.bf16 %v9437_v20, %v9436_v14  ;;  %v6235_v58 = vpop.f32.mrb[7].mxu1  ;;  %v7061_v14 = vsel %vm421_vm0, %v8055_v4, 0 }
 0xe11   : > { %v6249_v21 = vpack.c.bf16 %v6235_v58, %v6232_v18  ;;  %v8064_v18 = vld [vmem:[%s11787_s4 + $0x8c] sm:$0xf] }
 0xe13   : > { %9444 = vmatprep.mubr.msk.bf16.mxu0 %vm408_vm1, %v6249_v21 }
 0xe14   : > { %9445 = vmatmul.mubr.msk.bf16.gmra.mrb[60].mxu0 %vm408_vm1, %v6250_v56 }
 0xe15   : > { %v9458_v60 = vpop.f32.mrb[8].mxu1 }
 0xe16   : > { %v6375_v29 = vpop.f32.mrb[9].mxu1 }
 0xe17   : > { %v9459_v41 = vpop.f32.mrb[10].mxu1 }
 0xe18   : > { %v6407_v47 = vpack.c.bf16 %v9459_v41, %v9458_v60  ;;  %v6378_v53 = vpop.f32.mrb[11].mxu1 }
 0xe19   : > { %v6406_v40 = vpack.c.bf16 %v6378_v53, %v6375_v29 }
 0xe1b   : > { %9466 = vmatprep.mubr.msk.bf16.mxu0 %vm408_vm1, %v6406_v40 }
 0xe1c   : > { %9467 = vmatmul.mubr.msk.bf16.vlgmr.msra.gmra.mrb[56].mxu0 %vm408_vm1, %v6407_v47 }
 0xe1d   : > { %v9462_v57 = vpop.f32.mrb[12].mxu1  ;;  %9491 = vmatpush3.bf16.msra.mxu0 %v6584_v30 }
 0xe1e   : > { %v6391_v36 = vpop.f32.mrb[13].mxu1  ;;  %9951 = vmatprep.subr.msk.bf16.mxu0 %vm421_vm0, %v8037_v55 }
 0xe1f   : > { %v9463_v2 = vpop.f32.mrb[14].mxu1 }
 0xe20   : > { %v6409_v62 = vpack.c.bf16 %v9463_v2, %v9462_v57  ;;  %v6394_v33 = vpop.f32.mrb[15].mxu1  ;;  %v7220_v57 = vsel %vm421_vm0, %v8064_v18, 0 }
 0xe21   : > { %v6408_v63 = vpack.c.bf16 %v6394_v33, %v6391_v36 }
 0xe23   : > { %9470 = vmatprep.mubr.msk.bf16.mxu0 %vm408_vm1, %v6408_v63 }
 0xe24   : > { %9471 = vmatmul.mubr.msk.bf16.gmra.mrb[60].mxu0 %vm408_vm1, %v6409_v62 }
 0xe25   : > { %v9484_v0 = vpop.f32.mrb[16].mxu1 }
 0xe26   : > { %v6534_v1 = vpop.f32.mrb[17].mxu1 }
 0xe27   : > { %v9485_v5 = vpop.f32.mrb[18].mxu1 }
 0xe28   : > { %v6566_v10 = vpack.c.bf16 %v9485_v5, %v9484_v0  ;;  %v6537_v13 = vpop.f32.mrb[19].mxu1 }
 0xe29   : > { %v6565_v17 = vpack.c.bf16 %v6537_v13, %v6534_v1 }
 0xe2b   : > { %9492 = vmatprep.mubr.msk.bf16.mxu0 %vm408_vm1, %v6565_v17 }
 0xe2c   : > { %9493 = vmatmul.mubr.msk.bf16.vlgmr.msra.gmra.mrb[56].mxu0 %vm408_vm1, %v6566_v10 }
 0xe2d   : > { %v9488_v27 = vpop.f32.mrb[20].mxu1  ;;  %9517 = vmatpush3.bf16.msra.mxu0 %v6743_v19 }
 0xe2e   : > { %v6550_v23 = vpop.f32.mrb[21].mxu1  ;;  %9952 = vmatprep.subr.msk.bf16.mxu0 %vm421_vm0, %v8046_v35 }
 0xe2f   : > { %v9489_v24 = vpop.f32.mrb[22].mxu1 }
 0xe30   : > { %v6568_v25 = vpack.c.bf16 %v9489_v24, %v9488_v27  ;;  %v6553_v34 = vpop.f32.mrb[23].mxu1 }
 0xe31   : > { %v6567_v15 = vpack.c.bf16 %v6553_v34, %v6550_v23 }
 0xe33   : > { %9496 = vmatprep.mubr.msk.bf16.mxu0 %vm408_vm1, %v6567_v15  ;;  %v7413_v15 = vld [vmem:[%s11791_s8] sm:$0xf] }
 0xe34   : > { %9497 = vmatmul.mubr.msk.bf16.gmra.mrb[60].mxu0 %vm408_vm1, %v6568_v25 }
 0xe35   : > { %v9510_v28 = vpop.f32.mrb[24].mxu1 }
 0xe36   : > { %v6693_v49 = vpop.f32.mrb[25].mxu1 }
 0xe37   : > { %v9511_v8 = vpop.f32.mrb[26].mxu1 }
 0xe38   : > { %v6725_v43 = vpack.c.bf16 %v9511_v8, %v9510_v28  ;;  %v6696_v48 = vpop.f32.mrb[27].mxu1  ;;  %v7438_v28 = vsel %vm421_vm0, %v7413_v15, 0 }
 0xe39   : > { %v6724_v11 = vpack.c.bf16 %v6696_v48, %v6693_v49  ;;  %v7996_v49 = vld [vmem:[%s11788_s5 + $0x3] ss:$0 sm:$0xff] }
 0xe3b   : > { %9518 = vmatprep.mubr.msk.bf16.mxu0 %vm408_vm1, %v6724_v11 }
 0xe3c   : > { %9519 = vmatmul.mubr.msk.bf16.vlgmr.msra.gmra.mrb[56].mxu0 %vm408_vm1, %v6725_v43 }
 0xe3d   : > { %v9514_v38 = vpop.f32.mrb[28].mxu1  ;;  %9543 = vmatpush3.bf16.msra.mxu0 %v6902_v12 }
 0xe3e   : > { %v6709_v37 = vpop.f32.mrb[29].mxu1  ;;  %9953 = vmatprep.subr.msk.bf16.mxu0 %vm421_vm0, %v8055_v4 }
 0xe3f   : > { %v9515_v42 = vpop.f32.mrb[30].mxu1 }
 0xe40   : > { %v6727_v31 = vpack.c.bf16 %v9515_v42, %v9514_v38  ;;  %v6712_v6 = vpop.f32.mrb[31].mxu1 }
 0xe41   : > { %v6726_v52 = vpack.c.bf16 %v6712_v6, %v6709_v37 }
 0xe43   : > { %9522 = vmatprep.mubr.msk.bf16.mxu0 %vm408_vm1, %v6726_v52 }
 0xe44   : > { %9523 = vmatmul.mubr.msk.bf16.gmra.mrb[60].mxu0 %vm408_vm1, %v6727_v31 }
 0xe45   : > { %v9536_v9 = vpop.f32.mrb[32].mxu1 }
 0xe46   : > { %v6852_v59 = vpop.f32.mrb[33].mxu1 }
 0xe47   : > { %v9537_v16 = vpop.f32.mrb[34].mxu1 }
 0xe48   : > { %v6884_v54 = vpack.c.bf16 %v9537_v16, %v9536_v9  ;;  %v6855_v26 = vpop.f32.mrb[35].mxu1 }
 0xe49   : > { %v6883_v39 = vpack.c.bf16 %v6855_v26, %v6852_v59 }
 0xe4b   : > { %9544 = vmatprep.mubr.msk.bf16.mxu0 %vm408_vm1, %v6883_v39 }
 0xe4c   : > { %9545 = vmatmul.mubr.msk.bf16.vlgmr.msra.gmra.mrb[56].mxu0 %vm408_vm1, %v6884_v54 }
 0xe4d   : > { %v9540_v20 = vpop.f32.mrb[36].mxu1  ;;  %9569 = vmatpush3.bf16.msra.mxu0 %v7061_v14 }
 0xe4e   : > { %v6868_v56 = vpop.f32.mrb[37].mxu1  ;;  %9954 = vmatprep.subr.msk.bf16.mxu0 %vm421_vm0, %v8064_v18 }
 0xe4f   : > { %v9541_v58 = vpop.f32.mrb[38].mxu1 }
 0xe50   : > { %v6886_v21 = vpack.c.bf16 %v9541_v58, %v9540_v20  ;;  %v6871_v60 = vpop.f32.mrb[39].mxu1 }
 0xe51   : > { %v6885_v29 = vpack.c.bf16 %v6871_v60, %v6868_v56 }
 0xe53   : > { %9548 = vmatprep.mubr.msk.bf16.mxu0 %vm408_vm1, %v6885_v29 }
 0xe54   : > { %9549 = vmatmul.mubr.msk.bf16.gmra.mrb[60].mxu0 %vm408_vm1, %v6886_v21 }
 0xe55   : > { %v9562_v41 = vpop.f32.mrb[40].mxu1 }
 0xe56   : > { %v7011_v47 = vpop.f32.mrb[41].mxu1 }
 0xe57   : > { %v9563_v53 = vpop.f32.mrb[42].mxu1 }
 0xe58   : > { %v7043_v40 = vpack.c.bf16 %v9563_v53, %v9562_v41  ;;  %v7014_v30 = vpop.f32.mrb[43].mxu1  ;;  %v8071_v53 = vld [vmem:[%s11790_s7 + $0x3] ss:$0 sm:$0xff] }
 0xe59   : > { %v7042_v55 = vpack.c.bf16 %v7014_v30, %v7011_v47 }
 0xe5b   : > { %9570 = vmatprep.mubr.msk.bf16.mxu0 %vm408_vm1, %v7042_v55 }
 0xe5c   : > { %9571 = vmatmul.mubr.msk.bf16.vlgmr.msra.gmra.mrb[56].mxu0 %vm408_vm1, %v7043_v40 }
 0xe5d   : > { %v9566_v36 = vpop.f32.mrb[44].mxu1  ;;  %9595 = vmatpush3.bf16.msra.mxu0 %v7220_v57 }
 0xe5e   : > { %v7027_v2 = vpop.f32.mrb[45].mxu1  ;;  %9956 = vmatprep.subr.msk.bf16.mxu0 %vm421_vm0, %v7413_v15 }
 0xe5f   : > { %v9567_v62 = vpop.f32.mrb[46].mxu1 }
 0xe60   : > { %v7045_v33 = vpack.c.bf16 %v9567_v62, %v9566_v36  ;;  %v7030_v63 = vpop.f32.mrb[47].mxu1 }
 0xe61   : > { %v7044_v0 = vpack.c.bf16 %v7030_v63, %v7027_v2 }
 0xe63   : > { %9574 = vmatprep.mubr.msk.bf16.mxu0 %vm408_vm1, %v7044_v0 }
 0xe64   : > { %9575 = vmatmul.mubr.msk.bf16.gmra.mrb[60].mxu0 %vm408_vm1, %v7045_v33 }
 0xe65   : > { %v9588_v1 = vpop.f32.mrb[48].mxu1 }
 0xe66   : > { %v7170_v5 = vpop.f32.mrb[49].mxu1 }
 0xe67   : > { %v9589_v10 = vpop.f32.mrb[50].mxu1 }
 0xe68   : > { %v7202_v13 = vpack.c.bf16 %v9589_v10, %v9588_v1  ;;  %v7173_v17 = vpop.f32.mrb[51].mxu1  ;;  %v11835_v1 = vmax.f32 %v11406_v45, 0.0  ;;  %v11836_v10 = vmax.f32 %v11410_v22, 0.0 }
 0xe69   : > { %v7201_v19 = vpack.c.bf16 %v7173_v17, %v7170_v5 }
 0xe6b   : > { %9596 = vmatprep.mubr.msk.bf16.mxu0 %vm408_vm1, %v7201_v19 }
 0xe6c   : > { %9597 = vmatmul.mubr.msk.bf16.vlgmr.msra.gmra.mrb[56].mxu0 %vm408_vm1, %v7202_v13 }
 0xe6d   : > { %v9592_v35 = vpop.f32.mrb[52].mxu1  ;;  %9615 = vmatpush3.bf16.msra.mxu0 %v7438_v28 }
 0xe6e   : > { %v7186_v27 = vpop.f32.mrb[53].mxu1 }
 0xe6f   : > { %v9593_v23 = vpop.f32.mrb[54].mxu1 }
 0xe70   : > { %v7204_v24 = vpack.c.bf16 %v9593_v23, %v9592_v35  ;;  %v7189_v25 = vpop.f32.mrb[55].mxu1 }
 0xe71   : > { %v7203_v34 = vpack.c.bf16 %v7189_v25, %v7186_v27 }
 0xe73   : > { %9600 = vmatprep.mubr.msk.bf16.mxu0 %vm408_vm1, %v7203_v34 }
 0xe74   : > { %9601 = vmatmul.mubr.msk.bf16.gmra.mrb[60].mxu0 %vm408_vm1, %v7204_v24 }
 0xf3f   : > { %v9598_v8 = vpop.f32.mrb[56].mxu0 }
 0xf40   : > { %v9648_v43 = vadd.f32 %v9598_v8, %v7996_v49  ;;  %v7256_v48 = vpop.f32.mrb[57].mxu0 }
 0xf41   : > { %v9649_v11 = vadd.f32 %v7996_v49, %v7256_v48  ;;  %v9599_v12 = vpop.f32.mrb[58].mxu0 }
 0xf42   : > { %v9650_v4 = vadd.f32 %v9599_v12, %v7996_v49  ;;  %v7259_v38 = vpop.f32.mrb[59].mxu0  ;;  %v7297_v42 = vmax.f32 %v9648_v43, 0.0  ;;  %v11839_v43 = vmax.f32 %v11435_v7, 0.0 }
 0xf43   : > { %v9651_v37 = vadd.f32 %v7996_v49, %v7259_v38  ;;  %v7295_v6 = vmax.f32 %v9649_v11, 0.0  ;;  %v11840_v11 = vmax.f32 %v11440_v46, 0.0  ;;  %v7507_v46 = vld [vmem:[%s11793_s10 + $0x10] sm:$0xff] }
 0xf44   : > { %v7298_v31 = vmax.f32 %v9650_v4, 0.0 }
 0xf45   : > { %v7296_v52 = vmax.f32 %v9651_v37, 0.0 }
 0xf46   : > { %v7306_v9 = vpack.c.bf16 %v7298_v31, %v7297_v42 }
 0xf47   : > { %v7305_v59 = vpack.c.bf16 %v7296_v52, %v7295_v6  ;;  %v9602_v16 = vpop.f32.mrb[60].mxu0 }
 0xf48   : > { %v9652_v54 = vadd.f32 %v9602_v16, %v7996_v49  ;;  %v7272_v26 = vpop.f32.mrb[61].mxu0 }
 0xf49   : > { %v9653_v39 = vadd.f32 %v7996_v49, %v7272_v26  ;;  %v9603_v14 = vpop.f32.mrb[62].mxu0  ;;  %9606 = vmatprep.mubr.msk.bf16.mxu1 %vm408_vm1, %v7305_v59 }
 0xf4a   : > { %v9654_v18 = vadd.f32 %v9603_v14, %v7996_v49  ;;  %v7275_v20 = vpop.f32.mrb[63].mxu0  ;;  %9607 = vmatmul.mubr.msk.bf16.vlgmr.msra.gmra.mrb[56].mxu1 %vm408_vm1, %v7306_v9  ;;  %v7301_v58 = vmax.f32 %v9652_v54, 0.0  ;;  %v7505_v9 = vld [vmem:[%s11793_s10] sm:$0xff]  ;;  %v7508_v54 = vld [vmem:[%s11793_s10 + $0x18] sm:$0xff] }
 0xf4b   : > { %v9655_v56 = vadd.f32 %v7996_v49, %v7275_v20  ;;  %v7299_v60 = vmax.f32 %v9653_v39, 0.0  ;;  %v11838_v49 = vmax.f32 %v11426_v61, 0.0  ;;  %v8076_v61 = vld [vmem:[%s11792_s9] ss:$0 sm:$0xff] }
 0xf4c   : > { %v7302_v21 = vmax.f32 %v9654_v18, 0.0  ;;  %v7506_v18 = vld [vmem:[%s11793_s10 + $0x8] sm:$0xff] }
 0xf4d   : > { %v7300_v29 = vmax.f32 %v9655_v56, 0.0 }
 0xf4e   : > { %v7308_v41 = vpack.c.bf16 %v7302_v21, %v7301_v58 }
 0xf4f   : > { %v7307_v47 = vpack.c.bf16 %v7300_v29, %v7299_v60  ;;  %v7511_v29 = vld [vmem:[%s11793_s10 + $0x30] sm:$0xff] }
 0xf51   : > { %9610 = vmatprep.mubr.msk.bf16.mxu1 %vm408_vm1, %v7307_v47 }
 0xf52   : > { %9611 = vmatmul.mubr.msk.bf16.gmra.mrb[60].mxu1 %vm408_vm1, %v7308_v41 }
0x101d   : > { %v9608_v40 = vpop.f32.mrb[56].mxu1 }
0x101e   : > { %v7375_v30 = vadd.f32 %v9608_v40, %v8071_v53  ;;  %v7366_v55 = vpop.f32.mrb[57].mxu1 }
0x101f   : > { %v7367_v57 = vadd.f32 %v8071_v53, %v7366_v55  ;;  %v9609_v36 = vpop.f32.mrb[58].mxu1  ;;  %v7512_v55 = vld [vmem:[%s11793_s10 + $0x38] sm:$0xff] }
0x1020   : > { %v7399_v2 = vadd.f32 %v7375_v30, %v5744_v50  ;;  %v7378_v62 = vadd.f32 %v9609_v36, %v8071_v53  ;;  %v7369_v33 = vpop.f32.mrb[59].mxu1 }
0x1021   : > { %v7397_v63 = vadd.f32 %v7367_v57, %v5742_v51  ;;  %v7370_v0 = vadd.f32 %v8071_v53, %v7369_v33 }
0x1022   : > { %v7400_v5 = vadd.f32 %v7378_v62, %v11835_v1  ;;  %v7407_v17 = vmax.f32 %v7399_v2, 0.0  ;;  %v7510_v62 = vld [vmem:[%s11793_s10 + $0x28] sm:$0xff] }
0x1023   : > { %v7398_v13 = vadd.f32 %v7370_v0, %v11836_v10  ;;  %v7405_v35 = vmax.f32 %v7397_v63, 0.0 }
0x1024   : > { %v7408_v19 = vmax.f32 %v7400_v5, 0.0 }
0x1025   : > { %v7406_v27 = vmax.f32 %v7398_v13, 0.0  ;;  %v9612_v23 = vpop.f32.mrb[60].mxu1 }
0x1026   : > { %v7415_v24 = vpack.c.bf16 %v7408_v19, %v7407_v17  ;;  %v7391_v32 = vadd.f32 %v9612_v23, %v8071_v53  ;;  %v7382_v50 = vpop.f32.mrb[61].mxu1 }
0x1027   : > { %v7414_v25 = vpack.c.bf16 %v7406_v27, %v7405_v35  ;;  %v7383_v34 = vadd.f32 %v8071_v53, %v7382_v50  ;;  %v9613_v15 = vpop.f32.mrb[62].mxu1 }
0x1028   : > { %v7403_v51 = vadd.f32 %v7391_v32, %v11837_v44  ;;  %v7394_v28 = vadd.f32 %v9613_v15, %v8071_v53  ;;  %v7385_v45 = vpop.f32.mrb[63].mxu1 }
0x1029   : > { %v7401_v22 = vadd.f32 %v7383_v34, %v11838_v49  ;;  %v7386_v8 = vadd.f32 %v8071_v53, %v7385_v45  ;;  %9616 = vmatprep.mubr.msk.bf16.mxu0 %vm408_vm1, %v7414_v25  ;;  %v7509_v53 = vld [vmem:[%s11793_s10 + $0x20] sm:$0xff] }
0x102a   : > { %v7404_v48 = vadd.f32 %v7394_v28, %v11839_v43  ;;  %9617 = vmatmul.mubr.msk.bf16.vlgmr.msra.gmra.mrb[64].mxu0 %vm408_vm1, %v7415_v24  ;;  %v7411_v4 = vmax.f32 %v7403_v51, 0.0 }
0x102b   : > { %v7402_v12 = vadd.f32 %v7386_v8, %v11840_v11  ;;  %v7409_v38 = vmax.f32 %v7401_v22, 0.0 }
0x102c   : > { %v7412_v3 = vmax.f32 %v7404_v48, 0.0 }
0x102d   : > { %v7410_v37 = vmax.f32 %v7402_v12, 0.0 }
0x102e   : > { %v7417_v42 = vpack.c.bf16 %v7412_v3, %v7411_v4 }
0x102f   : > { %v7416_v31 = vpack.c.bf16 %v7410_v37, %v7409_v38 }
0x1031   : > { %9620 = vmatprep.mubr.msk.bf16.mxu0 %vm408_vm1, %v7416_v31 }
0x1032   : > { %9621 = vmatmul.mubr.msk.bf16.gmra.mrb[68].mxu0 %vm408_vm1, %v7417_v42 }
0x10fd   : > { %v9618_v7 = vpop.f32.mrb[64].mxu0 }
0x10fe   : > { %v7483_v6 = vadd.f32 %v9618_v7, %v8076_v61  ;;  %v7474_v52 = vpop.f32.mrb[65].mxu0 }
0x10ff   : > { %v7475_v59 = vadd.f32 %v8076_v61, %v7474_v52  ;;  %v9619_v16 = vpop.f32.mrb[66].mxu0 }
0x1100   : > { %v7515_v26 = vadd.f32 %v7507_v46, %v7483_v6  ;;  %v7486_v39 = vadd.f32 %v9619_v16, %v8076_v61  ;;  %v7477_v14 = vpop.f32.mrb[67].mxu0 }
0x1101   : > { %v7513_v20 = vadd.f32 %v7505_v9, %v7475_v59  ;;  %v7478_v56 = vadd.f32 %v8076_v61, %v7477_v14 }
0x1102   : > { %7524 = vst.msk [vmem:[%s11744_s14 + $0x10] sm:$0xff] %vm7521_vm3, %v7515_v26  ;;  %v7516_v58 = vadd.f32 %v7508_v54, %v7486_v39 }
0x1103   : > { %7522 = vst.msk [vmem:[%s11744_s14] sm:$0xff] %vm7521_vm3, %v7513_v20  ;;  %v7514_v21 = vadd.f32 %v7506_v18, %v7478_v56 }
0x1104   : > { %7525 = vst.msk [vmem:[%s11744_s14 + $0x18] sm:$0xff] %vm7521_vm3, %v7516_v58 }
0x1105   : > { %7523 = vst.msk [vmem:[%s11744_s14 + $0x8] sm:$0xff] %vm7521_vm3, %v7514_v21  ;;  %v9622_v60 = vpop.f32.mrb[68].mxu0 }
0x1106   : > { %v7499_v41 = vadd.f32 %v9622_v60, %v8076_v61  ;;  %v7490_v47 = vpop.f32.mrb[69].mxu0 }
0x1107   : > { %v7491_v40 = vadd.f32 %v8076_v61, %v7490_v47  ;;  %v9623_v30 = vpop.f32.mrb[70].mxu0 }
0x1108   : > { %v7519_v57 = vadd.f32 %v7511_v29, %v7499_v41  ;;  %v7502_v36 = vadd.f32 %v9623_v30, %v8076_v61  ;;  %v7493_v2 = vpop.f32.mrb[71].mxu0 }
0x1109   : > { %v7517_v33 = vadd.f32 %v7509_v53, %v7491_v40  ;;  %v7494_v63 = vadd.f32 %v8076_v61, %v7493_v2 }
0x110a   : > { %7528 = vst.msk [vmem:[%s11744_s14 + $0x30] sm:$0xff] %vm7521_vm3, %v7519_v57  ;;  %v7520_v0 = vadd.f32 %v7512_v55, %v7502_v36 }
0x110b   : > { %7526 = vst.msk [vmem:[%s11744_s14 + $0x20] sm:$0xff] %vm7521_vm3, %v7517_v33  ;;  %v7518_v1 = vadd.f32 %v7510_v62, %v7494_v63 }
0x110c   : > { %7529 = vst.msk [vmem:[%s11744_s14 + $0x38] sm:$0xff] %vm7521_vm3, %v7520_v0 }
0x110d   : > { %7527 = vst.msk [vmem:[%s11744_s14 + $0x28] sm:$0xff] %vm7521_vm3, %v7518_v1 }
0x110e PF: > { %s21_s17 = sadd.s32 1, %s10043_s17  }
0x110f   : > { %p18_p4 = scmp.ge.s32.totalorder %s21_s17, 4  }
0x1111   :  { %20 = sbr.rel (!%p18_p4) target bundleno = 1 (0x1), region = 152 }

</bundles_post_ra>
